<compile_context>
chip_gen: v7x
topology: tpu7x:2x2x1
jax: 0.10.0
libtpu: 0.0.40
codegen_flags: <defaults>
</compile_context>

<pallas_src>
import math

import jax
import jax.numpy as jnp
from jax import lax
from jax.experimental import pallas as pl
from jax.experimental.pallas import tpu as pltpu

# ---- constants mirroring the PyTorch module ---------------------------------
NODES = 3                    # nodes_per_graph == qubit_number
EMB = 2 ** NODES             # 8  (embedding_size)
N_LAYERS = 6
N_STEPS = 2 * N_LAYERS       # 12 evolution steps (j, h)
FEAT_DIM = 4                 # x_data_proc.shape[2]  (chosen small)
IN_LEN = 2 * EMB * EMB       # 128 == inputs.shape[1]
DEC_H1 = 6 * EMB             # 48
DEC_H2 = 4 * EMB             # 32
BLK = 2 * EMB                # 16  (real embedding of a complex 8x8)
BD = N_STEPS * BLK           # 192 (block-diagonal packing of all 12 steps)

# Scaling-and-squaring expm: degree-10 Taylor via Paterson–Stockmeyer + 4 squarings.
# With ||eta*H|| << 1 the 2^-4 prescale keeps the Taylor remainder far below f32 eps.
EXPM_TAYLOR_DEGREE = 10
EXPM_SQUARINGS = 4
_INV_FACT = [1.0 / math.factorial(k) for k in range(EXPM_TAYLOR_DEGREE + 1)]

f32 = jnp.float32

# ---- packed-parameter layout (shared by host packing and kernel slicing) ------
PACK_W = 64                                         # lane width of the packed buffer

_ENC_NAMES = ['e_w1r', 'e_w1i', 'e_b1r', 'e_b1i',
              'e_w2r', 'e_w2i', 'e_b2r', 'e_b2i',
              'e_w3r', 'e_w3i', 'e_b3r', 'e_b3i']
_ENC_SHAPES = [(FEAT_DIM, 16), (FEAT_DIM, 16), (1, 16), (1, 16),
               (16, 16), (16, 16), (1, 16), (1, 16),
               (16, 2), (16, 2), (1, 2), (1, 2)]
_DEC_NAMES = ['d_w1r', 'd_w1i', 'd_b1r', 'd_b1i',
              'd_w2r', 'd_w2i', 'd_b2r', 'd_b2i',
              'd_w3r', 'd_w3i', 'd_b3r', 'd_b3i']
_DEC_SHAPES = [(1, DEC_H1), (1, DEC_H1), (1, DEC_H1), (1, DEC_H1),
               (DEC_H1, DEC_H2), (DEC_H1, DEC_H2), (1, DEC_H2), (1, DEC_H2),
               (DEC_H2, 2), (DEC_H2, 2), (1, 2), (1, 2)]

_PACK_ENTRIES = ([('fr', (NODES, FEAT_DIM)), ('fi', (NODES, FEAT_DIM))]
                 + list(zip(_ENC_NAMES, _ENC_SHAPES))
                 + list(zip(_DEC_NAMES, _DEC_SHAPES)))


def _make_layout(entries):
    layout = {}
    r = 0
    for name, (nr, nc) in entries:
        layout[name] = (r, nr, nc)
        r += ((nr + 7) // 8) * 8        # 8-row alignment -> cheap sublane slices
    return layout, r


PACK_LAYOUT, PACK_ROWS = _make_layout(_PACK_ENTRIES)


# ---- small helpers used inside the kernel ------------------------------------
def _dot(a, b):
    return jnp.dot(a, b, preferred_element_type=jnp.float32)


def _cmatmul(ar, ai, br, bi):
    # (ar + i ai) @ (br + i bi)
    return _dot(ar, br) - _dot(ai, bi), _dot(ar, bi) + _dot(ai, br)


def _crelu(r, i):
    # complex_activation: ReLU(real) + i ReLU(imag)
    return jnp.maximum(r, 0.0), jnp.maximum(i, 0.0)


# ---- the single fused kernel ---------------------------------------------------
def _fused_kernel(pack_ref, mbd_ref, qbd_ref, qhs_ref, out_ref):
    def P(name):
        r0, nr, nc = PACK_LAYOUT[name]
        return pack_ref[r0:r0 + nr, 0:nc]

    # ---------- encoder: complex MLP  (3,F) -> (3,2) ----------
    hr, hi = _cmatmul(P('fr'), P('fi'), P('e_w1r'), P('e_w1i'))
    hr, hi = _crelu(hr + P('e_b1r'), hi + P('e_b1i'))
    hr, hi = _cmatmul(hr, hi, P('e_w2r'), P('e_w2i'))
    hr, hi = _crelu(hr + P('e_b2r'), hi + P('e_b2i'))
    er, ei = _cmatmul(hr, hi, P('e_w3r'), P('e_w3i'))
    er = er + P('e_b3r')                     # (3,2) encoder output, real part
    ei = ei + P('e_b3i')                     # (3,2) encoder output, imag part

    # ---------- kron chain  s0[k] = prod_i emb[i, bit_i(k)]  +  normalization ----------
    k_idx = lax.broadcasted_iota(jnp.int32, (EMB, 2), 0)    # state index 0..7
    j_idx = lax.broadcasted_iota(jnp.int32, (EMB, 2), 1)    # component 0/1
    sr = jnp.ones((EMB, 1), f32)
    si = jnp.zeros((EMB, 1), f32)
    for i in range(NODES):                                  # unrolled (3 iters)
        bit = (k_idx >> i) & 1
        sel = (bit == j_idx).astype(f32)                    # (8,2) one-hot selector
        vr = jnp.sum(sel * er[i:i + 1, :], axis=-1, keepdims=True)   # (8,1)
        vi = jnp.sum(sel * ei[i:i + 1, :], axis=-1, keepdims=True)
        sr, si = sr * vr - si * vi, sr * vi + si * vr
    # construct_low_energy_state: term / sqrt(|<term|term>|)   (no epsilon, as in reference)
    rnorm = lax.rsqrt(jnp.sum(sr * sr + si * si))
    sr = sr * rnorm
    si = si * rnorm
    s16 = jnp.concatenate([sr, si], axis=0)                 # (16,1) real-embedded state column

    # ---------- phase 1: ALL 12 expm(-i*eta*H) at once, block-diag 192x192 ----------
    # Paterson–Stockmeyer degree-10 Taylor:
    #   T = I + r0 + m^5/5! + m^5 @ r1
    #   r0 = m + m^2/2! + m^3/3! + m^4/4!
    #   r1 = m/6! + m^2/7! + m^3/8! + m^4/9! + m^5/10!
    m = mbd_ref[...]                  # block-diag real-embed(-i*eta_t*H_{h(t)} * 2^-s)
    m2 = _dot(m, m)
    m3 = _dot(m2, m)
    m4 = _dot(m2, m2)                 # depends only on m2 -> pipelines with m3
    m5 = _dot(m3, m2)
    C = _INV_FACT
    r0 = m + C[2] * m2 + C[3] * m3 + C[4] * m4
    r1 = C[6] * m + C[7] * m2 + C[8] * m3 + C[9] * m4 + C[10] * m5

    rows = lax.broadcasted_iota(jnp.int32, (BD, BD), 0)
    cols = lax.broadcasted_iota(jnp.int32, (BD, BD), 1)
    eye_bd = (rows == cols).astype(f32)

    acc = eye_bd + r0 + C[5] * m5 + _dot(m5, r1)            # degree-10 Taylor of m*2^-s
    for _ in range(EXPM_SQUARINGS):                          # unrolled repeated squaring
        acc = _dot(acc, acc)

    # sandwich: U_t = q_{t//2} @ expm_t @ q_{t//2}^H for all t, via the STACKED q^H.
    # u_stack[t*16:(t+1)*16, :] == U_t   (aligned sublane row-block slices).
    u_stack = _dot(qbd_ref[...], _dot(acc, qhs_ref[...]))    # (192,16)

    # ---------- phase 2: tree-compose P = U_11 @ ... @ U_0, then one mat-vec ----------
    blocks = [u_stack[t * BLK:(t + 1) * BLK, :] for t in range(N_STEPS)]
    while len(blocks) > 1:                                   # depth-4 pairwise tree
        nxt = [_dot(blocks[a + 1], blocks[a]) for a in range(0, len(blocks) - 1, 2)]
        if len(blocks) % 2:
            nxt.append(blocks[-1])
        blocks = nxt
    p = blocks[0]
    s_fin = _dot(p, s16)                                     # (16,1) final state [Re; Im]

    # ---------- product_state(x).sum(axis=1) / x.shape[1]  ->  complex scalar ----------
    xr = jnp.sum(s_fin[:EMB, :]) * (1.0 / EMB)
    xi = jnp.sum(s_fin[EMB:, :]) * (1.0 / EMB)

    # ---------- decoder: complex Linear(1,48)+cReLU+Linear(48,32)+cReLU+Linear(32,2) ----------
    h1r = xr * P('d_w1r') - xi * P('d_w1i') + P('d_b1r')
    h1i = xr * P('d_w1i') + xi * P('d_w1r') + P('d_b1i')
    h1r, h1i = _crelu(h1r, h1i)
    h2r, h2i = _cmatmul(h1r, h1i, P('d_w2r'), P('d_w2i'))
    h2r, h2i = _crelu(h2r + P('d_b2r'), h2i + P('d_b2i'))
    h3r, h3i = _cmatmul(h2r, h2i, P('d_w3r'), P('d_w3i'))
    h3r = h3r + P('d_b3r')
    h3i = h3i + P('d_b3i')

    # (h * h.conj()).real
    out_ref[...] = h3r * h3r + h3i * h3i


# ---- pallas_call wrapper --------------------------------------------------------
_VMEM = pl.BlockSpec(memory_space=pltpu.MemorySpace.VMEM)


def fused_call(pack, m_bd, q_bd, qh_stack):
    cost = pl.CostEstimate(
        flops=130_000_000,          # 9 x (2*192^3) block-diag matmuls dominate
        transcendentals=1,
        bytes_accessed=410_000,
    )
    return pl.pallas_call(
        _fused_kernel,
        out_shape=jax.ShapeDtypeStruct((1, 2), f32),
        in_specs=[_VMEM] * 4,
        out_specs=_VMEM,
        compiler_params=pltpu.CompilerParams(),
        cost_estimate=cost,
    )(pack, m_bd, q_bd, qh_stack)


# ---- parameter setup (deterministic, synthetic) -------------------------------
def init_params(key):
    keys = jax.random.split(key, 8)
    kit = iter(keys)

    def clin(kin, kout):
        # complex Linear: store W^T (in,out) and b (1,out) as real/imag float32
        k1, k2, k3, k4 = jax.random.split(next(kit), 4)
        s = float(kin) ** -0.5
        return (s * jax.random.normal(k1, (kin, kout), f32),
                s * jax.random.normal(k2, (kin, kout), f32),
                s * jax.random.normal(k3, (1, kout), f32),
                s * jax.random.normal(k4, (1, kout), f32))

    enc = clin(FEAT_DIM, 16) + clin(16, 16) + clin(16, 2)
    dec = clin(1, DEC_H1) + clin(DEC_H1, DEC_H2) + clin(DEC_H2, 2)
    # qml TorchLayer weights: shape (1, n_layers*2 + n_layers*emb*emb*2)
    qweights = 0.1 * jax.random.normal(
        next(kit), (1, 2 * N_LAYERS + N_LAYERS * EMB * EMB * 2), f32)
    return enc, dec, qweights


# ---- plain-JAX glue (parameter setup / data layout only) ------------------------
def _cinv(a_complex):
    # complex matrix inverse via the exact real 2Nx2N block form
    x = jnp.real(a_complex)
    y = jnp.imag(a_complex)
    b = jnp.block([[x, -y], [y, x]])
    binv = jnp.linalg.inv(b)
    return (binv[:EMB, :EMB] + 1j * binv[EMB:, :EMB]).astype(jnp.complex64)


def _real_embed(c):
    # complex (..., n, n) -> real (..., 2n, 2n) embedding [[Re, -Im], [Im, Re]]
    cr = jnp.real(c).astype(f32)
    ci = jnp.imag(c).astype(f32)
    top = jnp.concatenate([cr, -ci], axis=-1)
    bot = jnp.concatenate([ci, cr], axis=-1)
    return jnp.concatenate([top, bot], axis=-2)


def _block_diag(blocks):
    # (T, n, n) -> (T*n, T*n) block-diagonal
    t, n, _ = blocks.shape
    eye_t = jnp.eye(t, dtype=blocks.dtype)
    return jnp.einsum('tij,ts->tisj', blocks, eye_t).reshape(t * n, t * n)


def pack_inputs(fr, fi, enc, dec):
    # pack all small feature / encoder / decoder arrays into one lane-dense buffer
    arrays = {'fr': fr, 'fi': fi}
    arrays.update(zip(_ENC_NAMES, enc))
    arrays.update(zip(_DEC_NAMES, dec))
    buf = jnp.zeros((PACK_ROWS, PACK_W), f32)
    for name, _ in _PACK_ENTRIES:
        r0, _, _ = PACK_LAYOUT[name]
        buf = lax.dynamic_update_slice(buf, arrays[name].astype(f32), (r0, 0))
    return buf


# ---- full forward ---------------------------------------------------------------
@jax.jit
def quantum_iso_forward(inputs_c, features_c, enc, dec, qweights):
    # qlayer parameter setup (glue): coeffs and Cayley-transform unitaries q_j.
    # Kept in plain JAX because it needs a matrix inverse.
    coeffs = qweights[:, :2 * N_LAYERS].reshape(N_LAYERS, 2)
    As = qweights[:, 2 * N_LAYERS:].reshape(N_LAYERS, 2, EMB, EMB)
    eye_c = jnp.eye(EMB, dtype=jnp.complex64)
    qs = []
    for j in range(N_LAYERS):
        A = As[j, 0].astype(jnp.complex64) + 1j * As[j, 1].astype(jnp.complex64)
        A = A + jnp.conj(A).T
        qs.append((A - 1j * eye_c) @ _cinv(A + 1j * eye_c))
    q = jnp.stack(qs)                                        # (6,8,8) complex64
    qh = jnp.conj(jnp.transpose(q, (0, 2, 1)))

    # Hamiltonians: inputs[0,:].reshape(2, 8, 8)  (used as-is, like the reference)
    H = inputs_c[0].reshape(2, EMB, EMB).astype(jnp.complex64)

    # Per-step (t = 2*j + h) operators; heavy math happens inside the Pallas kernel.
    etas = coeffs.reshape(N_STEPS)                           # eta_t = coeffs[t//2, t%2]
    h_idx = jnp.tile(jnp.arange(2), N_LAYERS)                # [0,1,0,1,...]
    q_idx = jnp.repeat(jnp.arange(N_LAYERS), 2)              # [0,0,1,1,...]
    scale = f32(2.0 ** (-EXPM_SQUARINGS))                    # kept in sync with kernel
    m_steps = (-1j) * ((etas * scale)[:, None, None] * H[h_idx])   # (12,8,8) complex
    m_bd = _block_diag(_real_embed(m_steps))                 # (192,192) f32
    q_bd = _block_diag(_real_embed(q[q_idx]))                # (192,192) f32
    qh_stack = _real_embed(qh[q_idx]).reshape(BD, BLK)       # (192,16)  f32 (stacked q^H)

    pack = pack_inputs(jnp.real(features_c).astype(f32),
                       jnp.imag(features_c).astype(f32), enc, dec)

    # Single fused Pallas kernel: encoder -> kron/normalize -> 12x evolution ->
    # mean -> decoder -> |h|^2
    return fused_call(pack, m_bd, q_bd, qh_stack)            # (1, 2) float32


# ---- main -----------------------------------------------------------------------
if __name__ == "__main__":
    key = jax.random.PRNGKey(0)
    k_in, k_feat, k_params = jax.random.split(key, 3)
    enc, dec, qweights = init_params(k_params)

    k_ir, k_ii = jax.random.split(k_in)
    inputs_c = (0.3 * jax.random.normal(k_ir, (1, IN_LEN), f32)
                + 1j * 0.3 * jax.random.normal(k_ii, (1, IN_LEN), f32)
                ).astype(jnp.complex64)                      # (1, 128)

    k_fr, k_fi = jax.random.split(k_feat)
    features_c = (jax.random.normal(k_fr, (NODES, FEAT_DIM), f32)
                  + 1j * jax.random.normal(k_fi, (NODES, FEAT_DIM), f32)
                  ).astype(jnp.complex64)                    # (3, 4)

    out = quantum_iso_forward(inputs_c, features_c, enc, dec, qweights)
    out = jax.block_until_ready(out)
    assert out.shape == (1, 2)
    assert bool(jnp.all(jnp.isfinite(out)))
    print("KERNEL_OK")
</pallas_src>

<mosaic_0001>
module attributes {stable_mosaic.version = 11 : i64} {
  func.func @_fused_kernel(%arg0: memref<368x64xf32, #tpu.memory_space<vmem>>, %arg1: memref<192x192xf32, #tpu.memory_space<vmem>>, %arg2: memref<192x192xf32, #tpu.memory_space<vmem>>, %arg3: memref<192x16xf32, #tpu.memory_space<vmem>>, %arg4: memref<1x2xf32, #tpu.memory_space<vmem>>) attributes {dimension_semantics = [], scalar_prefetch = 0 : i64, scratch_operands = 0 : i64, tpu.core_type = #tpu.core_type<tc>} {
    %c0 = arith.constant 0 : index
    %c0_0 = arith.constant 0 : index
    %0 = vector.load %arg0[%c0, %c0_0] : memref<368x64xf32, #tpu.memory_space<vmem>>, vector<3x4xf32>
    %c8 = arith.constant 8 : index
    %c0_1 = arith.constant 0 : index
    %1 = vector.load %arg0[%c8, %c0_1] : memref<368x64xf32, #tpu.memory_space<vmem>>, vector<3x4xf32>
    %c16 = arith.constant 16 : index
    %c0_2 = arith.constant 0 : index
    %2 = vector.load %arg0[%c16, %c0_2] : memref<368x64xf32, #tpu.memory_space<vmem>>, vector<4x16xf32>
    %c24 = arith.constant 24 : index
    %c0_3 = arith.constant 0 : index
    %3 = vector.load %arg0[%c24, %c0_3] : memref<368x64xf32, #tpu.memory_space<vmem>>, vector<4x16xf32>
    %cst = arith.constant dense<0.000000e+00> : vector<3x16xf32>
    %4 = tpu.matmul %0, %2, %cst {dimension_numbers = #tpu.dot_dimension_numbers<[1], [0], [0], [1], [0, 0, 1, 1], [], []>} : vector<3x4xf32>, vector<4x16xf32>, vector<3x16xf32> -> vector<3x16xf32>
    %cst_4 = arith.constant dense<0.000000e+00> : vector<3x16xf32>
    %5 = tpu.matmul %1, %3, %cst_4 {dimension_numbers = #tpu.dot_dimension_numbers<[1], [0], [0], [1], [0, 0, 1, 1], [], []>} : vector<3x4xf32>, vector<4x16xf32>, vector<3x16xf32> -> vector<3x16xf32>
    %6 = arith.subf %4, %5 : vector<3x16xf32>
    %cst_5 = arith.constant dense<0.000000e+00> : vector<3x16xf32>
    %7 = tpu.matmul %0, %3, %cst_5 {dimension_numbers = #tpu.dot_dimension_numbers<[1], [0], [0], [1], [0, 0, 1, 1], [], []>} : vector<3x4xf32>, vector<4x16xf32>, vector<3x16xf32> -> vector<3x16xf32>
    %cst_6 = arith.constant dense<0.000000e+00> : vector<3x16xf32>
    %8 = tpu.matmul %1, %2, %cst_6 {dimension_numbers = #tpu.dot_dimension_numbers<[1], [0], [0], [1], [0, 0, 1, 1], [], []>} : vector<3x4xf32>, vector<4x16xf32>, vector<3x16xf32> -> vector<3x16xf32>
    %9 = arith.addf %7, %8 : vector<3x16xf32>
    %c32 = arith.constant 32 : index
    %c0_7 = arith.constant 0 : index
    %10 = vector.load %arg0[%c32, %c0_7] : memref<368x64xf32, #tpu.memory_space<vmem>>, vector<1x16xf32>
    %11 = vector.broadcast %10 : vector<1x16xf32> to vector<3x16xf32>
    %12 = arith.addf %6, %11 : vector<3x16xf32>
    %c40 = arith.constant 40 : index
    %c0_8 = arith.constant 0 : index
    %13 = vector.load %arg0[%c40, %c0_8] : memref<368x64xf32, #tpu.memory_space<vmem>>, vector<1x16xf32>
    %14 = vector.broadcast %13 : vector<1x16xf32> to vector<3x16xf32>
    %15 = arith.addf %9, %14 : vector<3x16xf32>
    %cst_9 = arith.constant 0.000000e+00 : f32
    %16 = vector.broadcast %cst_9 : f32 to vector<3x16xf32>
    %17 = arith.maximumf %12, %16 : vector<3x16xf32>
    %cst_10 = arith.constant 0.000000e+00 : f32
    %18 = vector.broadcast %cst_10 : f32 to vector<3x16xf32>
    %19 = arith.maximumf %15, %18 : vector<3x16xf32>
    %c48 = arith.constant 48 : index
    %c0_11 = arith.constant 0 : index
    %20 = vector.load %arg0[%c48, %c0_11] : memref<368x64xf32, #tpu.memory_space<vmem>>, vector<16x16xf32>
    %c64 = arith.constant 64 : index
    %c0_12 = arith.constant 0 : index
    %21 = vector.load %arg0[%c64, %c0_12] : memref<368x64xf32, #tpu.memory_space<vmem>>, vector<16x16xf32>
    %cst_13 = arith.constant dense<0.000000e+00> : vector<3x16xf32>
    %22 = tpu.matmul %17, %20, %cst_13 {dimension_numbers = #tpu.dot_dimension_numbers<[1], [0], [0], [1], [0, 0, 1, 1], [], []>} : vector<3x16xf32>, vector<16x16xf32>, vector<3x16xf32> -> vector<3x16xf32>
    %cst_14 = arith.constant dense<0.000000e+00> : vector<3x16xf32>
    %23 = tpu.matmul %19, %21, %cst_14 {dimension_numbers = #tpu.dot_dimension_numbers<[1], [0], [0], [1], [0, 0, 1, 1], [], []>} : vector<3x16xf32>, vector<16x16xf32>, vector<3x16xf32> -> vector<3x16xf32>
    %24 = arith.subf %22, %23 : vector<3x16xf32>
    %cst_15 = arith.constant dense<0.000000e+00> : vector<3x16xf32>
    %25 = tpu.matmul %17, %21, %cst_15 {dimension_numbers = #tpu.dot_dimension_numbers<[1], [0], [0], [1], [0, 0, 1, 1], [], []>} : vector<3x16xf32>, vector<16x16xf32>, vector<3x16xf32> -> vector<3x16xf32>
    %cst_16 = arith.constant dense<0.000000e+00> : vector<3x16xf32>
    %26 = tpu.matmul %19, %20, %cst_16 {dimension_numbers = #tpu.dot_dimension_numbers<[1], [0], [0], [1], [0, 0, 1, 1], [], []>} : vector<3x16xf32>, vector<16x16xf32>, vector<3x16xf32> -> vector<3x16xf32>
    %27 = arith.addf %25, %26 : vector<3x16xf32>
    %c80 = arith.constant 80 : index
    %c0_17 = arith.constant 0 : index
    %28 = vector.load %arg0[%c80, %c0_17] : memref<368x64xf32, #tpu.memory_space<vmem>>, vector<1x16xf32>
    %29 = vector.broadcast %28 : vector<1x16xf32> to vector<3x16xf32>
    %30 = arith.addf %24, %29 : vector<3x16xf32>
    %c88 = arith.constant 88 : index
    %c0_18 = arith.constant 0 : index
    %31 = vector.load %arg0[%c88, %c0_18] : memref<368x64xf32, #tpu.memory_space<vmem>>, vector<1x16xf32>
    %32 = vector.broadcast %31 : vector<1x16xf32> to vector<3x16xf32>
    %33 = arith.addf %27, %32 : vector<3x16xf32>
    %cst_19 = arith.constant 0.000000e+00 : f32
    %34 = vector.broadcast %cst_19 : f32 to vector<3x16xf32>
    %35 = arith.maximumf %30, %34 : vector<3x16xf32>
    %cst_20 = arith.constant 0.000000e+00 : f32
    %36 = vector.broadcast %cst_20 : f32 to vector<3x16xf32>
    %37 = arith.maximumf %33, %36 : vector<3x16xf32>
    %c96 = arith.constant 96 : index
    %c0_21 = arith.constant 0 : index
    %38 = vector.load %arg0[%c96, %c0_21] : memref<368x64xf32, #tpu.memory_space<vmem>>, vector<16x2xf32>
    %c112 = arith.constant 112 : index
    %c0_22 = arith.constant 0 : index
    %39 = vector.load %arg0[%c112, %c0_22] : memref<368x64xf32, #tpu.memory_space<vmem>>, vector<16x2xf32>
    %cst_23 = arith.constant dense<0.000000e+00> : vector<3x2xf32>
    %40 = tpu.matmul %35, %38, %cst_23 {dimension_numbers = #tpu.dot_dimension_numbers<[1], [0], [0], [1], [0, 0, 1, 1], [], []>} : vector<3x16xf32>, vector<16x2xf32>, vector<3x2xf32> -> vector<3x2xf32>
    %cst_24 = arith.constant dense<0.000000e+00> : vector<3x2xf32>
    %41 = tpu.matmul %37, %39, %cst_24 {dimension_numbers = #tpu.dot_dimension_numbers<[1], [0], [0], [1], [0, 0, 1, 1], [], []>} : vector<3x16xf32>, vector<16x2xf32>, vector<3x2xf32> -> vector<3x2xf32>
    %42 = arith.subf %40, %41 : vector<3x2xf32>
    %cst_25 = arith.constant dense<0.000000e+00> : vector<3x2xf32>
    %43 = tpu.matmul %35, %39, %cst_25 {dimension_numbers = #tpu.dot_dimension_numbers<[1], [0], [0], [1], [0, 0, 1, 1], [], []>} : vector<3x16xf32>, vector<16x2xf32>, vector<3x2xf32> -> vector<3x2xf32>
    %cst_26 = arith.constant dense<0.000000e+00> : vector<3x2xf32>
    %44 = tpu.matmul %37, %38, %cst_26 {dimension_numbers = #tpu.dot_dimension_numbers<[1], [0], [0], [1], [0, 0, 1, 1], [], []>} : vector<3x16xf32>, vector<16x2xf32>, vector<3x2xf32> -> vector<3x2xf32>
    %45 = arith.addf %43, %44 : vector<3x2xf32>
    %c128 = arith.constant 128 : index
    %c0_27 = arith.constant 0 : index
    %46 = vector.load %arg0[%c128, %c0_27] : memref<368x64xf32, #tpu.memory_space<vmem>>, vector<1x2xf32>
    %47 = vector.broadcast %46 : vector<1x2xf32> to vector<3x2xf32>
    %48 = arith.addf %42, %47 : vector<3x2xf32>
    %c136 = arith.constant 136 : index
    %c0_28 = arith.constant 0 : index
    %49 = vector.load %arg0[%c136, %c0_28] : memref<368x64xf32, #tpu.memory_space<vmem>>, vector<1x2xf32>
    %50 = vector.broadcast %49 : vector<1x2xf32> to vector<3x2xf32>
    %51 = arith.addf %45, %50 : vector<3x2xf32>
    %52 = tpu.iota {dimensions = array<i32: 0>} : vector<8x2xi32>
    %53 = tpu.iota {dimensions = array<i32: 1>} : vector<8x2xi32>
    %cst_29 = arith.constant 1.000000e+00 : f32
    %54 = vector.broadcast %cst_29 : f32 to vector<8x1xf32>
    %cst_30 = arith.constant 0.000000e+00 : f32
    %55 = vector.broadcast %cst_30 : f32 to vector<8x1xf32>
    %c0_i32 = arith.constant 0 : i32
    %56 = vector.broadcast %c0_i32 : i32 to vector<8x2xi32>
    %57 = arith.shrsi %52, %56 : vector<8x2xi32>
    %c1_i32 = arith.constant 1 : i32
    %58 = vector.broadcast %c1_i32 : i32 to vector<8x2xi32>
    %59 = arith.andi %57, %58 : vector<8x2xi32>
    %60 = arith.cmpi eq, %59, %53 : vector<8x2xi32>
    %61 = arith.extui %60 : vector<8x2xi1> to vector<8x2xi32>
    %62 = arith.sitofp %61 : vector<8x2xi32> to vector<8x2xf32>
    %63 = vector.extract_strided_slice %48 {offsets = [0, 0], sizes = [1, 2], strides = [1, 1]} : vector<3x2xf32> to vector<1x2xf32>
    %64 = vector.broadcast %63 : vector<1x2xf32> to vector<8x2xf32>
    %65 = arith.mulf %62, %64 : vector<8x2xf32>
    %cst_31 = arith.constant dense<0.000000e+00> : vector<8xf32>
    %66 = vector.multi_reduction <add>, %65, %cst_31 [1] : vector<8x2xf32> to vector<8xf32>
    %67 = vector.shape_cast %66 : vector<8xf32> to vector<8x1xf32>
    %68 = vector.extract_strided_slice %51 {offsets = [0, 0], sizes = [1, 2], strides = [1, 1]} : vector<3x2xf32> to vector<1x2xf32>
    %69 = vector.broadcast %68 : vector<1x2xf32> to vector<8x2xf32>
    %70 = arith.mulf %62, %69 : vector<8x2xf32>
    %cst_32 = arith.constant dense<0.000000e+00> : vector<8xf32>
    %71 = vector.multi_reduction <add>, %70, %cst_32 [1] : vector<8x2xf32> to vector<8xf32>
    %72 = vector.shape_cast %71 : vector<8xf32> to vector<8x1xf32>
    %73 = arith.mulf %54, %67 : vector<8x1xf32>
    %74 = arith.mulf %55, %72 : vector<8x1xf32>
    %75 = arith.subf %73, %74 : vector<8x1xf32>
    %76 = arith.mulf %54, %72 : vector<8x1xf32>
    %77 = arith.mulf %55, %67 : vector<8x1xf32>
    %78 = arith.addf %76, %77 : vector<8x1xf32>
    %c1_i32_33 = arith.constant 1 : i32
    %79 = vector.broadcast %c1_i32_33 : i32 to vector<8x2xi32>
    %80 = arith.shrsi %52, %79 : vector<8x2xi32>
    %c1_i32_34 = arith.constant 1 : i32
    %81 = vector.broadcast %c1_i32_34 : i32 to vector<8x2xi32>
    %82 = arith.andi %80, %81 : vector<8x2xi32>
    %83 = arith.cmpi eq, %82, %53 : vector<8x2xi32>
    %84 = arith.extui %83 : vector<8x2xi1> to vector<8x2xi32>
    %85 = arith.sitofp %84 : vector<8x2xi32> to vector<8x2xf32>
    %86 = vector.extract_strided_slice %48 {offsets = [1, 0], sizes = [1, 2], strides = [1, 1]} : vector<3x2xf32> to vector<1x2xf32>
    %87 = vector.broadcast %86 : vector<1x2xf32> to vector<8x2xf32>
    %88 = arith.mulf %85, %87 : vector<8x2xf32>
    %cst_35 = arith.constant dense<0.000000e+00> : vector<8xf32>
    %89 = vector.multi_reduction <add>, %88, %cst_35 [1] : vector<8x2xf32> to vector<8xf32>
    %90 = vector.shape_cast %89 : vector<8xf32> to vector<8x1xf32>
    %91 = vector.extract_strided_slice %51 {offsets = [1, 0], sizes = [1, 2], strides = [1, 1]} : vector<3x2xf32> to vector<1x2xf32>
    %92 = vector.broadcast %91 : vector<1x2xf32> to vector<8x2xf32>
    %93 = arith.mulf %85, %92 : vector<8x2xf32>
    %cst_36 = arith.constant dense<0.000000e+00> : vector<8xf32>
    %94 = vector.multi_reduction <add>, %93, %cst_36 [1] : vector<8x2xf32> to vector<8xf32>
    %95 = vector.shape_cast %94 : vector<8xf32> to vector<8x1xf32>
    %96 = arith.mulf %75, %90 : vector<8x1xf32>
    %97 = arith.mulf %78, %95 : vector<8x1xf32>
    %98 = arith.subf %96, %97 : vector<8x1xf32>
    %99 = arith.mulf %75, %95 : vector<8x1xf32>
    %100 = arith.mulf %78, %90 : vector<8x1xf32>
    %101 = arith.addf %99, %100 : vector<8x1xf32>
    %c2_i32 = arith.constant 2 : i32
    %102 = vector.broadcast %c2_i32 : i32 to vector<8x2xi32>
    %103 = arith.shrsi %52, %102 : vector<8x2xi32>
    %c1_i32_37 = arith.constant 1 : i32
    %104 = vector.broadcast %c1_i32_37 : i32 to vector<8x2xi32>
    %105 = arith.andi %103, %104 : vector<8x2xi32>
    %106 = arith.cmpi eq, %105, %53 : vector<8x2xi32>
    %107 = arith.extui %106 : vector<8x2xi1> to vector<8x2xi32>
    %108 = arith.sitofp %107 : vector<8x2xi32> to vector<8x2xf32>
    %109 = vector.extract_strided_slice %48 {offsets = [2, 0], sizes = [1, 2], strides = [1, 1]} : vector<3x2xf32> to vector<1x2xf32>
    %110 = vector.broadcast %109 : vector<1x2xf32> to vector<8x2xf32>
    %111 = arith.mulf %108, %110 : vector<8x2xf32>
    %cst_38 = arith.constant dense<0.000000e+00> : vector<8xf32>
    %112 = vector.multi_reduction <add>, %111, %cst_38 [1] : vector<8x2xf32> to vector<8xf32>
    %113 = vector.shape_cast %112 : vector<8xf32> to vector<8x1xf32>
    %114 = vector.extract_strided_slice %51 {offsets = [2, 0], sizes = [1, 2], strides = [1, 1]} : vector<3x2xf32> to vector<1x2xf32>
    %115 = vector.broadcast %114 : vector<1x2xf32> to vector<8x2xf32>
    %116 = arith.mulf %108, %115 : vector<8x2xf32>
    %cst_39 = arith.constant dense<0.000000e+00> : vector<8xf32>
    %117 = vector.multi_reduction <add>, %116, %cst_39 [1] : vector<8x2xf32> to vector<8xf32>
    %118 = vector.shape_cast %117 : vector<8xf32> to vector<8x1xf32>
    %119 = arith.mulf %98, %113 : vector<8x1xf32>
    %120 = arith.mulf %101, %118 : vector<8x1xf32>
    %121 = arith.subf %119, %120 : vector<8x1xf32>
    %122 = arith.mulf %98, %118 : vector<8x1xf32>
    %123 = arith.mulf %101, %113 : vector<8x1xf32>
    %124 = arith.addf %122, %123 : vector<8x1xf32>
    %125 = arith.mulf %121, %121 : vector<8x1xf32>
    %126 = arith.mulf %124, %124 : vector<8x1xf32>
    %127 = arith.addf %125, %126 : vector<8x1xf32>
    %128 = vector.shape_cast %127 : vector<8x1xf32> to vector<1x8x1xf32>
    %cst_40 = arith.constant dense<0.000000e+00> : vector<1xf32>
    %129 = vector.multi_reduction <add>, %128, %cst_40 [1, 2] : vector<1x8x1xf32> to vector<1xf32>
    %130 = vector.shape_cast %129 : vector<1xf32> to vector<1x1x1xf32>
    %131 = vector.extract %130[0, 0, 0] : f32 from vector<1x1x1xf32>
    %132 = math.rsqrt %131 : f32
    %133 = vector.broadcast %132 : f32 to vector<8x1xf32>
    %134 = arith.mulf %121, %133 : vector<8x1xf32>
    %135 = vector.broadcast %132 : f32 to vector<8x1xf32>
    %136 = arith.mulf %124, %135 : vector<8x1xf32>
    %137 = tpu.concatenate %134, %136 in 0 : vector<8x1xf32>, vector<8x1xf32> -> vector<16x1xf32>
    %c0_41 = arith.constant 0 : index
    %c0_42 = arith.constant 0 : index
    %138 = vector.load %arg1[%c0_41, %c0_42] : memref<192x192xf32, #tpu.memory_space<vmem>>, vector<192x192xf32>
    %cst_43 = arith.constant dense<0.000000e+00> : vector<192x192xf32>
    %139 = tpu.matmul %138, %138, %cst_43 {dimension_numbers = #tpu.dot_dimension_numbers<[1], [0], [0], [1], [0, 0, 1, 1], [], []>} : vector<192x192xf32>, vector<192x192xf32>, vector<192x192xf32> -> vector<192x192xf32>
    %cst_44 = arith.constant dense<0.000000e+00> : vector<192x192xf32>
    %140 = tpu.matmul %139, %138, %cst_44 {dimension_numbers = #tpu.dot_dimension_numbers<[1], [0], [0], [1], [0, 0, 1, 1], [], []>} : vector<192x192xf32>, vector<192x192xf32>, vector<192x192xf32> -> vector<192x192xf32>
    %cst_45 = arith.constant dense<0.000000e+00> : vector<192x192xf32>
    %141 = tpu.matmul %139, %139, %cst_45 {dimension_numbers = #tpu.dot_dimension_numbers<[1], [0], [0], [1], [0, 0, 1, 1], [], []>} : vector<192x192xf32>, vector<192x192xf32>, vector<192x192xf32> -> vector<192x192xf32>
    %cst_46 = arith.constant dense<0.000000e+00> : vector<192x192xf32>
    %142 = tpu.matmul %140, %139, %cst_46 {dimension_numbers = #tpu.dot_dimension_numbers<[1], [0], [0], [1], [0, 0, 1, 1], [], []>} : vector<192x192xf32>, vector<192x192xf32>, vector<192x192xf32> -> vector<192x192xf32>
    %cst_47 = arith.constant 5.000000e-01 : f32
    %143 = vector.broadcast %cst_47 : f32 to vector<192x192xf32>
    %144 = arith.mulf %143, %139 : vector<192x192xf32>
    %145 = arith.addf %138, %144 : vector<192x192xf32>
    %cst_48 = arith.constant 0.166666672 : f32
    %146 = vector.broadcast %cst_48 : f32 to vector<192x192xf32>
    %147 = arith.mulf %146, %140 : vector<192x192xf32>
    %148 = arith.addf %145, %147 : vector<192x192xf32>
    %cst_49 = arith.constant 0.0416666679 : f32
    %149 = vector.broadcast %cst_49 : f32 to vector<192x192xf32>
    %150 = arith.mulf %149, %141 : vector<192x192xf32>
    %151 = arith.addf %148, %150 : vector<192x192xf32>
    %cst_50 = arith.constant 0.00138888892 : f32
    %152 = vector.broadcast %cst_50 : f32 to vector<192x192xf32>
    %153 = arith.mulf %152, %138 : vector<192x192xf32>
    %cst_51 = arith.constant 1.98412701E-4 : f32
    %154 = vector.broadcast %cst_51 : f32 to vector<192x192xf32>
    %155 = arith.mulf %154, %139 : vector<192x192xf32>
    %156 = arith.addf %153, %155 : vector<192x192xf32>
    %cst_52 = arith.constant 2.48015876E-5 : f32
    %157 = vector.broadcast %cst_52 : f32 to vector<192x192xf32>
    %158 = arith.mulf %157, %140 : vector<192x192xf32>
    %159 = arith.addf %156, %158 : vector<192x192xf32>
    %cst_53 = arith.constant 2.75573188E-6 : f32
    %160 = vector.broadcast %cst_53 : f32 to vector<192x192xf32>
    %161 = arith.mulf %160, %141 : vector<192x192xf32>
    %162 = arith.addf %159, %161 : vector<192x192xf32>
    %cst_54 = arith.constant 2.755732E-7 : f32
    %163 = vector.broadcast %cst_54 : f32 to vector<192x192xf32>
    %164 = arith.mulf %163, %142 : vector<192x192xf32>
    %165 = arith.addf %162, %164 : vector<192x192xf32>
    %166 = tpu.iota {dimensions = array<i32: 0>} : vector<192x192xi32>
    %167 = tpu.iota {dimensions = array<i32: 1>} : vector<192x192xi32>
    %168 = arith.cmpi eq, %166, %167 : vector<192x192xi32>
    %169 = arith.extui %168 : vector<192x192xi1> to vector<192x192xi32>
    %170 = arith.sitofp %169 : vector<192x192xi32> to vector<192x192xf32>
    %171 = arith.addf %170, %151 : vector<192x192xf32>
    %cst_55 = arith.constant 0.00833333377 : f32
    %172 = vector.broadcast %cst_55 : f32 to vector<192x192xf32>
    %173 = arith.mulf %172, %142 : vector<192x192xf32>
    %174 = arith.addf %171, %173 : vector<192x192xf32>
    %cst_56 = arith.constant dense<0.000000e+00> : vector<192x192xf32>
    %175 = tpu.matmul %142, %165, %cst_56 {dimension_numbers = #tpu.dot_dimension_numbers<[1], [0], [0], [1], [0, 0, 1, 1], [], []>} : vector<192x192xf32>, vector<192x192xf32>, vector<192x192xf32> -> vector<192x192xf32>
    %176 = arith.addf %174, %175 : vector<192x192xf32>
    %cst_57 = arith.constant dense<0.000000e+00> : vector<192x192xf32>
    %177 = tpu.matmul %176, %176, %cst_57 {dimension_numbers = #tpu.dot_dimension_numbers<[1], [0], [0], [1], [0, 0, 1, 1], [], []>} : vector<192x192xf32>, vector<192x192xf32>, vector<192x192xf32> -> vector<192x192xf32>
    %cst_58 = arith.constant dense<0.000000e+00> : vector<192x192xf32>
    %178 = tpu.matmul %177, %177, %cst_58 {dimension_numbers = #tpu.dot_dimension_numbers<[1], [0], [0], [1], [0, 0, 1, 1], [], []>} : vector<192x192xf32>, vector<192x192xf32>, vector<192x192xf32> -> vector<192x192xf32>
    %cst_59 = arith.constant dense<0.000000e+00> : vector<192x192xf32>
    %179 = tpu.matmul %178, %178, %cst_59 {dimension_numbers = #tpu.dot_dimension_numbers<[1], [0], [0], [1], [0, 0, 1, 1], [], []>} : vector<192x192xf32>, vector<192x192xf32>, vector<192x192xf32> -> vector<192x192xf32>
    %cst_60 = arith.constant dense<0.000000e+00> : vector<192x192xf32>
    %180 = tpu.matmul %179, %179, %cst_60 {dimension_numbers = #tpu.dot_dimension_numbers<[1], [0], [0], [1], [0, 0, 1, 1], [], []>} : vector<192x192xf32>, vector<192x192xf32>, vector<192x192xf32> -> vector<192x192xf32>
    %c0_61 = arith.constant 0 : index
    %c0_62 = arith.constant 0 : index
    %181 = vector.load %arg2[%c0_61, %c0_62] : memref<192x192xf32, #tpu.memory_space<vmem>>, vector<192x192xf32>
    %c0_63 = arith.constant 0 : index
    %c0_64 = arith.constant 0 : index
    %182 = vector.load %arg3[%c0_63, %c0_64] : memref<192x16xf32, #tpu.memory_space<vmem>>, vector<192x16xf32>
    %cst_65 = arith.constant dense<0.000000e+00> : vector<192x16xf32>
    %183 = tpu.matmul %180, %182, %cst_65 {dimension_numbers = #tpu.dot_dimension_numbers<[1], [0], [0], [1], [0, 0, 1, 1], [], []>} : vector<192x192xf32>, vector<192x16xf32>, vector<192x16xf32> -> vector<192x16xf32>
    %cst_66 = arith.constant dense<0.000000e+00> : vector<192x16xf32>
    %184 = tpu.matmul %181, %183, %cst_66 {dimension_numbers = #tpu.dot_dimension_numbers<[1], [0], [0], [1], [0, 0, 1, 1], [], []>} : vector<192x192xf32>, vector<192x16xf32>, vector<192x16xf32> -> vector<192x16xf32>
    %185 = vector.extract_strided_slice %184 {offsets = [0, 0], sizes = [16, 16], strides = [1, 1]} : vector<192x16xf32> to vector<16x16xf32>
    %186 = vector.extract_strided_slice %184 {offsets = [16, 0], sizes = [16, 16], strides = [1, 1]} : vector<192x16xf32> to vector<16x16xf32>
    %187 = vector.extract_strided_slice %184 {offsets = [32, 0], sizes = [16, 16], strides = [1, 1]} : vector<192x16xf32> to vector<16x16xf32>
    %188 = vector.extract_strided_slice %184 {offsets = [48, 0], sizes = [16, 16], strides = [1, 1]} : vector<192x16xf32> to vector<16x16xf32>
    %189 = vector.extract_strided_slice %184 {offsets = [64, 0], sizes = [16, 16], strides = [1, 1]} : vector<192x16xf32> to vector<16x16xf32>
    %190 = vector.extract_strided_slice %184 {offsets = [80, 0], sizes = [16, 16], strides = [1, 1]} : vector<192x16xf32> to vector<16x16xf32>
    %191 = vector.extract_strided_slice %184 {offsets = [96, 0], sizes = [16, 16], strides = [1, 1]} : vector<192x16xf32> to vector<16x16xf32>
    %192 = vector.extract_strided_slice %184 {offsets = [112, 0], sizes = [16, 16], strides = [1, 1]} : vector<192x16xf32> to vector<16x16xf32>
    %193 = vector.extract_strided_slice %184 {offsets = [128, 0], sizes = [16, 16], strides = [1, 1]} : vector<192x16xf32> to vector<16x16xf32>
    %194 = vector.extract_strided_slice %184 {offsets = [144, 0], sizes = [16, 16], strides = [1, 1]} : vector<192x16xf32> to vector<16x16xf32>
    %195 = vector.extract_strided_slice %184 {offsets = [160, 0], sizes = [16, 16], strides = [1, 1]} : vector<192x16xf32> to vector<16x16xf32>
    %196 = vector.extract_strided_slice %184 {offsets = [176, 0], sizes = [16, 16], strides = [1, 1]} : vector<192x16xf32> to vector<16x16xf32>
    %cst_67 = arith.constant dense<0.000000e+00> : vector<16x16xf32>
    %197 = tpu.matmul %186, %185, %cst_67 {dimension_numbers = #tpu.dot_dimension_numbers<[1], [0], [0], [1], [0, 0, 1, 1], [], []>} : vector<16x16xf32>, vector<16x16xf32>, vector<16x16xf32> -> vector<16x16xf32>
    %cst_68 = arith.constant dense<0.000000e+00> : vector<16x16xf32>
    %198 = tpu.matmul %188, %187, %cst_68 {dimension_numbers = #tpu.dot_dimension_numbers<[1], [0], [0], [1], [0, 0, 1, 1], [], []>} : vector<16x16xf32>, vector<16x16xf32>, vector<16x16xf32> -> vector<16x16xf32>
    %cst_69 = arith.constant dense<0.000000e+00> : vector<16x16xf32>
    %199 = tpu.matmul %190, %189, %cst_69 {dimension_numbers = #tpu.dot_dimension_numbers<[1], [0], [0], [1], [0, 0, 1, 1], [], []>} : vector<16x16xf32>, vector<16x16xf32>, vector<16x16xf32> -> vector<16x16xf32>
    %cst_70 = arith.constant dense<0.000000e+00> : vector<16x16xf32>
    %200 = tpu.matmul %192, %191, %cst_70 {dimension_numbers = #tpu.dot_dimension_numbers<[1], [0], [0], [1], [0, 0, 1, 1], [], []>} : vector<16x16xf32>, vector<16x16xf32>, vector<16x16xf32> -> vector<16x16xf32>
    %cst_71 = arith.constant dense<0.000000e+00> : vector<16x16xf32>
    %201 = tpu.matmul %194, %193, %cst_71 {dimension_numbers = #tpu.dot_dimension_numbers<[1], [0], [0], [1], [0, 0, 1, 1], [], []>} : vector<16x16xf32>, vector<16x16xf32>, vector<16x16xf32> -> vector<16x16xf32>
    %cst_72 = arith.constant dense<0.000000e+00> : vector<16x16xf32>
    %202 = tpu.matmul %196, %195, %cst_72 {dimension_numbers = #tpu.dot_dimension_numbers<[1], [0], [0], [1], [0, 0, 1, 1], [], []>} : vector<16x16xf32>, vector<16x16xf32>, vector<16x16xf32> -> vector<16x16xf32>
    %cst_73 = arith.constant dense<0.000000e+00> : vector<16x16xf32>
    %203 = tpu.matmul %198, %197, %cst_73 {dimension_numbers = #tpu.dot_dimension_numbers<[1], [0], [0], [1], [0, 0, 1, 1], [], []>} : vector<16x16xf32>, vector<16x16xf32>, vector<16x16xf32> -> vector<16x16xf32>
    %cst_74 = arith.constant dense<0.000000e+00> : vector<16x16xf32>
    %204 = tpu.matmul %200, %199, %cst_74 {dimension_numbers = #tpu.dot_dimension_numbers<[1], [0], [0], [1], [0, 0, 1, 1], [], []>} : vector<16x16xf32>, vector<16x16xf32>, vector<16x16xf32> -> vector<16x16xf32>
    %cst_75 = arith.constant dense<0.000000e+00> : vector<16x16xf32>
    %205 = tpu.matmul %202, %201, %cst_75 {dimension_numbers = #tpu.dot_dimension_numbers<[1], [0], [0], [1], [0, 0, 1, 1], [], []>} : vector<16x16xf32>, vector<16x16xf32>, vector<16x16xf32> -> vector<16x16xf32>
    %cst_76 = arith.constant dense<0.000000e+00> : vector<16x16xf32>
    %206 = tpu.matmul %204, %203, %cst_76 {dimension_numbers = #tpu.dot_dimension_numbers<[1], [0], [0], [1], [0, 0, 1, 1], [], []>} : vector<16x16xf32>, vector<16x16xf32>, vector<16x16xf32> -> vector<16x16xf32>
    %cst_77 = arith.constant dense<0.000000e+00> : vector<16x16xf32>
    %207 = tpu.matmul %205, %206, %cst_77 {dimension_numbers = #tpu.dot_dimension_numbers<[1], [0], [0], [1], [0, 0, 1, 1], [], []>} : vector<16x16xf32>, vector<16x16xf32>, vector<16x16xf32> -> vector<16x16xf32>
    %cst_78 = arith.constant dense<0.000000e+00> : vector<16x1xf32>
    %208 = tpu.matmul %207, %137, %cst_78 {dimension_numbers = #tpu.dot_dimension_numbers<[1], [0], [0], [1], [0, 0, 1, 1], [], []>} : vector<16x16xf32>, vector<16x1xf32>, vector<16x1xf32> -> vector<16x1xf32>
    %209 = vector.extract_strided_slice %208 {offsets = [0, 0], sizes = [8, 1], strides = [1, 1]} : vector<16x1xf32> to vector<8x1xf32>
    %210 = vector.shape_cast %209 : vector<8x1xf32> to vector<1x8x1xf32>
    %cst_79 = arith.constant dense<0.000000e+00> : vector<1xf32>
    %211 = vector.multi_reduction <add>, %210, %cst_79 [1, 2] : vector<1x8x1xf32> to vector<1xf32>
    %212 = vector.shape_cast %211 : vector<1xf32> to vector<1x1x1xf32>
    %213 = vector.extract %212[0, 0, 0] : f32 from vector<1x1x1xf32>
    %cst_80 = arith.constant 1.250000e-01 : f32
    %214 = arith.mulf %213, %cst_80 : f32
    %215 = vector.extract_strided_slice %208 {offsets = [8, 0], sizes = [8, 1], strides = [1, 1]} : vector<16x1xf32> to vector<8x1xf32>
    %216 = vector.shape_cast %215 : vector<8x1xf32> to vector<1x8x1xf32>
    %cst_81 = arith.constant dense<0.000000e+00> : vector<1xf32>
    %217 = vector.multi_reduction <add>, %216, %cst_81 [1, 2] : vector<1x8x1xf32> to vector<1xf32>
    %218 = vector.shape_cast %217 : vector<1xf32> to vector<1x1x1xf32>
    %219 = vector.extract %218[0, 0, 0] : f32 from vector<1x1x1xf32>
    %cst_82 = arith.constant 1.250000e-01 : f32
    %220 = arith.mulf %219, %cst_82 : f32
    %c144 = arith.constant 144 : index
    %c0_83 = arith.constant 0 : index
    %221 = vector.load %arg0[%c144, %c0_83] : memref<368x64xf32, #tpu.memory_space<vmem>>, vector<1x48xf32>
    %222 = vector.broadcast %214 : f32 to vector<1x48xf32>
    %223 = arith.mulf %222, %221 : vector<1x48xf32>
    %c152 = arith.constant 152 : index
    %c0_84 = arith.constant 0 : index
    %224 = vector.load %arg0[%c152, %c0_84] : memref<368x64xf32, #tpu.memory_space<vmem>>, vector<1x48xf32>
    %225 = vector.broadcast %220 : f32 to vector<1x48xf32>
    %226 = arith.mulf %225, %224 : vector<1x48xf32>
    %227 = arith.subf %223, %226 : vector<1x48xf32>
    %c160 = arith.constant 160 : index
    %c0_85 = arith.constant 0 : index
    %228 = vector.load %arg0[%c160, %c0_85] : memref<368x64xf32, #tpu.memory_space<vmem>>, vector<1x48xf32>
    %229 = arith.addf %227, %228 : vector<1x48xf32>
    %c152_86 = arith.constant 152 : index
    %c0_87 = arith.constant 0 : index
    %230 = vector.load %arg0[%c152_86, %c0_87] : memref<368x64xf32, #tpu.memory_space<vmem>>, vector<1x48xf32>
    %231 = vector.broadcast %214 : f32 to vector<1x48xf32>
    %232 = arith.mulf %231, %230 : vector<1x48xf32>
    %c144_88 = arith.constant 144 : index
    %c0_89 = arith.constant 0 : index
    %233 = vector.load %arg0[%c144_88, %c0_89] : memref<368x64xf32, #tpu.memory_space<vmem>>, vector<1x48xf32>
    %234 = vector.broadcast %220 : f32 to vector<1x48xf32>
    %235 = arith.mulf %234, %233 : vector<1x48xf32>
    %236 = arith.addf %232, %235 : vector<1x48xf32>
    %c168 = arith.constant 168 : index
    %c0_90 = arith.constant 0 : index
    %237 = vector.load %arg0[%c168, %c0_90] : memref<368x64xf32, #tpu.memory_space<vmem>>, vector<1x48xf32>
    %238 = arith.addf %236, %237 : vector<1x48xf32>
    %cst_91 = arith.constant 0.000000e+00 : f32
    %239 = vector.broadcast %cst_91 : f32 to vector<1x48xf32>
    %240 = arith.maximumf %229, %239 : vector<1x48xf32>
    %cst_92 = arith.constant 0.000000e+00 : f32
    %241 = vector.broadcast %cst_92 : f32 to vector<1x48xf32>
    %242 = arith.maximumf %238, %241 : vector<1x48xf32>
    %c176 = arith.constant 176 : index
    %c0_93 = arith.constant 0 : index
    %243 = vector.load %arg0[%c176, %c0_93] : memref<368x64xf32, #tpu.memory_space<vmem>>, vector<48x32xf32>
    %c224 = arith.constant 224 : index
    %c0_94 = arith.constant 0 : index
    %244 = vector.load %arg0[%c224, %c0_94] : memref<368x64xf32, #tpu.memory_space<vmem>>, vector<48x32xf32>
    %cst_95 = arith.constant dense<0.000000e+00> : vector<1x32xf32>
    %245 = tpu.matmul %240, %243, %cst_95 {dimension_numbers = #tpu.dot_dimension_numbers<[1], [0], [0], [1], [0, 0, 1, 1], [], []>} : vector<1x48xf32>, vector<48x32xf32>, vector<1x32xf32> -> vector<1x32xf32>
    %cst_96 = arith.constant dense<0.000000e+00> : vector<1x32xf32>
    %246 = tpu.matmul %242, %244, %cst_96 {dimension_numbers = #tpu.dot_dimension_numbers<[1], [0], [0], [1], [0, 0, 1, 1], [], []>} : vector<1x48xf32>, vector<48x32xf32>, vector<1x32xf32> -> vector<1x32xf32>
    %247 = arith.subf %245, %246 : vector<1x32xf32>
    %cst_97 = arith.constant dense<0.000000e+00> : vector<1x32xf32>
    %248 = tpu.matmul %240, %244, %cst_97 {dimension_numbers = #tpu.dot_dimension_numbers<[1], [0], [0], [1], [0, 0, 1, 1], [], []>} : vector<1x48xf32>, vector<48x32xf32>, vector<1x32xf32> -> vector<1x32xf32>
    %cst_98 = arith.constant dense<0.000000e+00> : vector<1x32xf32>
    %249 = tpu.matmul %242, %243, %cst_98 {dimension_numbers = #tpu.dot_dimension_numbers<[1], [0], [0], [1], [0, 0, 1, 1], [], []>} : vector<1x48xf32>, vector<48x32xf32>, vector<1x32xf32> -> vector<1x32xf32>
    %250 = arith.addf %248, %249 : vector<1x32xf32>
    %c272 = arith.constant 272 : index
    %c0_99 = arith.constant 0 : index
    %251 = vector.load %arg0[%c272, %c0_99] : memref<368x64xf32, #tpu.memory_space<vmem>>, vector<1x32xf32>
    %252 = arith.addf %247, %251 : vector<1x32xf32>
    %c280 = arith.constant 280 : index
    %c0_100 = arith.constant 0 : index
    %253 = vector.load %arg0[%c280, %c0_100] : memref<368x64xf32, #tpu.memory_space<vmem>>, vector<1x32xf32>
    %254 = arith.addf %250, %253 : vector<1x32xf32>
    %cst_101 = arith.constant 0.000000e+00 : f32
    %255 = vector.broadcast %cst_101 : f32 to vector<1x32xf32>
    %256 = arith.maximumf %252, %255 : vector<1x32xf32>
    %cst_102 = arith.constant 0.000000e+00 : f32
    %257 = vector.broadcast %cst_102 : f32 to vector<1x32xf32>
    %258 = arith.maximumf %254, %257 : vector<1x32xf32>
    %c288 = arith.constant 288 : index
    %c0_103 = arith.constant 0 : index
    %259 = vector.load %arg0[%c288, %c0_103] : memref<368x64xf32, #tpu.memory_space<vmem>>, vector<32x2xf32>
    %c320 = arith.constant 320 : index
    %c0_104 = arith.constant 0 : index
    %260 = vector.load %arg0[%c320, %c0_104] : memref<368x64xf32, #tpu.memory_space<vmem>>, vector<32x2xf32>
    %cst_105 = arith.constant dense<0.000000e+00> : vector<1x2xf32>
    %261 = tpu.matmul %256, %259, %cst_105 {dimension_numbers = #tpu.dot_dimension_numbers<[1], [0], [0], [1], [0, 0, 1, 1], [], []>} : vector<1x32xf32>, vector<32x2xf32>, vector<1x2xf32> -> vector<1x2xf32>
    %cst_106 = arith.constant dense<0.000000e+00> : vector<1x2xf32>
    %262 = tpu.matmul %258, %260, %cst_106 {dimension_numbers = #tpu.dot_dimension_numbers<[1], [0], [0], [1], [0, 0, 1, 1], [], []>} : vector<1x32xf32>, vector<32x2xf32>, vector<1x2xf32> -> vector<1x2xf32>
    %263 = arith.subf %261, %262 : vector<1x2xf32>
    %cst_107 = arith.constant dense<0.000000e+00> : vector<1x2xf32>
    %264 = tpu.matmul %256, %260, %cst_107 {dimension_numbers = #tpu.dot_dimension_numbers<[1], [0], [0], [1], [0, 0, 1, 1], [], []>} : vector<1x32xf32>, vector<32x2xf32>, vector<1x2xf32> -> vector<1x2xf32>
    %cst_108 = arith.constant dense<0.000000e+00> : vector<1x2xf32>
    %265 = tpu.matmul %258, %259, %cst_108 {dimension_numbers = #tpu.dot_dimension_numbers<[1], [0], [0], [1], [0, 0, 1, 1], [], []>} : vector<1x32xf32>, vector<32x2xf32>, vector<1x2xf32> -> vector<1x2xf32>
    %266 = arith.addf %264, %265 : vector<1x2xf32>
    %c352 = arith.constant 352 : index
    %c0_109 = arith.constant 0 : index
    %267 = vector.load %arg0[%c352, %c0_109] : memref<368x64xf32, #tpu.memory_space<vmem>>, vector<1x2xf32>
    %268 = arith.addf %263, %267 : vector<1x2xf32>
    %c360 = arith.constant 360 : index
    %c0_110 = arith.constant 0 : index
    %269 = vector.load %arg0[%c360, %c0_110] : memref<368x64xf32, #tpu.memory_space<vmem>>, vector<1x2xf32>
    %270 = arith.addf %266, %269 : vector<1x2xf32>
    %271 = arith.mulf %268, %268 : vector<1x2xf32>
    %272 = arith.mulf %270, %270 : vector<1x2xf32>
    %273 = arith.addf %271, %272 : vector<1x2xf32>
    %c0_111 = arith.constant 0 : index
    %c0_112 = arith.constant 0 : index
    %274 = vector.load %arg4[%c0_111, %c0_112] : memref<1x2xf32, #tpu.memory_space<vmem>>, vector<1x2xf32>
    tpu.vector_store %arg4[%c0_111, %c0_112], %273 {strides = array<i32>} : memref<1x2xf32, #tpu.memory_space<vmem>>, vector<1x2xf32>,
    return
  }
}

</mosaic_0001>

<bundles_post_ra>
// kernel: custom-call.22
= control target key start
LH: loop header
LB: loop body
LE: loop exit
PB: predicated region body
PF: predicated region fallthrough
CT: control target
= control target key end

     0   :  { %5 = vsyncpa [#allocation4], 0  ;;  %s877_s0 = inlined_call_operand.vmem [shape: f32[16,16], index: 0, kind: input, shape index: {}]   ;;  %s878_s1 = inlined_call_operand.vmem [shape: f32[16,16], index: 1, kind: output, shape index: {0}]   ;;  %s879_s2 = inlined_call_operand.hbm [shape: s32[16], index: 2, kind: output, shape index: {1}]   ;;  %s880_s3 = inlined_call_operand.vmem [shape: s32[16], index: 3, kind: output, shape index: {2}]  }
   0x1   :  { %s19_s14 = scalar_lea.vmem %s877_s0, 8 }
   0x2   :  { %p454_p0 = scmp.gt.s32.totalorder %s877_s0, %s19_s14 }
   0x3   :  { %s747_s17 = smov (!%p454_p0), [#allocation0]   ;;  %s751_s20 = smov (!%p454_p0), %s877_s0  }
   0x4   :  { %455 = sbr.rel (%p454_p0) target bundleno = 21 (0x15), region = 157 }
   0xb LB: > { %v53_v0 = vld [vmem:[%s753_s20] sm:$0xff]  ;;  %s55_s20 = scalar_lea.vmem %s753_s20, 8   ;;  %s753_s20 = sphi %s751_s20, %s55_s20   ;;  %s749_s17 = sphi %s747_s17, %s56_s17  }
   0xc   : > { %54 = vst [vmem:[%s749_s17] sm:$0xff] %v53_v0  ;;  %s56_s17 = scalar_lea.vmem %s749_s17, 8   ;;  %p50_p1 = scmp.gt.s32.totalorder %s55_s20, %s19_s14 }
   0xe   :  { %52 = sbr.rel (!%p50_p1) target bundleno = 11 (0xb), region = 163 }
  0x15 PF:  { %v68_v1 = vld [vmem:[#allocation0] sm:$0xff]  ;;  %v72_v2 = vld [vmem:[#allocation0 + $0x8] sm:$0xff]  ;;  %v75_v3 = vlaneseq  ;;  %v771_v4 = vmov 0   ;;  %s755_s0 = smov 0  }
  0x16   :  { %69 = vst [vmem:[#allocation1] sm:$0xff] %v68_v1  ;;  %73 = vst [vmem:[#allocation1 + $0x8] sm:$0xff] %v72_v2 }
  0x17   :  { %74 = vst [vmem:[#allocation2] sm:$0x1] %v771_v4  ;;  %v803_v5 = vshrl.u32 %v75_v3, 7 }
  0x18 LB: > { %s512_s21 = sshll.u32 %s757_s0, 3  ;;  %s83_s0 = sadd.s32 1, %s757_s0   ;;  %s757_s0 = sphi %s755_s0, %s83_s0  }
  0x19   : > { %v87_v6 = vstv %s512_s21  ;;  %s85_s22 = scalar_lea.vmem [#allocation7], %s512_s21  ;;  %p80_p2 = scmp.ge.s32.totalorder %s83_s0, 2  }
  0x1a   : > { %v88_v7 = vadd.s32 %v87_v6, %v803_v5  ;;  %s806_s23 = smov (%p80_p2), 0  }
  0x1b   :  { %82 = sbr.rel (!%p80_p2) target bundleno = 24 (0x18), region = 174 }
  0x1c   : > { %89 = vst [vmem:[%s85_s22] sm:$0xff] %v88_v7 }
  0x22 LB: > { %v100_v8 = vld [vmem:[#allocation1] sm:$0xff]  ;;  %v112_v9 = vld [vmem:[#allocation1 + $0x8] sm:$0xff]  ;;  %v812_v10 = vadd.s32 8, %v803_v5  ;;  %v815_v12 = vstv %s761_s23  ;;  %s158_s24 = ssub.s32 128, %s761_s23  ;;  %v164_v45 = vand.u32 127, %v75_v3  ;;  %s170_s25 = scalar_lea.vmem [#allocation1], %s761_s23  ;;  %s761_s23 = sphi %s806_s23, %s95_s23  }
  0x23   : > { %v101_v11 = vand.u32 2147483647, %v100_v8  ;;  %v113_v13 = vand.u32 2147483647, %v112_v9  ;;  %vm104_vm0 = vcmp.ge.s32.totalorder %v803_v5, %v815_v12  ;;  %v167_v48 = vld [vmem:[#allocation2] ss:$0 sm:$0xff] }
  0x24   : > { %vm116_vm3 = vcmp.ge.s32.totalorder %v812_v10, %v815_v12  ;;  %vm188_vm13 = vcmp.gt.s32.totalorder %v164_v45, %v815_v12  ;;  %vm211_vm14 = vcmp.gt.s32.totalorder %v812_v10, %v815_v12  ;;  %vm165_vm15 = vcmp.eq.s32.totalorder %v164_v45, %v815_v12  ;;  %v172_v49 = vld [vmem:[%s170_s25] ss:$0 sm:$0xff]  ;;  %s176_s27 = scalar_lea.vmem [#allocation7], %s761_s23  ;;  %s95_s23 = sadd.s32 1, %s761_s23  }
  0x25   : > { %vm514_vm1 = vcmp.gt.f32.partialorder %v101_v11, -inf  ;;  %v178_v50 = vld [vmem:[%s176_s27] ss:$0 sm:$0xff]  ;;  %p92_p3 = scmp.ge.s32.totalorder %s95_s23, 16  }
  0x26   : > { %vm108_vm2 = vmand %vm104_vm0, %vm514_vm1  ;;  %s763_s5 = smov (%p92_p3), %s878_s1   ;;  %s767_s6 = smov (%p92_p3), [#allocation1]  }
  0x27   : > { %v109_v14 = vsel %vm108_vm2, %v803_v5, %v815_v12  ;;  %v110_v15 = vsel %vm108_vm2, %v101_v11, -inf  ;;  %vm835_vm0 = vmand %vm211_vm14, %vm165_vm15  ;;  %vm196_vm2 = vcmp.gt.s32.totalorder %v803_v5, %v815_v12 }
  0x28   : > { %vm119_vm4 = vcmp.lt.f32.partialorder %v110_v15, %v113_v13 }
  0x29   : > { %vm120_vm5 = vmand %vm116_vm3, %vm119_vm4 }
  0x2a   : > { %v121_v16 = vsel %vm120_vm5, %v812_v10, %v109_v14  ;;  %v122_v17 = vsel %vm120_vm5, %v113_v13, %v110_v15  ;;  %vm200_vm4 = vmand %vm196_vm2, %vm165_vm15 }
  0x2b   : > { %v123_v18 = vrot.slane %v122_v17, 1  ;;  %v124_v19 = vrot.slane %v121_v16, 1 }
  0x2d   : > { %vm125_vm6 = vcmp.ge.f32.partialorder %v123_v18, %v122_v17  ;;  %v128_v20 = vrot.slane %v123_v18, 1  ;;  %v129_v21 = vrot.slane %v124_v19, 1 }
  0x2e   : > { %v126_v22 = vsel %vm125_vm6, %v123_v18, %v122_v17  ;;  %v127_v23 = vsel %vm125_vm6, %v124_v19, %v121_v16 }
  0x2f   : > { %vm130_vm7 = vcmp.ge.f32.partialorder %v128_v20, %v126_v22  ;;  %v133_v24 = vrot.slane %v128_v20, 1  ;;  %v134_v25 = vrot.slane %v129_v21, 1 }
  0x30   : > { %v131_v26 = vsel %vm130_vm7, %v128_v20, %v126_v22  ;;  %v132_v27 = vsel %vm130_vm7, %v129_v21, %v127_v23 }
  0x31   : > { %vm135_vm8 = vcmp.ge.f32.partialorder %v133_v24, %v131_v26  ;;  %v138_v28 = vrot.slane %v133_v24, 1  ;;  %v139_v29 = vrot.slane %v134_v25, 1 }
  0x32   : > { %v136_v30 = vsel %vm135_vm8, %v133_v24, %v131_v26  ;;  %v137_v31 = vsel %vm135_vm8, %v134_v25, %v132_v27 }
  0x33   : > { %vm140_vm9 = vcmp.ge.f32.partialorder %v138_v28, %v136_v30  ;;  %v143_v32 = vrot.slane %v138_v28, 1  ;;  %v144_v33 = vrot.slane %v139_v29, 1 }
  0x34   : > { %v141_v34 = vsel %vm140_vm9, %v138_v28, %v136_v30  ;;  %v142_v35 = vsel %vm140_vm9, %v139_v29, %v137_v31 }
  0x35   : > { %vm145_vm10 = vcmp.ge.f32.partialorder %v143_v32, %v141_v34  ;;  %v148_v36 = vrot.slane %v143_v32, 1  ;;  %v149_v37 = vrot.slane %v144_v33, 1 }
  0x36   : > { %v146_v38 = vsel %vm145_vm10, %v143_v32, %v141_v34  ;;  %v147_v39 = vsel %vm145_vm10, %v144_v33, %v142_v35 }
  0x37   : > { %vm150_vm11 = vcmp.ge.f32.partialorder %v148_v36, %v146_v38  ;;  %v153_v40 = vrot.slane %v148_v36, 1  ;;  %v154_v41 = vrot.slane %v149_v37, 1 }
  0x38   : > { %v151_v42 = vsel %vm150_vm11, %v148_v36, %v146_v38  ;;  %v152_v43 = vsel %vm150_vm11, %v149_v37, %v147_v39 }
  0x39   : > { %vm155_vm12 = vcmp.ge.f32.partialorder %v153_v40, %v151_v42 }
  0x3a   : > { %v157_v44 = vsel %vm155_vm12, %v154_v41, %v152_v43 }
  0x3b   : > { %159 = vrot.lane.b32.xlu0 %v157_v44, %s158_s24 }
  0xad   : > { %v160_v47 = vpop.permute.xlu0 %159 }
  0xae   : > { %522 = vpush %v160_v47 }
  0xdf   : > { %s523_s26 = spop %522 }
  0xe0   : > { %v166_v51 = vstv %s523_s26  ;;  %s171_s28 = scalar_lea.vmem [#allocation1], %s523_s26  ;;  %s177_s29 = scalar_lea.vmem [#allocation7], %s523_s26 }
  0xe1   : > { %v168_v52 = vsel %vm165_vm15, %v166_v51, %v167_v48  ;;  %v173_v53 = vld [vmem:[%s171_s28] ss:$0 sm:$0xff] }
  0xe2   : > { %v179_v54 = vld [vmem:[%s177_s29] ss:$0 sm:$0xff]  ;;  %169 = vst [vmem:[#allocation2] sm:$0x1] %v168_v52  ;;  %174 = vst [vmem:[%s171_s28] sm:$0x1] %v172_v49  ;;  %vm182_vm1 = vcmp.ne.f32.partialorder %v173_v53, 0.0 }
  0xe3   : > { %180 = vst [vmem:[%s177_s29] sm:$0x1] %v178_v50  ;;  %175 = vst [vmem:[%s170_s25] sm:$0x1] %v173_v53  ;;  %v189_v2 = vsel %vm188_vm13, %v173_v53, 0.0 }
  0xe4   : > { %181 = vst [vmem:[%s176_s27] sm:$0x1] %v179_v54  ;;  %vm183_vm3 = vmand %vm165_vm15, %vm182_vm1 }
  0xe5   : > { %v184_v55 = vsel %vm183_vm3, %v173_v53, 1.0 }
  0xe6   : > { %v212_v56 = vsel %vm211_vm14, %v184_v55, 1.0  ;;  %v197_v57 = vsel %vm196_vm2, %v184_v55, 1.0 }
  0xe7   : > { %655 = vrcp.f32 %v212_v56 }
  0xe8   : > { %657 = vrcp.f32 %v197_v57 }
  0xe9   :  { %v275_v12 = vld [vmem:[#allocation2] sm:$0x1] (%p92_p3) }
  0xea   : > { %v208_v59 = vld [vmem:[#allocation1 + $0x8] sm:$0xff]  ;;  %v193_v62 = vld [vmem:[#allocation1] sm:$0xff]  ;;  %277 = vst [vmem:[#allocation3] sm:$0x1] (%p92_p3), %v275_v12 }
  0xeb   :  { %v222_v11 = vld [vmem:[#allocation7] sm:$0xff] (%p92_p3)  ;;  %v224_v13 = vld [vmem:[#allocation7 + $0x8] sm:$0xff] (%p92_p3) }
  0xf1   : > { %v656_v58 = vpop.eup %655 }
  0xf2   : > { %v658_v60 = vpop.eup %657  ;;  %v214_v61 = vmul.f32 %v656_v58, %v208_v59 }
  0xf3   : > { %v199_v63 = vmul.f32 %v658_v60, %v193_v62 }
  0xf4   : > { %v216_v0 = vsel %vm835_vm0, %v214_v61, 0.0 }
  0xf5   : > { %217 = vadd.xlane.f32.xlu1 %v216_v0  ;;  %v201_v1 = vsel %vm200_vm4, %v199_v63, 0.0 }
  0xf6   : > { %202 = vadd.xlane.f32.xlu0 %v201_v1 }
 0x123   :  { %239 = vxpose.xlu0.b32.start [1/2] (short) (narrow) (%p92_p3), %v222_v11, 8 }
 0x127   :  { %240 = vxpose.xlu0.b32.end [2/2] (short) (narrow) (%p92_p3), %v224_v13, 8 }
 0x182   : > { %v218_v4 = vpop.xlane.xlu1 %217  ;;  %94 = sbr.rel (!%p92_p3) target bundleno = 34 (0x22), region = 185 }
 0x183   : > { %v219_v6 = vmul.f32 %v218_v4, %v189_v2  ;;  %v203_v7 = vpop.xlane.xlu0 %202 }
 0x184   : > { %v204_v8 = vmul.f32 %v203_v7, %v189_v2 }
 0x185   : > { %v220_v9 = vsub.f32 %v214_v61, %v219_v6 }
 0x186   : > { %v205_v10 = vsub.f32 %v199_v63, %v204_v8 }
 0x187   : > { %221 = vst [vmem:[#allocation1 + $0x8] sm:$0xff] %v220_v9 }
 0x188   : > { %206 = vst [vmem:[#allocation1] sm:$0xff] %v205_v10 }
 0x1a3   :  { %v255_v14 = vpop.trf.xlu0 }
 0x1a4   :  { %271 = vst [vmem:[#allocation5] sm:$0x1] %v255_v14 }
 0x1ab   :  { %v281_v15 = vld [vmem:[#allocation5] sm:$0x1] }
 0x1ac   :  { %283 = vst [vmem:[#allocation6] sm:$0x1] %v281_v15 }
 0x1ad LB: > { %v331_v16 = vld [vmem:[%s769_s6] sm:$0xff]  ;;  %s333_s6 = scalar_lea.vmem %s769_s6, 8   ;;  %s769_s6 = sphi %s767_s6, %s333_s6   ;;  %s765_s5 = sphi %s763_s5, %s334_s5  }
 0x1ae   : > { %332 = vst [vmem:[%s765_s5] sm:$0xff] %v331_v16  ;;  %s334_s5 = scalar_lea.vmem %s765_s5, 8   ;;  %p328_p4 = scmp.gt.s32.totalorder %s333_s6, [#allocation1 + $0x8] }
 0x1af   :  { %s772_s7 = smov (%p328_p4), [#allocation3]  }
 0x1b0   :  { %330 = sbr.rel (!%p328_p4) target bundleno = 429 (0x1ad), region = 207  ;;  %s351_s8 = sshll.u32 (%p328_p4), %s772_s7, 4  ;;  %s352_s8 = int_to_ptr.vmem [resolvable:$true] %s351_s8 }
 0x1b1   :  { %s659_s1 = scalar_lea.vmem (%p328_p4), %s352_s8, 16  ;;  %s663_s11 = scalar_lea.vmem (%p328_p4), %s352_s8, 32 }
 0x1b2   :  { %p660_p5 = scmp.ne.s32.totalorder (%p328_p4), %s352_s8, %s659_s1  ;;  %p664_p6 = scmp.lt.s32.totalorder (%p328_p4), %s352_s8, %s352_s8 }
 0x1b3   :  { %v417_v3 = vld [vmem:[#allocation6] sm:$0x1] (%p328_p4)  ;;  %p665_p7 = scmp.lt.s32.totalorder (%p328_p4), %s663_s11, %s659_s1 }
 0x1b4   :  { %418 = vst [vmem:[%s880_s3] sm:$0x1] (%p328_p4), %v417_v3 }
 0x1b5   :  { %p666_p8 = por (%p328_p4), %p665_p7, %p664_p6 }
 0x1b7   :  { %p667_p9 = pnand %p666_p8, %p660_p5 }
 0x1b9   :  { %670 = shalt.err (!%p667_p9)
}
 0x1ba   :  { %s671_s14 = scalar_lea.hbm %s879_s2, 16 }
 0x1bb   :  { %p672_p10 = scmp.ne.s32.totalorder %s879_s2, %s671_s14  ;;  %p675_p11 = scmp.lt.u32.totalorder %s671_s14, %s879_s2 }
 0x1bd   :  { %p677_p12 = pnand %p675_p11, %p672_p10 }
 0x1bf   :  { %680 = shalt.err (!%p677_p12)
}
 0x1c0   :  { %354 = dma.vmem_to_hbm [thread:$0]  %s352_s8, 16, %s879_s2, [#allocation4]  }
 0x1c1   :  { %745 = dma.done.wait [#allocation4], 16  }
 0x1c2   :  { %746 = vsyncadd [#allocation4], 4294967280 }
 0x1c3   :  { %424 = vsyncpa [#allocation4], 1 }

// kernel: custom-call.24
= control target key start
LH: loop header
LB: loop body
LE: loop exit
PB: predicated region body
PF: predicated region fallthrough
CT: control target
= control target key end

     0   :  { %v38_v0 = vlaneseq  ;;  %v332_v9 = vmov -1.0   ;;  %v333_v53 = vmov 0.0   ;;  %s401_s0 = inlined_call_operand.vmem [shape: f32[1,16,16], index: 0, kind: input, shape index: {}]   ;;  %s402_s1 = inlined_call_operand.vmem [shape: f32[1,16,16], index: 1, kind: output, shape index: {}]  }
   0x1   :  { %v31_v1 = vld [vmem:[%s401_s0] sm:$0xff]  ;;  %v33_v36 = vld [vmem:[%s401_s0 + $0x8] sm:$0xff] }
   0x2   :  { %v347_v2 = vand.u32 127, %v38_v0  ;;  %v42_v3 = vshrl.u32 %v38_v0, 7 }
   0x4   :  { %vm44_vm0 = vcmp.eq.s32.totalorder %v42_v3, %v347_v2  ;;  %vm40_vm1 = vcmp.lt.s32.totalorder %v347_v2, 16  ;;  %vm49_vm2 = vcmp.ge.s32.totalorder %v42_v3, %v347_v2  ;;  %vm79_vm4 = vcmp.eq.s32.totalorder %v347_v2, 0 }
   0x5   :  { %v46_v4 = vsel %vm44_vm0, %v31_v1, 0.0  ;;  %vm50_vm3 = vmand %vm49_vm2, %vm40_vm1  ;;  %vm76_vm5 = vcmp.eq.s32.totalorder %v347_v2, %v42_v3  ;;  %v80_v10 = vsel %vm79_vm4, 1.0, %v332_v9  ;;  %vm94_vm6 = vcmp.eq.s32.totalorder %v347_v2, 1 }
   0x6   :  { %47 = vadd.xlane.f32.xlu0 %v46_v4  ;;  %v51_v6 = vsel %vm50_vm3, %v31_v1, 0.0  ;;  %v81_v11 = vsel %vm76_vm5, %v80_v10, 0.0  ;;  %vm104_vm7 = vcmp.eq.s32.totalorder %v347_v2, 2  ;;  %vm114_vm8 = vcmp.eq.s32.totalorder %v347_v2, 3 }
   0x7   :  { %vm124_vm9 = vcmp.eq.s32.totalorder %v347_v2, 4  ;;  %v59_v31 = vadd.s32 8, %v42_v3  ;;  %vm134_vm11 = vcmp.eq.s32.totalorder %v347_v2, 5  ;;  %vm144_vm14 = vcmp.eq.s32.totalorder %v347_v2, 6 }
   0x8   :  { %vm154_vm0 = vcmp.eq.s32.totalorder %v347_v2, 7  ;;  %vm178_vm2 = vcmp.eq.s32.totalorder %v347_v2, 9  ;;  %vm192_vm3 = vcmp.eq.s32.totalorder %v347_v2, 10  ;;  %vm206_vm4 = vcmp.eq.s32.totalorder %v347_v2, 11 }
   0x9   :  { %vm60_vm10 = vcmp.eq.s32.totalorder %v59_v31, %v347_v2  ;;  %vm65_vm12 = vcmp.ge.s32.totalorder %v59_v31, %v347_v2  ;;  %vm87_vm15 = vcmp.eq.s32.totalorder %v347_v2, %v59_v31  ;;  %vm220_vm5 = vcmp.eq.s32.totalorder %v347_v2, 12 }
   0xa   :  { %v62_v37 = vsel %vm60_vm10, %v33_v36, 0.0  ;;  %vm66_vm13 = vmand %vm65_vm12, %vm40_vm1  ;;  %v88_v54 = vsel %vm87_vm15, -1.0, %v333_v53  ;;  %vm164_vm1 = vcmp.eq.s32.totalorder %v347_v2, 8 }
   0xb   :  { %v67_v44 = vsel %vm66_vm13, %v33_v36, 0.0 }
  0x93   :  { %v350_v5 = vpop.xlane.xlu0 %47 }
  0x94   :  { %328 = vrcp.f32 %v350_v5  ;;  %vm273_vm10 = vweird.f32 %v350_v5 }
  0x9e   :  { %v357_v7 = vpop.eup %328 }
  0x9f   :  { %v53_v8 = vmul.f32 %v357_v7, %v51_v6 }
  0xa1   :  { %54 = vst [vmem:[#allocation2] sm:$0xff] %v53_v8 }
  0xa8   :  { %v90_v12 = vld [vmem:[#allocation2 + $0x1] ss:$0 sm:$0xff]  ;;  %v100_v15 = vld [vmem:[#allocation2 + $0x2] ss:$0 sm:$0xff]  ;;  %v110_v20 = vld [vmem:[#allocation2 + $0x3] ss:$0 sm:$0xff] }
  0xa9   :  { %v91_v13 = vxor.u32 2147483648, %v90_v12  ;;  %v101_v17 = vxor.u32 2147483648, %v100_v15  ;;  %v111_v22 = vxor.u32 2147483648, %v110_v20  ;;  %v120_v25 = vld [vmem:[#allocation2 + $0x4] ss:$0 sm:$0xff] }
  0xaa   :  { %v121_v27 = vxor.u32 2147483648, %v120_v25  ;;  %v130_v30 = vld [vmem:[#allocation2 + $0x5] ss:$0 sm:$0xff]  ;;  %v140_v38 = vld [vmem:[#allocation2 + $0x6] ss:$0 sm:$0xff] }
  0xab   :  { %v95_v14 = vmul.f32 %v91_v13, %v81_v11  ;;  %v131_v33 = vxor.u32 2147483648, %v130_v30  ;;  %v141_v40 = vxor.u32 2147483648, %v140_v38  ;;  %v150_v47 = vld [vmem:[#allocation2 + $0x7] ss:$0 sm:$0xff] }
  0xac   :  { %v151_v50 = vxor.u32 2147483648, %v150_v47 }
  0xad   :  { %96 = vadd.xlane.f32.xlu0 %v95_v14 }
 0x13a   :  { %v97_v16 = vpop.xlane.xlu0 %96 }
 0x13b   :  { %v98_v18 = vsel %vm94_vm6, %v97_v16, %v81_v11  ;;  %vm234_vm6 = vcmp.eq.s32.totalorder %v347_v2, 13 }
 0x13c   :  { %v105_v19 = vmul.f32 %v101_v17, %v98_v18 }
 0x13e   :  { %106 = vadd.xlane.f32.xlu1 %v105_v19 }
 0x1cb   :  { %v107_v21 = vpop.xlane.xlu1 %106 }
 0x1cc   :  { %v108_v23 = vsel %vm104_vm7, %v107_v21, %v98_v18  ;;  %vm248_vm7 = vcmp.eq.s32.totalorder %v347_v2, 14 }
 0x1cd   :  { %v115_v24 = vmul.f32 %v111_v22, %v108_v23 }
 0x1cf   :  { %116 = vadd.xlane.f32.xlu1 %v115_v24 }
 0x25c   :  { %v117_v26 = vpop.xlane.xlu1 %116 }
 0x25d   :  { %v118_v28 = vsel %vm114_vm8, %v117_v26, %v108_v23  ;;  %vm262_vm8 = vcmp.eq.s32.totalorder %v347_v2, 15 }
 0x25e   :  { %v125_v29 = vmul.f32 %v121_v27, %v118_v28 }
 0x260   :  { %126 = vadd.xlane.f32.xlu0 %v125_v29 }
 0x2ed   :  { %v127_v32 = vpop.xlane.xlu0 %126 }
 0x2ee   :  { %v128_v34 = vsel %vm124_vm9, %v127_v32, %v118_v28 }
 0x2ef   :  { %v135_v35 = vmul.f32 %v131_v33, %v128_v34 }
 0x2f1   :  { %136 = vadd.xlane.f32.xlu1 %v135_v35 }
 0x2f5   :  { %63 = vadd.xlane.f32.xlu1 %v62_v37 }
 0x37e   :  { %v137_v39 = vpop.xlane.xlu1 %136 }
 0x37f   :  { %v138_v41 = vsel %vm134_vm11, %v137_v39, %v128_v34 }
 0x380   :  { %v145_v42 = vmul.f32 %v141_v40, %v138_v41 }
 0x382   :  { %146 = vadd.xlane.f32.xlu0 %v145_v42  ;;  %v371_v43 = vpop.xlane.xlu1 %63 }
 0x383   :  { %330 = vrcp.f32 %v371_v43  ;;  %vm278_vm9 = vweird.f32 %v371_v43 }
 0x38d   :  { %v377_v45 = vpop.eup %330 }
 0x38e   :  { %v69_v46 = vmul.f32 %v377_v45, %v67_v44 }
 0x390   :  { %70 = vst [vmem:[#allocation2 + $0x8] sm:$0xff] %v69_v46 }
 0x397   :  { %v160_v48 = vld [vmem:[#allocation2 + $0x8] ss:$0 sm:$0xff]  ;;  %v174_v59 = vld [vmem:[#allocation2 + $0x9] ss:$0 sm:$0xff]  ;;  %v188_v4 = vld [vmem:[#allocation2 + $0xa] ss:$0 sm:$0xff] }
 0x398   :  { %v161_v51 = vxor.u32 2147483648, %v160_v48  ;;  %v175_v62 = vxor.u32 2147483648, %v174_v59  ;;  %v189_v9 = vxor.u32 2147483648, %v188_v4  ;;  %v202_v14 = vld [vmem:[#allocation2 + $0xb] ss:$0 sm:$0xff] }
 0x399   :  { %v203_v17 = vxor.u32 2147483648, %v202_v14  ;;  %v216_v22 = vld [vmem:[#allocation2 + $0xc] ss:$0 sm:$0xff]  ;;  %v230_v30 = vld [vmem:[#allocation2 + $0xd] ss:$0 sm:$0xff] }
 0x39a   :  { %v169_v56 = vmul.f32 %v161_v51, %v88_v54  ;;  %v217_v25 = vxor.u32 2147483648, %v216_v22  ;;  %v231_v33 = vxor.u32 2147483648, %v230_v30  ;;  %v244_v38 = vld [vmem:[#allocation2 + $0xe] ss:$0 sm:$0xff]  ;;  %v258_v48 = vld [vmem:[#allocation2 + $0xf] ss:$0 sm:$0xff] }
 0x40f   :  { %v147_v49 = vpop.xlane.xlu0 %146 }
 0x410   :  { %v148_v52 = vsel %vm144_vm14, %v147_v49, %v138_v41  ;;  %v245_v41 = vxor.u32 2147483648, %v244_v38 }
 0x411   :  { %v155_v55 = vmul.f32 %v151_v50, %v148_v52 }
 0x413   :  { %156 = vadd.xlane.f32.xlu0 %v155_v55 }
 0x417   :  { %170 = vadd.xlane.f32.xlu0 %v169_v56 }
 0x4a0   :  { %v157_v57 = vpop.xlane.xlu0 %156 }
 0x4a1   :  { %v158_v58 = vsel %vm154_vm0, %v157_v57, %v148_v52 }
 0x4a2   :  { %v165_v60 = vmul.f32 %v161_v51, %v158_v58  ;;  %v259_v51 = vxor.u32 2147483648, %v258_v48 }
 0x4a4   :  { %v171_v61 = vpop.xlane.xlu0 %170  ;;  %166 = vadd.xlane.f32.xlu1 %v165_v60 }
 0x4a5   :  { %v172_v63 = vsel %vm164_vm1, %v171_v61, %v88_v54 }
 0x4a6   :  { %v183_v0 = vmul.f32 %v175_v62, %v172_v63 }
 0x4a8   :  { %184 = vadd.xlane.f32.xlu0 %v183_v0 }
 0x531   :  { %v167_v1 = vpop.xlane.xlu1 %166 }
 0x532   :  { %v168_v3 = vsel %vm164_vm1, %v167_v1, %v158_v58 }
 0x533   :  { %v179_v6 = vmul.f32 %v175_v62, %v168_v3 }
 0x535   :  { %v185_v8 = vpop.xlane.xlu0 %184  ;;  %180 = vadd.xlane.f32.xlu1 %v179_v6 }
 0x536   :  { %v186_v10 = vsel %vm178_vm2, %v185_v8, %v172_v63 }
 0x537   :  { %v197_v11 = vmul.f32 %v189_v9, %v186_v10 }
 0x539   :  { %198 = vadd.xlane.f32.xlu0 %v197_v11 }
 0x5c2   :  { %v181_v12 = vpop.xlane.xlu1 %180 }
 0x5c3   :  { %v182_v13 = vsel %vm178_vm2, %v181_v12, %v168_v3 }
 0x5c4   :  { %v193_v15 = vmul.f32 %v189_v9, %v182_v13 }
 0x5c6   :  { %v199_v16 = vpop.xlane.xlu0 %198  ;;  %194 = vadd.xlane.f32.xlu1 %v193_v15 }
 0x5c7   :  { %v200_v18 = vsel %vm192_vm3, %v199_v16, %v186_v10 }
 0x5c8   :  { %v211_v19 = vmul.f32 %v203_v17, %v200_v18 }
 0x5ca   :  { %212 = vadd.xlane.f32.xlu0 %v211_v19 }
 0x653   :  { %v195_v20 = vpop.xlane.xlu1 %194 }
 0x654   :  { %v196_v21 = vsel %vm192_vm3, %v195_v20, %v182_v13 }
 0x655   :  { %v207_v23 = vmul.f32 %v203_v17, %v196_v21 }
 0x657   :  { %v213_v24 = vpop.xlane.xlu0 %212  ;;  %208 = vadd.xlane.f32.xlu1 %v207_v23 }
 0x658   :  { %v214_v26 = vsel %vm206_vm4, %v213_v24, %v200_v18 }
 0x659   :  { %v225_v27 = vmul.f32 %v217_v25, %v214_v26 }
 0x65b   :  { %226 = vadd.xlane.f32.xlu0 %v225_v27 }
 0x6e4   :  { %v209_v28 = vpop.xlane.xlu1 %208 }
 0x6e5   :  { %v210_v29 = vsel %vm206_vm4, %v209_v28, %v196_v21 }
 0x6e6   :  { %v221_v31 = vmul.f32 %v217_v25, %v210_v29 }
 0x6e8   :  { %v227_v32 = vpop.xlane.xlu0 %226  ;;  %222 = vadd.xlane.f32.xlu1 %v221_v31 }
 0x6e9   :  { %v228_v34 = vsel %vm220_vm5, %v227_v32, %v214_v26 }
 0x6ea   :  { %v239_v35 = vmul.f32 %v231_v33, %v228_v34 }
 0x6ec   :  { %240 = vadd.xlane.f32.xlu0 %v239_v35 }
 0x775   :  { %v223_v36 = vpop.xlane.xlu1 %222 }
 0x776   :  { %v224_v37 = vsel %vm220_vm5, %v223_v36, %v210_v29 }
 0x777   :  { %v235_v39 = vmul.f32 %v231_v33, %v224_v37 }
 0x779   :  { %v241_v40 = vpop.xlane.xlu0 %240  ;;  %236 = vadd.xlane.f32.xlu1 %v235_v39 }
 0x77a   :  { %v242_v42 = vsel %vm234_vm6, %v241_v40, %v228_v34 }
 0x77b   :  { %v253_v44 = vmul.f32 %v245_v41, %v242_v42 }
 0x77d   :  { %254 = vadd.xlane.f32.xlu0 %v253_v44 }
 0x806   :  { %v237_v46 = vpop.xlane.xlu1 %236 }
 0x807   :  { %v238_v47 = vsel %vm234_vm6, %v237_v46, %v224_v37 }
 0x808   :  { %v249_v49 = vmul.f32 %v245_v41, %v238_v47 }
 0x80a   :  { %v255_v50 = vpop.xlane.xlu0 %254  ;;  %250 = vadd.xlane.f32.xlu1 %v249_v49 }
 0x80b   :  { %v256_v52 = vsel %vm248_vm7, %v255_v50, %v242_v42 }
 0x80c   :  { %v267_v53 = vmul.f32 %v259_v51, %v256_v52 }
 0x80e   :  { %268 = vadd.xlane.f32.xlu0 %v267_v53 }
 0x897   :  { %v251_v54 = vpop.xlane.xlu1 %250 }
 0x898   :  { %v252_v55 = vsel %vm248_vm7, %v251_v54, %v238_v47 }
 0x899   :  { %v263_v56 = vmul.f32 %v259_v51, %v252_v55 }
 0x89b   :  { %v269_v57 = vpop.xlane.xlu0 %268  ;;  %264 = vadd.xlane.f32.xlu1 %v263_v56 }
 0x89c   :  { %v270_v58 = vsel %vm262_vm8, %v269_v57, %v256_v52 }
 0x89d   :  { %v277_v59 = vmul.f32 %v377_v45, %v270_v58 }
 0x89f   :  { %v279_v60 = vsel %vm278_vm9, %v270_v58, %v277_v59 }
 0x8a0   :  { %314 = vst [vmem:[%s402_s1 + $0x8] sm:$0xff] %v279_v60 }
 0x928   :  { %v265_v61 = vpop.xlane.xlu1 %264 }
 0x929   :  { %v266_v62 = vsel %vm262_vm8, %v265_v61, %v252_v55 }
 0x92a   :  { %v272_v63 = vmul.f32 %v357_v7, %v266_v62 }
 0x92c   :  { %v274_v2 = vsel %vm273_vm10, %v266_v62, %v272_v63 }
 0x92d   :  { %312 = vst [vmem:[%s402_s1] sm:$0xff] %v274_v2 }

// kernel: custom-call.23
= control target key start
LH: loop header
LB: loop body
LE: loop exit
PB: predicated region body
PF: predicated region fallthrough
CT: control target
= control target key end

     0   :  { %v38_v0 = vlaneseq  ;;  %v331_v10 = vmov -1.0   ;;  %v332_v47 = vmov 0.0   ;;  %s434_s0 = inlined_call_operand.vmem [shape: f32[1,16,16], index: 0, kind: input, shape index: {}]   ;;  %s435_s1 = inlined_call_operand.vmem [shape: f32[1,16,16], index: 1, kind: output, shape index: {}]  }
   0x1   :  { %v33_v3 = vld [vmem:[%s434_s0 + $0x8] sm:$0xff]  ;;  %v31_v36 = vld [vmem:[%s434_s0] sm:$0xff] }
   0x2   :  { %v343_v1 = vand.u32 127, %v38_v0  ;;  %v345_v2 = vshrl.u32 %v38_v0, 7 }
   0x4   :  { %vm40_vm0 = vcmp.lt.s32.totalorder %v343_v1, 16  ;;  %v59_v4 = vadd.s32 8, %v345_v2  ;;  %vm86_vm4 = vcmp.eq.s32.totalorder %v343_v1, 15  ;;  %vm94_vm6 = vcmp.eq.s32.totalorder %v343_v1, 14 }
   0x5   :  { %v87_v11 = vsel %vm86_vm4, 1.0, %v331_v10  ;;  %vm104_vm7 = vcmp.eq.s32.totalorder %v343_v1, 13  ;;  %vm114_vm8 = vcmp.eq.s32.totalorder %v343_v1, 12  ;;  %vm124_vm9 = vcmp.eq.s32.totalorder %v343_v1, 11 }
   0x6   :  { %vm60_vm1 = vcmp.eq.s32.totalorder %v59_v4, %v343_v1  ;;  %vm65_vm2 = vcmp.le.s32.totalorder %v59_v4, %v343_v1  ;;  %vm83_vm5 = vcmp.eq.s32.totalorder %v343_v1, %v59_v4  ;;  %vm44_vm10 = vcmp.eq.s32.totalorder %v345_v2, %v343_v1 }
   0x7   :  { %v62_v5 = vsel %vm60_vm1, %v33_v3, 0.0  ;;  %vm66_vm3 = vmand %vm65_vm2, %vm40_vm0  ;;  %v88_v12 = vsel %vm83_vm5, %v87_v11, 0.0  ;;  %v46_v37 = vsel %vm44_vm10, %v31_v36, 0.0  ;;  %vm134_vm11 = vcmp.eq.s32.totalorder %v343_v1, 10 }
   0x8   :  { %v67_v6 = vsel %vm66_vm3, %v33_v3, 0.0  ;;  %63 = vadd.xlane.f32.xlu0 %v62_v5  ;;  %vm49_vm12 = vcmp.le.s32.totalorder %v345_v2, %v343_v1  ;;  %vm76_vm14 = vcmp.eq.s32.totalorder %v343_v1, %v345_v2  ;;  %vm144_vm15 = vcmp.eq.s32.totalorder %v343_v1, 9 }
   0x9   :  { %vm50_vm13 = vmand %vm49_vm12, %vm40_vm0  ;;  %v77_v48 = vsel %vm76_vm14, -1.0, %v332_v47  ;;  %vm164_vm0 = vcmp.eq.s32.totalorder %v343_v1, 7  ;;  %vm154_vm1 = vcmp.eq.s32.totalorder %v343_v1, 8  ;;  %vm178_vm2 = vcmp.eq.s32.totalorder %v343_v1, 6 }
   0xa   :  { %v51_v44 = vsel %vm50_vm13, %v31_v36, 0.0  ;;  %vm192_vm3 = vcmp.eq.s32.totalorder %v343_v1, 5  ;;  %vm206_vm4 = vcmp.eq.s32.totalorder %v343_v1, 4  ;;  %vm220_vm5 = vcmp.eq.s32.totalorder %v343_v1, 3 }
  0x95   :  { %v356_v7 = vpop.xlane.xlu0 %63 }
  0x96   :  { %327 = vrcp.f32 %v356_v7  ;;  %vm277_vm10 = vweird.f32 %v356_v7 }
  0xa0   :  { %v359_v8 = vpop.eup %327 }
  0xa1   :  { %v69_v9 = vmul.f32 %v359_v8, %v67_v6 }
  0xa3   :  { %70 = vst [vmem:[#allocation2 + $0x8] sm:$0xff] %v69_v9 }
  0xaa   :  { %v90_v13 = vld [vmem:[#allocation2 + $0xe] ss:$0 sm:$0xff]  ;;  %v100_v16 = vld [vmem:[#allocation2 + $0xd] ss:$0 sm:$0xff]  ;;  %v110_v21 = vld [vmem:[#allocation2 + $0xc] ss:$0 sm:$0xff] }
  0xab   :  { %v91_v14 = vxor.u32 2147483648, %v90_v13  ;;  %v101_v18 = vxor.u32 2147483648, %v100_v16  ;;  %v111_v23 = vxor.u32 2147483648, %v110_v21  ;;  %v120_v26 = vld [vmem:[#allocation2 + $0xb] ss:$0 sm:$0xff] }
  0xac   :  { %v121_v28 = vxor.u32 2147483648, %v120_v26  ;;  %v130_v31 = vld [vmem:[#allocation2 + $0xa] ss:$0 sm:$0xff]  ;;  %v140_v38 = vld [vmem:[#allocation2 + $0x9] ss:$0 sm:$0xff] }
  0xad   :  { %v95_v15 = vmul.f32 %v91_v14, %v88_v12  ;;  %v131_v33 = vxor.u32 2147483648, %v130_v31  ;;  %v141_v40 = vxor.u32 2147483648, %v140_v38  ;;  %v150_v52 = vld [vmem:[#allocation2 + $0x8] ss:$0 sm:$0xff] }
  0xae   :  { %v151_v54 = vxor.u32 2147483648, %v150_v52 }
  0xaf   :  { %96 = vadd.xlane.f32.xlu0 %v95_v15 }
 0x13c   :  { %v97_v17 = vpop.xlane.xlu0 %96 }
 0x13d   :  { %v98_v19 = vsel %vm94_vm6, %v97_v17, %v88_v12  ;;  %vm234_vm6 = vcmp.eq.s32.totalorder %v343_v1, 2 }
 0x13e   :  { %v105_v20 = vmul.f32 %v101_v18, %v98_v19 }
 0x140   :  { %106 = vadd.xlane.f32.xlu1 %v105_v20 }
 0x1cd   :  { %v107_v22 = vpop.xlane.xlu1 %106 }
 0x1ce   :  { %v108_v24 = vsel %vm104_vm7, %v107_v22, %v98_v19  ;;  %vm248_vm7 = vcmp.eq.s32.totalorder %v343_v1, 1 }
 0x1cf   :  { %v115_v25 = vmul.f32 %v111_v23, %v108_v24 }
 0x1d1   :  { %116 = vadd.xlane.f32.xlu1 %v115_v25 }
 0x25e   :  { %v117_v27 = vpop.xlane.xlu1 %116 }
 0x25f   :  { %v118_v29 = vsel %vm114_vm8, %v117_v27, %v108_v24  ;;  %vm261_vm8 = vcmp.eq.s32.totalorder %v343_v1, 0 }
 0x260   :  { %v125_v30 = vmul.f32 %v121_v28, %v118_v29 }
 0x262   :  { %126 = vadd.xlane.f32.xlu0 %v125_v30 }
 0x2ef   :  { %v127_v32 = vpop.xlane.xlu0 %126 }
 0x2f0   :  { %v128_v34 = vsel %vm124_vm9, %v127_v32, %v118_v29 }
 0x2f1   :  { %v135_v35 = vmul.f32 %v131_v33, %v128_v34 }
 0x2f3   :  { %136 = vadd.xlane.f32.xlu1 %v135_v35 }
 0x2f7   :  { %47 = vadd.xlane.f32.xlu1 %v46_v37 }
 0x380   :  { %v137_v39 = vpop.xlane.xlu1 %136 }
 0x381   :  { %v138_v41 = vsel %vm134_vm11, %v137_v39, %v128_v34 }
 0x382   :  { %v145_v42 = vmul.f32 %v141_v40, %v138_v41 }
 0x384   :  { %146 = vadd.xlane.f32.xlu0 %v145_v42  ;;  %v374_v43 = vpop.xlane.xlu1 %47 }
 0x385   :  { %329 = vrcp.f32 %v374_v43  ;;  %vm272_vm9 = vweird.f32 %v374_v43 }
 0x38f   :  { %v381_v45 = vpop.eup %329 }
 0x390   :  { %v53_v46 = vmul.f32 %v381_v45, %v51_v44 }
 0x392   :  { %54 = vst [vmem:[#allocation2] sm:$0xff] %v53_v46 }
 0x399   :  { %v160_v49 = vld [vmem:[#allocation2 + $0x7] ss:$0 sm:$0xff]  ;;  %v174_v57 = vld [vmem:[#allocation2 + $0x6] ss:$0 sm:$0xff]  ;;  %v188_v2 = vld [vmem:[#allocation2 + $0x5] ss:$0 sm:$0xff] }
 0x39a   :  { %v161_v50 = vxor.u32 2147483648, %v160_v49  ;;  %v175_v58 = vxor.u32 2147483648, %v174_v57  ;;  %v189_v4 = vxor.u32 2147483648, %v188_v2  ;;  %v202_v12 = vld [vmem:[#allocation2 + $0x4] ss:$0 sm:$0xff] }
 0x39b   :  { %v203_v14 = vxor.u32 2147483648, %v202_v12  ;;  %v216_v20 = vld [vmem:[#allocation2 + $0x3] ss:$0 sm:$0xff]  ;;  %v230_v28 = vld [vmem:[#allocation2 + $0x2] ss:$0 sm:$0xff] }
 0x39c   :  { %v165_v51 = vmul.f32 %v161_v50, %v77_v48  ;;  %v217_v22 = vxor.u32 2147483648, %v216_v20  ;;  %v231_v30 = vxor.u32 2147483648, %v230_v28  ;;  %v244_v36 = vld [vmem:[#allocation2 + $0x1] ss:$0 sm:$0xff]  ;;  %v257_v46 = vld [vmem:[#allocation2] ss:$0 sm:$0xff] }
 0x39d   :  { %v245_v38 = vxor.u32 2147483648, %v244_v36 }
 0x39e   :  { %166 = vadd.xlane.f32.xlu1 %v165_v51 }
 0x411   :  { %v147_v53 = vpop.xlane.xlu0 %146 }
 0x412   :  { %v148_v55 = vsel %vm144_vm15, %v147_v53, %v138_v41 }
 0x413   :  { %v155_v56 = vmul.f32 %v151_v54, %v148_v55 }
 0x415   :  { %156 = vadd.xlane.f32.xlu0 %v155_v56 }
 0x42b   :  { %v167_v59 = vpop.xlane.xlu1 %166 }
 0x42c   :  { %v168_v60 = vsel %vm164_vm0, %v167_v59, %v77_v48  ;;  %v258_v48 = vxor.u32 2147483648, %v257_v46 }
 0x42d   :  { %v179_v61 = vmul.f32 %v175_v58, %v168_v60 }
 0x42f   :  { %180 = vadd.xlane.f32.xlu1 %v179_v61 }
 0x4a2   :  { %v157_v62 = vpop.xlane.xlu0 %156 }
 0x4a3   :  { %v158_v63 = vsel %vm154_vm1, %v157_v62, %v148_v55 }
 0x4a4   :  { %v169_v0 = vmul.f32 %v161_v50, %v158_v63 }
 0x4a6   :  { %170 = vadd.xlane.f32.xlu0 %v169_v0 }
 0x4bc   :  { %v181_v3 = vpop.xlane.xlu1 %180 }
 0x4bd   :  { %v182_v5 = vsel %vm178_vm2, %v181_v3, %v168_v60 }
 0x4be   :  { %v193_v6 = vmul.f32 %v189_v4, %v182_v5 }
 0x4c0   :  { %194 = vadd.xlane.f32.xlu1 %v193_v6 }
 0x533   :  { %v171_v9 = vpop.xlane.xlu0 %170 }
 0x534   :  { %v172_v10 = vsel %vm164_vm0, %v171_v9, %v158_v63 }
 0x535   :  { %v183_v11 = vmul.f32 %v175_v58, %v172_v10 }
 0x537   :  { %184 = vadd.xlane.f32.xlu0 %v183_v11 }
 0x54d   :  { %v195_v13 = vpop.xlane.xlu1 %194 }
 0x54e   :  { %v196_v15 = vsel %vm192_vm3, %v195_v13, %v182_v5 }
 0x54f   :  { %v207_v16 = vmul.f32 %v203_v14, %v196_v15 }
 0x551   :  { %208 = vadd.xlane.f32.xlu1 %v207_v16 }
 0x5c4   :  { %v185_v17 = vpop.xlane.xlu0 %184 }
 0x5c5   :  { %v186_v18 = vsel %vm178_vm2, %v185_v17, %v172_v10 }
 0x5c6   :  { %v197_v19 = vmul.f32 %v189_v4, %v186_v18 }
 0x5c8   :  { %198 = vadd.xlane.f32.xlu0 %v197_v19 }
 0x5de   :  { %v209_v21 = vpop.xlane.xlu1 %208 }
 0x5df   :  { %v210_v23 = vsel %vm206_vm4, %v209_v21, %v196_v15 }
 0x5e0   :  { %v221_v24 = vmul.f32 %v217_v22, %v210_v23 }
 0x5e2   :  { %222 = vadd.xlane.f32.xlu1 %v221_v24 }
 0x655   :  { %v199_v25 = vpop.xlane.xlu0 %198 }
 0x656   :  { %v200_v26 = vsel %vm192_vm3, %v199_v25, %v186_v18 }
 0x657   :  { %v211_v27 = vmul.f32 %v203_v14, %v200_v26 }
 0x659   :  { %212 = vadd.xlane.f32.xlu0 %v211_v27 }
 0x66f   :  { %v223_v29 = vpop.xlane.xlu1 %222 }
 0x670   :  { %v224_v31 = vsel %vm220_vm5, %v223_v29, %v210_v23 }
 0x671   :  { %v235_v32 = vmul.f32 %v231_v30, %v224_v31 }
 0x673   :  { %236 = vadd.xlane.f32.xlu1 %v235_v32 }
 0x6e6   :  { %v213_v33 = vpop.xlane.xlu0 %212 }
 0x6e7   :  { %v214_v34 = vsel %vm206_vm4, %v213_v33, %v200_v26 }
 0x6e8   :  { %v225_v35 = vmul.f32 %v217_v22, %v214_v34 }
 0x6ea   :  { %226 = vadd.xlane.f32.xlu0 %v225_v35 }
 0x700   :  { %v237_v37 = vpop.xlane.xlu1 %236 }
 0x701   :  { %v238_v39 = vsel %vm234_vm6, %v237_v37, %v224_v31 }
 0x702   :  { %v249_v40 = vmul.f32 %v245_v38, %v238_v39 }
 0x704   :  { %250 = vadd.xlane.f32.xlu1 %v249_v40 }
 0x777   :  { %v227_v41 = vpop.xlane.xlu0 %226 }
 0x778   :  { %v228_v42 = vsel %vm220_vm5, %v227_v41, %v214_v34 }
 0x779   :  { %v239_v44 = vmul.f32 %v231_v30, %v228_v42 }
 0x77b   :  { %240 = vadd.xlane.f32.xlu0 %v239_v44 }
 0x791   :  { %v251_v47 = vpop.xlane.xlu1 %250 }
 0x792   :  { %v252_v49 = vsel %vm248_vm7, %v251_v47, %v238_v39 }
 0x793   :  { %v262_v50 = vmul.f32 %v258_v48, %v252_v49 }
 0x795   :  { %263 = vadd.xlane.f32.xlu1 %v262_v50 }
 0x808   :  { %v241_v51 = vpop.xlane.xlu0 %240 }
 0x809   :  { %v242_v52 = vsel %vm234_vm6, %v241_v51, %v228_v42 }
 0x80a   :  { %v253_v53 = vmul.f32 %v245_v38, %v242_v52 }
 0x80c   :  { %254 = vadd.xlane.f32.xlu0 %v253_v53 }
 0x822   :  { %v264_v54 = vpop.xlane.xlu1 %263 }
 0x823   :  { %v265_v55 = vsel %vm261_vm8, %v264_v54, %v252_v49 }
 0x824   :  { %v271_v56 = vmul.f32 %v381_v45, %v265_v55 }
 0x826   :  { %v273_v57 = vsel %vm272_vm9, %v265_v55, %v271_v56 }
 0x827   :  { %311 = vst [vmem:[%s435_s1] sm:$0xff] %v273_v57 }
 0x899   :  { %v255_v58 = vpop.xlane.xlu0 %254 }
 0x89a   :  { %v256_v59 = vsel %vm248_vm7, %v255_v58, %v242_v52 }
 0x89b   :  { %v266_v60 = vmul.f32 %v258_v48, %v256_v59 }
 0x89d   :  { %267 = vadd.xlane.f32.xlu0 %v266_v60 }
 0x92a   :  { %v268_v61 = vpop.xlane.xlu0 %267 }
 0x92b   :  { %v269_v62 = vsel %vm261_vm8, %v268_v61, %v256_v59 }
 0x92c   :  { %v276_v63 = vmul.f32 %v359_v8, %v269_v62 }
 0x92e   :  { %v278_v45 = vsel %vm277_vm10, %v269_v62, %v276_v63 }
 0x92f   :  { %313 = vst [vmem:[%s435_s1 + $0x8] sm:$0xff] %v278_v45 }

// kernel: neg.31
= control target key start
LH: loop header
LB: loop body
LE: loop exit
PB: predicated region body
PF: predicated region fallthrough
CT: control target
= control target key end

     0   :  { %s200_s0 = inlined_call_operand.vmem [shape: f32[12,8,8], index: 0, kind: input, shape index: {}]   ;;  %s201_s1 = inlined_call_operand.vmem [shape: f32[12,8,8], index: 1, kind: output, shape index: {}]  }
   0x1   :  { %v2_v0 = vld [vmem:[%s200_s0] sm:$0xff]  ;;  %v96_v1 = vld [vmem:[%s200_s0 + $0x8] sm:$0xff]  ;;  %v98_v2 = vld [vmem:[%s200_s0 + $0x10] sm:$0xff] }
   0x2   :  { %v5_v3 = vxor.u32 2147483648, %v2_v0  ;;  %v12_v4 = vxor.u32 2147483648, %v96_v1  ;;  %v20_v5 = vxor.u32 2147483648, %v98_v2  ;;  %v100_v6 = vld [vmem:[%s200_s0 + $0x18] sm:$0xff]  ;;  %v102_v7 = vld [vmem:[%s200_s0 + $0x20] sm:$0xff]  ;;  %v104_v8 = vld [vmem:[%s200_s0 + $0x28] sm:$0xff] }
   0x3   :  { %v28_v9 = vxor.u32 2147483648, %v100_v6  ;;  %v36_v10 = vxor.u32 2147483648, %v102_v7  ;;  %v44_v11 = vxor.u32 2147483648, %v104_v8  ;;  %v106_v12 = vld [vmem:[%s200_s0 + $0x30] sm:$0xff]  ;;  %v108_v13 = vld [vmem:[%s200_s0 + $0x38] sm:$0xff]  ;;  %v110_v14 = vld [vmem:[%s200_s0 + $0x40] sm:$0xff] }
   0x4   :  { %7 = vst [vmem:[%s201_s1] sm:$0xff] %v5_v3  ;;  %97 = vst [vmem:[%s201_s1 + $0x8] sm:$0xff] %v12_v4  ;;  %v52_v15 = vxor.u32 2147483648, %v106_v12  ;;  %v60_v16 = vxor.u32 2147483648, %v108_v13  ;;  %v68_v17 = vxor.u32 2147483648, %v110_v14  ;;  %v112_v18 = vld [vmem:[%s200_s0 + $0x48] sm:$0xff]  ;;  %v114_v19 = vld [vmem:[%s200_s0 + $0x50] sm:$0xff] }
   0x5   :  { %99 = vst [vmem:[%s201_s1 + $0x10] sm:$0xff] %v20_v5  ;;  %v116_v20 = vld [vmem:[%s200_s0 + $0x58] sm:$0xff]  ;;  %101 = vst [vmem:[%s201_s1 + $0x18] sm:$0xff] %v28_v9  ;;  %v76_v21 = vxor.u32 2147483648, %v112_v18  ;;  %v84_v22 = vxor.u32 2147483648, %v114_v19 }
   0x6   :  { %103 = vst [vmem:[%s201_s1 + $0x20] sm:$0xff] %v36_v10  ;;  %105 = vst [vmem:[%s201_s1 + $0x28] sm:$0xff] %v44_v11  ;;  %v92_v23 = vxor.u32 2147483648, %v116_v20 }
   0x7   :  { %107 = vst [vmem:[%s201_s1 + $0x30] sm:$0xff] %v52_v15  ;;  %109 = vst [vmem:[%s201_s1 + $0x38] sm:$0xff] %v60_v16 }
   0x8   :  { %111 = vst [vmem:[%s201_s1 + $0x40] sm:$0xff] %v68_v17  ;;  %113 = vst [vmem:[%s201_s1 + $0x48] sm:$0xff] %v76_v21 }
   0x9   :  { %115 = vst [vmem:[%s201_s1 + $0x50] sm:$0xff] %v84_v22  ;;  %117 = vst [vmem:[%s201_s1 + $0x58] sm:$0xff] %v92_v23 }

// kernel: neg.30
= control target key start
LH: loop header
LB: loop body
LE: loop exit
PB: predicated region body
PF: predicated region fallthrough
CT: control target
= control target key end

     0   :  { %s200_s0 = inlined_call_operand.vmem [shape: f32[12,8,8], index: 0, kind: input, shape index: {}]   ;;  %s201_s1 = inlined_call_operand.vmem [shape: f32[12,8,8], index: 1, kind: output, shape index: {}]  }
   0x1   :  { %v2_v0 = vld [vmem:[%s200_s0] sm:$0xff]  ;;  %v96_v1 = vld [vmem:[%s200_s0 + $0x8] sm:$0xff]  ;;  %v98_v2 = vld [vmem:[%s200_s0 + $0x10] sm:$0xff] }
   0x2   :  { %v5_v3 = vxor.u32 2147483648, %v2_v0  ;;  %v12_v4 = vxor.u32 2147483648, %v96_v1  ;;  %v20_v5 = vxor.u32 2147483648, %v98_v2  ;;  %v100_v6 = vld [vmem:[%s200_s0 + $0x18] sm:$0xff]  ;;  %v102_v7 = vld [vmem:[%s200_s0 + $0x20] sm:$0xff]  ;;  %v104_v8 = vld [vmem:[%s200_s0 + $0x28] sm:$0xff] }
   0x3   :  { %v28_v9 = vxor.u32 2147483648, %v100_v6  ;;  %v36_v10 = vxor.u32 2147483648, %v102_v7  ;;  %v44_v11 = vxor.u32 2147483648, %v104_v8  ;;  %v106_v12 = vld [vmem:[%s200_s0 + $0x30] sm:$0xff]  ;;  %v108_v13 = vld [vmem:[%s200_s0 + $0x38] sm:$0xff]  ;;  %v110_v14 = vld [vmem:[%s200_s0 + $0x40] sm:$0xff] }
   0x4   :  { %7 = vst [vmem:[%s201_s1] sm:$0xff] %v5_v3  ;;  %97 = vst [vmem:[%s201_s1 + $0x8] sm:$0xff] %v12_v4  ;;  %v52_v15 = vxor.u32 2147483648, %v106_v12  ;;  %v60_v16 = vxor.u32 2147483648, %v108_v13  ;;  %v68_v17 = vxor.u32 2147483648, %v110_v14  ;;  %v112_v18 = vld [vmem:[%s200_s0 + $0x48] sm:$0xff]  ;;  %v114_v19 = vld [vmem:[%s200_s0 + $0x50] sm:$0xff] }
   0x5   :  { %99 = vst [vmem:[%s201_s1 + $0x10] sm:$0xff] %v20_v5  ;;  %v116_v20 = vld [vmem:[%s200_s0 + $0x58] sm:$0xff]  ;;  %101 = vst [vmem:[%s201_s1 + $0x18] sm:$0xff] %v28_v9  ;;  %v76_v21 = vxor.u32 2147483648, %v112_v18  ;;  %v84_v22 = vxor.u32 2147483648, %v114_v19 }
   0x6   :  { %103 = vst [vmem:[%s201_s1 + $0x20] sm:$0xff] %v36_v10  ;;  %105 = vst [vmem:[%s201_s1 + $0x28] sm:$0xff] %v44_v11  ;;  %v92_v23 = vxor.u32 2147483648, %v116_v20 }
   0x7   :  { %107 = vst [vmem:[%s201_s1 + $0x30] sm:$0xff] %v52_v15  ;;  %109 = vst [vmem:[%s201_s1 + $0x38] sm:$0xff] %v60_v16 }
   0x8   :  { %111 = vst [vmem:[%s201_s1 + $0x40] sm:$0xff] %v68_v17  ;;  %113 = vst [vmem:[%s201_s1 + $0x48] sm:$0xff] %v76_v21 }
   0x9   :  { %115 = vst [vmem:[%s201_s1 + $0x50] sm:$0xff] %v84_v22  ;;  %117 = vst [vmem:[%s201_s1 + $0x58] sm:$0xff] %v92_v23 }

// kernel: custom-call.2
= control target key start
LH: loop header
LB: loop body
LE: loop exit
PB: predicated region body
PF: predicated region fallthrough
CT: control target
= control target key end

     0   :  { %2 = vsyncpa [#allocation0], 0  ;;  %s61_s0 = inlined_call_operand.hbm [shape: c64[1,128], index: 0, kind: input, shape index: {}]   ;;  %s62_s1 = inlined_call_operand.vmem [shape: f32[1,128], index: 1, kind: output, shape index: {}]  }
   0x1   :  { %s3_s8 = sshll.u32 %s62_s1, 4  ;;  %s9_s11 = scalar_lea.hbm %s61_s0, 16  ;;  %s4_s8 = int_to_ptr.vmem [resolvable:$true] %s3_s8 }
   0x2   :  { %p10_p0 = scmp.ne.s32.totalorder %s61_s0, %s9_s11  ;;  %s11_s16 = scalar_lea.hbm %s61_s0, 32 }
   0x3   :  { %p12_p1 = scmp.lt.u32.totalorder %s11_s16, %s9_s11  ;;  %p13_p2 = scmp.lt.u32.totalorder %s9_s11, %s61_s0 }
   0x5   :  { %p14_p3 = por %p13_p2, %p12_p1 }
   0x7   :  { %p15_p4 = pnand %p14_p3, %p10_p0 }
   0x9   :  { %18 = shalt.err (!%p15_p4)  }
   0xa   :  { %s19_s1 = scalar_lea.vmem %s4_s8, 16  ;;  %p24_p6 = scmp.lt.s32.totalorder %s4_s8, %s4_s8 }
   0xb   :  { %p20_p5 = scmp.ne.s32.totalorder %s4_s8, %s19_s1  ;;  %p25_p7 = scmp.lt.s32.totalorder %s19_s1, %s19_s1 }
   0xd   :  { %p26_p8 = por %p25_p7, %p24_p6 }
   0xf   :  { %p27_p9 = pnand %p26_p8, %p20_p5 }
  0x11   :  { %30 = shalt.err (!%p27_p9)  }
  0x12   :  { %6 = dma.hbm_to_vmem [thread:$0]  %s61_s0, 16, %s4_s8, [#allocation0] }
  0x13   :  { %31 = dma.done.wait [#allocation0], 16  }
  0x14   :  { %32 = vsyncadd [#allocation0], 4294967280 }
  0x15   :  { %8 = vsyncpa [#allocation0], 1 }

// kernel: squeeze.27
= control target key start
LH: loop header
LB: loop body
LE: loop exit
PB: predicated region body
PF: predicated region fallthrough
CT: control target
= control target key end

     0   :  { %s130_s8 = smov 104   ;;  %s131_s9 = smov 112   ;;  %vm7_vm0 = vcmask 64512   ;;  %s221_s0 = inlined_call_operand.vmem [shape: f32[128], index: 0, kind: input, shape index: {}]   ;;  %s222_s1 = inlined_call_operand.vmem [shape: f32[2,8,8], index: 1, kind: output, shape index: {}]  }
   0x1   :  { %v4_v0 = vld [vmem:[%s221_s0] sm:$0x1]  ;;  %s129_s0 = smov 120   ;;  %s132_s10 = smov 96  }
   0x2   :  { %5 = vst [vmem:[#allocation0] sm:$0x1] %v4_v0  ;;  %s133_s11 = smov 88   ;;  %s134_s12 = smov 80  }
   0x3   :  { %s135_s13 = smov 72   ;;  %s136_s14 = smov 64  }
   0x4   :  { %s137_s17 = smov 56   ;;  %s138_s18 = smov 48  }
   0x5   :  { %s139_s19 = smov 40   ;;  %s140_s20 = smov 32  }
   0x6   :  { %s141_s21 = smov 24   ;;  %s142_s22 = smov 16  }
   0x7   :  { %s143_s23 = smov 8  }
   0x9   :  { %v9_v1 = vld [vmem:[#allocation0] sm:$0x1]  }
   0xa   :  { %v21_v2 = vld [vmem:[#allocation0] sm:$0x1]   ;;  %10 = vrot.lane.b32.xlu0 %v9_v1, %s129_s0 }
   0xb   :  { %22 = vrot.lane.b32.xlu1 %v21_v2, %s130_s8  ;;  %v15_v3 = vld [vmem:[#allocation0] sm:$0x1]  }
   0xc   :  { %v27_v4 = vld [vmem:[#allocation0] sm:$0x1]  }
   0xd   :  { %v33_v5 = vld [vmem:[#allocation0] sm:$0x1]  }
   0xe   :  { %16 = vrot.lane.b32.xlu0 %v15_v3, %s131_s9  ;;  %v39_v6 = vld [vmem:[#allocation0] sm:$0x1]  }
   0xf   :  { %28 = vrot.lane.b32.xlu1 %v27_v4, %s132_s10  ;;  %v45_v7 = vld [vmem:[#allocation0] sm:$0x1]  }
  0x10   :  { %v51_v8 = vld [vmem:[#allocation0] sm:$0x1]  }
  0x11   :  { %v57_v9 = vld [vmem:[#allocation0] sm:$0x1]  }
  0x12   :  { %34 = vrot.lane.b32.xlu0 %v33_v5, %s133_s11  ;;  %v63_v10 = vld [vmem:[#allocation0] sm:$0x1]  }
  0x13   :  { %40 = vrot.lane.b32.xlu1 %v39_v6, %s134_s12  ;;  %v6_v11 = vld [vmem:[#allocation0] sm:$0x1]  }
  0x14   :  { %8 = vst.msk [vmem:[%s222_s1] sm:$0x1] %vm7_vm0, %v6_v11   ;;  %v69_v12 = vld [vmem:[#allocation0] sm:$0x1]  }
  0x15   :  { %v75_v13 = vld [vmem:[#allocation0] sm:$0x1]  }
  0x16   :  { %46 = vrot.lane.b32.xlu0 %v45_v7, %s135_s13  ;;  %v81_v14 = vld [vmem:[#allocation0] sm:$0x1]  }
  0x17   :  { %52 = vrot.lane.b32.xlu1 %v51_v8, %s136_s14  ;;  %v87_v15 = vld [vmem:[#allocation0] sm:$0x1]  }
  0x18   :  { %v93_v16 = vld [vmem:[#allocation0] sm:$0x1]  }
  0x1a   :  { %58 = vrot.lane.b32.xlu0 %v57_v9, %s137_s17 }
  0x1b   :  { %64 = vrot.lane.b32.xlu1 %v63_v10, %s138_s18 }
  0x1e   :  { %70 = vrot.lane.b32.xlu0 %v69_v12, %s139_s19 }
  0x1f   :  { %76 = vrot.lane.b32.xlu1 %v75_v13, %s140_s20 }
  0x22   :  { %82 = vrot.lane.b32.xlu0 %v81_v14, %s141_s21 }
  0x23   :  { %88 = vrot.lane.b32.xlu1 %v87_v15, %s142_s22 }
  0x26   :  { %94 = vrot.lane.b32.xlu0 %v93_v16, %s143_s23 }
  0x7c   :  { %v11_v17 = vpop.permute.xlu0 %10  }
  0x7d   :  { %v23_v18 = vpop.permute.xlu1 %22   ;;  %99 = vst.msk [vmem:[%s222_s1 + $0x1] sm:$0x1] %vm7_vm0, %v11_v17  }
  0x7e   :  { %101 = vst.msk [vmem:[%s222_s1 + $0x3] sm:$0x1] %vm7_vm0, %v23_v18  }
  0x80   :  { %v17_v19 = vpop.permute.xlu0 %16  }
  0x81   :  { %v29_v20 = vpop.permute.xlu1 %28   ;;  %100 = vst.msk [vmem:[%s222_s1 + $0x2] sm:$0x1] %vm7_vm0, %v17_v19  }
  0x82   :  { %102 = vst.msk [vmem:[%s222_s1 + $0x4] sm:$0x1] %vm7_vm0, %v29_v20  }
  0x84   :  { %v35_v21 = vpop.permute.xlu0 %34  }
  0x85   :  { %v41_v22 = vpop.permute.xlu1 %40   ;;  %103 = vst.msk [vmem:[%s222_s1 + $0x5] sm:$0x1] %vm7_vm0, %v35_v21  }
  0x86   :  { %104 = vst.msk [vmem:[%s222_s1 + $0x6] sm:$0x1] %vm7_vm0, %v41_v22  }
  0x88   :  { %v47_v23 = vpop.permute.xlu0 %46  }
  0x89   :  { %v53_v24 = vpop.permute.xlu1 %52   ;;  %105 = vst.msk [vmem:[%s222_s1 + $0x7] sm:$0x1] %vm7_vm0, %v47_v23  }
  0x8a   :  { %106 = vst.msk [vmem:[%s222_s1 + $0x8] sm:$0x1] %vm7_vm0, %v53_v24  }
  0x8c   :  { %v59_v25 = vpop.permute.xlu0 %58  }
  0x8d   :  { %v65_v26 = vpop.permute.xlu1 %64   ;;  %107 = vst.msk [vmem:[%s222_s1 + $0x9] sm:$0x1] %vm7_vm0, %v59_v25  }
  0x8e   :  { %108 = vst.msk [vmem:[%s222_s1 + $0xa] sm:$0x1] %vm7_vm0, %v65_v26  }
  0x90   :  { %v71_v27 = vpop.permute.xlu0 %70  }
  0x91   :  { %v77_v28 = vpop.permute.xlu1 %76   ;;  %109 = vst.msk [vmem:[%s222_s1 + $0xb] sm:$0x1] %vm7_vm0, %v71_v27  }
  0x92   :  { %110 = vst.msk [vmem:[%s222_s1 + $0xc] sm:$0x1] %vm7_vm0, %v77_v28  }
  0x94   :  { %v83_v29 = vpop.permute.xlu0 %82  }
  0x95   :  { %v89_v30 = vpop.permute.xlu1 %88   ;;  %111 = vst.msk [vmem:[%s222_s1 + $0xd] sm:$0x1] %vm7_vm0, %v83_v29  }
  0x96   :  { %112 = vst.msk [vmem:[%s222_s1 + $0xe] sm:$0x1] %vm7_vm0, %v89_v30  }
  0x98   :  { %v95_v31 = vpop.permute.xlu0 %94  }
  0x99   :  { %113 = vst.msk [vmem:[%s222_s1 + $0xf] sm:$0x1] %vm7_vm0, %v95_v31  }

// kernel: custom-call.3
= control target key start
LH: loop header
LB: loop body
LE: loop exit
PB: predicated region body
PF: predicated region fallthrough
CT: control target
= control target key end

     0   :  { %s59_s0 = inlined_call_operand.hbm [shape: c64[1,128], index: 0, kind: input, shape index: {}]   ;;  %s60_s1 = inlined_call_operand.vmem [shape: f32[1,128], index: 1, kind: output, shape index: {}]  }
   0x1   :  { %s2_s8 = scalar_lea.hbm %s59_s0, 16 }
   0x2   :  { %3 = vsyncpa [#allocation0], 0  ;;  %s4_s11 = sshll.u32 %s60_s1, 4  ;;  %s34_s14 = scalar_lea.hbm %s59_s0, 32  ;;  %s5_s11 = int_to_ptr.vmem [resolvable:$true] %s4_s11 }
   0x3   :  { %p11_p0 = scmp.ne.s32.totalorder %s2_s8, %s34_s14  ;;  %p13_p1 = scmp.lt.u32.totalorder %s2_s8, %s59_s0 }
   0x4   :  { %p14_p2 = scmp.lt.u32.totalorder %s34_s14, %s34_s14  ;;  %p16_p4 = scmp.lt.u32.totalorder %s34_s14, %s2_s8 }
   0x6   :  { %p15_p3 = por %p14_p2, %p13_p1 }
   0x8   :  { %p17_p5 = por %p16_p4, %p15_p3 }
   0xa   :  { %p18_p6 = pnand %p17_p5, %p11_p0 }
   0xc   :  { %21 = shalt.err (!%p18_p6)  }
   0xd   :  { %s22_s17 = scalar_lea.vmem %s5_s11, 16  ;;  %p27_p8 = scmp.lt.s32.totalorder %s5_s11, %s5_s11 }
   0xe   :  { %p23_p7 = scmp.ne.s32.totalorder %s5_s11, %s22_s17  ;;  %p28_p9 = scmp.lt.s32.totalorder %s22_s17, %s22_s17 }
  0x10   :  { %p29_p10 = por %p28_p9, %p27_p8 }
  0x12   :  { %p30_p11 = pnand %p29_p10, %p23_p7 }
  0x14   :  { %33 = shalt.err (!%p30_p11)  }
  0x15   :  { %7 = dma.hbm_to_vmem [thread:$0]  %s2_s8, 16, %s5_s11, [#allocation0] }
  0x16   :  { %35 = dma.done.wait [#allocation0], 16  }
  0x17   :  { %36 = vsyncadd [#allocation0], 4294967280 }
  0x18   :  { %9 = vsyncpa [#allocation0], 1 }

// kernel: custom-call
= control target key start
LH: loop header
LB: loop body
LE: loop exit
PB: predicated region body
PF: predicated region fallthrough
CT: control target
= control target key end

     0   :  { %2 = vsyncpa [#allocation0], 0  ;;  %s61_s0 = inlined_call_operand.hbm [shape: c64[3,4], index: 0, kind: input, shape index: {}]   ;;  %s62_s1 = inlined_call_operand.vmem [shape: f32[3,4], index: 1, kind: output, shape index: {}]  }
   0x1   :  { %s3_s8 = sshll.u32 %s62_s1, 4  ;;  %s9_s11 = scalar_lea.hbm %s61_s0, 64  ;;  %s4_s8 = int_to_ptr.vmem [resolvable:$true] %s3_s8 }
   0x2   :  { %p10_p0 = scmp.ne.s32.totalorder %s61_s0, %s9_s11  ;;  %s11_s16 = scalar_lea.hbm %s61_s0, 128 }
   0x3   :  { %p12_p1 = scmp.lt.u32.totalorder %s11_s16, %s9_s11  ;;  %p13_p2 = scmp.lt.u32.totalorder %s9_s11, %s61_s0 }
   0x5   :  { %p14_p3 = por %p13_p2, %p12_p1 }
   0x7   :  { %p15_p4 = pnand %p14_p3, %p10_p0 }
   0x9   :  { %18 = shalt.err (!%p15_p4)  }
   0xa   :  { %s19_s1 = scalar_lea.vmem %s4_s8, 64  ;;  %p24_p6 = scmp.lt.s32.totalorder %s4_s8, %s4_s8 }
   0xb   :  { %p20_p5 = scmp.ne.s32.totalorder %s4_s8, %s19_s1  ;;  %p25_p7 = scmp.lt.s32.totalorder %s19_s1, %s19_s1 }
   0xd   :  { %p26_p8 = por %p25_p7, %p24_p6 }
   0xf   :  { %p27_p9 = pnand %p26_p8, %p20_p5 }
  0x11   :  { %30 = shalt.err (!%p27_p9)  }
  0x12   :  { %6 = dma.hbm_to_vmem [thread:$0]  %s61_s0, 64, %s4_s8, [#allocation0] }
  0x13   :  { %31 = dma.done.wait [#allocation0], 64  }
  0x14   :  { %32 = vsyncadd [#allocation0], 4294967232 }
  0x15   :  { %8 = vsyncpa [#allocation0], 1 }

// kernel: custom-call.1
= control target key start
LH: loop header
LB: loop body
LE: loop exit
PB: predicated region body
PF: predicated region fallthrough
CT: control target
= control target key end

     0   :  { %s59_s0 = inlined_call_operand.hbm [shape: c64[3,4], index: 0, kind: input, shape index: {}]   ;;  %s60_s1 = inlined_call_operand.vmem [shape: f32[3,4], index: 1, kind: output, shape index: {}]  }
   0x1   :  { %s2_s8 = scalar_lea.hbm %s59_s0, 64 }
   0x2   :  { %3 = vsyncpa [#allocation0], 0  ;;  %s4_s11 = sshll.u32 %s60_s1, 4  ;;  %s34_s14 = scalar_lea.hbm %s59_s0, 128  ;;  %s5_s11 = int_to_ptr.vmem [resolvable:$true] %s4_s11 }
   0x3   :  { %p11_p0 = scmp.ne.s32.totalorder %s2_s8, %s34_s14  ;;  %p13_p1 = scmp.lt.u32.totalorder %s2_s8, %s59_s0 }
   0x4   :  { %p14_p2 = scmp.lt.u32.totalorder %s34_s14, %s34_s14  ;;  %p16_p4 = scmp.lt.u32.totalorder %s34_s14, %s2_s8 }
   0x6   :  { %p15_p3 = por %p14_p2, %p13_p1 }
   0x8   :  { %p17_p5 = por %p16_p4, %p15_p3 }
   0xa   :  { %p18_p6 = pnand %p17_p5, %p11_p0 }
   0xc   :  { %21 = shalt.err (!%p18_p6)  }
   0xd   :  { %s22_s17 = scalar_lea.vmem %s5_s11, 64  ;;  %p27_p8 = scmp.lt.s32.totalorder %s5_s11, %s5_s11 }
   0xe   :  { %p23_p7 = scmp.ne.s32.totalorder %s5_s11, %s22_s17  ;;  %p28_p9 = scmp.lt.s32.totalorder %s22_s17, %s22_s17 }
  0x10   :  { %p29_p10 = por %p28_p9, %p27_p8 }
  0x12   :  { %p30_p11 = pnand %p29_p10, %p23_p7 }
  0x14   :  { %33 = shalt.err (!%p30_p11)  }
  0x15   :  { %7 = dma.hbm_to_vmem [thread:$0]  %s2_s8, 64, %s5_s11, [#allocation0] }
  0x16   :  { %35 = dma.done.wait [#allocation0], 64  }
  0x17   :  { %36 = vsyncadd [#allocation0], 4294967232 }
  0x18   :  { %9 = vsyncpa [#allocation0], 1 }

// kernel: quantum_iso_forward.1
= control target key start
LH: loop header
LB: loop body
LE: loop exit
PB: predicated region body
PF: predicated region fallthrough
CT: control target
= control target key end

     0   :  { %vm26_vm0 = vcmask 1043456   ;;  %vm22_vm1 = vcmask 31744   ;;  %v11821_v1 = vmov 0.0   ;;  %vm8310_vm2 = vmmov 0   ;;  %s11814_s0 = inlined_call_operand.vmem [shape: f32[368,64], index: 0, kind: input, shape index: {}]   ;;  %s11815_s1 = inlined_call_operand.vmem [shape: f32[192,192], index: 1, kind: input, shape index: {}]   ;;  %s11816_s2 = inlined_call_operand.vmem [shape: f32[192,192], index: 2, kind: input, shape index: {}]   ;;  %s11817_s3 = inlined_call_operand.vmem [shape: f32[192,16], index: 3, kind: input, shape index: {}]   ;;  %s11818_s4 = inlined_call_operand.hbm [shape: f32[1,2], index: 4, kind: output, shape index: {}]  }
   0x1   :  { %v20_v0 = vld [vmem:[%s11814_s0 + $0x10] sm:$0xf]  ;;  %7323 = vmatprep.subr.mxu0 %v11821_v1  ;;  %7328 = vmatprep.subr.mxu1 %v11821_v1  ;;  %v21_v2 = vld [vmem:[%s11814_s0 + $0x18] sm:$0xf]  ;;  %v18_v3 = vld [vmem:[%s11814_s0] sm:$0x7] }
   0x2   :  { %v19_v4 = vld [vmem:[%s11814_s0 + $0x8] sm:$0x7]  ;;  %7324 = vmatpush3.msk.msra.mxu0 %vm26_vm0, %v20_v0  ;;  %7325 = vmatprep.mubr.msk.f32.mxu0 %vm8310_vm2, %v11821_v1 }
   0x3   :  { %9 = vsyncpa [#allocation3], 0  ;;  %7329 = vmatpush3.msk.msra.mxu1 %vm26_vm0, %v21_v2  ;;  %7330 = vmatprep.mubr.msk.f32.mxu1 %vm8310_vm2, %v11821_v1  ;;  %v331_v5 = vld [vmem:[%s11814_s0 + $0x30] sm:$0xff]  ;;  %v332_v6 = vld [vmem:[%s11814_s0 + $0x38] sm:$0xff]  ;;  %v11819_v8 = vmov 0.0|0.0   ;;  %vm335_vm3 = vcmask 130048  }
   0x4   :  { %7326 = vmatmul.mubr.msk.f32.vlgmr.msra.gmra.mrb[0].mxu0 %vm22_vm1, %v18_v3  ;;  %7331 = vmatmul.mubr.msk.f32.vlgmr.msra.gmra.mrb[0].mxu1 %vm22_vm1, %v19_v4  ;;  %v7588_v7 = vpack.c.bf16 %v332_v6, %v331_v5  ;;  %v333_v9 = vld [vmem:[%s11814_s0 + $0x40] sm:$0xff]  ;;  %v334_v10 = vld [vmem:[%s11814_s0 + $0x48] sm:$0xff]  ;;  %v639_v31 = vld [vmem:[%s11814_s0 + $0x70] sm:$0xff]  ;;  %vm1091_vm4 = vcmask 523264   ;;  %vm953_vm7 = vcmask 15360   ;;  %vm1026_vm9 = vcmask 7168  }
   0x5   :  { %7333 = vmatprep.subr.mxu0 %v11821_v1  ;;  %7338 = vmatprep.subr.mxu1 %v11821_v1  ;;  %v7591_v11 = vpack.c.bf16 %v334_v10, %v333_v9  ;;  %v6858_v14 = vld [vmem:[%s11814_s0 + $0x20] ss:$0 sm:$0xff]  ;;  %v6859_v21 = vld [vmem:[%s11814_s0 + $0x28] ss:$0 sm:$0xff]  ;;  %v640_v32 = vld [vmem:[%s11814_s0 + $0x78] sm:$0xff]  ;;  %s8312_s16 = smov [#allocation2]  }
   0x6   :  { %7334 = vmatpush3.msk.msra.mxu0 %vm26_vm0, %v20_v0  ;;  %7335 = vmatprep.mubr.msk.f32.mxu0 %vm8310_vm2, %v11821_v1  ;;  %v637_v28 = vld [vmem:[%s11814_s0 + $0x60] sm:$0xff]  ;;  %v638_v29 = vld [vmem:[%s11814_s0 + $0x68] sm:$0xff]  ;;  %v7603_v33 = vpack.c.bf16 %v640_v32, %v639_v31  ;;  %v6864_v37 = vld [vmem:[%s11814_s0 + $0x50] ss:$0 sm:$0xff]  ;;  %s6842_s17 = sshll.u32 %s8312_s16, 4  ;;  %s6843_s17 = int_to_ptr.vmem [resolvable:$true] %s6842_s17 }
   0x7   :  { %7339 = vmatpush3.msk.msra.mxu1 %vm26_vm0, %v21_v2  ;;  %7340 = vmatprep.mubr.msk.f32.mxu1 %vm8310_vm2, %v11821_v1  ;;  %v7600_v30 = vpack.c.bf16 %v638_v29, %v637_v28  ;;  %v8430_v42 = vld [vmem:[%s11815_s1 + $0x8] sm:$0xff]  ;;  %v8435_v43 = vld [vmem:[%s11815_s1 + $0x18] sm:$0xff]  ;;  %v8445_v51 = vld [vmem:[%s11815_s1] sm:$0xff]  ;;  %s8285_s18 = scalar_lea.vmem %s6843_s17, 16  ;;  %s8289_s19 = scalar_lea.vmem %s6843_s17, 32 }
   0x8   :  { %7336 = vmatmul.mubr.msk.f32.vlgmr.msra.gmra.mrb[2].mxu0 %vm22_vm1, %v19_v4  ;;  %7341 = vmatmul.mubr.msk.f32.vlgmr.msra.gmra.mrb[2].mxu1 %vm22_vm1, %v18_v3  ;;  %v6865_v46 = vld [vmem:[%s11814_s0 + $0x58] ss:$0 sm:$0xff]  ;;  %v7611_v50 = vpack.c.bf16 %v8435_v43, %v8430_v42  ;;  %v8450_v52 = vld [vmem:[%s11815_s1 + $0x10] sm:$0xff]  ;;  %v8455_v53 = vld [vmem:[%s11815_s1 + $0x28] sm:$0xff]  ;;  %p8286_p0 = scmp.ne.s32.totalorder %s6843_s17, %s8285_s18  ;;  %p8290_p1 = scmp.lt.s32.totalorder %s6843_s17, %s6843_s17 }
   0x9   :  { %7347 = vmatprep.mubr.msk.f32.mxu0 %vm8310_vm2, %v11821_v1  ;;  %7354 = vmatprep.mubr.msk.f32.mxu1 %vm8310_vm2, %v11821_v1  ;;  %11942 = vst [vmem:[#allocation5_spill] sm:$0xff] %v8455_v53  ;;  %v8460_v54 = vld [vmem:[%s11815_s1 + $0x38] sm:$0xff]  ;;  %v7613_v56 = vpack.c.bf16 %v8450_v52, %v8445_v51  ;;  %v8472_v59 = vld [vmem:[%s11815_s1 + $0x20] sm:$0xff]  ;;  %v8477_v60 = vld [vmem:[%s11815_s1 + $0x30] sm:$0xff]  ;;  %p8291_p2 = scmp.lt.s32.totalorder %s8289_s19, %s8285_s18 }
   0xa   :  { %7587 = vmatprep.subr.bf16.mxu0 %v11819_v8  ;;  %7590 = vmatprep.subr.bf16.mxu1 %v11819_v8  ;;  %11943 = vst [vmem:[#allocation6_spill] sm:$0xff] %v8460_v54  ;;  %v7615_v58 = vpack.c.bf16 %v8460_v54, %v8455_v53  ;;  %11944 = vst [vmem:[#allocation7_spill] sm:$0xff] %v8472_v59  ;;  %v8482_v61 = vld [vmem:[%s11815_s1 + $0x48] sm:$0xff]  ;;  %v8487_v62 = vld [vmem:[%s11815_s1 + $0x58] sm:$0xff]  ;;  %v7617_v63 = vpack.c.bf16 %v8477_v60, %v8472_v59 }
   0xb   :  { %7589 = vmatpush3.bf16.msra.mxu0 %v7588_v7  ;;  %7592 = vmatpush3.bf16.msra.mxu1 %v7591_v11  ;;  %11945 = vst [vmem:[#allocation8_spill] sm:$0xff] %v8477_v60  ;;  %11946 = vst [vmem:[#allocation9_spill] sm:$0xff] %v8482_v61  ;;  %v7619_v0 = vpack.c.bf16 %v8487_v62, %v8482_v61  ;;  %v8500_v2 = vld [vmem:[%s11815_s1 + $0x40] sm:$0xff]  ;;  %v8505_v3 = vld [vmem:[%s11815_s1 + $0x50] sm:$0xff]  ;;  %p8292_p3 = por %p8291_p2, %p8290_p1 }
   0xc   :  { %7593 = vmatprep.subr.bf16.mxu0 %v11819_v8  ;;  %7596 = vmatprep.subr.bf16.mxu1 %v11819_v8  ;;  %11947 = vst [vmem:[#allocation10_spill] sm:$0xff] %v8487_v62  ;;  %11948 = vst [vmem:[#allocation11_spill] sm:$0xff] %v8500_v2  ;;  %v8510_v4 = vld [vmem:[%s11815_s1 + $0x68] sm:$0xff]  ;;  %v8515_v5 = vld [vmem:[%s11815_s1 + $0x78] sm:$0xff]  ;;  %v7621_v6 = vpack.c.bf16 %v8505_v3, %v8500_v2 }
   0xd   :  { %11949 = vst [vmem:[#allocation12_spill] sm:$0xff] %v8505_v3  ;;  %11950 = vst [vmem:[#allocation13_spill] sm:$0xff] %v8510_v4  ;;  %v8527_v9 = vld [vmem:[%s11815_s1 + $0x60] sm:$0xff]  ;;  %v8532_v10 = vld [vmem:[%s11815_s1 + $0x70] sm:$0xff]  ;;  %p8293_p4 = pnand %p8292_p3, %p8286_p0 }
   0xe   :  { %11951 = vst [vmem:[#allocation14_spill] sm:$0xff] %v8515_v5  ;;  %11952 = vst [vmem:[#allocation15_spill] sm:$0xff] %v8527_v9  ;;  %v8604_v28 = vld [vmem:[%s11815_s1 + $0xd0] sm:$0xff]  ;;  %v8609_v29 = vld [vmem:[%s11815_s1 + $0xe8] sm:$0xff] }
   0xf   :  { %11953 = vst [vmem:[#allocation16_spill] sm:$0xff] %v8532_v10  ;;  %11965 = vst [vmem:[#allocation28_spill] sm:$0xff] %v8604_v28 }
  0x10   :  { %11966 = vst [vmem:[#allocation29_spill] sm:$0xff] %v8609_v29 }
  0xd7   :  { %v96_v12 = vpop.f32.mrb[0].mxu0  ;;  %v172_v13 = vpop.f32.mrb[0].mxu1 }
  0xd8   :  { %v176_v15 = vsub.f32 %v96_v12, %v172_v13  ;;  %v7327_v16 = vpop.f32.mrb[1].mxu0  ;;  %v7332_v17 = vpop.f32.mrb[1].mxu1  ;;  %v8542_v12 = vld [vmem:[%s11815_s1 + $0x98] sm:$0xff]  ;;  %v7625_v13 = vpack.c.bf16 %v8532_v10, %v8527_v9 }
  0xd9   :  { %11955 = vst [vmem:[#allocation18_spill] sm:$0xff] %v8542_v12  ;;  %v8556_v16 = vld [vmem:[%s11815_s1 + $0x90] sm:$0xff]  ;;  %v8561_v17 = vld [vmem:[%s11815_s1 + $0xa8] sm:$0xff] }
  0xda   :  { %v322_v18 = vadd.f32 %v6858_v14, %v176_v15  ;;  %v8551_v15 = vld [vmem:[%s11815_s1 + $0x80] sm:$0xff]  ;;  %11957 = vst [vmem:[#allocation20_spill] sm:$0xff] %v8556_v16  ;;  %11958 = vst [vmem:[#allocation21_spill] sm:$0xff] %v8561_v17 }
  0xdb   :  { %v243_v19 = vpop.f32.mrb[2].mxu0  ;;  %v313_v20 = vpop.f32.mrb[2].mxu1  ;;  %11956 = vst [vmem:[#allocation19_spill] sm:$0xff] %v8551_v15 }
  0xdc   :  { %v329_v22 = vmax.f32 %v322_v18, 0.0  ;;  %v314_v23 = vadd.f32 %v313_v20, %v243_v19  ;;  %v7337_v24 = vpop.f32.mrb[3].mxu0  ;;  %v7342_v25 = vpop.f32.mrb[3].mxu1  ;;  %v8566_v18 = vld [vmem:[%s11815_s1 + $0xb8] sm:$0xff]  ;;  %v7629_v19 = vpack.c.bf16 %v8556_v16, %v8551_v15 }
  0xdd   :  { %11959 = vst [vmem:[#allocation22_spill] sm:$0xff] %v8566_v18  ;;  %v7631_v20 = vpack.c.bf16 %v8566_v18, %v8561_v17  ;;  %v8590_v24 = vld [vmem:[%s11815_s1 + $0xd8] sm:$0xff] }
  0xde   :  { %v328_v26 = vadd.f32 %v6859_v21, %v314_v23  ;;  %7348 = vmatmul.mubr.msk.f32.vlgmr.msra.gmra.mrb[4].mxu0 %vm335_vm3, %v329_v22  ;;  %v8575_v21 = vld [vmem:[%s11815_s1 + $0xa0] sm:$0xff]  ;;  %v8585_v23 = vld [vmem:[%s11815_s1 + $0xc8] sm:$0xff]  ;;  %11963 = vst [vmem:[#allocation26_spill] sm:$0xff] %v8590_v24 }
  0xdf   :  { %7595 = vmatpush3.bf16.msra.mxu0 %v7588_v7  ;;  %7361 = vmatprep.mubr.msk.f32.mxu0 %vm8310_vm2, %v11821_v1  ;;  %v7623_v7 = vpack.c.bf16 %v8515_v5, %v8510_v4  ;;  %11960 = vst [vmem:[#allocation23_spill] sm:$0xff] %v8575_v21  ;;  %11962 = vst [vmem:[#allocation25_spill] sm:$0xff] %v8585_v23 }
  0xe0   :  { %v330_v27 = vmax.f32 %v328_v26, 0.0  ;;  %7599 = vmatprep.subr.bf16.mxu0 %v11819_v8  ;;  %v7635_v26 = vpack.c.bf16 %v8590_v24, %v8585_v23 }
  0xe2   :  { %7355 = vmatmul.mubr.msk.f32.vlgmr.msra.gmra.mrb[4].mxu1 %vm335_vm3, %v330_v27  ;;  %7362 = vmatmul.mubr.msk.f32.vlgmr.msra.gmra.mrb[6].mxu0 %vm335_vm3, %v330_v27  ;;  %v8599_v27 = vld [vmem:[%s11815_s1 + $0xc0] sm:$0xff] }
  0xe3   :  { %7598 = vmatpush3.bf16.msra.mxu1 %v7591_v11  ;;  %7368 = vmatprep.mubr.msk.f32.mxu1 %vm8310_vm2, %v11821_v1  ;;  %v8537_v11 = vld [vmem:[%s11815_s1 + $0x88] sm:$0xff]  ;;  %11964 = vst [vmem:[#allocation27_spill] sm:$0xff] %v8599_v27  ;;  %v7637_v31 = vpack.c.bf16 %v8604_v28, %v8599_v27 }
  0xe4   :  { %7375 = vmatprep.mubr.msk.f32.mxu0 %vm8310_vm2, %v11821_v1  ;;  %7602 = vmatprep.subr.bf16.mxu1 %v11819_v8  ;;  %11954 = vst [vmem:[#allocation17_spill] sm:$0xff] %v8537_v11  ;;  %v7627_v14 = vpack.c.bf16 %v8542_v12, %v8537_v11 }
  0xe5   :  { %7601 = vmatpush3.bf16.msra.mxu0 %v7600_v30 }
  0xe6   :  { %7369 = vmatmul.mubr.msk.f32.vlgmr.msra.gmra.mrb[6].mxu1 %vm335_vm3, %v329_v22  ;;  %7605 = vmatprep.subr.bf16.mxu0 %v11819_v8  ;;  %v8580_v22 = vld [vmem:[%s11815_s1 + $0xb0] sm:$0xff] }
  0xe7   :  { %7382 = vmatprep.mubr.msk.f32.mxu1 %vm8310_vm2, %v11821_v1  ;;  %7604 = vmatpush3.bf16.msra.mxu1 %v7603_v33  ;;  %11961 = vst [vmem:[#allocation24_spill] sm:$0xff] %v8580_v22  ;;  %v7633_v25 = vpack.c.bf16 %v8580_v22, %v8575_v21 }
  0xe8   :  { %7608 = vmatprep.subr.bf16.mxu1 %v11819_v8 }
 0x1b1   :  { %v405_v34 = vpop.f32.mrb[4].mxu0 }
 0x1b2   :  { %v7349_v35 = vpop.f32.mrb[5].mxu0 }
 0x1b3   :  { %v8633_v35 = vld [vmem:[%s11815_s1 + $0x108] sm:$0xff] }
 0x1b4   :  { %11970 = vst [vmem:[#allocation33_spill] sm:$0xff] %v8633_v35 }
 0x1b5   :  { %v478_v36 = vpop.f32.mrb[4].mxu1  ;;  %v549_v38 = vpop.f32.mrb[6].mxu0 }
 0x1b6   :  { %v482_v39 = vsub.f32 %v405_v34, %v478_v36  ;;  %v7356_v40 = vpop.f32.mrb[5].mxu1  ;;  %v7363_v41 = vpop.f32.mrb[7].mxu0  ;;  %v8628_v34 = vld [vmem:[%s11815_s1 + $0xf0] sm:$0xff]  ;;  %v8638_v36 = vld [vmem:[%s11815_s1 + $0x118] sm:$0xff] }
 0x1b7   :  { %11969 = vst [vmem:[#allocation32_spill] sm:$0xff] %v8628_v34  ;;  %11971 = vst [vmem:[#allocation34_spill] sm:$0xff] %v8638_v36  ;;  %v8652_v40 = vld [vmem:[%s11815_s1 + $0x110] sm:$0xff]  ;;  %v8657_v41 = vld [vmem:[%s11815_s1 + $0x128] sm:$0xff] }
 0x1b8   :  { %v628_v44 = vadd.f32 %v6864_v37, %v482_v39  ;;  %v8647_v39 = vld [vmem:[%s11815_s1 + $0x100] sm:$0xff]  ;;  %11973 = vst [vmem:[#allocation36_spill] sm:$0xff] %v8652_v40  ;;  %11974 = vst [vmem:[#allocation37_spill] sm:$0xff] %v8657_v41 }
 0x1b9   :  { %v619_v45 = vpop.f32.mrb[6].mxu1  ;;  %11972 = vst [vmem:[#allocation35_spill] sm:$0xff] %v8647_v39 }
 0x1ba   :  { %v635_v47 = vmax.f32 %v628_v44, 0.0  ;;  %v620_v48 = vadd.f32 %v619_v45, %v549_v38  ;;  %v7370_v49 = vpop.f32.mrb[7].mxu1  ;;  %v7643_v38 = vpack.c.bf16 %v8638_v36, %v8633_v35  ;;  %v8662_v44 = vld [vmem:[%s11815_s1 + $0x138] sm:$0xff]  ;;  %v7645_v45 = vpack.c.bf16 %v8652_v40, %v8647_v39 }
 0x1bb   :  { %11975 = vst [vmem:[#allocation38_spill] sm:$0xff] %v8662_v44  ;;  %v8681_v49 = vld [vmem:[%s11815_s1 + $0x148] sm:$0xff] }
 0x1bc   :  { %v634_v55 = vadd.f32 %v6865_v46, %v620_v48  ;;  %7376 = vmatmul.mubr.msk.f32.vlgmr.msra.gmra.mrb[8].mxu0 %vm335_vm3, %v635_v47  ;;  %v7647_v46 = vpack.c.bf16 %v8662_v44, %v8657_v41  ;;  %v8676_v48 = vld [vmem:[%s11815_s1 + $0x130] sm:$0xff]  ;;  %11978 = vst [vmem:[#allocation41_spill] sm:$0xff] %v8681_v49 }
 0x1bd   :  { %7607 = vmatpush3.bf16.msra.mxu0 %v7600_v30  ;;  %7389 = vmatprep.mubr.msk.f32.mxu0 %vm8310_vm2, %v11821_v1  ;;  %v8614_v30 = vld [vmem:[%s11815_s1 + $0xf8] sm:$0xff]  ;;  %11977 = vst [vmem:[#allocation40_spill] sm:$0xff] %v8676_v48 }
 0x1be   :  { %v636_v57 = vmax.f32 %v634_v55, 0.0  ;;  %7612 = vmatprep.subr.bf16.mxu0 %v7611_v50  ;;  %11967 = vst [vmem:[#allocation30_spill] sm:$0xff] %v8614_v30  ;;  %v7639_v32 = vpack.c.bf16 %v8614_v30, %v8609_v29 }
 0x1c0   :  { %7383 = vmatmul.mubr.msk.f32.vlgmr.msra.gmra.mrb[8].mxu1 %vm335_vm3, %v636_v57  ;;  %7390 = vmatmul.mubr.msk.f32.vlgmr.msra.gmra.mrb[10].mxu0 %vm335_vm3, %v636_v57  ;;  %v8695_v57 = vld [vmem:[%s11815_s1 + $0x140] sm:$0xff] }
 0x1c1   :  { %7614 = vmatpush1.bf16.msra.mxu0 %v7613_v56  ;;  %7610 = vmatpush3.bf16.msra.mxu1 %v7603_v33  ;;  %v8623_v33 = vld [vmem:[%s11815_s1 + $0xe0] sm:$0xff]  ;;  %11980 = vst [vmem:[#allocation43_spill] sm:$0xff] %v8695_v57 }
 0x1c2   :  { %7396 = vmatprep.mubr.msk.f32.mxu1 %vm8310_vm2, %v11821_v1  ;;  %7616 = vmatprep.subr.bf16.mxu0 %v7615_v58  ;;  %11968 = vst [vmem:[#allocation31_spill] sm:$0xff] %v8623_v33  ;;  %v7641_v37 = vpack.c.bf16 %v8628_v34, %v8623_v33 }
 0x1c3   :  { %6875 = vmatprep.mubr.msk.f32.mxu0 %vm1091_vm4, %v8430_v42  ;;  %7660 = vmatprep.subr.bf16.mxu1 %v7611_v50  ;;  %v8686_v50 = vld [vmem:[%s11815_s1 + $0x158] sm:$0xff] }
 0x1c4   :  { %7397 = vmatmul.mubr.msk.f32.vlgmr.msra.gmra.mrb[10].mxu1 %vm335_vm3, %v635_v47  ;;  %v8671_v47 = vld [vmem:[%s11815_s1 + $0x120] sm:$0xff]  ;;  %11979 = vst [vmem:[#allocation42_spill] sm:$0xff] %v8686_v50 }
 0x1c5   :  { %7618 = vmatpush1.bf16.msra.mxu0 %v7617_v63  ;;  %7662 = vmatpush1.bf16.msra.mxu1 %v7613_v56  ;;  %11976 = vst [vmem:[#allocation39_spill] sm:$0xff] %v8671_v47  ;;  %v7649_v55 = vpack.c.bf16 %v8676_v48, %v8671_v47  ;;  %v7651_v56 = vpack.c.bf16 %v8686_v50, %v8681_v49 }
 0x1c6   :  { %7620 = vmatprep.subr.bf16.mxu0 %v7619_v0  ;;  %7664 = vmatprep.subr.bf16.mxu1 %v7615_v58  ;;  %v8700_v58 = vld [vmem:[%s11815_s1 + $0x150] sm:$0xff] }
 0x1c7   :  { %11981 = vst [vmem:[#allocation44_spill] sm:$0xff] %v8700_v58 }
 0x1c9   :  { %7622 = vmatpush1.bf16.msra.mxu0 %v7621_v6  ;;  %7666 = vmatpush1.bf16.msra.mxu1 %v7617_v63  ;;  %v8705_v63 = vld [vmem:[%s11815_s1 + $0x168] sm:$0xff] }
 0x1ca   :  { %7624 = vmatprep.subr.bf16.mxu0 %v7623_v7  ;;  %7668 = vmatprep.subr.bf16.mxu1 %v7619_v0  ;;  %11982 = vst [vmem:[#allocation45_spill] sm:$0xff] %v8705_v63  ;;  %v8710_v0 = vld [vmem:[%s11815_s1 + $0x178] sm:$0xff] }
 0x1cb   :  { %11983 = vst [vmem:[#allocation46_spill] sm:$0xff] %v8710_v0 }
 0x1cd   :  { %7626 = vmatpush1.bf16.msra.mxu0 %v7625_v13  ;;  %7670 = vmatpush1.bf16.msra.mxu1 %v7621_v6  ;;  %v7653_v6 = vpack.c.bf16 %v8700_v58, %v8695_v57 }
 0x1ce   :  { %7628 = vmatprep.subr.bf16.mxu0 %v7627_v14  ;;  %7672 = vmatprep.subr.bf16.mxu1 %v7623_v7  ;;  %v7655_v7 = vpack.c.bf16 %v8710_v0, %v8705_v63 }
 0x1d1   :  { %7630 = vmatpush1.bf16.msra.mxu0 %v7629_v19  ;;  %7674 = vmatpush1.bf16.msra.mxu1 %v7625_v13  ;;  %v8719_v13 = vld [vmem:[%s11815_s1 + $0x160] sm:$0xff] }
 0x1d2   :  { %7632 = vmatprep.subr.bf16.mxu0 %v7631_v20  ;;  %7676 = vmatprep.subr.bf16.mxu1 %v7627_v14  ;;  %11984 = vst [vmem:[#allocation47_spill] sm:$0xff] %v8719_v13  ;;  %v8724_v14 = vld [vmem:[%s11815_s1 + $0x170] sm:$0xff] }
 0x1d3   :  { %11985 = vst [vmem:[#allocation48_spill] sm:$0xff] %v8724_v14 }
 0x1d5   :  { %7634 = vmatpush1.bf16.msra.mxu0 %v7633_v25  ;;  %7678 = vmatpush1.bf16.msra.mxu1 %v7629_v19  ;;  %v7657_v19 = vpack.c.bf16 %v8724_v14, %v8719_v13 }
 0x1d6   :  { %7636 = vmatprep.subr.bf16.mxu0 %v7635_v26  ;;  %7680 = vmatprep.subr.bf16.mxu1 %v7631_v20  ;;  %v940_v20 = vlaneseq }
 0x1d9   :  { %7638 = vmatpush1.bf16.msra.mxu0 %v7637_v31  ;;  %7682 = vmatpush1.bf16.msra.mxu1 %v7633_v25  ;;  %v8798_v25 = vshrl.u32 %v940_v20, 7 }
 0x1da   :  { %7640 = vmatprep.subr.bf16.mxu0 %v7639_v32  ;;  %7684 = vmatprep.subr.bf16.mxu1 %v7635_v26 }
 0x1db   :  { %11986 = vst [vmem:[#allocation49_spill] sm:$0xff] %v8798_v25  ;;  %v969_v26 = vshra.s32 %v8798_v25, 1 }
 0x1dd   :  { %7642 = vmatpush1.bf16.msra.mxu0 %v7641_v37  ;;  %7686 = vmatpush1.bf16.msra.mxu1 %v7637_v31 }
 0x1de   :  { %7644 = vmatprep.subr.bf16.mxu0 %v7643_v38  ;;  %7688 = vmatprep.subr.bf16.mxu1 %v7639_v32 }
 0x1e1   :  { %7646 = vmatpush1.bf16.msra.mxu0 %v7645_v45  ;;  %7690 = vmatpush1.bf16.msra.mxu1 %v7641_v37  ;;  %v8801_v37 = vand.u32 127, %v940_v20  ;;  %v950_v20 = vsub.s32 0, %v8798_v25 }
 0x1e2   :  { %7648 = vmatprep.subr.bf16.mxu0 %v7647_v46  ;;  %7692 = vmatprep.subr.bf16.mxu1 %v7643_v38  ;;  %v970_v38 = vand.u32 1, %v969_v26 }
 0x1e3   :  { %11987 = vst [vmem:[#allocation50_spill] sm:$0xff] %v8801_v37 }
 0x1e4   :  { %vm971_vm5 = vcmp.eq.s32.totalorder %v970_v38, %v8801_v37 }
 0x1e5   :  { %7650 = vmatpush1.bf16.msra.mxu0 %v7649_v55  ;;  %7694 = vmatpush1.bf16.msra.mxu1 %v7645_v45  ;;  %v944_v45 = vand.u32 1, %v8798_v25 }
 0x1e6   :  { %7652 = vmatprep.subr.bf16.mxu0 %v7651_v56  ;;  %7696 = vmatprep.subr.bf16.mxu1 %v7647_v46  ;;  %v996_v46 = vshra.s32 %v8798_v25, 2 }
 0x1e7   :  { %vm945_vm6 = vcmp.eq.s32.totalorder %v944_v45, %v8801_v37 }
 0x1e9   :  { %7654 = vmatpush1.bf16.msra.mxu0 %v7653_v6  ;;  %7698 = vmatpush1.bf16.msra.mxu1 %v7649_v55 }
 0x1ea   :  { %7656 = vmatprep.subr.bf16.mxu0 %v7655_v7  ;;  %7700 = vmatprep.subr.bf16.mxu1 %v7651_v56  ;;  %v6870_v56 = vld [vmem:[%s11814_s0 + $0x80] ss:$0 sm:$0xff] }
 0x1ed   :  { %7658 = vmatpush1.bf16.msra.mxu0 %v7657_v19  ;;  %7702 = vmatpush1.bf16.msra.mxu1 %v7653_v6 }
 0x1ee   :  { %7704 = vmatprep.subr.bf16.mxu1 %v7655_v7  ;;  %v976_v7 = vsub.s32 1, %v8798_v25 }
 0x1f0   :  { %1229 = vmatmul.mubr.f32.vlgmr.msra.gmra.mrb[12].mxu0 %v8445_v51 }
 0x1f1   :  { %6876 = vmatprep.mubr.msk.f32.mxu0 %vm1091_vm4, %v8435_v43  ;;  %7706 = vmatpush1.bf16.msra.mxu1 %v7657_v19 }
 0x1f4   :  { %1235 = vmatmul.mubr.f32.gmra.mrb[14].mxu0 %v8450_v52 }
 0x1f5   :  { %6877 = vmatprep.mubr.msk.f32.mxu0 %vm1091_vm4, %v8455_v53 }
 0x1f8   :  { %1241 = vmatmul.mubr.f32.gmra.mrb[16].mxu0 %v8472_v59 }
 0x1f9   :  { %6878 = vmatprep.mubr.msk.f32.mxu0 %vm1091_vm4, %v8460_v54 }
 0x1fc   :  { %1247 = vmatmul.mubr.f32.gmra.mrb[18].mxu0 %v8477_v60 }
 0x1fd   :  { %6879 = vmatprep.mubr.msk.f32.mxu0 %vm1091_vm4, %v8482_v61 }
 0x200   :  { %1253 = vmatmul.mubr.f32.gmra.mrb[20].mxu0 %v8500_v2 }
 0x201   :  { %6880 = vmatprep.mubr.msk.f32.mxu0 %vm1091_vm4, %v8487_v62 }
 0x204   :  { %1259 = vmatmul.mubr.f32.gmra.mrb[22].mxu0 %v8505_v3 }
 0x205   :  { %6881 = vmatprep.mubr.msk.f32.mxu0 %vm1091_vm4, %v8510_v4 }
 0x208   :  { %1265 = vmatmul.mubr.f32.gmra.mrb[24].mxu0 %v8527_v9 }
 0x209   :  { %6882 = vmatprep.mubr.msk.f32.mxu0 %vm1091_vm4, %v8515_v5 }
 0x20c   :  { %1271 = vmatmul.mubr.f32.gmra.mrb[26].mxu0 %v8532_v10 }
 0x20d   :  { %6883 = vmatprep.mubr.msk.f32.mxu0 %vm1091_vm4, %v8537_v11 }
 0x210   :  { %1277 = vmatmul.mubr.f32.gmra.mrb[28].mxu0 %v8551_v15 }
 0x211   :  { %6884 = vmatprep.mubr.msk.f32.mxu0 %vm1091_vm4, %v8542_v12 }
 0x214   :  { %1283 = vmatmul.mubr.f32.gmra.mrb[30].mxu0 %v8556_v16 }
 0x215   :  { %6885 = vmatprep.mubr.msk.f32.mxu0 %vm1091_vm4, %v8561_v17 }
 0x218   :  { %1289 = vmatmul.mubr.f32.gmra.mrb[32].mxu0 %v8575_v21 }
 0x219   :  { %6886 = vmatprep.mubr.msk.f32.mxu0 %vm1091_vm4, %v8566_v18 }
 0x21c   :  { %1295 = vmatmul.mubr.f32.gmra.mrb[34].mxu0 %v8580_v22 }
 0x21d   :  { %6887 = vmatprep.mubr.msk.f32.mxu0 %vm1091_vm4, %v8585_v23 }
 0x220   :  { %1301 = vmatmul.mubr.f32.gmra.mrb[36].mxu0 %v8599_v27 }
 0x221   :  { %6888 = vmatprep.mubr.msk.f32.mxu0 %vm1091_vm4, %v8590_v24 }
 0x224   :  { %1307 = vmatmul.mubr.f32.gmra.mrb[38].mxu0 %v8604_v28 }
 0x225   :  { %6889 = vmatprep.mubr.msk.f32.mxu0 %vm1091_vm4, %v8609_v29 }
 0x228   :  { %1313 = vmatmul.mubr.f32.gmra.mrb[40].mxu0 %v8623_v33 }
 0x229   :  { %6890 = vmatprep.mubr.msk.f32.mxu0 %vm1091_vm4, %v8614_v30 }
 0x22c   :  { %1319 = vmatmul.mubr.f32.gmra.mrb[42].mxu0 %v8628_v34 }
 0x22d   :  { %6891 = vmatprep.mubr.msk.f32.mxu0 %vm1091_vm4, %v8633_v35 }
 0x230   :  { %1325 = vmatmul.mubr.f32.gmra.mrb[44].mxu0 %v8647_v39 }
 0x231   :  { %6892 = vmatprep.mubr.msk.f32.mxu0 %vm1091_vm4, %v8638_v36 }
 0x234   :  { %1331 = vmatmul.mubr.f32.gmra.mrb[46].mxu0 %v8652_v40 }
 0x235   :  { %6893 = vmatprep.mubr.msk.f32.mxu0 %vm1091_vm4, %v8657_v41 }
 0x238   :  { %1337 = vmatmul.mubr.f32.gmra.mrb[48].mxu0 %v8671_v47 }
 0x239   :  { %6894 = vmatprep.mubr.msk.f32.mxu0 %vm1091_vm4, %v8662_v44 }
 0x23c   :  { %1343 = vmatmul.mubr.f32.gmra.mrb[50].mxu0 %v8676_v48 }
 0x23d   :  { %6895 = vmatprep.mubr.msk.f32.mxu0 %vm1091_vm4, %v8681_v49 }
 0x240   :  { %1349 = vmatmul.mubr.f32.gmra.mrb[52].mxu0 %v8695_v57 }
 0x241   :  { %6896 = vmatprep.mubr.msk.f32.mxu0 %vm1091_vm4, %v8686_v50 }
 0x244   :  { %1355 = vmatmul.mubr.f32.gmra.mrb[54].mxu0 %v8700_v58 }
 0x245   :  { %6897 = vmatprep.mubr.msk.f32.mxu0 %vm1091_vm4, %v8705_v63  ;;  %v11988_v63 = vmov 0.0  }
 0x246   :  { %v6872_v50 = vsel %vm945_vm6, 1.0, %v11988_v63 }
 0x248   :  { %1361 = vmatmul.mubr.f32.gmra.mrb[56].mxu0 %v8719_v13  ;;  %v6873_v13 = vsel %vm971_vm5, 1.0, %v11988_v63 }
 0x249   :  { %6898 = vmatprep.mubr.msk.f32.mxu0 %vm1091_vm4, %v8710_v0 }
 0x24c   :  { %1367 = vmatmul.mubr.f32.gmra.mrb[58].mxu0 %v8724_v14  ;;  %v6871_v14 = vld [vmem:[%s11814_s0 + $0x88] ss:$0 sm:$0xff] }
 0x28f   :  { %v710_v31 = vpop.f32.mrb[8].mxu0 }
 0x290   :  { %v7377_v32 = vpop.f32.mrb[9].mxu0 }
 0x291   :  { %v997_v32 = vand.u32 1, %v996_v46 }
 0x293   :  { %v783_v55 = vpop.f32.mrb[8].mxu1  ;;  %v854_v6 = vpop.f32.mrb[10].mxu0  ;;  %vm998_vm8 = vcmp.eq.s32.totalorder %v997_v32, %v8801_v37 }
 0x294   :  { %v787_v19 = vsub.f32 %v710_v31, %v783_v55  ;;  %v7384_v8 = vpop.f32.mrb[9].mxu1  ;;  %v7391_v1 = vpop.f32.mrb[11].mxu0 }
 0x295   :  { %v1003_v8 = vsub.s32 2, %v8798_v25 }
 0x296   :  { %v933_v26 = vadd.f32 %v6870_v56, %v787_v19 }
 0x297   :  { %v924_v0 = vpop.f32.mrb[10].mxu1 }
 0x298   :  { %v925_v1 = vadd.f32 %v924_v0, %v854_v6  ;;  %v7398_v31 = vpop.f32.mrb[11].mxu1  ;;  %v977_v38 = vrot.slane %v933_v26, %v976_v7  ;;  %v951_v55 = vrot.slane %v933_v26, %v950_v20  ;;  %v1004_v46 = vrot.slane %v933_v26, %v1003_v8 }
 0x299   :  { %v6874_v0 = vsel %vm998_vm8, 1.0, %v11988_v63 }
 0x29a   :  { %v939_v45 = vadd.f32 %v6871_v14, %v925_v1  ;;  %v978_v58 = vmul.f32 %v6873_v13, %v977_v38  ;;  %v952_v56 = vmul.f32 %v6872_v50, %v951_v55  ;;  %v1005_v32 = vmul.f32 %v6874_v0, %v1004_v46 }
 0x29c   :  { %v979_v19 = vsel %vm953_vm7, %v978_v58, 0.0  ;;  %v954_v49 = vsel %vm953_vm7, %v952_v56, 0.0  ;;  %v985_v57 = vrot.slane %v939_v45, %v976_v7  ;;  %v960_v44 = vrot.slane %v939_v45, %v950_v20 }
 0x29d   :  { %980 = vadd.xlane.f32.xlu1 %v979_v19  ;;  %955 = vadd.xlane.f32.xlu0 %v954_v49  ;;  %v1012_v6 = vrot.slane %v939_v45, %v1003_v8  ;;  %v1006_v7 = vsel %vm953_vm7, %v1005_v32, 0.0 }
 0x29e   :  { %v986_v31 = vmul.f32 %v6873_v13, %v985_v57  ;;  %v961_v25 = vmul.f32 %v6872_v50, %v960_v44 }
 0x29f   :  { %v1013_v38 = vmul.f32 %v6874_v0, %v1012_v6 }
 0x2a0   :  { %v987_v14 = vsel %vm953_vm7, %v986_v31, 0.0  ;;  %v962_v1 = vsel %vm953_vm7, %v961_v25, 0.0 }
 0x2a1   :  { %988 = vadd.xlane.f32.xlu1 %v987_v14  ;;  %963 = vadd.xlane.f32.xlu0 %v962_v1  ;;  %v1014_v58 = vsel %vm953_vm7, %v1013_v38, 0.0 }
 0x2a5   :  { %1015 = vadd.xlane.f32.xlu1 %v1014_v58  ;;  %1007 = vadd.xlane.f32.xlu0 %v1006_v7 }
 0x2c3   :  { %v8826_v49 = vpop.f32.mrb[12].mxu0 }
 0x2c4   :  { %11989 = vst [vmem:[#allocation51_spill] sm:$0xff] %v8826_v49  ;;  %v8828_v20 = vpop.f32.mrb[13].mxu0 }
 0x2c5   :  { %11990 = vst [vmem:[#allocation52_spill] sm:$0xff] %v8828_v20  ;;  %6899 = vmatprep.mubr.msk.f32.mxu1 %vm1091_vm4, %v8828_v20  ;;  %6923 = vmatprep.mubr.msk.f32.mxu0 %vm1091_vm4, %v8828_v20 }
 0x2c6   :  { %1510 = vmatmul.mubr.f32.vlgmr.msra.gmra.mrb[12].mxu1 %v8826_v49 }
 0x2c7   :  { %v8835_v44 = vpop.f32.mrb[14].mxu0 }
 0x2c8   :  { %11991 = vst [vmem:[#allocation53_spill] sm:$0xff] %v8835_v44  ;;  %v8837_v50 = vpop.f32.mrb[15].mxu0  ;;  %v7709_v57 = vpack.c.bf16 %v8835_v44, %v8826_v49 }
 0x2c9   :  { %11992 = vst [vmem:[#allocation54_spill] sm:$0xff] %v8837_v50  ;;  %6900 = vmatprep.mubr.msk.f32.mxu1 %vm1091_vm4, %v8837_v50  ;;  %v7707_v13 = vpack.c.bf16 %v8837_v50, %v8828_v20 }
 0x2ca   :  { %1516 = vmatmul.mubr.f32.gmra.mrb[14].mxu1 %v8835_v44 }
 0x2cb   :  { %v8846_v25 = vpop.f32.mrb[16].mxu0  ;;  %7708 = vmatprep.subr.bf16.mxu0 %v7707_v13  ;;  %7756 = vmatprep.subr.bf16.mxu1 %v7707_v13 }
 0x2cc   :  { %11993 = vst [vmem:[#allocation55_spill] sm:$0xff] %v8846_v25  ;;  %v8848_v26 = vpop.f32.mrb[17].mxu0  ;;  %7710 = vmatpush1.bf16.msra.mxu0 %v7709_v57  ;;  %7758 = vmatpush1.bf16.msra.mxu1 %v7709_v57 }
 0x2cd   :  { %11994 = vst [vmem:[#allocation56_spill] sm:$0xff] %v8848_v26  ;;  %6901 = vmatprep.mubr.msk.f32.mxu1 %vm1091_vm4, %v8848_v26 }
 0x2ce   :  { %1522 = vmatmul.mubr.f32.gmra.mrb[16].mxu1 %v8846_v25 }
 0x2cf   :  { %v8853_v8 = vpop.f32.mrb[18].mxu0 }
 0x2d0   :  { %v8855_v55 = vpop.f32.mrb[19].mxu0  ;;  %v7713_v45 = vpack.c.bf16 %v8853_v8, %v8846_v25 }
 0x2d1   :  { %6902 = vmatprep.mubr.msk.f32.mxu1 %vm1091_vm4, %v8855_v55  ;;  %v7711_v56 = vpack.c.bf16 %v8855_v55, %v8848_v26 }
 0x2d2   :  { %1528 = vmatmul.mubr.f32.gmra.mrb[18].mxu1 %v8853_v8 }
 0x2d3   :  { %v8864_v46 = vpop.f32.mrb[20].mxu0  ;;  %7712 = vmatprep.subr.bf16.mxu0 %v7711_v56  ;;  %7760 = vmatprep.subr.bf16.mxu1 %v7711_v56 }
 0x2d4   :  { %v8866_v19 = vpop.f32.mrb[21].mxu0  ;;  %7714 = vmatpush1.bf16.msra.mxu0 %v7713_v45  ;;  %7762 = vmatpush1.bf16.msra.mxu1 %v7713_v45 }
 0x2d5   :  { %6903 = vmatprep.mubr.msk.f32.mxu1 %vm1091_vm4, %v8866_v19 }
 0x2d6   :  { %1534 = vmatmul.mubr.f32.gmra.mrb[20].mxu1 %v8864_v46 }
 0x2d7   :  { %v8871_v0 = vpop.f32.mrb[22].mxu0 }
 0x2d8   :  { %v8873_v6 = vpop.f32.mrb[23].mxu0  ;;  %v7717_v31 = vpack.c.bf16 %v8871_v0, %v8864_v46 }
 0x2d9   :  { %6904 = vmatprep.mubr.msk.f32.mxu1 %vm1091_vm4, %v8873_v6  ;;  %v7715_v14 = vpack.c.bf16 %v8873_v6, %v8866_v19 }
 0x2da   :  { %1540 = vmatmul.mubr.f32.gmra.mrb[22].mxu1 %v8871_v0 }
 0x2db   :  { %v8882_v1 = vpop.f32.mrb[24].mxu0  ;;  %7716 = vmatprep.subr.bf16.mxu0 %v7715_v14  ;;  %7764 = vmatprep.subr.bf16.mxu1 %v7715_v14 }
 0x2dc   :  { %v8884_v38 = vpop.f32.mrb[25].mxu0  ;;  %7718 = vmatpush1.bf16.msra.mxu0 %v7717_v31  ;;  %7766 = vmatpush1.bf16.msra.mxu1 %v7717_v31 }
 0x2dd   :  { %6905 = vmatprep.mubr.msk.f32.mxu1 %vm1091_vm4, %v8884_v38 }
 0x2de   :  { %1546 = vmatmul.mubr.f32.gmra.mrb[24].mxu1 %v8882_v1 }
 0x2df   :  { %v8889_v32 = vpop.f32.mrb[26].mxu0 }
 0x2e0   :  { %v8891_v58 = vpop.f32.mrb[27].mxu0  ;;  %v7721_v7 = vpack.c.bf16 %v8889_v32, %v8882_v1 }
 0x2e1   :  { %6906 = vmatprep.mubr.msk.f32.mxu1 %vm1091_vm4, %v8891_v58  ;;  %v7719_v57 = vpack.c.bf16 %v8891_v58, %v8884_v38 }
 0x2e2   :  { %1552 = vmatmul.mubr.f32.gmra.mrb[26].mxu1 %v8889_v32 }
 0x2e3   :  { %v8900_v13 = vpop.f32.mrb[28].mxu0  ;;  %7720 = vmatprep.subr.bf16.mxu0 %v7719_v57  ;;  %7768 = vmatprep.subr.bf16.mxu1 %v7719_v57 }
 0x2e4   :  { %v8902_v45 = vpop.f32.mrb[29].mxu0  ;;  %7722 = vmatpush1.bf16.msra.mxu0 %v7721_v7  ;;  %7770 = vmatpush1.bf16.msra.mxu1 %v7721_v7 }
 0x2e5   :  { %6907 = vmatprep.mubr.msk.f32.mxu1 %vm1091_vm4, %v8902_v45 }
 0x2e6   :  { %1558 = vmatmul.mubr.f32.gmra.mrb[28].mxu1 %v8900_v13 }
 0x2e7   :  { %v8907_v56 = vpop.f32.mrb[30].mxu0 }
 0x2e8   :  { %v8909_v31 = vpop.f32.mrb[31].mxu0  ;;  %v7725_v14 = vpack.c.bf16 %v8907_v56, %v8900_v13 }
 0x2e9   :  { %6908 = vmatprep.mubr.msk.f32.mxu1 %vm1091_vm4, %v8909_v31  ;;  %v7723_v57 = vpack.c.bf16 %v8909_v31, %v8902_v45 }
 0x2ea   :  { %1564 = vmatmul.mubr.f32.gmra.mrb[30].mxu1 %v8907_v56 }
 0x2eb   :  { %v8918_v7 = vpop.f32.mrb[32].mxu0  ;;  %7724 = vmatprep.subr.bf16.mxu0 %v7723_v57  ;;  %7772 = vmatprep.subr.bf16.mxu1 %v7723_v57 }
 0x2ec   :  { %v8920_v63 = vpop.f32.mrb[33].mxu0  ;;  %7726 = vmatpush1.bf16.msra.mxu0 %v7725_v14  ;;  %7774 = vmatpush1.bf16.msra.mxu1 %v7725_v14 }
 0x2ed   :  { %6909 = vmatprep.mubr.msk.f32.mxu1 %vm1091_vm4, %v8920_v63 }
 0x2ee   :  { %1570 = vmatmul.mubr.f32.gmra.mrb[32].mxu1 %v8918_v7 }
 0x2ef   :  { %v8925_v37 = vpop.f32.mrb[34].mxu0 }
 0x2f0   :  { %v8927_v20 = vpop.f32.mrb[35].mxu0  ;;  %v7729_v48 = vpack.c.bf16 %v8925_v37, %v8918_v7 }
 0x2f1   :  { %6910 = vmatprep.mubr.msk.f32.mxu1 %vm1091_vm4, %v8927_v20  ;;  %v7727_v57 = vpack.c.bf16 %v8927_v20, %v8920_v63 }
 0x2f2   :  { %1576 = vmatmul.mubr.f32.gmra.mrb[34].mxu1 %v8925_v37 }
 0x2f3   :  { %v8936_v14 = vpop.f32.mrb[36].mxu0  ;;  %7728 = vmatprep.subr.bf16.mxu0 %v7727_v57  ;;  %7776 = vmatprep.subr.bf16.mxu1 %v7727_v57 }
 0x2f4   :  { %v8938_v41 = vpop.f32.mrb[37].mxu0  ;;  %7730 = vmatpush1.bf16.msra.mxu0 %v7729_v48  ;;  %7778 = vmatpush1.bf16.msra.mxu1 %v7729_v48 }
 0x2f5   :  { %11995 = vst [vmem:[#allocation57_spill] sm:$0xff] %v8938_v41  ;;  %6911 = vmatprep.mubr.msk.f32.mxu1 %vm1091_vm4, %v8938_v41 }
 0x2f6   :  { %1582 = vmatmul.mubr.f32.gmra.mrb[36].mxu1 %v8936_v14 }
 0x2f7   :  { %v8943_v47 = vpop.f32.mrb[38].mxu0 }
 0x2f8   :  { %11996 = vst [vmem:[#allocation58_spill] sm:$0xff] %v8943_v47  ;;  %v8945_v36 = vpop.f32.mrb[39].mxu0  ;;  %v7733_v40 = vpack.c.bf16 %v8943_v47, %v8936_v14 }
 0x2f9   :  { %11997 = vst [vmem:[#allocation59_spill] sm:$0xff] %v8945_v36  ;;  %6912 = vmatprep.mubr.msk.f32.mxu1 %vm1091_vm4, %v8945_v36  ;;  %v7731_v57 = vpack.c.bf16 %v8945_v36, %v8938_v41 }
 0x2fa   :  { %1588 = vmatmul.mubr.f32.gmra.mrb[38].mxu1 %v8943_v47 }
 0x2fb   :  { %v8954_v48 = vpop.f32.mrb[40].mxu0  ;;  %7732 = vmatprep.subr.bf16.mxu0 %v7731_v57  ;;  %7780 = vmatprep.subr.bf16.mxu1 %v7731_v57 }
 0x2fc   :  { %11998 = vst [vmem:[#allocation60_spill] sm:$0xff] %v8954_v48  ;;  %v8956_v35 = vpop.f32.mrb[41].mxu0  ;;  %7734 = vmatpush1.bf16.msra.mxu0 %v7733_v40  ;;  %7782 = vmatpush1.bf16.msra.mxu1 %v7733_v40 }
 0x2fd   :  { %11999 = vst [vmem:[#allocation61_spill] sm:$0xff] %v8956_v35  ;;  %6913 = vmatprep.mubr.msk.f32.mxu1 %vm1091_vm4, %v8956_v35 }
 0x2fe   :  { %1594 = vmatmul.mubr.f32.gmra.mrb[40].mxu1 %v8954_v48 }
 0x2ff   :  { %v8961_v39 = vpop.f32.mrb[42].mxu0 }
 0x300   :  { %12000 = vst [vmem:[#allocation62_spill] sm:$0xff] %v8961_v39  ;;  %v8963_v30 = vpop.f32.mrb[43].mxu0  ;;  %v7737_v34 = vpack.c.bf16 %v8961_v39, %v8954_v48 }
 0x301   :  { %12001 = vst [vmem:[#allocation63_spill] sm:$0xff] %v8963_v30  ;;  %6914 = vmatprep.mubr.msk.f32.mxu1 %vm1091_vm4, %v8963_v30  ;;  %v7735_v57 = vpack.c.bf16 %v8963_v30, %v8956_v35 }
 0x302   :  { %1600 = vmatmul.mubr.f32.gmra.mrb[42].mxu1 %v8961_v39 }
 0x303   :  { %v8972_v40 = vpop.f32.mrb[44].mxu0  ;;  %7736 = vmatprep.subr.bf16.mxu0 %v7735_v57  ;;  %7784 = vmatprep.subr.bf16.mxu1 %v7735_v57 }
 0x304   :  { %12002 = vst [vmem:[#allocation64_spill] sm:$0xff] %v8972_v40  ;;  %v8974_v29 = vpop.f32.mrb[45].mxu0  ;;  %7738 = vmatpush1.bf16.msra.mxu0 %v7737_v34  ;;  %7786 = vmatpush1.bf16.msra.mxu1 %v7737_v34 }
 0x305   :  { %12003 = vst [vmem:[#allocation65_spill] sm:$0xff] %v8974_v29  ;;  %6915 = vmatprep.mubr.msk.f32.mxu1 %vm1091_vm4, %v8974_v29 }
 0x306   :  { %1606 = vmatmul.mubr.f32.gmra.mrb[44].mxu1 %v8972_v40 }
 0x307   :  { %v8979_v33 = vpop.f32.mrb[46].mxu0 }
 0x308   :  { %12004 = vst [vmem:[#allocation66_spill] sm:$0xff] %v8979_v33  ;;  %v8981_v24 = vpop.f32.mrb[47].mxu0  ;;  %v7741_v28 = vpack.c.bf16 %v8979_v33, %v8972_v40 }
 0x309   :  { %12005 = vst [vmem:[#allocation67_spill] sm:$0xff] %v8981_v24  ;;  %6916 = vmatprep.mubr.msk.f32.mxu1 %vm1091_vm4, %v8981_v24  ;;  %v7739_v57 = vpack.c.bf16 %v8981_v24, %v8974_v29 }
 0x30a   :  { %1612 = vmatmul.mubr.f32.gmra.mrb[46].mxu1 %v8979_v33 }
 0x30b   :  { %v8990_v34 = vpop.f32.mrb[48].mxu0  ;;  %7740 = vmatprep.subr.bf16.mxu0 %v7739_v57  ;;  %7788 = vmatprep.subr.bf16.mxu1 %v7739_v57 }
 0x30c   :  { %12006 = vst [vmem:[#allocation68_spill] sm:$0xff] %v8990_v34  ;;  %v8992_v23 = vpop.f32.mrb[49].mxu0  ;;  %7742 = vmatpush1.bf16.msra.mxu0 %v7741_v28  ;;  %7790 = vmatpush1.bf16.msra.mxu1 %v7741_v28 }
 0x30d   :  { %12007 = vst [vmem:[#allocation69_spill] sm:$0xff] %v8992_v23  ;;  %6917 = vmatprep.mubr.msk.f32.mxu1 %vm1091_vm4, %v8992_v23 }
 0x30e   :  { %1618 = vmatmul.mubr.f32.gmra.mrb[48].mxu1 %v8990_v34 }
 0x30f   :  { %v8997_v27 = vpop.f32.mrb[50].mxu0 }
 0x310   :  { %12008 = vst [vmem:[#allocation70_spill] sm:$0xff] %v8997_v27  ;;  %v8999_v18 = vpop.f32.mrb[51].mxu0  ;;  %v7745_v22 = vpack.c.bf16 %v8997_v27, %v8990_v34 }
 0x311   :  { %12009 = vst [vmem:[#allocation71_spill] sm:$0xff] %v8999_v18  ;;  %6918 = vmatprep.mubr.msk.f32.mxu1 %vm1091_vm4, %v8999_v18  ;;  %v7743_v57 = vpack.c.bf16 %v8999_v18, %v8992_v23 }
 0x312   :  { %1624 = vmatmul.mubr.f32.gmra.mrb[50].mxu1 %v8997_v27 }
 0x313   :  { %v9008_v28 = vpop.f32.mrb[52].mxu0  ;;  %7744 = vmatprep.subr.bf16.mxu0 %v7743_v57  ;;  %7792 = vmatprep.subr.bf16.mxu1 %v7743_v57 }
 0x314   :  { %12010 = vst [vmem:[#allocation72_spill] sm:$0xff] %v9008_v28  ;;  %v9010_v17 = vpop.f32.mrb[53].mxu0  ;;  %7746 = vmatpush1.bf16.msra.mxu0 %v7745_v22  ;;  %7794 = vmatpush1.bf16.msra.mxu1 %v7745_v22 }
 0x315   :  { %12011 = vst [vmem:[#allocation73_spill] sm:$0xff] %v9010_v17  ;;  %6919 = vmatprep.mubr.msk.f32.mxu1 %vm1091_vm4, %v9010_v17 }
 0x316   :  { %1630 = vmatmul.mubr.f32.gmra.mrb[52].mxu1 %v9008_v28 }
 0x317   :  { %v9015_v12 = vpop.f32.mrb[54].mxu0 }
 0x318   :  { %12012 = vst [vmem:[#allocation74_spill] sm:$0xff] %v9015_v12  ;;  %v9017_v16 = vpop.f32.mrb[55].mxu0  ;;  %v7749_v21 = vpack.c.bf16 %v9015_v12, %v9008_v28 }
 0x319   :  { %12013 = vst [vmem:[#allocation75_spill] sm:$0xff] %v9017_v16  ;;  %6920 = vmatprep.mubr.msk.f32.mxu1 %vm1091_vm4, %v9017_v16  ;;  %v7747_v57 = vpack.c.bf16 %v9017_v16, %v9010_v17 }
 0x31a   :  { %1636 = vmatmul.mubr.f32.gmra.mrb[54].mxu1 %v9015_v12 }
 0x31b   :  { %v9026_v22 = vpop.f32.mrb[56].mxu0  ;;  %7748 = vmatprep.subr.bf16.mxu0 %v7747_v57  ;;  %7796 = vmatprep.subr.bf16.mxu1 %v7747_v57 }
 0x31c   :  { %12014 = vst [vmem:[#allocation76_spill] sm:$0xff] %v9026_v22  ;;  %v9028_v11 = vpop.f32.mrb[57].mxu0  ;;  %7750 = vmatpush1.bf16.msra.mxu0 %v7749_v21  ;;  %7798 = vmatpush1.bf16.msra.mxu1 %v7749_v21 }
 0x31d   :  { %12015 = vst [vmem:[#allocation77_spill] sm:$0xff] %v9028_v11  ;;  %6921 = vmatprep.mubr.msk.f32.mxu1 %vm1091_vm4, %v9028_v11 }
 0x31e   :  { %1642 = vmatmul.mubr.f32.gmra.mrb[56].mxu1 %v9026_v22 }
 0x31f   :  { %v9033_v15 = vpop.f32.mrb[58].mxu0 }
 0x320   :  { %12016 = vst [vmem:[#allocation78_spill] sm:$0xff] %v9033_v15  ;;  %v9035_v5 = vpop.f32.mrb[59].mxu0  ;;  %v7753_v10 = vpack.c.bf16 %v9033_v15, %v9026_v22 }
 0x321   :  { %12017 = vst [vmem:[#allocation79_spill] sm:$0xff] %v9035_v5  ;;  %6922 = vmatprep.mubr.msk.f32.mxu1 %vm1091_vm4, %v9035_v5  ;;  %v7751_v57 = vpack.c.bf16 %v9035_v5, %v9028_v11 }
 0x322   :  { %1648 = vmatmul.mubr.f32.gmra.mrb[58].mxu1 %v9033_v15 }
 0x323   :  { %7752 = vmatprep.subr.bf16.mxu0 %v7751_v57  ;;  %7800 = vmatprep.subr.bf16.mxu1 %v7751_v57 }
 0x324   :  { %7754 = vmatpush1.bf16.msra.mxu0 %v7753_v10  ;;  %7802 = vmatpush1.bf16.msra.mxu1 %v7753_v10 }
 0x327   :  { %1719 = vmatmul.mubr.f32.vlgmr.msra.gmra.mrb[60].mxu0 %v8826_v49 }
 0x328   :  { %6924 = vmatprep.mubr.msk.f32.mxu0 %vm1091_vm4, %v8837_v50 }
 0x32a   :  { %v981_v21 = vpop.xlane.xlu1 %980  ;;  %v956_v4 = vpop.xlane.xlu0 %955 }
 0x32b   :  { %1725 = vmatmul.mubr.f32.gmra.mrb[62].mxu0 %v8835_v44  ;;  %v967_v9 = vmul.f32 0.0, %v956_v4 }
 0x32c   :  { %6925 = vmatprep.mubr.msk.f32.mxu0 %vm1091_vm4, %v8848_v26 }
 0x32e   :  { %v964_v62 = vpop.xlane.xlu0 %963  ;;  %v989_v57 = vpop.xlane.xlu1 %988 }
 0x32f   :  { %v965_v3 = vmul.f32 0.0, %v964_v62  ;;  %v968_v61 = vadd.f32 %v967_v9, %v964_v62  ;;  %1731 = vmatmul.mubr.f32.gmra.mrb[64].mxu0 %v8846_v25 }
 0x330   :  { %6926 = vmatprep.mubr.msk.f32.mxu0 %vm1091_vm4, %v8855_v55 }
 0x331   :  { %v966_v10 = vsub.f32 %v956_v4, %v965_v3  ;;  %v991_v49 = vmul.f32 %v989_v57, %v968_v61  ;;  %v994_v50 = vmul.f32 %v981_v21, %v968_v61  ;;  %v2433_v4 = vmul.f32 0.0013888889, %v8430_v42 }
 0x332   :  { %v1016_v60 = vpop.xlane.xlu1 %1015  ;;  %v1008_v62 = vpop.xlane.xlu0 %1007 }
 0x333   :  { %v990_v2 = vmul.f32 %v981_v21, %v966_v10  ;;  %v993_v54 = vmul.f32 %v989_v57, %v966_v10  ;;  %1737 = vmatmul.mubr.f32.gmra.mrb[66].mxu0 %v8853_v8  ;;  %v12022_v57 = vld [vmem:[#allocation8_spill] sm:$0xff] }
 0x334   :  { %6927 = vmatprep.mubr.msk.f32.mxu0 %vm1091_vm4, %v8866_v19  ;;  %v9138_v10 = vmul.f32 0.0013888889, %v12022_v57  ;;  %v12029_v57 = vld [vmem:[#allocation13_spill] sm:$0xff] }
 0x335   :  { %v992_v26 = vsub.f32 %v990_v2, %v991_v49  ;;  %v995_v44 = vadd.f32 %v994_v50, %v993_v54  ;;  %v9126_v49 = vmul.f32 0.0013888889, %v8450_v52  ;;  %v12020_v50 = vld [vmem:[#allocation7_spill] sm:$0xff]  ;;  %v12025_v52 = vld [vmem:[#allocation9_spill] sm:$0xff] }
 0x337   :  { %v1018_v9 = vmul.f32 %v1016_v60, %v995_v44  ;;  %v1020_v25 = vmul.f32 %v1016_v60, %v992_v26  ;;  %v1017_v53 = vmul.f32 %v1008_v62, %v992_v26  ;;  %v1021_v59 = vmul.f32 %v1008_v62, %v995_v44  ;;  %1743 = vmatmul.mubr.f32.gmra.mrb[68].mxu0 %v8864_v46  ;;  %v12021_v26 = vld [vmem:[#allocation5_spill] sm:$0xff]  ;;  %v12023_v62 = vld [vmem:[#allocation6_spill] sm:$0xff] }
 0x338   :  { %6928 = vmatprep.mubr.msk.f32.mxu0 %vm1091_vm4, %v8873_v6  ;;  %v9129_v44 = vmul.f32 0.0013888889, %v8435_v43  ;;  %v9135_v21 = vmul.f32 0.0013888889, %v12021_v26  ;;  %v12026_v43 = vld [vmem:[#allocation12_spill] sm:$0xff] }
 0x339   :  { %v9059_v61 = vsub.f32 %v1017_v53, %v1018_v9  ;;  %v9061_v3 = vadd.f32 %v1021_v59, %v1020_v25  ;;  %v2432_v59 = vmul.f32 0.0013888889, %v8445_v51  ;;  %v9132_v25 = vmul.f32 0.0013888889, %v12020_v50  ;;  %v12024_v51 = vld [vmem:[#allocation11_spill] sm:$0xff] }
 0x33a   :  { %v9141_v9 = vmul.f32 0.0013888889, %v12023_v62  ;;  %v9144_v42 = vmul.f32 0.0013888889, %v12024_v51  ;;  %v12028_v50 = vld [vmem:[#allocation15_spill] sm:$0xff]  ;;  %v12030_v62 = vld [vmem:[#allocation16_spill] sm:$0xff] }
 0x33b   :  { %12018 = vst [vmem:[#allocation80_spill] sm:$0xff] %v9059_v61  ;;  %12019 = vst [vmem:[#allocation81_spill] sm:$0xff] %v9061_v3  ;;  %1749 = vmatmul.mubr.f32.gmra.mrb[70].mxu0 %v8871_v0  ;;  %v1023_v54 = vmul.f32 %v9059_v61, %v9059_v61  ;;  %v1024_v2 = vmul.f32 %v9061_v3, %v9061_v3  ;;  %v9156_v26 = vmul.f32 0.0013888889, %v12028_v50  ;;  %v9159_v3 = vmul.f32 0.0013888889, %v12029_v57 }
 0x33c   :  { %6929 = vmatprep.mubr.msk.f32.mxu0 %vm1091_vm4, %v8884_v38  ;;  %v9162_v61 = vmul.f32 0.0013888889, %v12030_v62  ;;  %v12031_v51 = vld [vmem:[#allocation14_spill] sm:$0xff]  ;;  %v12035_v50 = vld [vmem:[#allocation20_spill] sm:$0xff]  ;;  %v12037_v62 = vld [vmem:[#allocation21_spill] sm:$0xff] }
 0x33d   :  { %v1025_v60 = vadd.f32 %v1024_v2, %v1023_v54  ;;  %v9147_v54 = vmul.f32 0.0013888889, %v12025_v52  ;;  %v9150_v2 = vmul.f32 0.0013888889, %v12026_v43  ;;  %v12032_v52 = vld [vmem:[#allocation19_spill] sm:$0xff]  ;;  %v12033_v43 = vld [vmem:[#allocation17_spill] sm:$0xff] }
 0x33e   :  { %v12036_v57 = vld [vmem:[#allocation18_spill] sm:$0xff] }
 0x33f   :  { %1755 = vmatmul.mubr.f32.gmra.mrb[72].mxu0 %v8882_v1  ;;  %v1027_v53 = vsel %vm1026_vm9, %v1025_v60, 0.0  ;;  %v12027_v60 = vld [vmem:[#allocation10_spill] sm:$0xff] }
 0x340   :  { %6930 = vmatprep.mubr.msk.f32.mxu0 %vm1091_vm4, %v8891_v58  ;;  %1028 = vadd.xlane.f32.xlu0 %v1027_v53  ;;  %v9153_v53 = vmul.f32 0.0013888889, %v12027_v60  ;;  %v12034_v60 = vld [vmem:[#allocation23_spill] sm:$0xff] }
 0x343   :  { %1761 = vmatmul.mubr.f32.gmra.mrb[74].mxu0 %v8889_v32 }
 0x344   :  { %6931 = vmatprep.mubr.msk.f32.mxu0 %vm1091_vm4, %v8902_v45 }
 0x347   :  { %1767 = vmatmul.mubr.f32.gmra.mrb[76].mxu0 %v8900_v13 }
 0x348   :  { %6932 = vmatprep.mubr.msk.f32.mxu0 %vm1091_vm4, %v8909_v31 }
 0x34b   :  { %1773 = vmatmul.mubr.f32.gmra.mrb[78].mxu0 %v8907_v56 }
 0x34c   :  { %6933 = vmatprep.mubr.msk.f32.mxu0 %vm1091_vm4, %v8920_v63 }
 0x34f   :  { %1779 = vmatmul.mubr.f32.gmra.mrb[80].mxu0 %v8918_v7 }
 0x350   :  { %6934 = vmatprep.mubr.msk.f32.mxu0 %vm1091_vm4, %v8927_v20 }
 0x353   :  { %1785 = vmatmul.mubr.f32.gmra.mrb[82].mxu0 %v8925_v37 }
 0x354   :  { %6935 = vmatprep.mubr.msk.f32.mxu0 %vm1091_vm4, %v8938_v41 }
 0x357   :  { %1791 = vmatmul.mubr.f32.gmra.mrb[84].mxu0 %v8936_v14 }
 0x358   :  { %6936 = vmatprep.mubr.msk.f32.mxu0 %vm1091_vm4, %v8945_v36 }
 0x35b   :  { %1797 = vmatmul.mubr.f32.gmra.mrb[86].mxu0 %v8943_v47 }
 0x35c   :  { %6937 = vmatprep.mubr.msk.f32.mxu0 %vm1091_vm4, %v8956_v35 }
 0x35f   :  { %1803 = vmatmul.mubr.f32.gmra.mrb[88].mxu0 %v8954_v48  ;;  %v12089_v48 = vld [vmem:[#allocation48_spill] sm:$0xff] }
 0x360   :  { %6938 = vmatprep.mubr.msk.f32.mxu0 %vm1091_vm4, %v8963_v30 }
 0x363   :  { %1809 = vmatmul.mubr.f32.gmra.mrb[90].mxu0 %v8961_v39 }
 0x364   :  { %6939 = vmatprep.mubr.msk.f32.mxu0 %vm1091_vm4, %v8974_v29 }
 0x367   :  { %1815 = vmatmul.mubr.f32.gmra.mrb[92].mxu0 %v8972_v40 }
 0x368   :  { %6940 = vmatprep.mubr.msk.f32.mxu0 %vm1091_vm4, %v8981_v24 }
 0x36b   :  { %1821 = vmatmul.mubr.f32.gmra.mrb[94].mxu0 %v8979_v33 }
 0x36c   :  { %6941 = vmatprep.mubr.msk.f32.mxu0 %vm1091_vm4, %v8992_v23 }
 0x36f   :  { %1827 = vmatmul.mubr.f32.gmra.mrb[96].mxu0 %v8990_v34 }
 0x370   :  { %6942 = vmatprep.mubr.msk.f32.mxu0 %vm1091_vm4, %v8999_v18 }
 0x373   :  { %1833 = vmatmul.mubr.f32.gmra.mrb[98].mxu0 %v8997_v27 }
 0x374   :  { %6943 = vmatprep.mubr.msk.f32.mxu0 %vm1091_vm4, %v9010_v17  ;;  %v9183_v17 = vmul.f32 0.0013888889, %v12037_v62  ;;  %v12050_v62 = vld [vmem:[#allocation31_spill] sm:$0xff] }
 0x375   :  { %v9204_v33 = vmul.f32 0.0013888889, %v12050_v62  ;;  %v12064_v62 = vld [vmem:[#allocation34_spill] sm:$0xff] }
 0x377   :  { %1839 = vmatmul.mubr.f32.gmra.mrb[100].mxu0 %v9008_v28  ;;  %12051 = vst [vmem:[#allocation12_spill] sm:$0xff] %v9204_v33  ;;  %v9225_v33 = vmul.f32 0.0013888889, %v12064_v62  ;;  %v12078_v62 = vld [vmem:[#allocation44_spill] sm:$0xff] }
 0x378   :  { %6944 = vmatprep.mubr.msk.f32.mxu0 %vm1091_vm4, %v9017_v16  ;;  %v9177_v16 = vmul.f32 0.0013888889, %v12035_v50  ;;  %v12046_v50 = vld [vmem:[#allocation28_spill] sm:$0xff] }
 0x379   :  { %v9198_v34 = vmul.f32 0.0013888889, %v12046_v50  ;;  %v12060_v50 = vld [vmem:[#allocation33_spill] sm:$0xff]  ;;  %12065 = vst [vmem:[#allocation17_spill] sm:$0xff] %v9225_v33  ;;  %v9246_v33 = vmul.f32 0.0013888889, %v12078_v62 }
 0x37a   :  { %v9219_v35 = vmul.f32 0.0013888889, %v12060_v50  ;;  %v12074_v50 = vld [vmem:[#allocation43_spill] sm:$0xff]  ;;  %v12087_v62 = vld [vmem:[#allocation45_spill] sm:$0xff] }
 0x37b   :  { %1845 = vmatmul.mubr.f32.gmra.mrb[102].mxu0 %v9015_v12  ;;  %v9180_v12 = vmul.f32 0.0013888889, %v12036_v57  ;;  %12047 = vst [vmem:[#allocation11_spill] sm:$0xff] %v9198_v34  ;;  %v12048_v57 = vld [vmem:[#allocation26_spill] sm:$0xff] }
 0x37c   :  { %6945 = vmatprep.mubr.msk.f32.mxu0 %vm1091_vm4, %v9028_v11  ;;  %v9171_v11 = vmul.f32 0.0013888889, %v12033_v43  ;;  %v12042_v43 = vld [vmem:[#allocation27_spill] sm:$0xff]  ;;  %v9201_v24 = vmul.f32 0.0013888889, %v12048_v57  ;;  %12061 = vst [vmem:[#allocation14_spill] sm:$0xff] %v9219_v35 }
 0x37d   :  { %v9192_v27 = vmul.f32 0.0013888889, %v12042_v43  ;;  %v12056_v43 = vld [vmem:[#allocation30_spill] sm:$0xff]  ;;  %v12062_v57 = vld [vmem:[#allocation36_spill] sm:$0xff]  ;;  %v9240_v35 = vmul.f32 0.0013888889, %v12074_v50 }
 0x37e   :  { %12049 = vst [vmem:[#allocation9_spill] sm:$0xff] %v9201_v24  ;;  %v9213_v30 = vmul.f32 0.0013888889, %v12056_v43  ;;  %v9222_v24 = vmul.f32 0.0013888889, %v12062_v57  ;;  %v12070_v43 = vld [vmem:[#allocation40_spill] sm:$0xff] }
 0x37f   :  { %1851 = vmatmul.mubr.f32.gmra.mrb[104].mxu0 %v9026_v22  ;;  %v9174_v22 = vmul.f32 0.0013888889, %v12034_v60  ;;  %12043 = vst [vmem:[#allocation8_spill] sm:$0xff] %v9192_v27  ;;  %v12044_v60 = vld [vmem:[#allocation25_spill] sm:$0xff]  ;;  %12079 = vst [vmem:[#allocation27_spill] sm:$0xff] %v9246_v33 }
 0x380   :  { %6946 = vmatprep.mubr.msk.f32.mxu0 %vm1091_vm4, %v9035_v5  ;;  %v9165_v5 = vmul.f32 0.0013888889, %v12031_v51  ;;  %v12038_v51 = vld [vmem:[#allocation24_spill] sm:$0xff]  ;;  %v9195_v23 = vmul.f32 0.0013888889, %v12044_v60  ;;  %12057 = vst [vmem:[#allocation13_spill] sm:$0xff] %v9213_v30 }
 0x381   :  { %v9186_v28 = vmul.f32 0.0013888889, %v12038_v51  ;;  %v12052_v51 = vld [vmem:[#allocation29_spill] sm:$0xff]  ;;  %v12058_v60 = vld [vmem:[#allocation35_spill] sm:$0xff]  ;;  %12063 = vst [vmem:[#allocation19_spill] sm:$0xff] %v9222_v24  ;;  %12075 = vst [vmem:[#allocation24_spill] sm:$0xff] %v9240_v35 }
 0x382   :  { %12045 = vst [vmem:[#allocation6_spill] sm:$0xff] %v9195_v23  ;;  %v9207_v29 = vmul.f32 0.0013888889, %v12052_v51  ;;  %v9216_v39 = vmul.f32 0.0013888889, %v12058_v60  ;;  %v12066_v51 = vld [vmem:[#allocation39_spill] sm:$0xff] }
 0x383   :  { %1857 = vmatmul.mubr.f32.gmra.mrb[106].mxu0 %v9033_v15  ;;  %v9168_v15 = vmul.f32 0.0013888889, %v12032_v52  ;;  %12039 = vst [vmem:[#allocation7_spill] sm:$0xff] %v9186_v28  ;;  %v12040_v52 = vld [vmem:[#allocation22_spill] sm:$0xff]  ;;  %v9234_v30 = vmul.f32 0.0013888889, %v12070_v43 }
 0x384   :  { %v9189_v18 = vmul.f32 0.0013888889, %v12040_v52  ;;  %12053 = vst [vmem:[#allocation10_spill] sm:$0xff] %v9207_v29  ;;  %v12054_v52 = vld [vmem:[#allocation32_spill] sm:$0xff]  ;;  %12059 = vst [vmem:[#allocation16_spill] sm:$0xff] %v9216_v39  ;;  %v12072_v60 = vld [vmem:[#allocation38_spill] sm:$0xff] }
 0x385   :  { %v9210_v40 = vmul.f32 0.0013888889, %v12054_v52  ;;  %v9228_v29 = vmul.f32 0.0013888889, %v12066_v51  ;;  %v12068_v52 = vld [vmem:[#allocation37_spill] sm:$0xff]  ;;  %12071 = vst [vmem:[#allocation18_spill] sm:$0xff] %v9234_v30 }
 0x386   :  { %12041 = vst [vmem:[#allocation5_spill] sm:$0xff] %v9189_v18  ;;  %v9237_v39 = vmul.f32 0.0013888889, %v12072_v60  ;;  %v12076_v57 = vld [vmem:[#allocation41_spill] sm:$0xff]  ;;  %v12080_v51 = vld [vmem:[#allocation51_spill] sm:$0xff]  ;;  %v12083_v43 = vld [vmem:[#allocation52_spill] sm:$0xff] }
 0x387   :  { %12055 = vst [vmem:[#allocation15_spill] sm:$0xff] %v9210_v40  ;;  %12067 = vst [vmem:[#allocation23_spill] sm:$0xff] %v9228_v29  ;;  %v9231_v40 = vmul.f32 0.0013888889, %v12068_v52  ;;  %v9243_v24 = vmul.f32 0.0013888889, %v12076_v57 }
 0x388   :  { %12073 = vst [vmem:[#allocation21_spill] sm:$0xff] %v9237_v39  ;;  %v2144_v29 = vmul.f32 0.5, %v12080_v51  ;;  %v2480_v52 = vmul.f32 0.0001984127, %v12080_v51  ;;  %v2145_v30 = vmul.f32 0.5, %v12083_v43  ;;  %v12084_v39 = vld [vmem:[#allocation47_spill] sm:$0xff] }
 0x389   :  { %12069 = vst [vmem:[#allocation20_spill] sm:$0xff] %v9231_v40  ;;  %12077 = vst [vmem:[#allocation22_spill] sm:$0xff] %v9243_v24  ;;  %v12081_v40 = vld [vmem:[#allocation42_spill] sm:$0xff]  ;;  %v2481_v60 = vmul.f32 0.0001984127, %v12083_v43  ;;  %v12086_v35 = vld [vmem:[#allocation53_spill] sm:$0xff] }
 0x38a   :  { %v9251_v34 = vmul.f32 0.0013888889, %v12081_v40  ;;  %v9256_v50 = vmul.f32 0.0013888889, %v12084_v39  ;;  %v2146_v57 = vmul.f32 0.5, %v12086_v35  ;;  %v12091_v51 = vld [vmem:[#allocation54_spill] sm:$0xff] }
 0x38b   :  { %v2482_v24 = vmul.f32 0.0001984127, %v12086_v35  ;;  %v9261_v33 = vmul.f32 0.0013888889, %v12087_v62  ;;  %v9264_v23 = vmul.f32 0.0013888889, %v12089_v48 }
 0x38c   :  { %12082 = vst [vmem:[#allocation25_spill] sm:$0xff] %v9251_v34  ;;  %12085 = vst [vmem:[#allocation28_spill] sm:$0xff] %v9256_v50  ;;  %v2147_v40 = vmul.f32 0.5, %v12091_v51  ;;  %v12092_v34 = vld [vmem:[#allocation46_spill] sm:$0xff]  ;;  %v8237_v39 = vld [vmem:[%s11815_s1] sm:$0xff]  ;;  %v2528_v50 = vadd.f32 %v2480_v52, %v2432_v59 }
 0x38d   :  { %12088 = vst [vmem:[#allocation26_spill] sm:$0xff] %v9261_v33  ;;  %12090 = vst [vmem:[#allocation31_spill] sm:$0xff] %v9264_v23  ;;  %v9268_v36 = vmul.f32 0.0013888889, %v12092_v34  ;;  %v2192_v43 = vadd.f32 %v8237_v39, %v2144_v29  ;;  %v2483_v27 = vmul.f32 0.0001984127, %v12091_v51  ;;  %v2529_v23 = vadd.f32 %v2481_v60, %v2433_v4 }
 0x38e   :  { %v8238_v62 = vld [vmem:[%s11815_s1 + $0x8] sm:$0xff]  ;;  %v12094_v33 = vld [vmem:[#allocation55_spill] sm:$0xff]  ;;  %v2530_v52 = vadd.f32 %v2482_v24, %v9126_v49 }
 0x38f   :  { %12093 = vst [vmem:[#allocation29_spill] sm:$0xff] %v9268_v36  ;;  %v2193_v48 = vadd.f32 %v8238_v62, %v2145_v30  ;;  %v2148_v47 = vmul.f32 0.5, %v12094_v33  ;;  %v2484_v34 = vmul.f32 0.0001984127, %v12094_v33  ;;  %v8239_v29 = vld [vmem:[%s11815_s1 + $0x10] sm:$0xff]  ;;  %v8240_v30 = vld [vmem:[%s11815_s1 + $0x18] sm:$0xff] }
 0x390   :  { %v2194_v59 = vadd.f32 %v8239_v29, %v2146_v57  ;;  %v2195_v4 = vadd.f32 %v8240_v30, %v2147_v40  ;;  %v12095_v33 = vld [vmem:[#allocation56_spill] sm:$0xff]  ;;  %v2531_v57 = vadd.f32 %v2483_v27, %v9129_v44  ;;  %v2150_v27 = vmul.f32 0.5, %v8853_v8 }
 0x391   :  { %v2149_v60 = vmul.f32 0.5, %v12095_v33  ;;  %v2485_v24 = vmul.f32 0.0001984127, %v12095_v33  ;;  %v8241_v40 = vld [vmem:[%s11815_s1 + $0x20] sm:$0xff] }
 0x392   :  { %v2196_v30 = vadd.f32 %v8241_v40, %v2148_v47  ;;  %v2151_v47 = vmul.f32 0.5, %v8855_v55 }
 0x399   :  { %v1511_v35 = vpop.f32.mrb[12].mxu1 }
 0x39a   :  { %v1513_v36 = vpop.f32.mrb[13].mxu1  ;;  %v2240_v18 = vmul.f32 0.16666667, %v1511_v35  ;;  %v2576_v41 = vmul.f32 2.4801588e-05, %v1511_v35 }
 0x39b   :  { %6947 = vmatprep.mubr.msk.f32.mxu1 %vm1091_vm4, %v1513_v36  ;;  %v2241_v51 = vmul.f32 0.16666667, %v1513_v36  ;;  %v2577_v39 = vmul.f32 2.4801588e-05, %v1513_v36 }
 0x39c   :  { %2000 = vmatmul.mubr.f32.vlgmr.msra.gmra.mrb[60].mxu1 %v1511_v35  ;;  %v9288_v62 = vadd.f32 %v2240_v18, %v2192_v43  ;;  %v9290_v28 = vadd.f32 %v2576_v41, %v2528_v50  ;;  %v2486_v35 = vmul.f32 0.0001984127, %v8853_v8  ;;  %v2532_v50 = vadd.f32 %v2484_v34, %v9132_v25 }
 0x39d   :  { %v1517_v49 = vpop.f32.mrb[14].mxu1  ;;  %v9294_v29 = vadd.f32 %v2241_v51, %v2193_v48  ;;  %v9296_v36 = vadd.f32 %v2577_v39, %v2529_v23  ;;  %v8242_v23 = vld [vmem:[%s11815_s1 + $0x28] sm:$0xff]  ;;  %v2533_v25 = vadd.f32 %v2485_v24, %v9135_v21  ;;  %v2487_v8 = vmul.f32 0.0001984127, %v8855_v55 }
 0x39e   :  { %v1519_v18 = vpop.f32.mrb[15].mxu1  ;;  %v2242_v43 = vmul.f32 0.16666667, %v1517_v49  ;;  %v2578_v41 = vmul.f32 2.4801588e-05, %v1517_v49  ;;  %v2197_v51 = vadd.f32 %v8242_v23, %v2149_v60  ;;  %v2534_v21 = vadd.f32 %v2486_v35, %v9138_v10 }
 0x39f   :  { %12096 = vst [vmem:[#allocation32_spill] sm:$0xff] %v9294_v29  ;;  %12097 = vst [vmem:[#allocation30_spill] sm:$0xff] %v9296_v36  ;;  %6948 = vmatprep.mubr.msk.f32.mxu1 %vm1091_vm4, %v1519_v18  ;;  %v2243_v44 = vmul.f32 0.16666667, %v1519_v18  ;;  %v2579_v48 = vmul.f32 2.4801588e-05, %v1519_v18 }
 0x3a0   :  { %2006 = vmatmul.mubr.f32.gmra.mrb[62].mxu1 %v1517_v49  ;;  %v9309_v39 = vadd.f32 %v2242_v43, %v2194_v59  ;;  %v9311_v33 = vadd.f32 %v2578_v41, %v2530_v52  ;;  %v2152_v36 = vmul.f32 0.5, %v8864_v46  ;;  %v2488_v60 = vmul.f32 0.0001984127, %v8864_v46  ;;  %v8243_v59 = vld [vmem:[%s11815_s1 + $0x30] sm:$0xff] }
 0x3a1   :  { %v1523_v34 = vpop.f32.mrb[16].mxu1  ;;  %v9315_v40 = vadd.f32 %v2243_v44, %v2195_v4  ;;  %v9317_v18 = vadd.f32 %v2579_v48, %v2531_v57  ;;  %v2198_v52 = vadd.f32 %v8243_v59, %v2150_v27  ;;  %v8244_v57 = vld [vmem:[%s11815_s1 + $0x38] sm:$0xff]  ;;  %v2153_v46 = vmul.f32 0.5, %v8866_v19 }
 0x3a2   :  { %v1525_v23 = vpop.f32.mrb[17].mxu1  ;;  %v2244_v29 = vmul.f32 0.16666667, %v1523_v34  ;;  %v2580_v49 = vmul.f32 2.4801588e-05, %v1523_v34  ;;  %v2199_v24 = vadd.f32 %v8244_v57, %v2151_v47  ;;  %v2535_v27 = vadd.f32 %v2487_v8, %v9141_v9  ;;  %v8245_v47 = vld [vmem:[%s11815_s1 + $0x40] sm:$0xff] }
 0x3a3   :  { %6949 = vmatprep.mubr.msk.f32.mxu1 %vm1091_vm4, %v1525_v23  ;;  %v2245_v55 = vmul.f32 0.16666667, %v1525_v23  ;;  %v2581_v4 = vmul.f32 2.4801588e-05, %v1525_v23  ;;  %v2489_v10 = vmul.f32 0.0001984127, %v8866_v19  ;;  %v2200_v23 = vadd.f32 %v8245_v47, %v2152_v36 }
 0x3a4   :  { %2012 = vmatmul.mubr.f32.gmra.mrb[64].mxu1 %v1523_v34  ;;  %v9330_v43 = vadd.f32 %v2244_v29, %v2196_v30  ;;  %v9332_v41 = vadd.f32 %v2580_v49, %v2532_v50  ;;  %v2490_v34 = vmul.f32 0.0001984127, %v8871_v0  ;;  %v2536_v49 = vadd.f32 %v2488_v60, %v9144_v42 }
 0x3a5   :  { %v1529_v35 = vpop.f32.mrb[18].mxu1  ;;  %v9336_v44 = vadd.f32 %v2245_v55, %v2197_v51  ;;  %v9338_v48 = vadd.f32 %v2581_v4, %v2533_v25  ;;  %v2154_v9 = vmul.f32 0.5, %v8871_v0  ;;  %v8246_v25 = vld [vmem:[%s11815_s1 + $0x48] sm:$0xff]  ;;  %v2155_v36 = vmul.f32 0.5, %v8873_v6 }
 0x3a6   :  { %v1531_v29 = vpop.f32.mrb[19].mxu1  ;;  %v2246_v30 = vmul.f32 0.16666667, %v1529_v35  ;;  %v2582_v50 = vmul.f32 2.4801588e-05, %v1529_v35  ;;  %v2201_v8 = vadd.f32 %v8246_v25, %v2153_v46  ;;  %v2537_v42 = vadd.f32 %v2489_v10, %v9147_v54 }
 0x3a7   :  { %6950 = vmatprep.mubr.msk.f32.mxu1 %vm1091_vm4, %v1531_v29  ;;  %v2247_v19 = vmul.f32 0.16666667, %v1531_v29  ;;  %v2583_v51 = vmul.f32 2.4801588e-05, %v1531_v29  ;;  %v2491_v0 = vmul.f32 0.0001984127, %v8873_v6  ;;  %v2538_v54 = vadd.f32 %v2490_v34, %v9150_v2 }
 0x3a8   :  { %2018 = vmatmul.mubr.f32.gmra.mrb[66].mxu1 %v1529_v35  ;;  %v9351_v59 = vadd.f32 %v2246_v30, %v2198_v52  ;;  %v9353_v55 = vadd.f32 %v2582_v50, %v2534_v21  ;;  %v2156_v47 = vmul.f32 0.5, %v8882_v1  ;;  %v2492_v46 = vmul.f32 0.0001984127, %v8882_v1  ;;  %v8247_v52 = vld [vmem:[%s11815_s1 + $0x50] sm:$0xff] }
 0x3a9   :  { %v1535_v60 = vpop.f32.mrb[20].mxu1  ;;  %v9357_v4 = vadd.f32 %v2247_v19, %v2199_v24  ;;  %v9359_v57 = vadd.f32 %v2583_v51, %v2535_v27  ;;  %v2202_v21 = vadd.f32 %v8247_v52, %v2154_v9  ;;  %v8248_v27 = vld [vmem:[%s11815_s1 + $0x58] sm:$0xff]  ;;  %v2157_v1 = vmul.f32 0.5, %v8884_v38 }
 0x3aa   :  { %v1537_v29 = vpop.f32.mrb[21].mxu1  ;;  %v2248_v25 = vmul.f32 0.16666667, %v1535_v60  ;;  %v2584_v35 = vmul.f32 2.4801588e-05, %v1535_v60  ;;  %v2203_v10 = vadd.f32 %v8248_v27, %v2155_v36  ;;  %v2539_v9 = vadd.f32 %v2491_v0, %v9153_v53  ;;  %v8249_v36 = vld [vmem:[%s11815_s1 + $0x60] sm:$0xff] }
 0x3ab   :  { %6951 = vmatprep.mubr.msk.f32.mxu1 %vm1091_vm4, %v1537_v29  ;;  %v2249_v6 = vmul.f32 0.16666667, %v1537_v29  ;;  %v2585_v24 = vmul.f32 2.4801588e-05, %v1537_v29  ;;  %v2493_v2 = vmul.f32 0.0001984127, %v8884_v38  ;;  %v2204_v29 = vadd.f32 %v8249_v36, %v2156_v47 }
 0x3ac   :  { %2024 = vmatmul.mubr.f32.gmra.mrb[68].mxu1 %v1535_v60  ;;  %v9372_v30 = vadd.f32 %v2248_v25, %v2200_v23  ;;  %v9374_v50 = vadd.f32 %v2584_v35, %v2536_v49  ;;  %v2494_v60 = vmul.f32 0.0001984127, %v8889_v32  ;;  %v2540_v35 = vadd.f32 %v2492_v46, %v9156_v26 }
 0x3ad   :  { %v1541_v34 = vpop.f32.mrb[22].mxu1  ;;  %v9378_v19 = vadd.f32 %v2249_v6, %v2201_v8  ;;  %v9380_v51 = vadd.f32 %v2585_v24, %v2537_v42  ;;  %v2158_v53 = vmul.f32 0.5, %v8889_v32  ;;  %v8250_v42 = vld [vmem:[%s11815_s1 + $0x68] sm:$0xff]  ;;  %v2159_v47 = vmul.f32 0.5, %v8891_v58 }
 0x3ae   :  { %v1543_v23 = vpop.f32.mrb[23].mxu1  ;;  %v2250_v25 = vmul.f32 0.16666667, %v1541_v34  ;;  %v2586_v49 = vmul.f32 2.4801588e-05, %v1541_v34  ;;  %v2205_v0 = vadd.f32 %v8250_v42, %v2157_v1  ;;  %v2541_v26 = vadd.f32 %v2493_v2, %v9159_v3 }
 0x3af   :  { %6952 = vmatprep.mubr.msk.f32.mxu1 %vm1091_vm4, %v1543_v23  ;;  %v2251_v38 = vmul.f32 0.16666667, %v1543_v23  ;;  %v2587_v8 = vmul.f32 2.4801588e-05, %v1543_v23  ;;  %v2495_v32 = vmul.f32 0.0001984127, %v8891_v58  ;;  %v2542_v3 = vadd.f32 %v2494_v60, %v9162_v61 }
 0x3b0   :  { %2030 = vmatmul.mubr.f32.gmra.mrb[70].mxu1 %v1541_v34  ;;  %v9393_v52 = vadd.f32 %v2250_v25, %v2202_v21  ;;  %v9395_v6 = vadd.f32 %v2586_v49, %v2538_v54  ;;  %v2160_v36 = vmul.f32 0.5, %v8900_v13  ;;  %v2496_v1 = vmul.f32 0.0001984127, %v8900_v13  ;;  %v8251_v21 = vld [vmem:[%s11815_s1 + $0x70] sm:$0xff] }
 0x3b1   :  { %v1547_v46 = vpop.f32.mrb[24].mxu1  ;;  %v9399_v24 = vadd.f32 %v2251_v38, %v2203_v10  ;;  %v9401_v27 = vadd.f32 %v2587_v8, %v2539_v9  ;;  %v2206_v54 = vadd.f32 %v8251_v21, %v2158_v53  ;;  %v8252_v9 = vld [vmem:[%s11815_s1 + $0x78] sm:$0xff]  ;;  %v2161_v13 = vmul.f32 0.5, %v8902_v45 }
 0x3b2   :  { %v1549_v23 = vpop.f32.mrb[25].mxu1  ;;  %v2252_v42 = vmul.f32 0.16666667, %v1547_v46  ;;  %v2588_v34 = vmul.f32 2.4801588e-05, %v1547_v46  ;;  %v2207_v2 = vadd.f32 %v8252_v9, %v2159_v47  ;;  %v2543_v53 = vadd.f32 %v2495_v32, %v9165_v5  ;;  %v8253_v47 = vld [vmem:[%s11815_s1 + $0x80] sm:$0xff] }
 0x3b3   :  { %6953 = vmatprep.mubr.msk.f32.mxu1 %vm1091_vm4, %v1549_v23  ;;  %v2253_v58 = vmul.f32 0.16666667, %v1549_v23  ;;  %v2589_v10 = vmul.f32 2.4801588e-05, %v1549_v23  ;;  %v2497_v61 = vmul.f32 0.0001984127, %v8902_v45  ;;  %v2208_v23 = vadd.f32 %v8253_v47, %v2160_v36 }
 0x3b4   :  { %2036 = vmatmul.mubr.f32.gmra.mrb[72].mxu1 %v1547_v46  ;;  %v9414_v25 = vadd.f32 %v2252_v42, %v2204_v29  ;;  %v9416_v49 = vadd.f32 %v2588_v34, %v2540_v35  ;;  %v2498_v46 = vmul.f32 0.0001984127, %v8907_v56  ;;  %v2544_v34 = vadd.f32 %v2496_v1, %v9168_v15 }
 0x3b5   :  { %v1553_v60 = vpop.f32.mrb[26].mxu1  ;;  %v9420_v38 = vadd.f32 %v2253_v58, %v2205_v0  ;;  %v9422_v8 = vadd.f32 %v2589_v10, %v2541_v26  ;;  %v2162_v5 = vmul.f32 0.5, %v8907_v56  ;;  %v8254_v26 = vld [vmem:[%s11815_s1 + $0x88] sm:$0xff]  ;;  %v2163_v36 = vmul.f32 0.5, %v8909_v31 }
 0x3b6   :  { %v1555_v29 = vpop.f32.mrb[27].mxu1  ;;  %v2254_v42 = vmul.f32 0.16666667, %v1553_v60  ;;  %v2590_v35 = vmul.f32 2.4801588e-05, %v1553_v60  ;;  %v2209_v32 = vadd.f32 %v8254_v26, %v2161_v13  ;;  %v2545_v15 = vadd.f32 %v2497_v61, %v9171_v11 }
 0x3b7   :  { %6954 = vmatprep.mubr.msk.f32.mxu1 %vm1091_vm4, %v1555_v29  ;;  %v2255_v45 = vmul.f32 0.16666667, %v1555_v29  ;;  %v2591_v0 = vmul.f32 2.4801588e-05, %v1555_v29  ;;  %v2499_v56 = vmul.f32 0.0001984127, %v8909_v31  ;;  %v2546_v11 = vadd.f32 %v2498_v46, %v9177_v16 }
 0x3b8   :  { %2042 = vmatmul.mubr.f32.gmra.mrb[74].mxu1 %v1553_v60  ;;  %v9435_v21 = vadd.f32 %v2254_v42, %v2206_v54  ;;  %v9437_v58 = vadd.f32 %v2590_v35, %v2542_v3  ;;  %v2164_v10 = vmul.f32 0.5, %v8918_v7  ;;  %v2500_v9 = vmul.f32 0.0001984127, %v8918_v7  ;;  %v8255_v54 = vld [vmem:[%s11815_s1 + $0x90] sm:$0xff] }
 0x3b9   :  { %v1559_v1 = vpop.f32.mrb[28].mxu1  ;;  %v9443_v47 = vadd.f32 %v2255_v45, %v2207_v2  ;;  %v9445_v29 = vadd.f32 %v2591_v0, %v2543_v53  ;;  %v2210_v3 = vadd.f32 %v8255_v54, %v2162_v5  ;;  %v2165_v31 = vmul.f32 0.5, %v8920_v63  ;;  %v8256_v2 = vld [vmem:[%s11815_s1 + $0x98] sm:$0xff]  ;;  %v8257_v5 = vld [vmem:[%s11815_s1 + $0xa0] sm:$0xff] }
 0x3ba   :  { %v1561_v13 = vpop.f32.mrb[29].mxu1  ;;  %v2256_v26 = vmul.f32 0.16666667, %v1559_v1  ;;  %v2592_v60 = vmul.f32 2.4801588e-05, %v1559_v1  ;;  %v2211_v53 = vadd.f32 %v8256_v2, %v2163_v36  ;;  %v2547_v16 = vadd.f32 %v2499_v56, %v9180_v12  ;;  %v8258_v12 = vld [vmem:[%s11815_s1 + $0xa8] sm:$0xff] }
 0x3bb   :  { %6955 = vmatprep.mubr.msk.f32.mxu1 %vm1091_vm4, %v1561_v13  ;;  %v2257_v61 = vmul.f32 0.16666667, %v1561_v13  ;;  %v2593_v7 = vmul.f32 2.4801588e-05, %v1561_v13  ;;  %v2501_v42 = vmul.f32 0.0001984127, %v8920_v63  ;;  %v2212_v0 = vadd.f32 %v8257_v5, %v2164_v10 }
 0x3bc   :  { %2048 = vmatmul.mubr.f32.gmra.mrb[76].mxu1 %v1559_v1  ;;  %v9457_v35 = vadd.f32 %v2256_v26, %v2208_v23  ;;  %v9459_v45 = vadd.f32 %v2592_v60, %v2544_v34  ;;  %v2502_v13 = vmul.f32 0.0001984127, %v8925_v37  ;;  %v2548_v63 = vadd.f32 %v2500_v9, %v9174_v22 }
 0x3bd   :  { %v1565_v46 = vpop.f32.mrb[30].mxu1  ;;  %v9466_v54 = vadd.f32 %v2257_v61, %v2209_v32  ;;  %v9468_v36 = vadd.f32 %v2593_v7, %v2545_v15  ;;  %v2166_v23 = vmul.f32 0.5, %v8925_v37  ;;  %v2213_v56 = vadd.f32 %v8258_v12, %v2165_v31 }
 0x3be   :  { %v1567_v1 = vpop.f32.mrb[31].mxu1  ;;  %v2258_v34 = vmul.f32 0.16666667, %v1565_v46  ;;  %v2594_v26 = vmul.f32 2.4801588e-05, %v1565_v46  ;;  %v2167_v10 = vmul.f32 0.5, %v8927_v20  ;;  %v2549_v15 = vadd.f32 %v2501_v42, %v9183_v17 }
 0x3bf   :  { %12098 = vst [vmem:[#allocation35_spill] sm:$0xff] %v9468_v36  ;;  %6956 = vmatprep.mubr.msk.f32.mxu1 %vm1091_vm4, %v1567_v1  ;;  %v2259_v32 = vmul.f32 0.16666667, %v1567_v1  ;;  %v2595_v60 = vmul.f32 2.4801588e-05, %v1567_v1  ;;  %v2168_v7 = vmul.f32 0.5, %v8936_v14 }
 0x3c0   :  { %2054 = vmatmul.mubr.f32.gmra.mrb[78].mxu1 %v1565_v46  ;;  %v2503_v22 = vmul.f32 0.0001984127, %v8927_v20  ;;  %v9479_v9 = vadd.f32 %v2258_v34, %v2210_v3  ;;  %v9481_v37 = vadd.f32 %v2594_v26, %v2546_v11  ;;  %v2504_v2 = vmul.f32 0.0001984127, %v8936_v14  ;;  %v8259_v17 = vld [vmem:[%s11815_s1 + $0xb0] sm:$0xff]  ;;  %v8260_v14 = vld [vmem:[%s11815_s1 + $0xb8] sm:$0xff] }
 0x3c1   :  { %v1571_v61 = vpop.f32.mrb[32].mxu1  ;;  %v9485_v5 = vadd.f32 %v2259_v32, %v2211_v53  ;;  %v9487_v31 = vadd.f32 %v2595_v60, %v2547_v16  ;;  %v2214_v20 = vadd.f32 %v8259_v17, %v2166_v23  ;;  %v12103_v3 = vld [vmem:[#allocation7_spill] sm:$0xff]  ;;  %v2215_v53 = vadd.f32 %v8260_v14, %v2167_v10  ;;  %v12104_v16 = vld [vmem:[#allocation57_spill] sm:$0xff] }
 0x3c2   :  { %12099 = vst [vmem:[#allocation33_spill] sm:$0xff] %v9479_v9  ;;  %12100 = vst [vmem:[#allocation36_spill] sm:$0xff] %v9481_v37  ;;  %v2260_v12 = vmul.f32 0.16666667, %v1571_v61  ;;  %v2596_v1 = vmul.f32 2.4801588e-05, %v1571_v61  ;;  %v2550_v11 = vadd.f32 %v2502_v13, %v12103_v3 }
 0x3c3   :  { %12101 = vst [vmem:[#allocation34_spill] sm:$0xff] %v9485_v5  ;;  %12102 = vst [vmem:[#allocation39_spill] sm:$0xff] %v9487_v31  ;;  %v1573_v46 = vpop.f32.mrb[33].mxu1  ;;  %v2169_v26 = vmul.f32 0.5, %v12104_v16  ;;  %v12107_v31 = vld [vmem:[#allocation5_spill] sm:$0xff]  ;;  %v12110_v5 = vld [vmem:[#allocation58_spill] sm:$0xff] }
 0x3c4   :  { %v2261_v42 = vmul.f32 0.16666667, %v1573_v46  ;;  %v2597_v34 = vmul.f32 2.4801588e-05, %v1573_v46  ;;  %6957 = vmatprep.mubr.msk.f32.mxu1 %vm1091_vm4, %v1573_v46  ;;  %v9498_v32 = vadd.f32 %v2260_v12, %v2212_v0  ;;  %v9500_v60 = vadd.f32 %v2596_v1, %v2548_v63  ;;  %v8261_v10 = vld [vmem:[%s11815_s1 + $0xc0] sm:$0xff] }
 0x3c5   :  { %2060 = vmatmul.mubr.f32.gmra.mrb[80].mxu1 %v1571_v61  ;;  %v2551_v23 = vadd.f32 %v2503_v22, %v12107_v31  ;;  %v2505_v13 = vmul.f32 0.0001984127, %v12104_v16  ;;  %v1577_v46 = vpop.f32.mrb[34].mxu1  ;;  %v2216_v14 = vadd.f32 %v8261_v10, %v2168_v7  ;;  %v2506_v0 = vmul.f32 0.0001984127, %v12110_v5  ;;  %v12111_v61 = vld [vmem:[#allocation8_spill] sm:$0xff] }
 0x3c6   :  { %12105 = vst [vmem:[#allocation37_spill] sm:$0xff] %v9498_v32  ;;  %12106 = vst [vmem:[#allocation40_spill] sm:$0xff] %v9500_v60  ;;  %v9504_v17 = vadd.f32 %v2261_v42, %v2213_v56  ;;  %v9506_v3 = vadd.f32 %v2597_v34, %v2549_v15  ;;  %v2262_v12 = vmul.f32 0.16666667, %v1577_v46  ;;  %v2598_v63 = vmul.f32 2.4801588e-05, %v1577_v46 }
 0x3c7   :  { %v1579_v1 = vpop.f32.mrb[35].mxu1  ;;  %v2552_v60 = vadd.f32 %v2504_v2, %v12111_v61  ;;  %v2170_v22 = vmul.f32 0.5, %v12110_v5  ;;  %v8262_v15 = vld [vmem:[%s11815_s1 + $0xc8] sm:$0xff]  ;;  %v12112_v34 = vld [vmem:[#allocation59_spill] sm:$0xff]  ;;  %v12118_v32 = vld [vmem:[#allocation60_spill] sm:$0xff] }
 0x3c8   :  { %12108 = vst [vmem:[#allocation38_spill] sm:$0xff] %v9504_v17  ;;  %12109 = vst [vmem:[#allocation43_spill] sm:$0xff] %v9506_v3  ;;  %v2263_v31 = vmul.f32 0.16666667, %v1579_v1  ;;  %v2599_v56 = vmul.f32 2.4801588e-05, %v1579_v1  ;;  %6958 = vmatprep.mubr.msk.f32.mxu1 %vm1091_vm4, %v1579_v1  ;;  %v2217_v42 = vadd.f32 %v8262_v15, %v2169_v26  ;;  %v9519_v16 = vadd.f32 %v2262_v12, %v2214_v20 }
 0x3c9   :  { %v2171_v7 = vmul.f32 0.5, %v12112_v34  ;;  %v9521_v10 = vadd.f32 %v2598_v63, %v2550_v11  ;;  %2066 = vmatmul.mubr.f32.gmra.mrb[82].mxu1 %v1577_v46  ;;  %v12115_v3 = vld [vmem:[#allocation6_spill] sm:$0xff]  ;;  %v2507_v5 = vmul.f32 0.0001984127, %v12112_v34  ;;  %v1583_v1 = vpop.f32.mrb[36].mxu1  ;;  %v2172_v37 = vmul.f32 0.5, %v12118_v32 }
 0x3ca   :  { %12113 = vst [vmem:[#allocation41_spill] sm:$0xff] %v9519_v16  ;;  %v2553_v2 = vadd.f32 %v2505_v13, %v12115_v3  ;;  %v9525_v61 = vadd.f32 %v2263_v31, %v2215_v53  ;;  %v9527_v17 = vadd.f32 %v2599_v56, %v2551_v23  ;;  %v2508_v26 = vmul.f32 0.0001984127, %v12118_v32  ;;  %v1585_v20 = vpop.f32.mrb[37].mxu1  ;;  %v8263_v11 = vld [vmem:[%s11815_s1 + $0xd0] sm:$0xff]  ;;  %v8264_v23 = vld [vmem:[%s11815_s1 + $0xd8] sm:$0xff] }
 0x3cb   :  { %12114 = vst [vmem:[#allocation44_spill] sm:$0xff] %v9521_v10  ;;  %v2264_v15 = vmul.f32 0.16666667, %v1583_v1  ;;  %v2600_v9 = vmul.f32 2.4801588e-05, %v1583_v1  ;;  %v2218_v46 = vadd.f32 %v8263_v11, %v2170_v22  ;;  %v12119_v13 = vld [vmem:[#allocation11_spill] sm:$0xff]  ;;  %6959 = vmatprep.mubr.msk.f32.mxu1 %vm1091_vm4, %v1585_v20  ;;  %v2219_v63 = vadd.f32 %v8264_v23, %v2171_v7 }
 0x3cc   :  { %12116 = vst [vmem:[#allocation51_spill] sm:$0xff] %v9525_v61  ;;  %12117 = vst [vmem:[#allocation42_spill] sm:$0xff] %v9527_v17  ;;  %v2554_v3 = vadd.f32 %v2506_v0, %v12119_v13  ;;  %v2265_v12 = vmul.f32 0.16666667, %v1585_v20  ;;  %v2601_v53 = vmul.f32 2.4801588e-05, %v1585_v20 }
 0x3cd   :  { %v12120_v32 = vld [vmem:[#allocation61_spill] sm:$0xff]  ;;  %v9540_v56 = vadd.f32 %v2264_v15, %v2216_v14  ;;  %v9542_v34 = vadd.f32 %v2600_v9, %v2552_v60  ;;  %2072 = vmatmul.mubr.f32.gmra.mrb[84].mxu1 %v1583_v1  ;;  %v1589_v20 = vpop.f32.mrb[38].mxu1  ;;  %v1029_v61 = vpop.xlane.xlu0 %1028  ;;  %v12126_v14 = vld [vmem:[#allocation62_spill] sm:$0xff]  ;;  %v12131_v10 = vld [vmem:[#allocation63_spill] sm:$0xff] }
 0x3ce   :  { %v2173_v31 = vmul.f32 0.5, %v12120_v32  ;;  %v12123_v17 = vld [vmem:[#allocation9_spill] sm:$0xff]  ;;  %v2509_v0 = vmul.f32 0.0001984127, %v12120_v32  ;;  %v9546_v11 = vadd.f32 %v2265_v12, %v2217_v42  ;;  %v9548_v13 = vadd.f32 %v2601_v53, %v2553_v2 }
 0x3cf   :  { %12121 = vst [vmem:[#allocation52_spill] sm:$0xff] %v9540_v56  ;;  %12122 = vst [vmem:[#allocation47_spill] sm:$0xff] %v9542_v34  ;;  %v2555_v22 = vadd.f32 %v2507_v5, %v12123_v17  ;;  %v8265_v7 = vld [vmem:[%s11815_s1 + $0xe0] sm:$0xff]  ;;  %v2174_v15 = vmul.f32 0.5, %v12126_v14  ;;  %v2266_v9 = vmul.f32 0.16666667, %v1589_v20 }
 0x3d0   :  { %12124 = vst [vmem:[#allocation53_spill] sm:$0xff] %v9546_v11  ;;  %12125 = vst [vmem:[#allocation45_spill] sm:$0xff] %v9548_v13  ;;  %v2220_v23 = vadd.f32 %v8265_v7, %v2172_v37  ;;  %v2602_v60 = vmul.f32 2.4801588e-05, %v1589_v20  ;;  %v1030_v1 = vrot.slane %v1029_v61, 4  ;;  %v1591_v34 = vpop.f32.mrb[39].mxu1 }
 0x3d1   :  { %v12127_v17 = vld [vmem:[#allocation12_spill] sm:$0xff]  ;;  %v2267_v32 = vmul.f32 0.16666667, %v1591_v34  ;;  %v2603_v42 = vmul.f32 2.4801588e-05, %v1591_v34  ;;  %6960 = vmatprep.mubr.msk.f32.mxu1 %vm1091_vm4, %v1591_v34  ;;  %v8266_v2 = vld [vmem:[%s11815_s1 + $0xe8] sm:$0xff]  ;;  %v9560_v37 = vadd.f32 %v2266_v9, %v2218_v46 }
 0x3d2   :  { %v2556_v5 = vadd.f32 %v2508_v26, %v12127_v17  ;;  %v2221_v12 = vadd.f32 %v8266_v2, %v2173_v31  ;;  %v2510_v53 = vmul.f32 0.0001984127, %v12126_v14  ;;  %v9562_v7 = vadd.f32 %v2602_v60, %v2554_v3  ;;  %2078 = vmatmul.mubr.f32.gmra.mrb[86].mxu1 %v1589_v20  ;;  %v12128_v11 = vld [vmem:[#allocation10_spill] sm:$0xff]  ;;  %v1595_v34 = vpop.f32.mrb[40].mxu1 }
 0x3d3   :  { %v1031_v13 = vadd.f32 %v1030_v1, %v1029_v61  ;;  %v2557_v56 = vadd.f32 %v2509_v0, %v12128_v11  ;;  %v9565_v26 = vadd.f32 %v2267_v32, %v2219_v63  ;;  %v9567_v17 = vadd.f32 %v2603_v42, %v2555_v22  ;;  %v1597_v46 = vpop.f32.mrb[41].mxu1  ;;  %v8267_v61 = vld [vmem:[%s11815_s1 + $0xf0] sm:$0xff]  ;;  %v12133_v11 = vld [vmem:[#allocation64_spill] sm:$0xff] }
 0x3d4   :  { %v2175_v16 = vmul.f32 0.5, %v12131_v10  ;;  %v2511_v36 = vmul.f32 0.0001984127, %v12131_v10  ;;  %v2268_v2 = vmul.f32 0.16666667, %v1595_v34  ;;  %v2222_v3 = vadd.f32 %v8267_v61, %v2174_v15  ;;  %6961 = vmatprep.mubr.msk.f32.mxu1 %vm1091_vm4, %v1597_v46  ;;  %v12132_v63 = vld [vmem:[#allocation15_spill] sm:$0xff] }
 0x3d5   :  { %12129 = vst [vmem:[#allocation48_spill] sm:$0xff] %v9565_v26  ;;  %12130 = vst [vmem:[#allocation54_spill] sm:$0xff] %v9567_v17  ;;  %v1032_v31 = vrot.slane %v1031_v13, 2  ;;  %v2604_v14 = vmul.f32 2.4801588e-05, %v1595_v34  ;;  %v2558_v22 = vadd.f32 %v2510_v53, %v12132_v63  ;;  %v2176_v9 = vmul.f32 0.5, %v12133_v11 }
 0x3d6   :  { %v2269_v20 = vmul.f32 0.16666667, %v1597_v46  ;;  %v2605_v0 = vmul.f32 2.4801588e-05, %v1597_v46  ;;  %v9577_v60 = vadd.f32 %v2268_v2, %v2220_v23  ;;  %2084 = vmatmul.mubr.f32.gmra.mrb[88].mxu1 %v1595_v34  ;;  %v2512_v1 = vmul.f32 0.0001984127, %v12133_v11 }
 0x3d7   :  { %v9579_v10 = vadd.f32 %v2604_v14, %v2556_v5  ;;  %v1033_v32 = vadd.f32 %v1032_v31, %v1031_v13  ;;  %v1601_v15 = vpop.f32.mrb[42].mxu1  ;;  %v8268_v46 = vld [vmem:[%s11815_s1 + $0xf8] sm:$0xff]  ;;  %v12138_v61 = vld [vmem:[#allocation65_spill] sm:$0xff] }
 0x3d8   :  { %12134 = vst [vmem:[#allocation46_spill] sm:$0xff] %v9577_v60  ;;  %v9582_v42 = vadd.f32 %v2269_v20, %v2221_v12  ;;  %v9584_v17 = vadd.f32 %v2605_v0, %v2557_v56  ;;  %v2223_v53 = vadd.f32 %v8268_v46, %v2175_v16  ;;  %v2177_v63 = vmul.f32 0.5, %v12138_v61  ;;  %v1603_v5 = vpop.f32.mrb[43].mxu1  ;;  %v12139_v14 = vld [vmem:[#allocation13_spill] sm:$0xff]  ;;  %v12140_v0 = vld [vmem:[#allocation16_spill] sm:$0xff] }
 0x3d9   :  { %12135 = vst [vmem:[#allocation55_spill] sm:$0xff] %v9579_v10  ;;  %v2270_v23 = vmul.f32 0.16666667, %v1601_v15  ;;  %v2606_v2 = vmul.f32 2.4801588e-05, %v1601_v15  ;;  %v2559_v34 = vadd.f32 %v2511_v36, %v12139_v14  ;;  %v1034_v10 = vrot.slane %v1033_v32, 1  ;;  %6962 = vmatprep.mubr.msk.f32.mxu1 %vm1091_vm4, %v1603_v5 }
 0x3da   :  { %12136 = vst [vmem:[#allocation56_spill] sm:$0xff] %v9582_v42  ;;  %12137 = vst [vmem:[#allocation7_spill] sm:$0xff] %v9584_v17  ;;  %v2271_v11 = vmul.f32 0.16666667, %v1603_v5  ;;  %v2607_v13 = vmul.f32 2.4801588e-05, %v1603_v5  ;;  %2090 = vmatmul.mubr.f32.gmra.mrb[90].mxu1 %v1601_v15  ;;  %v2560_v46 = vadd.f32 %v2512_v1, %v12140_v0 }
 0x3db   :  { %v8269_v56 = vld [vmem:[%s11815_s1 + $0x100] sm:$0xff]  ;;  %v2513_v31 = vmul.f32 0.0001984127, %v12138_v61  ;;  %v9596_v16 = vadd.f32 %v2270_v23, %v2222_v3  ;;  %v9598_v20 = vadd.f32 %v2606_v2, %v2558_v22  ;;  %v1035_v36 = vadd.f32 %v1034_v10, %v1033_v32  ;;  %v1607_v5 = vpop.f32.mrb[44].mxu1  ;;  %v12143_v42 = vld [vmem:[#allocation66_spill] sm:$0xff]  ;;  %v12144_v1 = vld [vmem:[#allocation67_spill] sm:$0xff] }
 0x3dc   :  { %v2224_v12 = vadd.f32 %v8269_v56, %v2176_v9  ;;  %v9601_v14 = vadd.f32 %v2271_v11, %v2223_v53  ;;  %v9603_v17 = vadd.f32 %v2607_v13, %v2559_v34  ;;  %v2178_v60 = vmul.f32 0.5, %v12143_v42  ;;  %v1609_v61 = vpop.f32.mrb[45].mxu1  ;;  %v8270_v3 = vld [vmem:[%s11815_s1 + $0x108] sm:$0xff] }
 0x3dd   :  { %v2514_v26 = vmul.f32 0.0001984127, %v12143_v42  ;;  %v2272_v9 = vmul.f32 0.16666667, %v1607_v5  ;;  %v2608_v56 = vmul.f32 2.4801588e-05, %v1607_v5  ;;  %v2225_v22 = vadd.f32 %v8270_v3, %v2177_v63  ;;  %8223 = vpush %v1035_v36  ;;  %6963 = vmatprep.mubr.msk.f32.mxu1 %vm1091_vm4, %v1609_v61 }
 0x3de   :  { %12141 = vst [vmem:[#allocation57_spill] sm:$0xff] %v9601_v14  ;;  %12142 = vst [vmem:[#allocation5_spill] sm:$0xff] %v9603_v17  ;;  %v2179_v10 = vmul.f32 0.5, %v12144_v1  ;;  %v2273_v32 = vmul.f32 0.16666667, %v1609_v61  ;;  %v12145_v15 = vld [vmem:[#allocation14_spill] sm:$0xff]  ;;  %2096 = vmatmul.mubr.f32.gmra.mrb[92].mxu1 %v1607_v5 }
 0x3df   :  { %v2561_v53 = vadd.f32 %v2513_v31, %v12145_v15  ;;  %v2609_v23 = vmul.f32 2.4801588e-05, %v1609_v61  ;;  %v2515_v2 = vmul.f32 0.0001984127, %v12144_v1  ;;  %v12146_v42 = vld [vmem:[#allocation68_spill] sm:$0xff]  ;;  %v9616_v13 = vadd.f32 %v2272_v9, %v2224_v12  ;;  %v1613_v3 = vpop.f32.mrb[46].mxu1 }
 0x3e0   :  { %v2180_v34 = vmul.f32 0.5, %v12146_v42  ;;  %v2516_v11 = vmul.f32 0.0001984127, %v12146_v42  ;;  %v9618_v0 = vadd.f32 %v2608_v56, %v2560_v46  ;;  %v9620_v63 = vadd.f32 %v2273_v32, %v2225_v22  ;;  %v8271_v31 = vld [vmem:[%s11815_s1 + $0x110] sm:$0xff]  ;;  %v12152_v17 = vld [vmem:[#allocation69_spill] sm:$0xff]  ;;  %v1615_v9 = vpop.f32.mrb[47].mxu1 }
 0x3e1   :  { %12147 = vst [vmem:[#allocation58_spill] sm:$0xff] %v9616_v13  ;;  %v9622_v36 = vadd.f32 %v2609_v23, %v2561_v53  ;;  %v2226_v61 = vadd.f32 %v8271_v31, %v2178_v60  ;;  %v12151_v1 = vld [vmem:[#allocation19_spill] sm:$0xff]  ;;  %v2181_v14 = vmul.f32 0.5, %v12152_v17  ;;  %v2274_v42 = vmul.f32 0.16666667, %v1613_v3  ;;  %v12153_v32 = vld [vmem:[#allocation17_spill] sm:$0xff]  ;;  %6964 = vmatprep.mubr.msk.f32.mxu1 %vm1091_vm4, %v1615_v9 }
 0x3e2   :  { %12148 = vst [vmem:[#allocation8_spill] sm:$0xff] %v9618_v0  ;;  %12149 = vst [vmem:[#allocation59_spill] sm:$0xff] %v9620_v63  ;;  %v2562_v15 = vadd.f32 %v2514_v26, %v12151_v1  ;;  %v2610_v12 = vmul.f32 2.4801588e-05, %v1613_v3  ;;  %v8272_v46 = vld [vmem:[%s11815_s1 + $0x118] sm:$0xff]  ;;  %v2563_v53 = vadd.f32 %v2515_v2, %v12153_v32  ;;  %2102 = vmatmul.mubr.f32.gmra.mrb[94].mxu1 %v1613_v3  ;;  %v8273_v31 = vld [vmem:[%s11815_s1 + $0x120] sm:$0xff] }
 0x3e3   :  { %12150 = vst [vmem:[#allocation6_spill] sm:$0xff] %v9622_v36  ;;  %v2227_v5 = vadd.f32 %v8272_v46, %v2179_v10  ;;  %v2517_v56 = vmul.f32 0.0001984127, %v12152_v17  ;;  %v2275_v22 = vmul.f32 0.16666667, %v1615_v9  ;;  %v9635_v60 = vadd.f32 %v2274_v42, %v2226_v61  ;;  %v12156_v36 = vld [vmem:[#allocation23_spill] sm:$0xff] }
 0x3e4   :  { %v2611_v23 = vmul.f32 2.4801588e-05, %v1615_v9  ;;  %v9637_v26 = vadd.f32 %v2610_v12, %v2562_v15  ;;  %v2228_v1 = vadd.f32 %v8273_v31, %v2180_v34  ;;  %v2564_v10 = vadd.f32 %v2516_v11, %v12156_v36  ;;  %v12157_v46 = vld [vmem:[#allocation70_spill] sm:$0xff]  ;;  %v1619_v61 = vpop.f32.mrb[48].mxu1  ;;  %v12160_v42 = vld [vmem:[#allocation71_spill] sm:$0xff]  ;;  %v12168_v0 = vld [vmem:[#allocation73_spill] sm:$0xff] }
 0x3e5   :  { %12154 = vst [vmem:[#allocation60_spill] sm:$0xff] %v9635_v60  ;;  %v2182_v17 = vmul.f32 0.5, %v12157_v46  ;;  %v2518_v63 = vmul.f32 0.0001984127, %v12157_v46  ;;  %v9645_v2 = vadd.f32 %v2275_v22, %v2227_v5  ;;  %v2183_v15 = vmul.f32 0.5, %v12160_v42  ;;  %v1621_v9 = vpop.f32.mrb[49].mxu1 }
 0x3e6   :  { %12155 = vst [vmem:[#allocation11_spill] sm:$0xff] %v9637_v26  ;;  %v9647_v32 = vadd.f32 %v2611_v23, %v2563_v53  ;;  %v2276_v12 = vmul.f32 0.16666667, %v1619_v61  ;;  %v2612_v3 = vmul.f32 2.4801588e-05, %v1619_v61  ;;  %v8274_v34 = vld [vmem:[%s11815_s1 + $0x128] sm:$0xff]  ;;  %6965 = vmatprep.mubr.msk.f32.mxu1 %vm1091_vm4, %v1621_v9 }
 0x3e7   :  { %12158 = vst [vmem:[#allocation61_spill] sm:$0xff] %v9645_v2  ;;  %v2229_v31 = vadd.f32 %v8274_v34, %v2181_v14  ;;  %v2519_v11 = vmul.f32 0.0001984127, %v12160_v42  ;;  %v2277_v36 = vmul.f32 0.16666667, %v1621_v9  ;;  %v12161_v26 = vld [vmem:[#allocation20_spill] sm:$0xff]  ;;  %2108 = vmatmul.mubr.f32.gmra.mrb[96].mxu1 %v1619_v61 }
 0x3e8   :  { %12159 = vst [vmem:[#allocation9_spill] sm:$0xff] %v9647_v32  ;;  %v2565_v46 = vadd.f32 %v2517_v56, %v12161_v26  ;;  %v2613_v5 = vmul.f32 2.4801588e-05, %v1621_v9  ;;  %v12162_v22 = vld [vmem:[#allocation72_spill] sm:$0xff]  ;;  %v9658_v32 = vadd.f32 %v2276_v12, %v2228_v1  ;;  %v9660_v2 = vadd.f32 %v2612_v3, %v2564_v10  ;;  %v1625_v42 = vpop.f32.mrb[50].mxu1  ;;  %v8275_v56 = vld [vmem:[%s11815_s1 + $0x130] sm:$0xff] }
 0x3e9   :  { %v2184_v53 = vmul.f32 0.5, %v12162_v22  ;;  %v2520_v23 = vmul.f32 0.0001984127, %v12162_v22  ;;  %v9662_v60 = vadd.f32 %v2277_v36, %v2229_v31  ;;  %v2230_v26 = vadd.f32 %v8275_v56, %v2182_v17  ;;  %v12167_v9 = vld [vmem:[#allocation18_spill] sm:$0xff]  ;;  %v1627_v12 = vpop.f32.mrb[51].mxu1  ;;  %v8276_v10 = vld [vmem:[%s11815_s1 + $0x138] sm:$0xff] }
 0x3ea   :  { %12163 = vst [vmem:[#allocation62_spill] sm:$0xff] %v9658_v32  ;;  %12164 = vst [vmem:[#allocation12_spill] sm:$0xff] %v9660_v2  ;;  %v9664_v14 = vadd.f32 %v2613_v5, %v2565_v46  ;;  %v2566_v34 = vadd.f32 %v2518_v63, %v12167_v9  ;;  %v2185_v13 = vmul.f32 0.5, %v12168_v0  ;;  %v2278_v22 = vmul.f32 0.16666667, %v1625_v42  ;;  %v12169_v36 = vld [vmem:[#allocation21_spill] sm:$0xff]  ;;  %6966 = vmatprep.mubr.msk.f32.mxu1 %vm1091_vm4, %v1627_v12 }
 0x3eb   :  { %12165 = vst [vmem:[#allocation10_spill] sm:$0xff] %v9662_v60  ;;  %v2614_v1 = vmul.f32 2.4801588e-05, %v1625_v42  ;;  %v2231_v61 = vadd.f32 %v8276_v10, %v2183_v15  ;;  %v2521_v3 = vmul.f32 0.0001984127, %v12168_v0  ;;  %v2567_v46 = vadd.f32 %v2519_v11, %v12169_v36  ;;  %2114 = vmatmul.mubr.f32.gmra.mrb[98].mxu1 %v1625_v42  ;;  %v8277_v56 = vld [vmem:[%s11815_s1 + $0x140] sm:$0xff] }
 0x3ec   :  { %12166 = vst [vmem:[#allocation63_spill] sm:$0xff] %v9664_v14  ;;  %v2279_v31 = vmul.f32 0.16666667, %v1627_v12  ;;  %v2615_v5 = vmul.f32 2.4801588e-05, %v1627_v12  ;;  %v9677_v17 = vadd.f32 %v2278_v22, %v2230_v26  ;;  %v2232_v9 = vadd.f32 %v8277_v56, %v2184_v53  ;;  %v12172_v14 = vld [vmem:[#allocation24_spill] sm:$0xff] }
 0x3ed   :  { %v9679_v63 = vadd.f32 %v2614_v1, %v2566_v34  ;;  %v2568_v15 = vadd.f32 %v2520_v23, %v12172_v14  ;;  %v12173_v10 = vld [vmem:[#allocation74_spill] sm:$0xff]  ;;  %v1631_v26 = vpop.f32.mrb[52].mxu1  ;;  %v12176_v22 = vld [vmem:[#allocation75_spill] sm:$0xff]  ;;  %v12182_v2 = vld [vmem:[#allocation77_spill] sm:$0xff] }
 0x3ee   :  { %12170 = vst [vmem:[#allocation15_spill] sm:$0xff] %v9677_v17  ;;  %v2186_v0 = vmul.f32 0.5, %v12173_v10  ;;  %v2522_v60 = vmul.f32 0.0001984127, %v12173_v10  ;;  %v9687_v11 = vadd.f32 %v2279_v31, %v2231_v61  ;;  %v9689_v36 = vadd.f32 %v2615_v5, %v2567_v46  ;;  %v1633_v12 = vpop.f32.mrb[53].mxu1  ;;  %v8278_v53 = vld [vmem:[%s11815_s1 + $0x148] sm:$0xff] }
 0x3ef   :  { %12171 = vst [vmem:[#allocation64_spill] sm:$0xff] %v9679_v63  ;;  %v2187_v34 = vmul.f32 0.5, %v12176_v22  ;;  %v2280_v1 = vmul.f32 0.16666667, %v1631_v26  ;;  %v2616_v42 = vmul.f32 2.4801588e-05, %v1631_v26  ;;  %v2233_v56 = vadd.f32 %v8278_v53, %v2185_v13  ;;  %6967 = vmatprep.mubr.msk.f32.mxu1 %vm1091_vm4, %v1633_v12 }
 0x3f0   :  { %12174 = vst [vmem:[#allocation65_spill] sm:$0xff] %v9687_v11  ;;  %12175 = vst [vmem:[#allocation13_spill] sm:$0xff] %v9689_v36  ;;  %v2523_v23 = vmul.f32 0.0001984127, %v12176_v22  ;;  %v2281_v14 = vmul.f32 0.16666667, %v1633_v12  ;;  %2120 = vmatmul.mubr.f32.gmra.mrb[100].mxu1 %v1631_v26 }
 0x3f1   :  { %v12177_v63 = vld [vmem:[#allocation22_spill] sm:$0xff]  ;;  %v2617_v61 = vmul.f32 2.4801588e-05, %v1633_v12  ;;  %v12178_v31 = vld [vmem:[#allocation76_spill] sm:$0xff]  ;;  %v9700_v36 = vadd.f32 %v2280_v1, %v2232_v9  ;;  %v9702_v11 = vadd.f32 %v2616_v42, %v2568_v15  ;;  %v1637_v22 = vpop.f32.mrb[54].mxu1  ;;  %v12181_v12 = vld [vmem:[#allocation27_spill] sm:$0xff] }
 0x3f2   :  { %v2569_v10 = vadd.f32 %v2521_v3, %v12177_v63  ;;  %v2188_v46 = vmul.f32 0.5, %v12178_v31  ;;  %v2524_v5 = vmul.f32 0.0001984127, %v12178_v31  ;;  %v9704_v17 = vadd.f32 %v2281_v14, %v2233_v56  ;;  %v8279_v3 = vld [vmem:[%s11815_s1 + $0x150] sm:$0xff]  ;;  %v1639_v1 = vpop.f32.mrb[55].mxu1  ;;  %v8280_v15 = vld [vmem:[%s11815_s1 + $0x158] sm:$0xff] }
 0x3f3   :  { %v2234_v63 = vadd.f32 %v8279_v3, %v2186_v0  ;;  %v2570_v53 = vadd.f32 %v2522_v60, %v12181_v12  ;;  %v2189_v32 = vmul.f32 0.5, %v12182_v2  ;;  %v2282_v31 = vmul.f32 0.16666667, %v1637_v22  ;;  %v12183_v14 = vld [vmem:[#allocation25_spill] sm:$0xff]  ;;  %6968 = vmatprep.mubr.msk.f32.mxu1 %vm1091_vm4, %v1639_v1 }
 0x3f4   :  { %12179 = vst [vmem:[#allocation16_spill] sm:$0xff] %v9704_v17  ;;  %v9706_v13 = vadd.f32 %v2617_v61, %v2569_v10  ;;  %v2618_v9 = vmul.f32 2.4801588e-05, %v1637_v22  ;;  %v2235_v26 = vadd.f32 %v8280_v15, %v2187_v34  ;;  %v2525_v42 = vmul.f32 0.0001984127, %v12182_v2  ;;  %2126 = vmatmul.mubr.f32.gmra.mrb[102].mxu1 %v1637_v22  ;;  %v8281_v3 = vld [vmem:[%s11815_s1 + $0x160] sm:$0xff] }
 0x3f5   :  { %v2283_v56 = vmul.f32 0.16666667, %v1639_v1  ;;  %v2571_v10 = vadd.f32 %v2523_v23, %v12183_v14  ;;  %v2619_v61 = vmul.f32 2.4801588e-05, %v1639_v1  ;;  %v9719_v0 = vadd.f32 %v2282_v31, %v2234_v63  ;;  %v12187_v15 = vld [vmem:[#allocation78_spill] sm:$0xff]  ;;  %v1643_v63 = vpop.f32.mrb[56].mxu1 }
 0x3f6   :  { %12180 = vst [vmem:[#allocation66_spill] sm:$0xff] %v9706_v13  ;;  %v9721_v60 = vadd.f32 %v2618_v9, %v2570_v53  ;;  %v2236_v12 = vadd.f32 %v8281_v3, %v2188_v46  ;;  %v12186_v13 = vld [vmem:[#allocation28_spill] sm:$0xff]  ;;  %v2190_v2 = vmul.f32 0.5, %v12187_v15  ;;  %v2526_v17 = vmul.f32 0.0001984127, %v12187_v15  ;;  %v12190_v31 = vld [vmem:[#allocation79_spill] sm:$0xff] }
 0x3f7   :  { %12184 = vst [vmem:[#allocation67_spill] sm:$0xff] %v9719_v0  ;;  %v2572_v34 = vadd.f32 %v2524_v5, %v12186_v13  ;;  %v9729_v23 = vadd.f32 %v2283_v56, %v2235_v26  ;;  %v9731_v14 = vadd.f32 %v2619_v61, %v2571_v10  ;;  %v2191_v53 = vmul.f32 0.5, %v12190_v31  ;;  %v1645_v1 = vpop.f32.mrb[57].mxu1  ;;  %v8282_v46 = vld [vmem:[%s11815_s1 + $0x168] sm:$0xff] }
 0x3f8   :  { %12185 = vst [vmem:[#allocation14_spill] sm:$0xff] %v9721_v60  ;;  %v2284_v9 = vmul.f32 0.16666667, %v1643_v63  ;;  %v2620_v22 = vmul.f32 2.4801588e-05, %v1643_v63  ;;  %v2237_v3 = vadd.f32 %v8282_v46, %v2189_v32  ;;  %v12191_v60 = vld [vmem:[#allocation26_spill] sm:$0xff]  ;;  %6969 = vmatprep.mubr.msk.f32.mxu1 %vm1091_vm4, %v1645_v1 }
 0x3f9   :  { %12188 = vst [vmem:[#allocation68_spill] sm:$0xff] %v9729_v23  ;;  %12189 = vst [vmem:[#allocation19_spill] sm:$0xff] %v9731_v14  ;;  %v2527_v5 = vmul.f32 0.0001984127, %v12190_v31  ;;  %v2285_v13 = vmul.f32 0.16666667, %v1645_v1  ;;  %v2573_v15 = vadd.f32 %v2525_v42, %v12191_v60  ;;  %2132 = vmatmul.mubr.f32.gmra.mrb[104].mxu1 %v1643_v63 }
 0x3fa   :  { %v2621_v26 = vmul.f32 2.4801588e-05, %v1645_v1  ;;  %v9740_v56 = vadd.f32 %v2284_v9, %v2236_v12  ;;  %v9742_v10 = vadd.f32 %v2620_v22, %v2572_v34  ;;  %v1649_v23 = vpop.f32.mrb[58].mxu1  ;;  %v8283_v32 = vld [vmem:[%s11815_s1 + $0x170] sm:$0xff]  ;;  %v8284_v12 = vld [vmem:[%s11815_s1 + $0x178] sm:$0xff]  ;;  %v12194_v9 = vld [vmem:[#allocation29_spill] sm:$0xff] }
 0x3fb   :  { %v9744_v61 = vadd.f32 %v2285_v13, %v2237_v3  ;;  %v2238_v31 = vadd.f32 %v8283_v32, %v2190_v2  ;;  %v2286_v46 = vmul.f32 0.16666667, %v1649_v23  ;;  %v12193_v42 = vld [vmem:[#allocation31_spill] sm:$0xff]  ;;  %v2622_v0 = vmul.f32 2.4801588e-05, %v1649_v23  ;;  %v1651_v1 = vpop.f32.mrb[59].mxu1 }
 0x3fc   :  { %v9746_v14 = vadd.f32 %v2621_v26, %v2573_v15  ;;  %v2574_v60 = vadd.f32 %v2526_v17, %v12193_v42  ;;  %v2239_v34 = vadd.f32 %v8284_v12, %v2191_v53  ;;  %v2287_v63 = vmul.f32 0.16666667, %v1651_v1  ;;  %6970 = vmatprep.mubr.msk.f32.mxu1 %vm1091_vm4, %v1651_v1  ;;  %v1720_v26 = vpop.f32.mrb[60].mxu0 }
 0x3fd   :  { %v2575_v22 = vadd.f32 %v2527_v5, %v12194_v9  ;;  %v2623_v3 = vmul.f32 2.4801588e-05, %v1651_v1  ;;  %v9757_v13 = vadd.f32 %v2286_v46, %v2238_v31  ;;  %2138 = vmatmul.mubr.f32.gmra.mrb[106].mxu1 %v1649_v23  ;;  %v2336_v32 = vmul.f32 0.041666668, %v1720_v26  ;;  %v12195_v31 = vld [vmem:[#allocation32_spill] sm:$0xff]  ;;  %v12196_v23 = vld [vmem:[#allocation30_spill] sm:$0xff] }
 0x3fe   :  { %12192 = vst [vmem:[#allocation69_spill] sm:$0xff] %v9746_v14  ;;  %v9759_v15 = vadd.f32 %v2622_v0, %v2574_v60  ;;  %v9761_v2 = vadd.f32 %v2287_v63, %v2239_v34  ;;  %v2672_v42 = vmul.f32 2.7557319e-06, %v1720_v26  ;;  %v1722_v14 = vpop.f32.mrb[61].mxu0 }
 0x3ff   :  { %v9763_v17 = vadd.f32 %v2623_v3, %v2575_v22  ;;  %v2337_v53 = vmul.f32 0.041666668, %v1722_v14  ;;  %v2673_v12 = vmul.f32 2.7557319e-06, %v1722_v14  ;;  %v9766_v5 = vadd.f32 %v2336_v32, %v9288_v62  ;;  %v1726_v60 = vpop.f32.mrb[62].mxu0 }
 0x400   :  { %v9769_v1 = vadd.f32 %v2672_v42, %v9290_v28  ;;  %v2338_v34 = vmul.f32 0.041666668, %v1726_v60  ;;  %v2674_v63 = vmul.f32 2.7557319e-06, %v1726_v60  ;;  %v1728_v9 = vpop.f32.mrb[63].mxu0 }
 0x401   :  { %v9772_v0 = vadd.f32 %v2337_v53, %v12195_v31  ;;  %v9775_v46 = vadd.f32 %v2673_v12, %v12196_v23  ;;  %v2339_v22 = vmul.f32 0.041666668, %v1728_v9  ;;  %v2675_v3 = vmul.f32 2.7557319e-06, %v1728_v9 }
 0x402   :  { %v9778_v14 = vadd.f32 %v2338_v34, %v9309_v39  ;;  %v9781_v62 = vadd.f32 %v2674_v63, %v9311_v33  ;;  %v1732_v32 = vpop.f32.mrb[64].mxu0 }
 0x403   :  { %v9784_v28 = vadd.f32 %v2339_v22, %v9315_v40  ;;  %v9787_v26 = vadd.f32 %v2675_v3, %v9317_v18  ;;  %v2340_v42 = vmul.f32 0.041666668, %v1732_v32  ;;  %v2676_v53 = vmul.f32 2.7557319e-06, %v1732_v32  ;;  %v1734_v12 = vpop.f32.mrb[65].mxu0 }
 0x404   :  { %v2341_v31 = vmul.f32 0.041666668, %v1734_v12  ;;  %v2677_v23 = vmul.f32 2.7557319e-06, %v1734_v12 }
 0x405   :  { %v9790_v60 = vadd.f32 %v2340_v42, %v9330_v43  ;;  %v9793_v39 = vadd.f32 %v2676_v53, %v9332_v41 }
 0x406   :  { %v9796_v33 = vadd.f32 %v2341_v31, %v9336_v44  ;;  %v9799_v40 = vadd.f32 %v2677_v23, %v9338_v48  ;;  %v1738_v18 = vpop.f32.mrb[66].mxu0 }
 0x407   :  { %v2342_v34 = vmul.f32 0.041666668, %v1738_v18  ;;  %v2678_v63 = vmul.f32 2.7557319e-06, %v1738_v18  ;;  %v1740_v9 = vpop.f32.mrb[67].mxu0 }
 0x408   :  { %v2343_v22 = vmul.f32 0.041666668, %v1740_v9  ;;  %v2679_v3 = vmul.f32 2.7557319e-06, %v1740_v9 }
 0x409   :  { %v9802_v32 = vadd.f32 %v2342_v34, %v9351_v59  ;;  %v9805_v43 = vadd.f32 %v2678_v63, %v9353_v55 }
 0x40a   :  { %v9808_v41 = vadd.f32 %v2343_v22, %v9357_v4  ;;  %v9811_v44 = vadd.f32 %v2679_v3, %v9359_v57  ;;  %v1744_v48 = vpop.f32.mrb[68].mxu0 }
 0x40b   :  { %v2344_v42 = vmul.f32 0.041666668, %v1744_v48  ;;  %v2680_v53 = vmul.f32 2.7557319e-06, %v1744_v48  ;;  %v1746_v12 = vpop.f32.mrb[69].mxu0 }
 0x40c   :  { %v2345_v31 = vmul.f32 0.041666668, %v1746_v12  ;;  %v2681_v23 = vmul.f32 2.7557319e-06, %v1746_v12 }
 0x40d   :  { %v9814_v59 = vadd.f32 %v2344_v42, %v9372_v30  ;;  %v9817_v55 = vadd.f32 %v2680_v53, %v9374_v50 }
 0x40e   :  { %s8224_s1 = spop %8223  ;;  %v9820_v4 = vadd.f32 %v2345_v31, %v9378_v19  ;;  %v9823_v57 = vadd.f32 %v2681_v23, %v9380_v51  ;;  %v1750_v34 = vpop.f32.mrb[70].mxu0 }
 0x40f   :  { %v1037_v18 = vstv %s8224_s1  ;;  %v2346_v63 = vmul.f32 0.041666668, %v1750_v34  ;;  %v2682_v9 = vmul.f32 2.7557319e-06, %v1750_v34  ;;  %v1752_v22 = vpop.f32.mrb[71].mxu0 }
 0x410   :  { %8235 = vrsqrt.f32 %v1037_v18  ;;  %v2347_v3 = vmul.f32 0.041666668, %v1752_v22  ;;  %v2683_v48 = vmul.f32 2.7557319e-06, %v1752_v22 }
 0x411   :  { %v9826_v12 = vadd.f32 %v2346_v63, %v9393_v52  ;;  %v9829_v30 = vadd.f32 %v2682_v9, %v9395_v6 }
 0x412   :  { %v9832_v50 = vadd.f32 %v2347_v3, %v9399_v24  ;;  %v9835_v19 = vadd.f32 %v2683_v48, %v9401_v27  ;;  %v1756_v51 = vpop.f32.mrb[72].mxu0 }
 0x413   :  { %v2348_v42 = vmul.f32 0.041666668, %v1756_v51  ;;  %v2684_v53 = vmul.f32 2.7557319e-06, %v1756_v51  ;;  %v1758_v31 = vpop.f32.mrb[73].mxu0 }
 0x414   :  { %v2349_v23 = vmul.f32 0.041666668, %v1758_v31  ;;  %v2685_v18 = vmul.f32 2.7557319e-06, %v1758_v31 }
 0x415   :  { %v9838_v34 = vadd.f32 %v2348_v42, %v9414_v25  ;;  %v9841_v52 = vadd.f32 %v2684_v53, %v9416_v49 }
 0x416   :  { %v9844_v6 = vadd.f32 %v2349_v23, %v9420_v38  ;;  %v9847_v24 = vadd.f32 %v2685_v18, %v9422_v8  ;;  %v1762_v27 = vpop.f32.mrb[74].mxu0 }
 0x417   :  { %v2350_v9 = vmul.f32 0.041666668, %v1762_v27  ;;  %v2686_v22 = vmul.f32 2.7557319e-06, %v1762_v27  ;;  %v1764_v3 = vpop.f32.mrb[75].mxu0 }
 0x418   :  { %v2351_v48 = vmul.f32 0.041666668, %v1764_v3  ;;  %v2687_v51 = vmul.f32 2.7557319e-06, %v1764_v3 }
 0x419   :  { %v9850_v25 = vadd.f32 %v2350_v9, %v9435_v21  ;;  %v9853_v49 = vadd.f32 %v2686_v22, %v9437_v58 }
 0x41a   :  { %v8236_v63 = vpop.eup %8235  ;;  %v9856_v38 = vadd.f32 %v2351_v48, %v9443_v47  ;;  %v9859_v8 = vadd.f32 %v2687_v51, %v9445_v29  ;;  %v1768_v42 = vpop.f32.mrb[76].mxu0  ;;  %v12201_v47 = vld [vmem:[#allocation35_spill] sm:$0xff] }
 0x41b   :  { %8225 = vpush %v8236_v63  ;;  %v2352_v53 = vmul.f32 0.041666668, %v1768_v42  ;;  %v2688_v31 = vmul.f32 2.7557319e-06, %v1768_v42  ;;  %v1770_v23 = vpop.f32.mrb[77].mxu0 }
 0x41c   :  { %12197 = vst [vmem:[#allocation17_spill] sm:$0xff] %v9856_v38  ;;  %v2353_v18 = vmul.f32 0.041666668, %v1770_v23  ;;  %v2689_v27 = vmul.f32 2.7557319e-06, %v1770_v23  ;;  %v12203_v38 = vld [vmem:[#allocation33_spill] sm:$0xff] }
 0x41d   :  { %v9862_v63 = vadd.f32 %v2352_v53, %v9457_v35  ;;  %v9865_v21 = vadd.f32 %v2688_v31, %v9459_v45  ;;  %v12205_v35 = vld [vmem:[#allocation36_spill] sm:$0xff]  ;;  %v12207_v45 = vld [vmem:[#allocation34_spill] sm:$0xff] }
 0x41e   :  { %v9868_v58 = vadd.f32 %v2353_v18, %v9466_v54  ;;  %v9871_v9 = vadd.f32 %v2689_v27, %v12201_v47  ;;  %v1774_v29 = vpop.f32.mrb[78].mxu0  ;;  %v12209_v54 = vld [vmem:[#allocation39_spill] sm:$0xff] }
 0x41f   :  { %12198 = vst [vmem:[#allocation23_spill] sm:$0xff] %v9862_v63  ;;  %12199 = vst [vmem:[#allocation70_spill] sm:$0xff] %v9865_v21  ;;  %v2354_v22 = vmul.f32 0.041666668, %v1774_v29  ;;  %v2690_v3 = vmul.f32 2.7557319e-06, %v1774_v29 }
 0x420   :  { %12200 = vst [vmem:[#allocation71_spill] sm:$0xff] %v9868_v58  ;;  %12202 = vst [vmem:[#allocation20_spill] sm:$0xff] %v9871_v9  ;;  %v1776_v48 = vpop.f32.mrb[79].mxu0  ;;  %v12211_v63 = vld [vmem:[#allocation37_spill] sm:$0xff] }
 0x421   :  { %v2355_v51 = vmul.f32 0.041666668, %v1776_v48  ;;  %v2691_v42 = vmul.f32 2.7557319e-06, %v1776_v48  ;;  %v9874_v23 = vadd.f32 %v2354_v22, %v12203_v38  ;;  %v9877_v53 = vadd.f32 %v2690_v3, %v12205_v35  ;;  %v12213_v38 = vld [vmem:[#allocation40_spill] sm:$0xff]  ;;  %v12215_v3 = vld [vmem:[#allocation38_spill] sm:$0xff] }
 0x422   :  { %v1780_v27 = vpop.f32.mrb[80].mxu0 }
 0x423   :  { %12204 = vst [vmem:[#allocation72_spill] sm:$0xff] %v9874_v23  ;;  %12206 = vst [vmem:[#allocation18_spill] sm:$0xff] %v9877_v53  ;;  %v9880_v31 = vadd.f32 %v2355_v51, %v12207_v45  ;;  %v9883_v18 = vadd.f32 %v2691_v42, %v12209_v54  ;;  %v2356_v47 = vmul.f32 0.041666668, %v1780_v27  ;;  %v2692_v58 = vmul.f32 2.7557319e-06, %v1780_v27 }
 0x424   :  { %v1782_v9 = vpop.f32.mrb[81].mxu0  ;;  %v12217_v51 = vld [vmem:[#allocation43_spill] sm:$0xff]  ;;  %v12219_v23 = vld [vmem:[#allocation41_spill] sm:$0xff] }
 0x425   :  { %12208 = vst [vmem:[#allocation73_spill] sm:$0xff] %v9880_v31  ;;  %12210 = vst [vmem:[#allocation21_spill] sm:$0xff] %v9883_v18  ;;  %v2357_v29 = vmul.f32 0.041666668, %v1782_v9  ;;  %v2693_v21 = vmul.f32 2.7557319e-06, %v1782_v9  ;;  %v9886_v48 = vadd.f32 %v2356_v47, %v12211_v63  ;;  %v9889_v22 = vadd.f32 %v2692_v58, %v12213_v38 }
 0x426   :  { %v1786_v42 = vpop.f32.mrb[82].mxu0  ;;  %v12220_v63 = vld [vmem:[#allocation44_spill] sm:$0xff]  ;;  %v12222_v58 = vld [vmem:[#allocation51_spill] sm:$0xff] }
 0x427   :  { %12212 = vst [vmem:[#allocation24_spill] sm:$0xff] %v9886_v48  ;;  %12214 = vst [vmem:[#allocation74_spill] sm:$0xff] %v9889_v22  ;;  %v9892_v35 = vadd.f32 %v2357_v29, %v12215_v3  ;;  %v9895_v45 = vadd.f32 %v2693_v21, %v12217_v51  ;;  %v2358_v54 = vmul.f32 0.041666668, %v1786_v42  ;;  %v2694_v31 = vmul.f32 2.7557319e-06, %v1786_v42 }
 0x428   :  { %v1788_v18 = vpop.f32.mrb[83].mxu0  ;;  %v12224_v29 = vld [vmem:[#allocation42_spill] sm:$0xff]  ;;  %v12226_v48 = vld [vmem:[#allocation52_spill] sm:$0xff] }
 0x429   :  { %12216 = vst [vmem:[#allocation75_spill] sm:$0xff] %v9892_v35  ;;  %12218 = vst [vmem:[#allocation22_spill] sm:$0xff] %v9895_v45  ;;  %v2359_v27 = vmul.f32 0.041666668, %v1788_v18  ;;  %v2695_v53 = vmul.f32 2.7557319e-06, %v1788_v18  ;;  %v9898_v9 = vadd.f32 %v2358_v54, %v12219_v23  ;;  %v9901_v47 = vadd.f32 %v2694_v31, %v12220_v63 }
 0x42a   :  { %v1792_v21 = vpop.f32.mrb[84].mxu0  ;;  %v12227_v23 = vld [vmem:[#allocation47_spill] sm:$0xff]  ;;  %v12229_v31 = vld [vmem:[#allocation53_spill] sm:$0xff] }
 0x42b   :  { %12221 = vst [vmem:[#allocation76_spill] sm:$0xff] %v9901_v47  ;;  %v9904_v38 = vadd.f32 %v2359_v27, %v12222_v58  ;;  %v9907_v3 = vadd.f32 %v2695_v53, %v12224_v29  ;;  %v2360_v51 = vmul.f32 0.041666668, %v1792_v21  ;;  %v2696_v35 = vmul.f32 2.7557319e-06, %v1792_v21  ;;  %v1794_v45 = vpop.f32.mrb[85].mxu0 }
 0x42c   :  { %v2361_v42 = vmul.f32 0.041666668, %v1794_v45  ;;  %v2697_v22 = vmul.f32 2.7557319e-06, %v1794_v45  ;;  %v12231_v27 = vld [vmem:[#allocation45_spill] sm:$0xff] }
 0x42d   :  { %12223 = vst [vmem:[#allocation27_spill] sm:$0xff] %v9904_v38  ;;  %12225 = vst [vmem:[#allocation77_spill] sm:$0xff] %v9907_v3  ;;  %v9910_v18 = vadd.f32 %v2360_v51, %v12226_v48  ;;  %v9913_v54 = vadd.f32 %v2696_v35, %v12227_v23  ;;  %v12234_v35 = vld [vmem:[#allocation48_spill] sm:$0xff] }
 0x42e   :  { %v9916_v63 = vadd.f32 %v2361_v42, %v12229_v31  ;;  %v9919_v58 = vadd.f32 %v2697_v22, %v12231_v27  ;;  %v1798_v53 = vpop.f32.mrb[86].mxu0  ;;  %v12236_v42 = vld [vmem:[#allocation54_spill] sm:$0xff] }
 0x42f   :  { %12228 = vst [vmem:[#allocation25_spill] sm:$0xff] %v9913_v54  ;;  %v2362_v29 = vmul.f32 0.041666668, %v1798_v53  ;;  %v2698_v38 = vmul.f32 2.7557319e-06, %v1798_v53  ;;  %v1800_v3 = vpop.f32.mrb[87].mxu0 }
 0x430   :  { %12230 = vst [vmem:[#allocation28_spill] sm:$0xff] %v9916_v63  ;;  %12232 = vst [vmem:[#allocation78_spill] sm:$0xff] %v9919_v58  ;;  %v2363_v21 = vmul.f32 0.041666668, %v1800_v3  ;;  %v2699_v47 = vmul.f32 2.7557319e-06, %v1800_v3 }
 0x431   :  { %v9922_v45 = vadd.f32 %v2362_v29, %v9560_v37  ;;  %v9925_v48 = vadd.f32 %v2698_v38, %v9562_v7  ;;  %v12238_v54 = vld [vmem:[#allocation46_spill] sm:$0xff]  ;;  %v12239_v37 = vld [vmem:[#allocation55_spill] sm:$0xff]  ;;  %v12241_v7 = vld [vmem:[#allocation56_spill] sm:$0xff] }
 0x432   :  { %v9928_v51 = vadd.f32 %v2363_v21, %v12234_v35  ;;  %v9931_v23 = vadd.f32 %v2699_v47, %v12236_v42  ;;  %v1804_v22 = vpop.f32.mrb[88].mxu0  ;;  %v12243_v21 = vld [vmem:[#allocation7_spill] sm:$0xff] }
 0x433   :  { %12233 = vst [vmem:[#allocation79_spill] sm:$0xff] %v9925_v48  ;;  %v2364_v31 = vmul.f32 0.041666668, %v1804_v22  ;;  %v2700_v27 = vmul.f32 2.7557319e-06, %v1804_v22  ;;  %v1806_v63 = vpop.f32.mrb[89].mxu0 }
 0x434   :  { %12235 = vst [vmem:[#allocation26_spill] sm:$0xff] %v9928_v51  ;;  %12237 = vst [vmem:[#allocation31_spill] sm:$0xff] %v9931_v23  ;;  %v2365_v53 = vmul.f32 0.041666668, %v1806_v63  ;;  %v2701_v58 = vmul.f32 2.7557319e-06, %v1806_v63 }
 0x435   :  { %v9934_v3 = vadd.f32 %v2364_v31, %v12238_v54  ;;  %v9937_v29 = vadd.f32 %v2700_v27, %v12239_v37  ;;  %v12247_v31 = vld [vmem:[#allocation57_spill] sm:$0xff] }
 0x436   :  { %v9940_v38 = vadd.f32 %v2365_v53, %v12241_v7  ;;  %v9943_v35 = vadd.f32 %v2701_v58, %v12243_v21  ;;  %v1810_v47 = vpop.f32.mrb[90].mxu0  ;;  %v12249_v53 = vld [vmem:[#allocation5_spill] sm:$0xff] }
 0x437   :  { %12240 = vst [vmem:[#allocation29_spill] sm:$0xff] %v9937_v29  ;;  %v2366_v42 = vmul.f32 0.041666668, %v1810_v47  ;;  %v2702_v51 = vmul.f32 2.7557319e-06, %v1810_v47  ;;  %v1812_v23 = vpop.f32.mrb[91].mxu0 }
 0x438   :  { %12242 = vst [vmem:[#allocation32_spill] sm:$0xff] %v9940_v38  ;;  %12244 = vst [vmem:[#allocation30_spill] sm:$0xff] %v9943_v35  ;;  %v2367_v22 = vmul.f32 0.041666668, %v1812_v23  ;;  %v2703_v48 = vmul.f32 2.7557319e-06, %v1812_v23 }
 0x439   :  { %v9946_v63 = vadd.f32 %v2366_v42, %v9596_v16  ;;  %v9949_v54 = vadd.f32 %v2702_v51, %v9598_v20  ;;  %v12251_v29 = vld [vmem:[#allocation58_spill] sm:$0xff]  ;;  %v12253_v16 = vld [vmem:[#allocation8_spill] sm:$0xff]  ;;  %v12255_v20 = vld [vmem:[#allocation59_spill] sm:$0xff] }
 0x43a   :  { %v9952_v27 = vadd.f32 %v2367_v22, %v12247_v31  ;;  %v9955_v37 = vadd.f32 %v2703_v48, %v12249_v53  ;;  %v1816_v58 = vpop.f32.mrb[92].mxu0  ;;  %v12257_v22 = vld [vmem:[#allocation6_spill] sm:$0xff] }
 0x43b   :  { %12245 = vst [vmem:[#allocation35_spill] sm:$0xff] %v9946_v63  ;;  %12246 = vst [vmem:[#allocation33_spill] sm:$0xff] %v9949_v54  ;;  %v2368_v7 = vmul.f32 0.041666668, %v1816_v58  ;;  %v2704_v21 = vmul.f32 2.7557319e-06, %v1816_v58 }
 0x43c   :  { %12248 = vst [vmem:[#allocation36_spill] sm:$0xff] %v9952_v27  ;;  %12250 = vst [vmem:[#allocation34_spill] sm:$0xff] %v9955_v37  ;;  %v1818_v38 = vpop.f32.mrb[93].mxu0  ;;  %v12259_v63 = vld [vmem:[#allocation60_spill] sm:$0xff] }
 0x43d   :  { %v2369_v47 = vmul.f32 0.041666668, %v1818_v38  ;;  %v2705_v35 = vmul.f32 2.7557319e-06, %v1818_v38  ;;  %v9958_v23 = vadd.f32 %v2368_v7, %v12251_v29  ;;  %v9961_v42 = vadd.f32 %v2704_v21, %v12253_v16  ;;  %v12261_v29 = vld [vmem:[#allocation11_spill] sm:$0xff]  ;;  %v12263_v21 = vld [vmem:[#allocation61_spill] sm:$0xff] }
 0x43e   :  { %v1822_v48 = vpop.f32.mrb[94].mxu0 }
 0x43f   :  { %12252 = vst [vmem:[#allocation39_spill] sm:$0xff] %v9958_v23  ;;  %12254 = vst [vmem:[#allocation37_spill] sm:$0xff] %v9961_v42  ;;  %v9964_v51 = vadd.f32 %v2369_v47, %v12255_v20  ;;  %v9967_v31 = vadd.f32 %v2705_v35, %v12257_v22  ;;  %v2370_v53 = vmul.f32 0.041666668, %v1822_v48  ;;  %v2706_v27 = vmul.f32 2.7557319e-06, %v1822_v48 }
 0x440   :  { %v1824_v37 = vpop.f32.mrb[95].mxu0  ;;  %v12265_v47 = vld [vmem:[#allocation9_spill] sm:$0xff] }
 0x441   :  { %12256 = vst [vmem:[#allocation40_spill] sm:$0xff] %v9964_v51  ;;  %12258 = vst [vmem:[#allocation38_spill] sm:$0xff] %v9967_v31  ;;  %v2371_v58 = vmul.f32 0.041666668, %v1824_v37  ;;  %v2707_v54 = vmul.f32 2.7557319e-06, %v1824_v37  ;;  %v9970_v38 = vadd.f32 %v2370_v53, %v12259_v63  ;;  %v9973_v7 = vadd.f32 %v2706_v27, %v12261_v29 }
 0x442   :  { %v1828_v35 = vpop.f32.mrb[96].mxu0  ;;  %v12267_v51 = vld [vmem:[#allocation62_spill] sm:$0xff]  ;;  %v12269_v63 = vld [vmem:[#allocation12_spill] sm:$0xff] }
 0x443   :  { %12260 = vst [vmem:[#allocation43_spill] sm:$0xff] %v9970_v38  ;;  %12262 = vst [vmem:[#allocation41_spill] sm:$0xff] %v9973_v7  ;;  %v9976_v16 = vadd.f32 %v2371_v58, %v12263_v21  ;;  %v9979_v20 = vadd.f32 %v2707_v54, %v12265_v47  ;;  %v2372_v22 = vmul.f32 0.041666668, %v1828_v35  ;;  %v2708_v31 = vmul.f32 2.7557319e-06, %v1828_v35 }
 0x444   :  { %v1830_v23 = vpop.f32.mrb[97].mxu0  ;;  %v12271_v27 = vld [vmem:[#allocation10_spill] sm:$0xff]  ;;  %v12272_v58 = vld [vmem:[#allocation63_spill] sm:$0xff] }
 0x445   :  { %12264 = vst [vmem:[#allocation44_spill] sm:$0xff] %v9976_v16  ;;  %12266 = vst [vmem:[#allocation51_spill] sm:$0xff] %v9979_v20  ;;  %v2373_v48 = vmul.f32 0.041666668, %v1830_v23  ;;  %v2709_v42 = vmul.f32 2.7557319e-06, %v1830_v23  ;;  %v9982_v37 = vadd.f32 %v2372_v22, %v12267_v51  ;;  %v9985_v53 = vadd.f32 %v2708_v31, %v12269_v63 }
 0x446   :  { %v1834_v54 = vpop.f32.mrb[98].mxu0  ;;  %v12274_v16 = vld [vmem:[#allocation15_spill] sm:$0xff]  ;;  %v12276_v51 = vld [vmem:[#allocation64_spill] sm:$0xff]  ;;  %v12278_v31 = vld [vmem:[#allocation65_spill] sm:$0xff] }
 0x447   :  { %12268 = vst [vmem:[#allocation42_spill] sm:$0xff] %v9982_v37  ;;  %12270 = vst [vmem:[#allocation52_spill] sm:$0xff] %v9985_v53  ;;  %v9988_v29 = vadd.f32 %v2373_v48, %v12271_v27  ;;  %v9991_v21 = vadd.f32 %v2709_v42, %v12272_v58  ;;  %v2374_v47 = vmul.f32 0.041666668, %v1834_v54  ;;  %v2710_v20 = vmul.f32 2.7557319e-06, %v1834_v54 }
 0x448   :  { %v1836_v38 = vpop.f32.mrb[99].mxu0  ;;  %v12279_v48 = vld [vmem:[#allocation13_spill] sm:$0xff] }
 0x449   :  { %12273 = vst [vmem:[#allocation47_spill] sm:$0xff] %v9991_v21  ;;  %v2375_v35 = vmul.f32 0.041666668, %v1836_v38  ;;  %v2711_v7 = vmul.f32 2.7557319e-06, %v1836_v38  ;;  %v9994_v23 = vadd.f32 %v2374_v47, %v12274_v16  ;;  %v9997_v22 = vadd.f32 %v2710_v20, %v12276_v51  ;;  %v12283_v20 = vld [vmem:[#allocation16_spill] sm:$0xff] }
 0x44a   :  { %v1840_v42 = vpop.f32.mrb[100].mxu0 }
 0x44b   :  { %12275 = vst [vmem:[#allocation53_spill] sm:$0xff] %v9994_v23  ;;  %12277 = vst [vmem:[#allocation45_spill] sm:$0xff] %v9997_v22  ;;  %v10000_v63 = vadd.f32 %v2375_v35, %v12278_v31  ;;  %v10003_v27 = vadd.f32 %v2711_v7, %v12279_v48  ;;  %v2376_v58 = vmul.f32 0.041666668, %v1840_v42  ;;  %v2712_v21 = vmul.f32 2.7557319e-06, %v1840_v42 }
 0x44c   :  { %v1842_v37 = vpop.f32.mrb[101].mxu0  ;;  %v12284_v35 = vld [vmem:[#allocation66_spill] sm:$0xff]  ;;  %v12286_v22 = vld [vmem:[#allocation67_spill] sm:$0xff] }
 0x44d   :  { %12280 = vst [vmem:[#allocation48_spill] sm:$0xff] %v10003_v27  ;;  %v2377_v54 = vmul.f32 0.041666668, %v1842_v37  ;;  %v2713_v53 = vmul.f32 2.7557319e-06, %v1842_v37  ;;  %v10006_v38 = vadd.f32 %v2376_v58, %v9700_v36  ;;  %v10009_v16 = vadd.f32 %v2712_v21, %v9702_v11  ;;  %v12287_v36 = vld [vmem:[#allocation14_spill] sm:$0xff] }
 0x44e   :  { %v1846_v7 = vpop.f32.mrb[102].mxu0  ;;  %v12288_v11 = vld [vmem:[#allocation68_spill] sm:$0xff] }
 0x44f   :  { %12281 = vst [vmem:[#allocation54_spill] sm:$0xff] %v10006_v38  ;;  %12282 = vst [vmem:[#allocation46_spill] sm:$0xff] %v10009_v16  ;;  %v10012_v47 = vadd.f32 %v2377_v54, %v12283_v20  ;;  %v10015_v51 = vadd.f32 %v2713_v53, %v12284_v35  ;;  %v2378_v31 = vmul.f32 0.041666668, %v1846_v7  ;;  %v2714_v48 = vmul.f32 2.7557319e-06, %v1846_v7 }
 0x450   :  { %v1848_v27 = vpop.f32.mrb[103].mxu0  ;;  %v12289_v54 = vld [vmem:[#allocation19_spill] sm:$0xff] }
 0x451   :  { %12285 = vst [vmem:[#allocation55_spill] sm:$0xff] %v10015_v51  ;;  %v2379_v42 = vmul.f32 0.041666668, %v1848_v27  ;;  %v2715_v23 = vmul.f32 2.7557319e-06, %v1848_v27  ;;  %v10018_v37 = vadd.f32 %v2378_v31, %v12286_v22  ;;  %v10021_v58 = vadd.f32 %v2714_v48, %v12287_v36  ;;  %v12291_v48 = vld [vmem:[#allocation69_spill] sm:$0xff] }
 0x452   :  { %v1852_v53 = vpop.f32.mrb[104].mxu0 }
 0x453   :  { %v10024_v21 = vadd.f32 %v2379_v42, %v12288_v11  ;;  %v10027_v20 = vadd.f32 %v2715_v23, %v12289_v54  ;;  %v2380_v35 = vmul.f32 0.041666668, %v1852_v53  ;;  %v2716_v51 = vmul.f32 2.7557319e-06, %v1852_v53  ;;  %v1854_v38 = vpop.f32.mrb[105].mxu0 }
 0x454   :  { %v2381_v7 = vmul.f32 0.041666668, %v1854_v38  ;;  %v2717_v16 = vmul.f32 2.7557319e-06, %v1854_v38 }
 0x455   :  { %12290 = vst [vmem:[#allocation56_spill] sm:$0xff] %v10027_v20  ;;  %v10030_v27 = vadd.f32 %v2380_v35, %v9740_v56  ;;  %v10033_v22 = vadd.f32 %v2716_v51, %v9742_v10  ;;  %v12296_v51 = vld [vmem:[#allocation49_spill] sm:$0xff] }
 0x456   :  { %v10036_v31 = vadd.f32 %v2381_v7, %v9744_v61  ;;  %v10039_v42 = vadd.f32 %v2717_v16, %v12291_v48  ;;  %v1858_v23 = vpop.f32.mrb[106].mxu0  ;;  %v12295_v16 = vld [vmem:[#allocation50_spill] sm:$0xff]  ;;  %v2864_v35 = vadd.s32 8, %v12296_v51  ;;  %v12297_v7 = vmov 0.0  }
 0x457   :  { %v2382_v36 = vmul.f32 0.041666668, %v1858_v23  ;;  %v2718_v11 = vmul.f32 2.7557319e-06, %v1858_v23  ;;  %v1860_v54 = vpop.f32.mrb[107].mxu0  ;;  %vm2888_vm10 = vcmp.eq.s32.totalorder %v12296_v51, %v12295_v16 }
 0x458   :  { %v2383_v53 = vmul.f32 0.041666668, %v1860_v54  ;;  %v2719_v20 = vmul.f32 2.7557319e-06, %v1860_v54  ;;  %v6971_v48 = vsel %vm2888_vm10, 1.0, %v12297_v7  ;;  %vm2890_vm11 = vcmp.eq.s32.totalorder %v2864_v35, %v12295_v16 }
 0x459   :  { %v10042_v38 = vadd.f32 %v2382_v36, %v9757_v13  ;;  %v10045_v56 = vadd.f32 %v2718_v11, %v9759_v15  ;;  %v2865_v13 = vadd.s32 16, %v12296_v51  ;;  %v6972_v54 = vsel %vm2890_vm11, 1.0, %v12297_v7 }
 0x45a   :  { %v10048_v10 = vadd.f32 %v2383_v53, %v9761_v2  ;;  %v10051_v61 = vadd.f32 %v2719_v20, %v9763_v17  ;;  %v3032_v17 = vadd.f32 %v6971_v48, %v9766_v5 }
 0x45b   :  { %12292 = vst [vmem:[#allocation7_spill] sm:$0xff] %v10042_v38  ;;  %12293 = vst [vmem:[#allocation57_spill] sm:$0xff] %v10045_v56  ;;  %vm2892_vm12 = vcmp.eq.s32.totalorder %v2865_v13, %v12295_v16 }
 0x45c   :  { %12294 = vst [vmem:[#allocation5_spill] sm:$0xff] %v10051_v61  ;;  %v2866_v61 = vadd.s32 24, %v12296_v51 }
 0x45e   :  { %vm2894_vm13 = vcmp.eq.s32.totalorder %v2866_v61, %v12295_v16 }
 0x46f   :  { %v10059_v23 = vpop.f32.mrb[60].mxu1 }
 0x470   :  { %12298 = vst [vmem:[#allocation58_spill] sm:$0xff] %v10059_v23  ;;  %v2768_v15 = vmul.f32 2.755732e-07, %v10059_v23  ;;  %v3080_v2 = vmul.f32 0.008333334, %v10059_v23  ;;  %v2003_v36 = vpop.f32.mrb[61].mxu1 }
 0x471   :  { %v2769_v20 = vmul.f32 2.755732e-07, %v2003_v36  ;;  %v3081_v11 = vmul.f32 0.008333334, %v2003_v36  ;;  %6995 = vmatprep.mubr.msk.f32.mxu0 %vm1091_vm4, %v2003_v36 }
 0x472   :  { %v2816_v53 = vadd.f32 %v2768_v15, %v9769_v1  ;;  %v10067_v35 = vadd.f32 %v3080_v2, %v3032_v17  ;;  %v3034_v1 = vadd.f32 %v6972_v54, %v9778_v14  ;;  %v6973_v2 = vsel %vm2892_vm12, 1.0, %v12297_v7 }
 0x473   :  { %v2817_v38 = vadd.f32 %v2769_v20, %v9775_v46  ;;  %v10072_v23 = vpop.f32.mrb[62].mxu1  ;;  %v10075_v5 = vadd.f32 %v3081_v11, %v9772_v0  ;;  %v2867_v0 = vadd.s32 32, %v12296_v51 }
 0x474   :  { %12299 = vst [vmem:[#allocation8_spill] sm:$0xff] %v10067_v35  ;;  %v2770_v48 = vmul.f32 2.755732e-07, %v10072_v23  ;;  %v3082_v36 = vmul.f32 0.008333334, %v10072_v23  ;;  %v10079_v56 = vpop.f32.mrb[63].mxu1 }
 0x475   :  { %12300 = vst [vmem:[#allocation59_spill] sm:$0xff] %v10075_v5  ;;  %v2771_v15 = vmul.f32 2.755732e-07, %v10079_v56  ;;  %v3083_v13 = vmul.f32 0.008333334, %v10079_v56  ;;  %vm2896_vm14 = vcmp.eq.s32.totalorder %v2867_v0, %v12295_v16 }
 0x476   :  { %v2818_v46 = vadd.f32 %v2770_v48, %v9781_v62  ;;  %v10086_v17 = vadd.f32 %v3082_v36, %v3034_v1  ;;  %v3036_v48 = vadd.f32 %v6973_v2, %v9790_v60 }
 0x477   :  { %v2819_v20 = vadd.f32 %v2771_v15, %v9787_v26  ;;  %v10091_v11 = vpop.f32.mrb[64].mxu1  ;;  %v10094_v14 = vadd.f32 %v3083_v13, %v9784_v28  ;;  %v6974_v26 = vsel %vm2894_vm13, 1.0, %v12297_v7  ;;  %v2868_v13 = vadd.s32 40, %v12296_v51 }
 0x478   :  { %12301 = vst [vmem:[#allocation6_spill] sm:$0xff] %v10086_v17  ;;  %v2772_v54 = vmul.f32 2.755732e-07, %v10091_v11  ;;  %v3084_v5 = vmul.f32 0.008333334, %v10091_v11  ;;  %v10098_v35 = vpop.f32.mrb[65].mxu1  ;;  %v7805_v62 = vpack.c.bf16 %v2818_v46, %v2816_v53 }
 0x479   :  { %12302 = vst [vmem:[#allocation60_spill] sm:$0xff] %v10094_v14  ;;  %v2773_v61 = vmul.f32 2.755732e-07, %v10098_v35  ;;  %v3085_v36 = vmul.f32 0.008333334, %v10098_v35  ;;  %v7803_v1 = vpack.c.bf16 %v2819_v20, %v2817_v38  ;;  %vm2898_vm15 = vcmp.eq.s32.totalorder %v2868_v13, %v12295_v16  ;;  %v12354_v17 = vld [vmem:[#allocation32_spill] sm:$0xff] }
 0x47a   :  { %v2820_v15 = vadd.f32 %v2772_v54, %v9793_v39  ;;  %v10105_v28 = vadd.f32 %v3084_v5, %v3036_v48  ;;  %v3038_v39 = vadd.f32 %v6974_v26, %v9802_v32 }
 0x47b   :  { %v2821_v14 = vadd.f32 %v2773_v61, %v9799_v40  ;;  %v10110_v53 = vpop.f32.mrb[66].mxu1  ;;  %7804 = vmatprep.subr.bf16.mxu0 %v7803_v1  ;;  %v10113_v60 = vadd.f32 %v3085_v36, %v9796_v33  ;;  %v6975_v40 = vsel %vm2896_vm14, 1.0, %v12297_v7  ;;  %v2869_v33 = vadd.s32 48, %v12296_v51 }
 0x47c   :  { %12303 = vst [vmem:[#allocation11_spill] sm:$0xff] %v10105_v28  ;;  %v2774_v38 = vmul.f32 2.755732e-07, %v10110_v53  ;;  %v3086_v2 = vmul.f32 0.008333334, %v10110_v53  ;;  %v10117_v46 = vpop.f32.mrb[67].mxu1  ;;  %7806 = vmatpush1.bf16.msra.mxu0 %v7805_v62  ;;  %v3040_v26 = vadd.f32 %v6975_v40, %v9814_v59 }
 0x47d   :  { %12304 = vst [vmem:[#allocation61_spill] sm:$0xff] %v10113_v60  ;;  %v2775_v5 = vmul.f32 2.755732e-07, %v10117_v46  ;;  %v3087_v0 = vmul.f32 0.008333334, %v10117_v46  ;;  %vm2900_vm0 = vcmp.eq.s32.totalorder %v2869_v33, %v12295_v16 }
 0x47e   :  { %v2822_v20 = vadd.f32 %v2774_v38, %v9805_v43  ;;  %v10124_v54 = vadd.f32 %v3086_v2, %v3038_v39 }
 0x47f   :  { %v2823_v48 = vadd.f32 %v2775_v5, %v9811_v44  ;;  %v10129_v61 = vpop.f32.mrb[68].mxu1  ;;  %v10132_v32 = vadd.f32 %v3087_v0, %v9808_v41  ;;  %v6976_v44 = vsel %vm2898_vm15, 1.0, %v12297_v7  ;;  %v2870_v5 = vadd.s32 56, %v12296_v51 }
 0x480   :  { %12305 = vst [vmem:[#allocation9_spill] sm:$0xff] %v10124_v54  ;;  %v2776_v62 = vmul.f32 2.755732e-07, %v10129_v61  ;;  %v3088_v36 = vmul.f32 0.008333334, %v10129_v61  ;;  %v10136_v1 = vpop.f32.mrb[69].mxu1  ;;  %v7809_v43 = vpack.c.bf16 %v2822_v20, %v2820_v15 }
 0x481   :  { %12306 = vst [vmem:[#allocation62_spill] sm:$0xff] %v10132_v32  ;;  %v2777_v13 = vmul.f32 2.755732e-07, %v10136_v1  ;;  %v3089_v38 = vmul.f32 0.008333334, %v10136_v1  ;;  %v7807_v2 = vpack.c.bf16 %v2823_v48, %v2821_v14  ;;  %vm2902_vm1 = vcmp.eq.s32.totalorder %v2870_v5, %v12295_v16 }
 0x482   :  { %v2824_v39 = vadd.f32 %v2776_v62, %v9817_v55  ;;  %v10143_v41 = vadd.f32 %v3088_v36, %v3040_v26  ;;  %v3042_v55 = vadd.f32 %v6976_v44, %v9826_v12 }
 0x483   :  { %v2825_v0 = vadd.f32 %v2777_v13, %v9823_v57  ;;  %v10148_v15 = vpop.f32.mrb[70].mxu1  ;;  %7808 = vmatprep.subr.bf16.mxu0 %v7807_v2  ;;  %v10151_v59 = vadd.f32 %v3089_v38, %v9820_v4  ;;  %v6977_v57 = vsel %vm2900_vm0, 1.0, %v12297_v7  ;;  %v2871_v4 = vadd.s32 64, %v12296_v51 }
 0x484   :  { %12307 = vst [vmem:[#allocation12_spill] sm:$0xff] %v10143_v41  ;;  %v2778_v14 = vmul.f32 2.755732e-07, %v10148_v15  ;;  %v3090_v40 = vmul.f32 0.008333334, %v10148_v15  ;;  %v10155_v20 = vpop.f32.mrb[71].mxu1  ;;  %7810 = vmatpush1.bf16.msra.mxu0 %v7809_v43  ;;  %v3044_v44 = vadd.f32 %v6977_v57, %v9838_v34 }
 0x485   :  { %12308 = vst [vmem:[#allocation10_spill] sm:$0xff] %v10151_v59  ;;  %v2779_v33 = vmul.f32 2.755732e-07, %v10155_v20  ;;  %v3091_v48 = vmul.f32 0.008333334, %v10155_v20  ;;  %vm2904_vm5 = vcmp.eq.s32.totalorder %v2871_v4, %v12295_v16 }
 0x486   :  { %v2826_v62 = vadd.f32 %v2778_v14, %v9829_v30  ;;  %v10162_v36 = vadd.f32 %v3090_v40, %v3042_v55 }
 0x487   :  { %v2827_v26 = vadd.f32 %v2779_v33, %v9835_v19  ;;  %v10167_v13 = vpop.f32.mrb[72].mxu1  ;;  %v10170_v12 = vadd.f32 %v3091_v48, %v9832_v50  ;;  %v6978_v19 = vsel %vm2902_vm1, 1.0, %v12297_v7  ;;  %v2872_v33 = vadd.s32 72, %v12296_v51 }
 0x488   :  { %12309 = vst [vmem:[#allocation63_spill] sm:$0xff] %v10162_v36  ;;  %v2780_v43 = vmul.f32 2.755732e-07, %v10167_v13  ;;  %v3092_v38 = vmul.f32 0.008333334, %v10167_v13  ;;  %v10174_v2 = vpop.f32.mrb[73].mxu1  ;;  %v7813_v30 = vpack.c.bf16 %v2826_v62, %v2824_v39 }
 0x489   :  { %12310 = vst [vmem:[#allocation15_spill] sm:$0xff] %v10170_v12  ;;  %v2781_v5 = vmul.f32 2.755732e-07, %v10174_v2  ;;  %v3093_v14 = vmul.f32 0.008333334, %v10174_v2  ;;  %v7811_v40 = vpack.c.bf16 %v2827_v26, %v2825_v0  ;;  %vm2906_vm6 = vcmp.eq.s32.totalorder %v2872_v33, %v12295_v16 }
 0x48a   :  { %v2828_v55 = vadd.f32 %v2780_v43, %v9841_v52  ;;  %v10181_v50 = vadd.f32 %v3092_v38, %v3044_v44  ;;  %v3046_v52 = vadd.f32 %v6978_v19, %v9850_v25 }
 0x48b   :  { %v2829_v48 = vadd.f32 %v2781_v5, %v9847_v24  ;;  %v10186_v39 = vpop.f32.mrb[74].mxu1  ;;  %7812 = vmatprep.subr.bf16.mxu0 %v7811_v40  ;;  %v10189_v34 = vadd.f32 %v3093_v14, %v9844_v6  ;;  %v6979_v24 = vsel %vm2904_vm5, 1.0, %v12297_v7  ;;  %v2873_v6 = vadd.s32 80, %v12296_v51 }
 0x48c   :  { %12311 = vst [vmem:[#allocation64_spill] sm:$0xff] %v10181_v50  ;;  %v2782_v0 = vmul.f32 2.755732e-07, %v10186_v39  ;;  %v3094_v57 = vmul.f32 0.008333334, %v10186_v39  ;;  %v10193_v62 = vpop.f32.mrb[75].mxu1  ;;  %7814 = vmatpush1.bf16.msra.mxu0 %v7813_v30 }
 0x48d   :  { %12312 = vst [vmem:[#allocation65_spill] sm:$0xff] %v10189_v34  ;;  %v2783_v4 = vmul.f32 2.755732e-07, %v10193_v62  ;;  %v3095_v26 = vmul.f32 0.008333334, %v10193_v62  ;;  %v12314_v30 = vld [vmem:[#allocation17_spill] sm:$0xff]  ;;  %vm2908_vm7 = vcmp.eq.s32.totalorder %v2873_v6, %v12295_v16 }
 0x48e   :  { %v2830_v43 = vadd.f32 %v2782_v0, %v9853_v49  ;;  %v10200_v38 = vadd.f32 %v3094_v57, %v3046_v52  ;;  %v12316_v0 = vld [vmem:[#allocation23_spill] sm:$0xff] }
 0x48f   :  { %v2831_v44 = vadd.f32 %v2783_v4, %v9859_v8  ;;  %v10205_v5 = vpop.f32.mrb[76].mxu1  ;;  %v10208_v25 = vadd.f32 %v3095_v26, %v12314_v30  ;;  %v3048_v57 = vadd.f32 %v6979_v24, %v12316_v0  ;;  %v6980_v8 = vsel %vm2906_vm6, 1.0, %v12297_v7  ;;  %v12317_v4 = vld [vmem:[#allocation70_spill] sm:$0xff]  ;;  %v12320_v24 = vld [vmem:[#allocation71_spill] sm:$0xff] }
 0x490   :  { %12313 = vst [vmem:[#allocation13_spill] sm:$0xff] %v10200_v38  ;;  %v2784_v14 = vmul.f32 2.755732e-07, %v10205_v5  ;;  %v3096_v40 = vmul.f32 0.008333334, %v10205_v5  ;;  %v10212_v19 = vpop.f32.mrb[77].mxu1  ;;  %v7817_v49 = vpack.c.bf16 %v2830_v43, %v2828_v55 }
 0x491   :  { %12315 = vst [vmem:[#allocation16_spill] sm:$0xff] %v10208_v25  ;;  %v2785_v33 = vmul.f32 2.755732e-07, %v10212_v19  ;;  %v3097_v52 = vmul.f32 0.008333334, %v10212_v19  ;;  %v7815_v38 = vpack.c.bf16 %v2831_v44, %v2829_v48  ;;  %v2874_v30 = vadd.s32 88, %v12296_v51 }
 0x492   :  { %v2832_v34 = vadd.f32 %v2784_v14, %v12317_v4  ;;  %v10219_v26 = vadd.f32 %v3096_v40, %v3048_v57  ;;  %v12319_v25 = vld [vmem:[#allocation20_spill] sm:$0xff] }
 0x493   :  { %v2833_v50 = vadd.f32 %v2785_v33, %v12319_v25  ;;  %v10224_v55 = vpop.f32.mrb[78].mxu1  ;;  %7816 = vmatprep.subr.bf16.mxu0 %v7815_v38  ;;  %v10227_v43 = vadd.f32 %v3097_v52, %v12320_v24  ;;  %v12322_v14 = vld [vmem:[#allocation72_spill] sm:$0xff]  ;;  %v6981_v25 = vsel %vm2908_vm7, 1.0, %v12297_v7  ;;  %v12323_v33 = vld [vmem:[#allocation18_spill] sm:$0xff]  ;;  %vm2910_vm8 = vcmp.eq.s32.totalorder %v2874_v30, %v12295_v16  ;;  %v12325_v24 = vld [vmem:[#allocation21_spill] sm:$0xff] }
 0x494   :  { %12318 = vst [vmem:[#allocation66_spill] sm:$0xff] %v10219_v26  ;;  %v2786_v48 = vmul.f32 2.755732e-07, %v10224_v55  ;;  %v3098_v44 = vmul.f32 0.008333334, %v10224_v55  ;;  %v10231_v0 = vpop.f32.mrb[79].mxu1  ;;  %7818 = vmatpush1.bf16.msra.mxu0 %v7817_v49  ;;  %v3050_v40 = vadd.f32 %v6980_v8, %v12322_v14 }
 0x495   :  { %12321 = vst [vmem:[#allocation67_spill] sm:$0xff] %v10227_v43  ;;  %v2787_v6 = vmul.f32 2.755732e-07, %v10231_v0  ;;  %v3099_v57 = vmul.f32 0.008333334, %v10231_v0  ;;  %v2875_v52 = vadd.s32 96, %v12296_v51 }
 0x496   :  { %v2834_v38 = vadd.f32 %v2786_v48, %v12323_v33  ;;  %v10238_v4 = vadd.f32 %v3098_v44, %v3050_v40  ;;  %v12326_v49 = vld [vmem:[#allocation73_spill] sm:$0xff]  ;;  %v12328_v44 = vld [vmem:[#allocation24_spill] sm:$0xff] }
 0x497   :  { %v2835_v43 = vadd.f32 %v2787_v6, %v12325_v24  ;;  %v10246_v8 = vadd.f32 %v3099_v57, %v12326_v49  ;;  %v3052_v40 = vadd.f32 %v6981_v25, %v12328_v44  ;;  %v6982_v6 = vsel %vm2910_vm8, 1.0, %v12297_v7  ;;  %v12329_v24 = vld [vmem:[#allocation74_spill] sm:$0xff]  ;;  %v12332_v25 = vld [vmem:[#allocation75_spill] sm:$0xff] }
 0x498   :  { %12324 = vst [vmem:[#allocation14_spill] sm:$0xff] %v10238_v4  ;;  %v10243_v26 = vpop.f32.mrb[80].mxu1  ;;  %v7821_v48 = vpack.c.bf16 %v2834_v38, %v2832_v34  ;;  %vm2912_vm10 = vcmp.eq.s32.totalorder %v2875_v52, %v12295_v16  ;;  %v2876_v49 = vadd.s32 104, %v12296_v51 }
 0x499   :  { %12327 = vst [vmem:[#allocation68_spill] sm:$0xff] %v10246_v8  ;;  %v2788_v14 = vmul.f32 2.755732e-07, %v10243_v26  ;;  %v3100_v12 = vmul.f32 0.008333334, %v10243_v26  ;;  %v10250_v36 = vpop.f32.mrb[81].mxu1  ;;  %v7819_v4 = vpack.c.bf16 %v2835_v43, %v2833_v50 }
 0x49a   :  { %v2789_v30 = vmul.f32 2.755732e-07, %v10250_v36  ;;  %v3101_v33 = vmul.f32 0.008333334, %v10250_v36  ;;  %v12331_v8 = vld [vmem:[#allocation22_spill] sm:$0xff]  ;;  %vm2914_vm11 = vcmp.eq.s32.totalorder %v2876_v49, %v12295_v16 }
 0x49b   :  { %v2836_v59 = vadd.f32 %v2788_v14, %v12329_v24  ;;  %v10257_v57 = vadd.f32 %v3100_v12, %v3052_v40  ;;  %7820 = vmatprep.subr.bf16.mxu0 %v7819_v4  ;;  %v3054_v12 = vadd.f32 %v6982_v6, %v9898_v9  ;;  %v12334_v40 = vld [vmem:[#allocation76_spill] sm:$0xff]  ;;  %v12336_v24 = vld [vmem:[#allocation77_spill] sm:$0xff] }
 0x49c   :  { %v2837_v41 = vadd.f32 %v2789_v30, %v12331_v8  ;;  %v10262_v34 = vpop.f32.mrb[82].mxu1  ;;  %v10265_v38 = vadd.f32 %v3101_v33, %v12332_v25  ;;  %7822 = vmatpush1.bf16.msra.mxu0 %v7821_v48  ;;  %v6983_v8 = vsel %vm2912_vm10, 1.0, %v12297_v7  ;;  %v2877_v33 = vadd.s32 112, %v12296_v51  ;;  %v12337_v48 = vld [vmem:[#allocation27_spill] sm:$0xff] }
 0x49d   :  { %12330 = vst [vmem:[#allocation19_spill] sm:$0xff] %v10257_v57  ;;  %v2790_v50 = vmul.f32 2.755732e-07, %v10262_v34  ;;  %v3102_v43 = vmul.f32 0.008333334, %v10262_v34  ;;  %v10269_v44 = vpop.f32.mrb[83].mxu1 }
 0x49e   :  { %12333 = vst [vmem:[#allocation69_spill] sm:$0xff] %v10265_v38  ;;  %v2791_v52 = vmul.f32 2.755732e-07, %v10269_v44  ;;  %v3103_v14 = vmul.f32 0.008333334, %v10269_v44  ;;  %vm2916_vm12 = vcmp.eq.s32.totalorder %v2877_v33, %v12295_v16 }
 0x49f   :  { %v2838_v4 = vadd.f32 %v2790_v50, %v12334_v40  ;;  %v10276_v30 = vadd.f32 %v3102_v43, %v3054_v12  ;;  %v3056_v43 = vadd.f32 %v6983_v8, %v9910_v18  ;;  %v12342_v18 = vld [vmem:[#allocation28_spill] sm:$0xff] }
 0x4a0   :  { %v2839_v25 = vadd.f32 %v2791_v52, %v12336_v24  ;;  %v10281_v38 = vpop.f32.mrb[84].mxu1  ;;  %v10284_v9 = vadd.f32 %v3103_v14, %v12337_v48  ;;  %v6984_v52 = vsel %vm2914_vm11, 1.0, %v12297_v7  ;;  %v12339_v24 = vld [vmem:[#allocation25_spill] sm:$0xff]  ;;  %v2878_v48 = vadd.s32 120, %v12296_v51 }
 0x4a1   :  { %12335 = vst [vmem:[#allocation50_spill] sm:$0xff] %v10276_v30  ;;  %v2792_v6 = vmul.f32 2.755732e-07, %v10281_v38  ;;  %v3104_v57 = vmul.f32 0.008333334, %v10281_v38  ;;  %v10288_v32 = vpop.f32.mrb[85].mxu1  ;;  %v7825_v50 = vpack.c.bf16 %v2838_v4, %v2836_v59 }
 0x4a2   :  { %12338 = vst [vmem:[#allocation49_spill] sm:$0xff] %v10284_v9  ;;  %v2793_v49 = vmul.f32 2.755732e-07, %v10288_v32  ;;  %v3105_v12 = vmul.f32 0.008333334, %v10288_v32  ;;  %v7823_v40 = vpack.c.bf16 %v2839_v25, %v2837_v41  ;;  %v12341_v9 = vld [vmem:[#allocation78_spill] sm:$0xff]  ;;  %vm2918_vm13 = vcmp.eq.s32.totalorder %v2878_v48, %v12295_v16 }
 0x4a3   :  { %v2840_v30 = vadd.f32 %v2792_v6, %v12339_v24  ;;  %v10295_v14 = vadd.f32 %v3104_v57, %v3056_v43  ;;  %v3058_v57 = vadd.f32 %v6984_v52, %v9922_v45  ;;  %v12344_v43 = vld [vmem:[#allocation79_spill] sm:$0xff]  ;;  %v2879_v45 = vadd.s32 128, %v12296_v51 }
 0x4a4   :  { %v2841_v54 = vadd.f32 %v2793_v49, %v12341_v9  ;;  %7824 = vmatprep.subr.bf16.mxu0 %v7823_v40  ;;  %v10303_v8 = vadd.f32 %v3105_v12, %v12342_v18  ;;  %v6985_v9 = vsel %vm2916_vm12, 1.0, %v12297_v7  ;;  %v12346_v12 = vld [vmem:[#allocation31_spill] sm:$0xff]  ;;  %v10325_v52 = vadd.s32 128, %v12295_v16 }
 0x4a5   :  { %12340 = vst [vmem:[#allocation17_spill] sm:$0xff] %v10295_v14  ;;  %v10300_v59 = vpop.f32.mrb[86].mxu1  ;;  %7826 = vmatpush1.bf16.msra.mxu0 %v7825_v50  ;;  %v3060_v48 = vadd.f32 %v6985_v9, %v9934_v3  ;;  %v2880_v3 = vadd.s32 136, %v12296_v51 }
 0x4a6   :  { %12343 = vst [vmem:[#allocation23_spill] sm:$0xff] %v10303_v8  ;;  %v2794_v41 = vmul.f32 2.755732e-07, %v10300_v59  ;;  %v3106_v4 = vmul.f32 0.008333334, %v10300_v59  ;;  %v10307_v25 = vpop.f32.mrb[87].mxu1  ;;  %vm2921_vm14 = vcmp.eq.s32.totalorder %v2879_v45, %v10325_v52 }
 0x4a7   :  { %v2795_v33 = vmul.f32 2.755732e-07, %v10307_v25  ;;  %v3107_v6 = vmul.f32 0.008333334, %v10307_v25  ;;  %v12348_v8 = vld [vmem:[#allocation26_spill] sm:$0xff]  ;;  %v6987_v45 = vsel %vm2921_vm14, 1.0, %v12297_v7  ;;  %vm2923_vm15 = vcmp.eq.s32.totalorder %v2880_v3, %v10325_v52 }
 0x4a8   :  { %v2842_v49 = vadd.f32 %v2794_v41, %v12344_v43  ;;  %v10314_v40 = vadd.f32 %v3106_v4, %v3058_v57 }
 0x4a9   :  { %v2843_v24 = vadd.f32 %v2795_v33, %v12346_v12  ;;  %v10318_v18 = vpop.f32.mrb[88].mxu1  ;;  %v10321_v50 = vadd.f32 %v3107_v6, %v12348_v8  ;;  %v6986_v6 = vsel %vm2918_vm13, 1.0, %v12297_v7  ;;  %v12350_v12 = vld [vmem:[#allocation29_spill] sm:$0xff] }
 0x4aa   :  { %12345 = vst [vmem:[#allocation70_spill] sm:$0xff] %v10314_v40  ;;  %12347 = vst [vmem:[#allocation20_spill] sm:$0xff] %v10318_v18  ;;  %v2796_v14 = vmul.f32 2.755732e-07, %v10318_v18  ;;  %v3108_v41 = vmul.f32 0.008333334, %v10318_v18  ;;  %v7829_v57 = vpack.c.bf16 %v2842_v49, %v2840_v30 }
 0x4ab   :  { %12349 = vst [vmem:[#allocation71_spill] sm:$0xff] %v10321_v50  ;;  %v10329_v4 = vpop.f32.mrb[89].mxu1  ;;  %v7827_v8 = vpack.c.bf16 %v2843_v24, %v2841_v54  ;;  %v12352_v40 = vld [vmem:[#allocation30_spill] sm:$0xff] }
 0x4ac   :  { %v2797_v33 = vmul.f32 2.755732e-07, %v10329_v4  ;;  %v3109_v43 = vmul.f32 0.008333334, %v10329_v4  ;;  %v2844_v50 = vadd.f32 %v2796_v14, %v12350_v12  ;;  %v10336_v16 = vadd.f32 %v3108_v41, %v3060_v48  ;;  %v12357_v14 = vld [vmem:[#allocation35_spill] sm:$0xff]  ;;  %v12358_v48 = vld [vmem:[#allocation33_spill] sm:$0xff] }
 0x4ad   :  { %v10339_v28 = vpop.f32.mrb[90].mxu1  ;;  %7828 = vmatprep.subr.bf16.mxu0 %v7827_v8  ;;  %v3062_v24 = vadd.f32 %v6986_v6, %v12357_v14 }
 0x4ae   :  { %12351 = vst [vmem:[#allocation72_spill] sm:$0xff] %v10336_v16  ;;  %v2845_v60 = vadd.f32 %v2797_v33, %v12352_v40  ;;  %12353 = vst [vmem:[#allocation18_spill] sm:$0xff] %v10339_v28  ;;  %v10342_v30 = vadd.f32 %v3109_v43, %v12354_v17  ;;  %v2798_v54 = vmul.f32 2.755732e-07, %v10339_v28  ;;  %v3110_v9 = vmul.f32 0.008333334, %v10339_v28  ;;  %7830 = vmatpush1.bf16.msra.mxu0 %v7829_v57 }
 0x4af   :  { %v10348_v49 = vpop.f32.mrb[91].mxu1  ;;  %v12360_v43 = vld [vmem:[#allocation34_spill] sm:$0xff]  ;;  %v2881_v57 = vadd.s32 144, %v12296_v51  ;;  %v6988_v28 = vsel %vm2923_vm15, 1.0, %v12297_v7 }
 0x4b0   :  { %12355 = vst [vmem:[#allocation21_spill] sm:$0xff] %v10342_v30  ;;  %12356 = vst [vmem:[#allocation73_spill] sm:$0xff] %v10348_v49  ;;  %v2799_v40 = vmul.f32 2.755732e-07, %v10348_v49  ;;  %v3111_v41 = vmul.f32 0.008333334, %v10348_v49  ;;  %v2846_v17 = vadd.f32 %v2798_v54, %v12358_v48  ;;  %v10354_v33 = vadd.f32 %v3110_v9, %v3062_v24 }
 0x4b1   :  { %v10358_v12 = vpop.f32.mrb[92].mxu1  ;;  %v12362_v30 = vld [vmem:[#allocation36_spill] sm:$0xff]  ;;  %v12368_v49 = vld [vmem:[#allocation38_spill] sm:$0xff]  ;;  %vm2925_vm0 = vcmp.eq.s32.totalorder %v2881_v57, %v10325_v52 }
 0x4b2   :  { %12359 = vst [vmem:[#allocation24_spill] sm:$0xff] %v10354_v33  ;;  %v2847_v8 = vadd.f32 %v2799_v40, %v12360_v43  ;;  %12361 = vst [vmem:[#allocation74_spill] sm:$0xff] %v10358_v12  ;;  %v10361_v16 = vadd.f32 %v3111_v41, %v12362_v30  ;;  %v2800_v6 = vmul.f32 2.755732e-07, %v10358_v12  ;;  %v3112_v14 = vmul.f32 0.008333334, %v10358_v12 }
 0x4b3   :  { %v10367_v54 = vpop.f32.mrb[93].mxu1  ;;  %v7833_v9 = vpack.c.bf16 %v2846_v17, %v2844_v50  ;;  %v12364_v43 = vld [vmem:[#allocation40_spill] sm:$0xff]  ;;  %v12365_v30 = vld [vmem:[#allocation37_spill] sm:$0xff]  ;;  %v6989_v57 = vsel %vm2925_vm0, 1.0, %v12297_v7 }
 0x4b4   :  { %12363 = vst [vmem:[#allocation22_spill] sm:$0xff] %v10361_v16  ;;  %v2801_v24 = vmul.f32 2.755732e-07, %v10367_v54  ;;  %v3113_v40 = vmul.f32 0.008333334, %v10367_v54  ;;  %v7831_v48 = vpack.c.bf16 %v2847_v8, %v2845_v60  ;;  %v3065_v33 = vadd.f32 %v6987_v45, %v12364_v43  ;;  %v12366_v16 = vld [vmem:[#allocation39_spill] sm:$0xff] }
 0x4b5   :  { %v2848_v41 = vadd.f32 %v2800_v6, %v12365_v30  ;;  %v10374_v3 = vadd.f32 %v3112_v14, %v12366_v16  ;;  %v10378_v12 = vpop.f32.mrb[94].mxu1  ;;  %v2882_v60 = vadd.s32 152, %v12296_v51  ;;  %v12372_v6 = vld [vmem:[#allocation44_spill] sm:$0xff]  ;;  %v12376_v43 = vld [vmem:[#allocation51_spill] sm:$0xff] }
 0x4b6   :  { %v2849_v18 = vadd.f32 %v2801_v24, %v12368_v49  ;;  %12369 = vst [vmem:[#allocation76_spill] sm:$0xff] %v10378_v12  ;;  %7832 = vmatprep.subr.bf16.mxu0 %v7831_v48  ;;  %v10380_v50 = vadd.f32 %v3113_v40, %v3065_v33  ;;  %v2802_v17 = vmul.f32 2.755732e-07, %v10378_v12  ;;  %v3114_v45 = vmul.f32 0.008333334, %v10378_v12  ;;  %v10386_v8 = vpop.f32.mrb[95].mxu1 }
 0x4b7   :  { %12367 = vst [vmem:[#allocation75_spill] sm:$0xff] %v10374_v3  ;;  %12371 = vst [vmem:[#allocation27_spill] sm:$0xff] %v10386_v8  ;;  %7834 = vmatpush1.bf16.msra.mxu0 %v7833_v9  ;;  %v2803_v16 = vmul.f32 2.755732e-07, %v10386_v8  ;;  %v3115_v49 = vmul.f32 0.008333334, %v10386_v8  ;;  %v3067_v14 = vadd.f32 %v6988_v28, %v12372_v6  ;;  %vm2927_vm1 = vcmp.eq.s32.totalorder %v2882_v60, %v10325_v52 }
 0x4b8   :  { %12370 = vst [vmem:[#allocation77_spill] sm:$0xff] %v10380_v50  ;;  %v12373_v24 = vld [vmem:[#allocation41_spill] sm:$0xff]  ;;  %v12374_v40 = vld [vmem:[#allocation43_spill] sm:$0xff]  ;;  %v2883_v9 = vadd.s32 160, %v12296_v51 }
 0x4b9   :  { %v2850_v33 = vadd.f32 %v2802_v17, %v12373_v24  ;;  %v10393_v48 = vadd.f32 %v3114_v45, %v12374_v40  ;;  %v2851_v30 = vadd.f32 %v2803_v16, %v12376_v43  ;;  %v10399_v3 = vadd.f32 %v3115_v49, %v3067_v14  ;;  %v12379_v49 = vld [vmem:[#allocation52_spill] sm:$0xff]  ;;  %v12380_v43 = vld [vmem:[#allocation42_spill] sm:$0xff] }
 0x4ba   :  { %v10397_v50 = vpop.f32.mrb[96].mxu1  ;;  %v3069_v40 = vadd.f32 %v6989_v57, %v9988_v29  ;;  %vm2929_vm5 = vcmp.eq.s32.totalorder %v2883_v9, %v10325_v52 }
 0x4bb   :  { %12375 = vst [vmem:[#allocation25_spill] sm:$0xff] %v10393_v48  ;;  %12377 = vst [vmem:[#allocation78_spill] sm:$0xff] %v10397_v50  ;;  %v2804_v12 = vmul.f32 2.755732e-07, %v10397_v50  ;;  %v3116_v28 = vmul.f32 0.008333334, %v10397_v50  ;;  %v7837_v45 = vpack.c.bf16 %v2850_v33, %v2848_v41  ;;  %v7835_v16 = vpack.c.bf16 %v2851_v30, %v2849_v18 }
 0x4bc   :  { %12378 = vst [vmem:[#allocation28_spill] sm:$0xff] %v10399_v3  ;;  %v10405_v17 = vpop.f32.mrb[97].mxu1  ;;  %v6990_v3 = vsel %vm2927_vm1, 1.0, %v12297_v7  ;;  %v12382_v48 = vld [vmem:[#allocation47_spill] sm:$0xff]  ;;  %v2884_v18 = vadd.s32 168, %v12296_v51  ;;  %v6991_v9 = vsel %vm2929_vm5, 1.0, %v12297_v7 }
 0x4bd   :  { %v2805_v6 = vmul.f32 2.755732e-07, %v10405_v17  ;;  %v3117_v24 = vmul.f32 0.008333334, %v10405_v17  ;;  %v2852_v14 = vadd.f32 %v2804_v12, %v12379_v49  ;;  %v10412_v60 = vadd.f32 %v3116_v28, %v12380_v43  ;;  %7836 = vmatprep.subr.bf16.mxu0 %v7835_v16  ;;  %v12385_v28 = vld [vmem:[#allocation45_spill] sm:$0xff] }
 0x4be   :  { %v10416_v50 = vpop.f32.mrb[98].mxu1  ;;  %7838 = vmatpush1.bf16.msra.mxu0 %v7837_v45  ;;  %v3071_v30 = vadd.f32 %v6990_v3, %v10000_v63  ;;  %vm2931_vm6 = vcmp.eq.s32.totalorder %v2884_v18, %v10325_v52  ;;  %v2885_v45 = vadd.s32 176, %v12296_v51 }
 0x4bf   :  { %12381 = vst [vmem:[#allocation79_spill] sm:$0xff] %v10412_v60  ;;  %v2853_v8 = vadd.f32 %v2805_v6, %v12382_v48  ;;  %12383 = vst [vmem:[#allocation31_spill] sm:$0xff] %v10416_v50  ;;  %v10418_v41 = vadd.f32 %v3117_v24, %v3069_v40  ;;  %v2806_v29 = vmul.f32 2.755732e-07, %v10416_v50  ;;  %v3118_v12 = vmul.f32 0.008333334, %v10416_v50 }
 0x4c0   :  { %v10424_v33 = vpop.f32.mrb[99].mxu1  ;;  %v12386_v24 = vld [vmem:[#allocation53_spill] sm:$0xff]  ;;  %v12388_v40 = vld [vmem:[#allocation48_spill] sm:$0xff]  ;;  %vm2933_vm7 = vcmp.eq.s32.totalorder %v2885_v45, %v10325_v52 }
 0x4c1   :  { %12384 = vst [vmem:[#allocation26_spill] sm:$0xff] %v10418_v41  ;;  %v2807_v57 = vmul.f32 2.755732e-07, %v10424_v33  ;;  %v3119_v48 = vmul.f32 0.008333334, %v10424_v33  ;;  %v2854_v6 = vadd.f32 %v2806_v29, %v12385_v28  ;;  %v10431_v16 = vadd.f32 %v3118_v12, %v12386_v24  ;;  %v12394_v45 = vld [vmem:[#allocation56_spill] sm:$0xff] }
 0x4c2   :  { %v3073_v24 = vadd.f32 %v6991_v9, %v10012_v47 }
 0x4c3   :  { %12387 = vst [vmem:[#allocation29_spill] sm:$0xff] %v10431_v16  ;;  %v2855_v49 = vadd.f32 %v2807_v57, %v12388_v40  ;;  %v10435_v43 = vpop.f32.mrb[100].mxu1  ;;  %v10437_v41 = vadd.f32 %v3119_v48, %v3071_v30  ;;  %v7841_v29 = vpack.c.bf16 %v2854_v6, %v2852_v14  ;;  %v12391_v48 = vld [vmem:[#allocation46_spill] sm:$0xff]  ;;  %v12393_v16 = vld [vmem:[#allocation55_spill] sm:$0xff] }
 0x4c4   :  { %12389 = vst [vmem:[#allocation30_spill] sm:$0xff] %v10435_v43  ;;  %v2808_v60 = vmul.f32 2.755732e-07, %v10435_v43  ;;  %v3120_v63 = vmul.f32 0.008333334, %v10435_v43  ;;  %v10443_v3 = vpop.f32.mrb[101].mxu1 }
 0x4c5   :  { %12390 = vst [vmem:[#allocation32_spill] sm:$0xff] %v10437_v41  ;;  %v2809_v12 = vmul.f32 2.755732e-07, %v10443_v3  ;;  %v3121_v28 = vmul.f32 0.008333334, %v10443_v3  ;;  %v7839_v57 = vpack.c.bf16 %v2855_v49, %v2853_v8  ;;  %v12392_v40 = vld [vmem:[#allocation54_spill] sm:$0xff] }
 0x4c6   :  { %v2856_v30 = vadd.f32 %v2808_v60, %v12391_v48  ;;  %v10450_v18 = vadd.f32 %v3120_v63, %v12392_v40  ;;  %v6992_v41 = vsel %vm2931_vm6, 1.0, %v12297_v7  ;;  %v2886_v8 = vadd.s32 184, %v12296_v51 }
 0x4c7   :  { %v2857_v50 = vadd.f32 %v2809_v12, %v12393_v16  ;;  %v10454_v43 = vpop.f32.mrb[102].mxu1  ;;  %7840 = vmatprep.subr.bf16.mxu0 %v7839_v57  ;;  %v10456_v14 = vadd.f32 %v3121_v28, %v3073_v24  ;;  %v3075_v49 = vadd.f32 %v6992_v41, %v10024_v21  ;;  %v6993_v51 = vsel %vm2933_vm7, 1.0, %v12297_v7 }
 0x4c8   :  { %v2810_v47 = vmul.f32 2.755732e-07, %v10454_v43  ;;  %v3122_v60 = vmul.f32 0.008333334, %v10454_v43  ;;  %v10462_v6 = vpop.f32.mrb[103].mxu1  ;;  %7842 = vmatpush1.bf16.msra.mxu0 %v7841_v29  ;;  %vm2935_vm8 = vcmp.eq.s32.totalorder %v2886_v8, %v10325_v52 }
 0x4c9   :  { %v2811_v9 = vmul.f32 2.755732e-07, %v10462_v6  ;;  %v3123_v16 = vmul.f32 0.008333334, %v10462_v6  ;;  %v6994_v52 = vsel %vm2935_vm8, 1.0, %v12297_v7 }
 0x4ca   :  { %v2858_v63 = vadd.f32 %v2810_v47, %v10021_v58  ;;  %v10469_v12 = vadd.f32 %v3122_v60, %v10018_v37  ;;  %v3077_v47 = vadd.f32 %v6993_v51, %v10036_v31  ;;  %v12395_v51 = vld [vmem:[#allocation57_spill] sm:$0xff] }
 0x4cb   :  { %v2859_v28 = vadd.f32 %v2811_v9, %v12394_v45  ;;  %v10475_v24 = vadd.f32 %v3123_v16, %v3075_v49 }
 0x4cc   :  { %v10473_v57 = vpop.f32.mrb[104].mxu1  ;;  %v7845_v58 = vpack.c.bf16 %v2858_v63, %v2856_v30 }
 0x4cd   :  { %v2812_v29 = vmul.f32 2.755732e-07, %v10473_v57  ;;  %v3124_v48 = vmul.f32 0.008333334, %v10473_v57  ;;  %v10480_v21 = vpop.f32.mrb[105].mxu1  ;;  %v7843_v40 = vpack.c.bf16 %v2859_v28, %v2857_v50  ;;  %v12396_v28 = vld [vmem:[#allocation7_spill] sm:$0xff] }
 0x4ce   :  { %v2813_v37 = vmul.f32 2.755732e-07, %v10480_v21  ;;  %v3125_v41 = vmul.f32 0.008333334, %v10480_v21 }
 0x4cf   :  { %v2860_v60 = vadd.f32 %v2812_v29, %v10033_v22  ;;  %v10487_v9 = vadd.f32 %v3124_v48, %v10030_v27  ;;  %7844 = vmatprep.subr.bf16.mxu0 %v7843_v40  ;;  %v3079_v27 = vadd.f32 %v6994_v52, %v10048_v10  ;;  %v12400_v10 = vld [vmem:[#allocation73_spill] sm:$0xff]  ;;  %v12416_v52 = vld [vmem:[#allocation12_spill] sm:$0xff] }
 0x4d0   :  { %v2861_v8 = vadd.f32 %v2813_v37, %v10039_v42  ;;  %v10491_v16 = vpop.f32.mrb[106].mxu1  ;;  %v10493_v30 = vadd.f32 %v3125_v41, %v3077_v47  ;;  %7846 = vmatpush1.bf16.msra.mxu0 %v7845_v58  ;;  %v12397_v42 = vld [vmem:[#allocation5_spill] sm:$0xff]  ;;  %v12398_v47 = vld [vmem:[#allocation58_spill] sm:$0xff] }
 0x4d1   :  { %v2814_v49 = vmul.f32 2.755732e-07, %v10491_v16  ;;  %v3126_v50 = vmul.f32 0.008333334, %v10491_v16  ;;  %v2141_v63 = vpop.f32.mrb[107].mxu1 }
 0x4d2   :  { %v2815_v31 = vmul.f32 2.755732e-07, %v2141_v63  ;;  %v3127_v22 = vmul.f32 0.008333334, %v2141_v63 }
 0x4d3   :  { %v2862_v45 = vadd.f32 %v2814_v49, %v12395_v51  ;;  %v10500_v29 = vadd.f32 %v3126_v50, %v12396_v28  ;;  %v12417_v49 = vld [vmem:[#allocation10_spill] sm:$0xff]  ;;  %v12419_v51 = vld [vmem:[#allocation15_spill] sm:$0xff] }
 0x4d4   :  { %v2863_v48 = vadd.f32 %v2815_v31, %v12397_v42  ;;  %v10503_v37 = vadd.f32 %v3127_v22, %v3079_v27  ;;  %v12418_v31 = vld [vmem:[#allocation63_spill] sm:$0xff] }
 0x4d5   :  { %v7849_v41 = vpack.c.bf16 %v2862_v45, %v2860_v60 }
 0x4d6   :  { %v7847_v40 = vpack.c.bf16 %v2863_v48, %v2861_v8 }
 0x4d8   :  { %7848 = vmatprep.subr.bf16.mxu0 %v7847_v40 }
 0x4d9   :  { %7850 = vmatpush1.bf16.msra.mxu0 %v7849_v41  ;;  %v12420_v41 = vld [vmem:[#allocation64_spill] sm:$0xff] }
 0x4dc   :  { %3313 = vmatmul.mubr.f32.vlgmr.msra.gmra.mrb[108].mxu0 %v12398_v47 }
 0x4dd   :  { %6996 = vmatprep.mubr.msk.f32.mxu0 %vm1091_vm4, %v10079_v56  ;;  %v12399_v56 = vld [vmem:[#allocation20_spill] sm:$0xff] }
 0x4e0   :  { %3319 = vmatmul.mubr.f32.gmra.mrb[110].mxu0 %v10072_v23  ;;  %v12401_v23 = vld [vmem:[#allocation18_spill] sm:$0xff] }
 0x4e1   :  { %6997 = vmatprep.mubr.msk.f32.mxu0 %vm1091_vm4, %v10098_v35  ;;  %v12402_v35 = vld [vmem:[#allocation74_spill] sm:$0xff] }
 0x4e4   :  { %3325 = vmatmul.mubr.f32.gmra.mrb[112].mxu0 %v10091_v11  ;;  %v12403_v11 = vld [vmem:[#allocation27_spill] sm:$0xff] }
 0x4e5   :  { %6998 = vmatprep.mubr.msk.f32.mxu0 %vm1091_vm4, %v10117_v46  ;;  %v12405_v46 = vld [vmem:[#allocation78_spill] sm:$0xff] }
 0x4e8   :  { %3331 = vmatmul.mubr.f32.gmra.mrb[114].mxu0 %v10110_v53  ;;  %v12404_v53 = vld [vmem:[#allocation76_spill] sm:$0xff] }
 0x4e9   :  { %6999 = vmatprep.mubr.msk.f32.mxu0 %vm1091_vm4, %v10136_v1 }
 0x4ec   :  { %3337 = vmatmul.mubr.f32.gmra.mrb[116].mxu0 %v10129_v61  ;;  %v12406_v61 = vld [vmem:[#allocation31_spill] sm:$0xff] }
 0x4ed   :  { %7000 = vmatprep.mubr.msk.f32.mxu0 %vm1091_vm4, %v10155_v20 }
 0x4f0   :  { %3343 = vmatmul.mubr.f32.gmra.mrb[118].mxu0 %v10148_v15  ;;  %v12408_v15 = vld [vmem:[#allocation8_spill] sm:$0xff] }
 0x4f1   :  { %7001 = vmatprep.mubr.msk.f32.mxu0 %vm1091_vm4, %v10174_v2 }
 0x4f4   :  { %3349 = vmatmul.mubr.f32.gmra.mrb[120].mxu0 %v10167_v13  ;;  %v12409_v13 = vld [vmem:[#allocation59_spill] sm:$0xff] }
 0x4f5   :  { %7002 = vmatprep.mubr.msk.f32.mxu0 %vm1091_vm4, %v10193_v62  ;;  %v12410_v62 = vld [vmem:[#allocation6_spill] sm:$0xff] }
 0x4f8   :  { %3355 = vmatmul.mubr.f32.gmra.mrb[122].mxu0 %v10186_v39 }
 0x4f9   :  { %7003 = vmatprep.mubr.msk.f32.mxu0 %vm1091_vm4, %v10212_v19 }
 0x4fc   :  { %3361 = vmatmul.mubr.f32.gmra.mrb[124].mxu0 %v10205_v5 }
 0x4fd   :  { %7004 = vmatprep.mubr.msk.f32.mxu0 %vm1091_vm4, %v10231_v0 }
 0x500   :  { %3367 = vmatmul.mubr.f32.gmra.mrb[126].mxu0 %v10224_v55 }
 0x501   :  { %7005 = vmatprep.mubr.msk.f32.mxu0 %vm1091_vm4, %v10250_v36 }
 0x504   :  { %3373 = vmatmul.mubr.f32.gmra.mrb[128].mxu0 %v10243_v26  ;;  %v12411_v26 = vld [vmem:[#allocation60_spill] sm:$0xff] }
 0x505   :  { %7006 = vmatprep.mubr.msk.f32.mxu0 %vm1091_vm4, %v10269_v44  ;;  %v12412_v44 = vld [vmem:[#allocation11_spill] sm:$0xff] }
 0x508   :  { %3379 = vmatmul.mubr.f32.gmra.mrb[130].mxu0 %v10262_v34 }
 0x509   :  { %7007 = vmatprep.mubr.msk.f32.mxu0 %vm1091_vm4, %v10288_v32  ;;  %v12407_v32 = vld [vmem:[#allocation30_spill] sm:$0xff] }
 0x50c   :  { %3385 = vmatmul.mubr.f32.gmra.mrb[132].mxu0 %v10281_v38 }
 0x50d   :  { %7008 = vmatprep.mubr.msk.f32.mxu0 %vm1091_vm4, %v10307_v25 }
 0x510   :  { %3391 = vmatmul.mubr.f32.gmra.mrb[134].mxu0 %v10300_v59 }
 0x511   :  { %7009 = vmatprep.mubr.msk.f32.mxu0 %vm1091_vm4, %v10329_v4  ;;  %v12413_v4 = vld [vmem:[#allocation61_spill] sm:$0xff] }
 0x514   :  { %3397 = vmatmul.mubr.f32.gmra.mrb[136].mxu0 %v12399_v56  ;;  %v12421_v56 = vld [vmem:[#allocation65_spill] sm:$0xff] }
 0x515   :  { %7010 = vmatprep.mubr.msk.f32.mxu0 %vm1091_vm4, %v12400_v10 }
 0x518   :  { %3403 = vmatmul.mubr.f32.gmra.mrb[138].mxu0 %v12401_v23 }
 0x519   :  { %7011 = vmatprep.mubr.msk.f32.mxu0 %vm1091_vm4, %v10367_v54 }
 0x51c   :  { %3409 = vmatmul.mubr.f32.gmra.mrb[140].mxu0 %v12402_v35  ;;  %v12422_v35 = vld [vmem:[#allocation13_spill] sm:$0xff] }
 0x51d   :  { %7012 = vmatprep.mubr.msk.f32.mxu0 %vm1091_vm4, %v12403_v11 }
 0x520   :  { %3415 = vmatmul.mubr.f32.gmra.mrb[142].mxu0 %v12404_v53 }
 0x521   :  { %7013 = vmatprep.mubr.msk.f32.mxu0 %vm1091_vm4, %v10405_v17 }
 0x524   :  { %3421 = vmatmul.mubr.f32.gmra.mrb[144].mxu0 %v12405_v46  ;;  %v12423_v46 = vld [vmem:[#allocation16_spill] sm:$0xff] }
 0x525   :  { %7014 = vmatprep.mubr.msk.f32.mxu0 %vm1091_vm4, %v10424_v33  ;;  %v12414_v33 = vld [vmem:[#allocation9_spill] sm:$0xff] }
 0x528   :  { %3427 = vmatmul.mubr.f32.gmra.mrb[146].mxu0 %v12406_v61 }
 0x529   :  { %7015 = vmatprep.mubr.msk.f32.mxu0 %vm1091_vm4, %v10443_v3 }
 0x52c   :  { %3433 = vmatmul.mubr.f32.gmra.mrb[148].mxu0 %v12407_v32 }
 0x52d   :  { %7016 = vmatprep.mubr.msk.f32.mxu0 %vm1091_vm4, %v10462_v6  ;;  %v12415_v6 = vld [vmem:[#allocation62_spill] sm:$0xff] }
 0x530   :  { %3439 = vmatmul.mubr.f32.gmra.mrb[150].mxu0 %v10454_v43 }
 0x531   :  { %7017 = vmatprep.mubr.msk.f32.mxu0 %vm1091_vm4, %v10480_v21 }
 0x534   :  { %3445 = vmatmul.mubr.f32.gmra.mrb[152].mxu0 %v10473_v57 }
 0x535   :  { %7018 = vmatprep.mubr.msk.f32.mxu0 %vm1091_vm4, %v2141_v63 }
 0x538   :  { %3451 = vmatmul.mubr.f32.gmra.mrb[154].mxu0 %v10491_v16 }
 0x5af   :  { %v3314_v1 = vpop.f32.mrb[108].mxu0 }
 0x5b0   :  { %v10575_v20 = vadd.f32 %v3314_v1, %v12408_v15  ;;  %v3316_v36 = vpop.f32.mrb[109].mxu0 }
 0x5b1   :  { %v3458_v2 = vadd.f32 %v3316_v36, %v12409_v13  ;;  %v12424_v36 = vld [vmem:[#allocation66_spill] sm:$0xff] }
 0x5b3   :  { %v3320_v39 = vpop.f32.mrb[110].mxu0  ;;  %7019 = vmatprep.mubr.msk.f32.mxu1 %vm1091_vm4, %v3458_v2 }
 0x5b4   :  { %v10580_v5 = vadd.f32 %v3320_v39, %v12410_v62  ;;  %v3322_v19 = vpop.f32.mrb[111].mxu0  ;;  %v12425_v39 = vld [vmem:[#allocation67_spill] sm:$0xff] }
 0x5b5   :  { %v10583_v55 = vadd.f32 %v3322_v19, %v12411_v26  ;;  %v12426_v26 = vld [vmem:[#allocation14_spill] sm:$0xff] }
 0x5b6   :  { %v7853_v38 = vpack.c.bf16 %v10580_v5, %v10575_v20 }
 0x5b7   :  { %v7851_v0 = vpack.c.bf16 %v10583_v55, %v3458_v2  ;;  %v3326_v34 = vpop.f32.mrb[112].mxu0 }
 0x5b8   :  { %v10589_v59 = vadd.f32 %v3326_v34, %v12412_v44  ;;  %v3328_v25 = vpop.f32.mrb[113].mxu0 }
 0x5b9   :  { %v10592_v54 = vadd.f32 %v3328_v25, %v12413_v4  ;;  %7852 = vmatprep.subr.bf16.mxu1 %v7851_v0 }
 0x5ba   :  { %7854 = vmatpush1.bf16.msra.mxu1 %v7853_v38  ;;  %v12427_v38 = vld [vmem:[#allocation68_spill] sm:$0xff] }
 0x5bb   :  { %v3332_v17 = vpop.f32.mrb[114].mxu0 }
 0x5bc   :  { %v10595_v43 = vadd.f32 %v3332_v17, %v12414_v33  ;;  %v3334_v3 = vpop.f32.mrb[115].mxu0  ;;  %v12428_v33 = vld [vmem:[#allocation19_spill] sm:$0xff] }
 0x5bd   :  { %v10598_v57 = vadd.f32 %v3334_v3, %v12415_v6 }
 0x5be   :  { %v7857_v60 = vpack.c.bf16 %v10595_v43, %v10589_v59 }
 0x5bf   :  { %v7855_v21 = vpack.c.bf16 %v10598_v57, %v10592_v54  ;;  %v3338_v58 = vpop.f32.mrb[116].mxu0 }
 0x5c0   :  { %v10605_v8 = vadd.f32 %v3338_v58, %v12416_v52  ;;  %v3340_v16 = vpop.f32.mrb[117].mxu0  ;;  %v12430_v52 = vld [vmem:[#allocation50_spill] sm:$0xff] }
 0x5c1   :  { %v10608_v50 = vadd.f32 %v3340_v16, %v12417_v49  ;;  %7856 = vmatprep.subr.bf16.mxu1 %v7855_v21  ;;  %v12429_v21 = vld [vmem:[#allocation69_spill] sm:$0xff] }
 0x5c2   :  { %7858 = vmatpush1.bf16.msra.mxu1 %v7857_v60 }
 0x5c3   :  { %v3344_v63 = vpop.f32.mrb[118].mxu0 }
 0x5c4   :  { %v10611_v22 = vadd.f32 %v3344_v63, %v12418_v31  ;;  %v3346_v27 = vpop.f32.mrb[119].mxu0  ;;  %v12431_v63 = vld [vmem:[#allocation49_spill] sm:$0xff] }
 0x5c5   :  { %v10614_v45 = vadd.f32 %v3346_v27, %v12419_v51 }
 0x5c6   :  { %v7861_v48 = vpack.c.bf16 %v10611_v22, %v10605_v8 }
 0x5c7   :  { %v7859_v28 = vpack.c.bf16 %v10614_v45, %v10608_v50  ;;  %v3350_v42 = vpop.f32.mrb[120].mxu0 }
 0x5c8   :  { %v10621_v40 = vadd.f32 %v3350_v42, %v12420_v41  ;;  %v3352_v47 = vpop.f32.mrb[121].mxu0  ;;  %v12432_v42 = vld [vmem:[#allocation17_spill] sm:$0xff] }
 0x5c9   :  { %v10624_v10 = vadd.f32 %v3352_v47, %v12421_v56  ;;  %7860 = vmatprep.subr.bf16.mxu1 %v7859_v28  ;;  %v12433_v47 = vld [vmem:[#allocation23_spill] sm:$0xff] }
 0x5ca   :  { %7862 = vmatpush1.bf16.msra.mxu1 %v7861_v48 }
 0x5cb   :  { %v3356_v23 = vpop.f32.mrb[122].mxu0 }
 0x5cc   :  { %v10627_v11 = vadd.f32 %v3356_v23, %v12422_v35  ;;  %v3358_v53 = vpop.f32.mrb[123].mxu0  ;;  %v12434_v35 = vld [vmem:[#allocation70_spill] sm:$0xff] }
 0x5cd   :  { %v10630_v61 = vadd.f32 %v3358_v53, %v12423_v46 }
 0x5ce   :  { %v7865_v15 = vpack.c.bf16 %v10627_v11, %v10621_v40 }
 0x5cf   :  { %v7863_v32 = vpack.c.bf16 %v10630_v61, %v10624_v10  ;;  %v3362_v1 = vpop.f32.mrb[124].mxu0 }
 0x5d0   :  { %v10637_v13 = vadd.f32 %v3362_v1, %v12424_v36  ;;  %v3364_v2 = vpop.f32.mrb[125].mxu0 }
 0x5d1   :  { %v10640_v62 = vadd.f32 %v3364_v2, %v12425_v39  ;;  %7864 = vmatprep.subr.bf16.mxu1 %v7863_v32  ;;  %v12435_v32 = vld [vmem:[#allocation71_spill] sm:$0xff]  ;;  %v12436_v39 = vld [vmem:[#allocation72_spill] sm:$0xff] }
 0x5d2   :  { %7866 = vmatpush1.bf16.msra.mxu1 %v7865_v15 }
 0x5d3   :  { %v3368_v19 = vpop.f32.mrb[126].mxu0 }
 0x5d4   :  { %v10643_v0 = vadd.f32 %v3368_v19, %v12426_v26  ;;  %v3370_v34 = vpop.f32.mrb[127].mxu0 }
 0x5d5   :  { %v10646_v44 = vadd.f32 %v3370_v34, %v12427_v38  ;;  %v12437_v34 = vld [vmem:[#allocation21_spill] sm:$0xff] }
 0x5d6   :  { %v7869_v17 = vpack.c.bf16 %v10643_v0, %v10637_v13 }
 0x5d7   :  { %v7867_v25 = vpack.c.bf16 %v10646_v44, %v10640_v62  ;;  %v3374_v4 = vpop.f32.mrb[128].mxu0 }
 0x5d8   :  { %v10653_v3 = vadd.f32 %v3374_v4, %v12428_v33  ;;  %v3376_v6 = vpop.f32.mrb[129].mxu0  ;;  %v12438_v4 = vld [vmem:[#allocation24_spill] sm:$0xff] }
 0x5d9   :  { %v10656_v58 = vadd.f32 %v3376_v6, %v12429_v21  ;;  %7868 = vmatprep.subr.bf16.mxu1 %v7867_v25  ;;  %v12439_v6 = vld [vmem:[#allocation22_spill] sm:$0xff] }
 0x5da   :  { %7870 = vmatpush1.bf16.msra.mxu1 %v7869_v17 }
 0x5db   :  { %v3380_v60 = vpop.f32.mrb[130].mxu0 }
 0x5dc   :  { %v10659_v16 = vadd.f32 %v3380_v60, %v12430_v52  ;;  %v3382_v49 = vpop.f32.mrb[131].mxu0 }
 0x5dd   :  { %v10662_v31 = vadd.f32 %v3382_v49, %v12431_v63  ;;  %v12440_v63 = vld [vmem:[#allocation75_spill] sm:$0xff] }
 0x5de   :  { %v7873_v28 = vpack.c.bf16 %v10659_v16, %v10653_v3 }
 0x5df   :  { %v7871_v27 = vpack.c.bf16 %v10662_v31, %v10656_v58  ;;  %v3386_v51 = vpop.f32.mrb[132].mxu0 }
 0x5e0   :  { %v10669_v48 = vadd.f32 %v3386_v51, %v12432_v42  ;;  %v3388_v41 = vpop.f32.mrb[133].mxu0 }
 0x5e1   :  { %v10672_v56 = vadd.f32 %v3388_v41, %v12433_v47  ;;  %7872 = vmatprep.subr.bf16.mxu1 %v7871_v27  ;;  %v12442_v47 = vld [vmem:[#allocation25_spill] sm:$0xff] }
 0x5e2   :  { %7874 = vmatpush1.bf16.msra.mxu1 %v7873_v28  ;;  %v12441_v28 = vld [vmem:[#allocation77_spill] sm:$0xff] }
 0x5e3   :  { %v3392_v23 = vpop.f32.mrb[134].mxu0 }
 0x5e4   :  { %v10675_v53 = vadd.f32 %v3392_v23, %v12434_v35  ;;  %v3394_v46 = vpop.f32.mrb[135].mxu0 }
 0x5e5   :  { %v10678_v1 = vadd.f32 %v3394_v46, %v12435_v32  ;;  %v12443_v46 = vld [vmem:[#allocation28_spill] sm:$0xff] }
 0x5e6   :  { %v7877_v2 = vpack.c.bf16 %v10675_v53, %v10669_v48 }
 0x5e7   :  { %v7875_v15 = vpack.c.bf16 %v10678_v1, %v10672_v56  ;;  %v3398_v36 = vpop.f32.mrb[136].mxu0 }
 0x5e8   :  { %v10685_v19 = vadd.f32 %v3398_v36, %v12436_v39  ;;  %v3400_v26 = vpop.f32.mrb[137].mxu0  ;;  %v12444_v39 = vld [vmem:[#allocation79_spill] sm:$0xff] }
 0x5e9   :  { %v10688_v38 = vadd.f32 %v3400_v26, %v12437_v34  ;;  %7876 = vmatprep.subr.bf16.mxu1 %v7875_v15 }
 0x5ea   :  { %7878 = vmatpush1.bf16.msra.mxu1 %v7877_v2 }
 0x5eb   :  { %v3404_v25 = vpop.f32.mrb[138].mxu0 }
 0x5ec   :  { %v10691_v17 = vadd.f32 %v3404_v25, %v12438_v4  ;;  %v3406_v33 = vpop.f32.mrb[139].mxu0  ;;  %v12445_v25 = vld [vmem:[#allocation26_spill] sm:$0xff] }
 0x5ed   :  { %v10694_v21 = vadd.f32 %v3406_v33, %v12439_v6  ;;  %v12446_v6 = vld [vmem:[#allocation29_spill] sm:$0xff] }
 0x5ee   :  { %v7881_v49 = vpack.c.bf16 %v10691_v17, %v10685_v19 }
 0x5ef   :  { %v7879_v60 = vpack.c.bf16 %v10694_v21, %v10688_v38  ;;  %v3410_v52 = vpop.f32.mrb[140].mxu0 }
 0x5f0   :  { %v10701_v27 = vadd.f32 %v3410_v52, %v12440_v63  ;;  %v3412_v51 = vpop.f32.mrb[141].mxu0 }
 0x5f1   :  { %v10704_v42 = vadd.f32 %v3412_v51, %v12441_v28  ;;  %7880 = vmatprep.subr.bf16.mxu1 %v7879_v60 }
 0x5f2   :  { %7882 = vmatpush1.bf16.msra.mxu1 %v7881_v49  ;;  %v12447_v49 = vld [vmem:[#allocation32_spill] sm:$0xff] }
 0x5f3   :  { %v3416_v41 = vpop.f32.mrb[142].mxu0 }
 0x5f4   :  { %v10707_v23 = vadd.f32 %v3416_v41, %v12442_v47  ;;  %v3418_v35 = vpop.f32.mrb[143].mxu0 }
 0x5f5   :  { %v10710_v32 = vadd.f32 %v3418_v35, %v12443_v46 }
 0x5f6   :  { %v7885_v2 = vpack.c.bf16 %v10707_v23, %v10701_v27 }
 0x5f7   :  { %v7883_v15 = vpack.c.bf16 %v10710_v32, %v10704_v42  ;;  %v3422_v36 = vpop.f32.mrb[144].mxu0 }
 0x5f8   :  { %v10717_v26 = vadd.f32 %v3422_v36, %v12444_v39  ;;  %v3424_v34 = vpop.f32.mrb[145].mxu0 }
 0x5f9   :  { %v10720_v4 = vadd.f32 %v3424_v34, %v12445_v25  ;;  %7884 = vmatprep.subr.bf16.mxu1 %v7883_v15 }
 0x5fa   :  { %7886 = vmatpush1.bf16.msra.mxu1 %v7885_v2 }
 0x5fb   :  { %v3428_v33 = vpop.f32.mrb[146].mxu0 }
 0x5fc   :  { %v10723_v60 = vadd.f32 %v3428_v33, %v12446_v6  ;;  %v3430_v52 = vpop.f32.mrb[147].mxu0 }
 0x5fd   :  { %v10726_v63 = vadd.f32 %v3430_v52, %v12447_v49 }
 0x5fe   :  { %v7889_v41 = vpack.c.bf16 %v10723_v60, %v10717_v26 }
 0x5ff   :  { %v7887_v51 = vpack.c.bf16 %v10726_v63, %v10720_v4  ;;  %v3434_v28 = vpop.f32.mrb[148].mxu0 }
 0x600   :  { %v10733_v47 = vadd.f32 %v3434_v28, %v10450_v18  ;;  %v3436_v35 = vpop.f32.mrb[149].mxu0 }
 0x601   :  { %v3498_v46 = vadd.f32 %v3436_v35, %v10456_v14  ;;  %7888 = vmatprep.subr.bf16.mxu1 %v7887_v51 }
 0x602   :  { %7890 = vmatpush1.bf16.msra.mxu1 %v7889_v41 }
 0x603   :  { %v3440_v15 = vpop.f32.mrb[150].mxu0 }
 0x604   :  { %v3499_v36 = vadd.f32 %v3440_v15, %v10469_v12  ;;  %v3442_v2 = vpop.f32.mrb[151].mxu0 }
 0x605   :  { %v3500_v39 = vadd.f32 %v3442_v2, %v10475_v24 }
 0x606   :  { %v7893_v33 = vpack.c.bf16 %v3499_v36, %v10733_v47 }
 0x607   :  { %v7891_v34 = vpack.c.bf16 %v3500_v39, %v3498_v46  ;;  %v3446_v25 = vpop.f32.mrb[152].mxu0 }
 0x608   :  { %v3501_v6 = vadd.f32 %v3446_v25, %v10487_v9  ;;  %v3448_v52 = vpop.f32.mrb[153].mxu0 }
 0x609   :  { %v3502_v18 = vadd.f32 %v3448_v52, %v10493_v30  ;;  %7892 = vmatprep.subr.bf16.mxu1 %v7891_v34 }
 0x60a   :  { %7894 = vmatpush1.bf16.msra.mxu1 %v7893_v33 }
 0x60b   :  { %v3452_v14 = vpop.f32.mrb[154].mxu0 }
 0x60c   :  { %v3503_v49 = vadd.f32 %v3452_v14, %v10500_v29  ;;  %v3454_v51 = vpop.f32.mrb[155].mxu0 }
 0x60d   :  { %v3504_v12 = vadd.f32 %v3454_v51, %v10503_v37 }
 0x60e   :  { %v7897_v41 = vpack.c.bf16 %v3503_v49, %v3501_v6 }
 0x60f   :  { %v7895_v28 = vpack.c.bf16 %v3504_v12, %v3502_v18 }
 0x611   :  { %7896 = vmatprep.subr.bf16.mxu1 %v7895_v28 }
 0x612   :  { %7898 = vmatpush1.bf16.msra.mxu1 %v7897_v41 }
 0x615   :  { %3642 = vmatmul.mubr.f32.vlgmr.msra.gmra.mrb[108].mxu1 %v10575_v20 }
 0x616   :  { %7020 = vmatprep.mubr.msk.f32.mxu1 %vm1091_vm4, %v10583_v55 }
 0x619   :  { %3648 = vmatmul.mubr.f32.gmra.mrb[110].mxu1 %v10580_v5 }
 0x61a   :  { %7021 = vmatprep.mubr.msk.f32.mxu1 %vm1091_vm4, %v10592_v54 }
 0x61d   :  { %3654 = vmatmul.mubr.f32.gmra.mrb[112].mxu1 %v10589_v59 }
 0x61e   :  { %7022 = vmatprep.mubr.msk.f32.mxu1 %vm1091_vm4, %v10598_v57 }
 0x621   :  { %3660 = vmatmul.mubr.f32.gmra.mrb[114].mxu1 %v10595_v43 }
 0x622   :  { %7023 = vmatprep.mubr.msk.f32.mxu1 %vm1091_vm4, %v10608_v50 }
 0x625   :  { %3666 = vmatmul.mubr.f32.gmra.mrb[116].mxu1 %v10605_v8 }
 0x626   :  { %7024 = vmatprep.mubr.msk.f32.mxu1 %vm1091_vm4, %v10614_v45 }
 0x629   :  { %3672 = vmatmul.mubr.f32.gmra.mrb[118].mxu1 %v10611_v22 }
 0x62a   :  { %7025 = vmatprep.mubr.msk.f32.mxu1 %vm1091_vm4, %v10624_v10 }
 0x62d   :  { %3678 = vmatmul.mubr.f32.gmra.mrb[120].mxu1 %v10621_v40 }
 0x62e   :  { %7026 = vmatprep.mubr.msk.f32.mxu1 %vm1091_vm4, %v10630_v61 }
 0x631   :  { %3684 = vmatmul.mubr.f32.gmra.mrb[122].mxu1 %v10627_v11 }
 0x632   :  { %7027 = vmatprep.mubr.msk.f32.mxu1 %vm1091_vm4, %v10640_v62 }
 0x635   :  { %3690 = vmatmul.mubr.f32.gmra.mrb[124].mxu1 %v10637_v13 }
 0x636   :  { %7028 = vmatprep.mubr.msk.f32.mxu1 %vm1091_vm4, %v10646_v44 }
 0x639   :  { %3696 = vmatmul.mubr.f32.gmra.mrb[126].mxu1 %v10643_v0 }
 0x63a   :  { %7029 = vmatprep.mubr.msk.f32.mxu1 %vm1091_vm4, %v10656_v58 }
 0x63d   :  { %3702 = vmatmul.mubr.f32.gmra.mrb[128].mxu1 %v10653_v3 }
 0x63e   :  { %7030 = vmatprep.mubr.msk.f32.mxu1 %vm1091_vm4, %v10662_v31 }
 0x641   :  { %3708 = vmatmul.mubr.f32.gmra.mrb[130].mxu1 %v10659_v16 }
 0x642   :  { %7031 = vmatprep.mubr.msk.f32.mxu1 %vm1091_vm4, %v10672_v56 }
 0x645   :  { %3714 = vmatmul.mubr.f32.gmra.mrb[132].mxu1 %v10669_v48 }
 0x646   :  { %7032 = vmatprep.mubr.msk.f32.mxu1 %vm1091_vm4, %v10678_v1 }
 0x649   :  { %3720 = vmatmul.mubr.f32.gmra.mrb[134].mxu1 %v10675_v53 }
 0x64a   :  { %7033 = vmatprep.mubr.msk.f32.mxu1 %vm1091_vm4, %v10688_v38 }
 0x64d   :  { %3726 = vmatmul.mubr.f32.gmra.mrb[136].mxu1 %v10685_v19 }
 0x64e   :  { %7034 = vmatprep.mubr.msk.f32.mxu1 %vm1091_vm4, %v10694_v21 }
 0x651   :  { %3732 = vmatmul.mubr.f32.gmra.mrb[138].mxu1 %v10691_v17 }
 0x652   :  { %7035 = vmatprep.mubr.msk.f32.mxu1 %vm1091_vm4, %v10704_v42 }
 0x655   :  { %3738 = vmatmul.mubr.f32.gmra.mrb[140].mxu1 %v10701_v27 }
 0x656   :  { %7036 = vmatprep.mubr.msk.f32.mxu1 %vm1091_vm4, %v10710_v32 }
 0x659   :  { %3744 = vmatmul.mubr.f32.gmra.mrb[142].mxu1 %v10707_v23 }
 0x65a   :  { %7037 = vmatprep.mubr.msk.f32.mxu1 %vm1091_vm4, %v10720_v4 }
 0x65d   :  { %3750 = vmatmul.mubr.f32.gmra.mrb[144].mxu1 %v10717_v26 }
 0x65e   :  { %7038 = vmatprep.mubr.msk.f32.mxu1 %vm1091_vm4, %v10726_v63 }
 0x661   :  { %3756 = vmatmul.mubr.f32.gmra.mrb[146].mxu1 %v10723_v60 }
 0x662   :  { %7039 = vmatprep.mubr.msk.f32.mxu1 %vm1091_vm4, %v3498_v46 }
 0x665   :  { %3762 = vmatmul.mubr.f32.gmra.mrb[148].mxu1 %v10733_v47 }
 0x666   :  { %7040 = vmatprep.mubr.msk.f32.mxu1 %vm1091_vm4, %v3500_v39 }
 0x669   :  { %3768 = vmatmul.mubr.f32.gmra.mrb[150].mxu1 %v3499_v36 }
 0x66a   :  { %7041 = vmatprep.mubr.msk.f32.mxu1 %vm1091_vm4, %v3502_v18 }
 0x66d   :  { %3774 = vmatmul.mubr.f32.gmra.mrb[152].mxu1 %v3501_v6 }
 0x66e   :  { %7042 = vmatprep.mubr.msk.f32.mxu1 %vm1091_vm4, %v3504_v12 }
 0x671   :  { %3780 = vmatmul.mubr.f32.gmra.mrb[154].mxu1 %v3503_v49 }
 0x6e8   :  { %v10806_v24 = vpop.f32.mrb[108].mxu1 }
 0x6e9   :  { %v3645_v9 = vpop.f32.mrb[109].mxu1 }
 0x6ea   :  { %7043 = vmatprep.mubr.msk.f32.mxu0 %vm1091_vm4, %v3645_v9 }
 0x6ec   :  { %v10809_v30 = vpop.f32.mrb[110].mxu1 }
 0x6ed   :  { %v7901_v29 = vpack.c.bf16 %v10809_v30, %v10806_v24  ;;  %v10813_v37 = vpop.f32.mrb[111].mxu1 }
 0x6ee   :  { %v7899_v20 = vpack.c.bf16 %v10813_v37, %v3645_v9 }
 0x6f0   :  { %v10816_v5 = vpop.f32.mrb[112].mxu1  ;;  %7900 = vmatprep.subr.bf16.mxu0 %v7899_v20 }
 0x6f1   :  { %v10818_v55 = vpop.f32.mrb[113].mxu1  ;;  %7902 = vmatpush1.bf16.msra.mxu0 %v7901_v29 }
 0x6f4   :  { %v10820_v59 = vpop.f32.mrb[114].mxu1 }
 0x6f5   :  { %v7905_v54 = vpack.c.bf16 %v10820_v59, %v10816_v5  ;;  %v10824_v43 = vpop.f32.mrb[115].mxu1 }
 0x6f6   :  { %v7903_v57 = vpack.c.bf16 %v10824_v43, %v10818_v55 }
 0x6f8   :  { %v10828_v8 = vpop.f32.mrb[116].mxu1  ;;  %7904 = vmatprep.subr.bf16.mxu0 %v7903_v57 }
 0x6f9   :  { %v10830_v50 = vpop.f32.mrb[117].mxu1  ;;  %7906 = vmatpush1.bf16.msra.mxu0 %v7905_v54 }
 0x6fc   :  { %v10832_v22 = vpop.f32.mrb[118].mxu1 }
 0x6fd   :  { %v7909_v45 = vpack.c.bf16 %v10832_v22, %v10828_v8  ;;  %v10836_v40 = vpop.f32.mrb[119].mxu1 }
 0x6fe   :  { %v7907_v10 = vpack.c.bf16 %v10836_v40, %v10830_v50 }
 0x700   :  { %v10840_v11 = vpop.f32.mrb[120].mxu1  ;;  %7908 = vmatprep.subr.bf16.mxu0 %v7907_v10 }
 0x701   :  { %v10842_v61 = vpop.f32.mrb[121].mxu1  ;;  %7910 = vmatpush1.bf16.msra.mxu0 %v7909_v45 }
 0x704   :  { %v10844_v13 = vpop.f32.mrb[122].mxu1 }
 0x705   :  { %v7913_v62 = vpack.c.bf16 %v10844_v13, %v10840_v11  ;;  %v10848_v0 = vpop.f32.mrb[123].mxu1 }
 0x706   :  { %v7911_v44 = vpack.c.bf16 %v10848_v0, %v10842_v61 }
 0x708   :  { %v10852_v3 = vpop.f32.mrb[124].mxu1  ;;  %7912 = vmatprep.subr.bf16.mxu0 %v7911_v44 }
 0x709   :  { %v10854_v58 = vpop.f32.mrb[125].mxu1  ;;  %7914 = vmatpush1.bf16.msra.mxu0 %v7913_v62 }
 0x70c   :  { %v10856_v16 = vpop.f32.mrb[126].mxu1 }
 0x70d   :  { %v7917_v31 = vpack.c.bf16 %v10856_v16, %v10852_v3  ;;  %v10860_v48 = vpop.f32.mrb[127].mxu1 }
 0x70e   :  { %v7915_v56 = vpack.c.bf16 %v10860_v48, %v10854_v58 }
 0x710   :  { %v10864_v53 = vpop.f32.mrb[128].mxu1  ;;  %7916 = vmatprep.subr.bf16.mxu0 %v7915_v56 }
 0x711   :  { %v10866_v1 = vpop.f32.mrb[129].mxu1  ;;  %7918 = vmatpush1.bf16.msra.mxu0 %v7917_v31 }
 0x714   :  { %v10868_v19 = vpop.f32.mrb[130].mxu1 }
 0x715   :  { %v7921_v38 = vpack.c.bf16 %v10868_v19, %v10864_v53  ;;  %v10872_v17 = vpop.f32.mrb[131].mxu1 }
 0x716   :  { %v7919_v21 = vpack.c.bf16 %v10872_v17, %v10866_v1 }
 0x718   :  { %v10876_v27 = vpop.f32.mrb[132].mxu1  ;;  %7920 = vmatprep.subr.bf16.mxu0 %v7919_v21 }
 0x719   :  { %v10878_v42 = vpop.f32.mrb[133].mxu1  ;;  %7922 = vmatpush1.bf16.msra.mxu0 %v7921_v38 }
 0x71c   :  { %v10880_v23 = vpop.f32.mrb[134].mxu1 }
 0x71d   :  { %v7925_v32 = vpack.c.bf16 %v10880_v23, %v10876_v27  ;;  %v10884_v26 = vpop.f32.mrb[135].mxu1 }
 0x71e   :  { %v7923_v4 = vpack.c.bf16 %v10884_v26, %v10878_v42 }
 0x720   :  { %v10888_v60 = vpop.f32.mrb[136].mxu1  ;;  %7924 = vmatprep.subr.bf16.mxu0 %v7923_v4 }
 0x721   :  { %v10890_v63 = vpop.f32.mrb[137].mxu1  ;;  %7926 = vmatpush1.bf16.msra.mxu0 %v7925_v32 }
 0x724   :  { %v10892_v47 = vpop.f32.mrb[138].mxu1 }
 0x725   :  { %v7929_v35 = vpack.c.bf16 %v10892_v47, %v10888_v60  ;;  %v10896_v46 = vpop.f32.mrb[139].mxu1 }
 0x726   :  { %v7927_v15 = vpack.c.bf16 %v10896_v46, %v10890_v63 }
 0x728   :  { %v10900_v36 = vpop.f32.mrb[140].mxu1  ;;  %7928 = vmatprep.subr.bf16.mxu0 %v7927_v15 }
 0x729   :  { %v10902_v2 = vpop.f32.mrb[141].mxu1  ;;  %7930 = vmatpush1.bf16.msra.mxu0 %v7929_v35 }
 0x72c   :  { %v10904_v39 = vpop.f32.mrb[142].mxu1 }
 0x72d   :  { %v7933_v34 = vpack.c.bf16 %v10904_v39, %v10900_v36  ;;  %v3747_v25 = vpop.f32.mrb[143].mxu1 }
 0x72e   :  { %v7931_v33 = vpack.c.bf16 %v3747_v25, %v10902_v2 }
 0x730   :  { %v3751_v6 = vpop.f32.mrb[144].mxu1  ;;  %7932 = vmatprep.subr.bf16.mxu0 %v7931_v33 }
 0x731   :  { %v3753_v52 = vpop.f32.mrb[145].mxu1  ;;  %7934 = vmatpush1.bf16.msra.mxu0 %v7933_v34 }
 0x734   :  { %v3757_v18 = vpop.f32.mrb[146].mxu1 }
 0x735   :  { %v7937_v14 = vpack.c.bf16 %v3757_v18, %v3751_v6  ;;  %v3759_v49 = vpop.f32.mrb[147].mxu1 }
 0x736   :  { %v7935_v51 = vpack.c.bf16 %v3759_v49, %v3753_v52 }
 0x738   :  { %v3763_v12 = vpop.f32.mrb[148].mxu1  ;;  %7936 = vmatprep.subr.bf16.mxu0 %v7935_v51 }
 0x739   :  { %v3765_v28 = vpop.f32.mrb[149].mxu1  ;;  %7938 = vmatpush1.bf16.msra.mxu0 %v7937_v14 }
 0x73c   :  { %v3769_v41 = vpop.f32.mrb[150].mxu1 }
 0x73d   :  { %v7941_v9 = vpack.c.bf16 %v3769_v41, %v3763_v12  ;;  %v3771_v29 = vpop.f32.mrb[151].mxu1 }
 0x73e   :  { %v7939_v20 = vpack.c.bf16 %v3771_v29, %v3765_v28 }
 0x740   :  { %v3775_v54 = vpop.f32.mrb[152].mxu1  ;;  %7940 = vmatprep.subr.bf16.mxu0 %v7939_v20 }
 0x741   :  { %v3777_v57 = vpop.f32.mrb[153].mxu1  ;;  %7942 = vmatpush1.bf16.msra.mxu0 %v7941_v9 }
 0x744   :  { %v3781_v45 = vpop.f32.mrb[154].mxu1 }
 0x745   :  { %v7945_v10 = vpack.c.bf16 %v3781_v45, %v3775_v54  ;;  %v3783_v62 = vpop.f32.mrb[155].mxu1 }
 0x746   :  { %v7943_v44 = vpack.c.bf16 %v3783_v62, %v3777_v57 }
 0x748   :  { %7944 = vmatprep.subr.bf16.mxu0 %v7943_v44 }
 0x749   :  { %7946 = vmatpush1.bf16.msra.mxu0 %v7945_v10 }
 0x74c   :  { %3923 = vmatmul.mubr.f32.vlgmr.msra.gmra.mrb[156].mxu0 %v10806_v24 }
 0x74d   :  { %7044 = vmatprep.mubr.msk.f32.mxu0 %vm1091_vm4, %v10813_v37 }
 0x750   :  { %3929 = vmatmul.mubr.f32.gmra.mrb[158].mxu0 %v10809_v30 }
 0x751   :  { %7045 = vmatprep.mubr.msk.f32.mxu0 %vm1091_vm4, %v10818_v55 }
 0x754   :  { %3935 = vmatmul.mubr.f32.gmra.mrb[160].mxu0 %v10816_v5 }
 0x755   :  { %7046 = vmatprep.mubr.msk.f32.mxu0 %vm1091_vm4, %v10824_v43 }
 0x758   :  { %3941 = vmatmul.mubr.f32.gmra.mrb[162].mxu0 %v10820_v59 }
 0x759   :  { %7047 = vmatprep.mubr.msk.f32.mxu0 %vm1091_vm4, %v10830_v50 }
 0x75c   :  { %3947 = vmatmul.mubr.f32.gmra.mrb[164].mxu0 %v10828_v8 }
 0x75d   :  { %7048 = vmatprep.mubr.msk.f32.mxu0 %vm1091_vm4, %v10836_v40 }
 0x760   :  { %3953 = vmatmul.mubr.f32.gmra.mrb[166].mxu0 %v10832_v22 }
 0x761   :  { %7049 = vmatprep.mubr.msk.f32.mxu0 %vm1091_vm4, %v10842_v61 }
 0x764   :  { %3959 = vmatmul.mubr.f32.gmra.mrb[168].mxu0 %v10840_v11 }
 0x765   :  { %7050 = vmatprep.mubr.msk.f32.mxu0 %vm1091_vm4, %v10848_v0 }
 0x768   :  { %3965 = vmatmul.mubr.f32.gmra.mrb[170].mxu0 %v10844_v13 }
 0x769   :  { %7051 = vmatprep.mubr.msk.f32.mxu0 %vm1091_vm4, %v10854_v58 }
 0x76c   :  { %3971 = vmatmul.mubr.f32.gmra.mrb[172].mxu0 %v10852_v3 }
 0x76d   :  { %7052 = vmatprep.mubr.msk.f32.mxu0 %vm1091_vm4, %v10860_v48 }
 0x770   :  { %3977 = vmatmul.mubr.f32.gmra.mrb[174].mxu0 %v10856_v16 }
 0x771   :  { %7053 = vmatprep.mubr.msk.f32.mxu0 %vm1091_vm4, %v10866_v1 }
 0x774   :  { %3983 = vmatmul.mubr.f32.gmra.mrb[176].mxu0 %v10864_v53 }
 0x775   :  { %7054 = vmatprep.mubr.msk.f32.mxu0 %vm1091_vm4, %v10872_v17 }
 0x778   :  { %3989 = vmatmul.mubr.f32.gmra.mrb[178].mxu0 %v10868_v19 }
 0x779   :  { %7055 = vmatprep.mubr.msk.f32.mxu0 %vm1091_vm4, %v10878_v42 }
 0x77c   :  { %3995 = vmatmul.mubr.f32.gmra.mrb[180].mxu0 %v10876_v27 }
 0x77d   :  { %7056 = vmatprep.mubr.msk.f32.mxu0 %vm1091_vm4, %v10884_v26 }
 0x780   :  { %4001 = vmatmul.mubr.f32.gmra.mrb[182].mxu0 %v10880_v23 }
 0x781   :  { %7057 = vmatprep.mubr.msk.f32.mxu0 %vm1091_vm4, %v10890_v63 }
 0x784   :  { %4007 = vmatmul.mubr.f32.gmra.mrb[184].mxu0 %v10888_v60 }
 0x785   :  { %7058 = vmatprep.mubr.msk.f32.mxu0 %vm1091_vm4, %v10896_v46 }
 0x788   :  { %4013 = vmatmul.mubr.f32.gmra.mrb[186].mxu0 %v10892_v47 }
 0x789   :  { %7059 = vmatprep.mubr.msk.f32.mxu0 %vm1091_vm4, %v10902_v2 }
 0x78c   :  { %4019 = vmatmul.mubr.f32.gmra.mrb[188].mxu0 %v10900_v36 }
 0x78d   :  { %7060 = vmatprep.mubr.msk.f32.mxu0 %vm1091_vm4, %v3747_v25 }
 0x790   :  { %4025 = vmatmul.mubr.f32.gmra.mrb[190].mxu0 %v10904_v39 }
 0x791   :  { %7061 = vmatprep.mubr.msk.f32.mxu0 %vm1091_vm4, %v3753_v52 }
 0x794   :  { %4031 = vmatmul.mubr.f32.gmra.mrb[192].mxu0 %v3751_v6 }
 0x795   :  { %7062 = vmatprep.mubr.msk.f32.mxu0 %vm1091_vm4, %v3759_v49 }
 0x798   :  { %4037 = vmatmul.mubr.f32.gmra.mrb[194].mxu0 %v3757_v18 }
 0x799   :  { %7063 = vmatprep.mubr.msk.f32.mxu0 %vm1091_vm4, %v3765_v28 }
 0x79c   :  { %4043 = vmatmul.mubr.f32.gmra.mrb[196].mxu0 %v3763_v12 }
 0x79d   :  { %7064 = vmatprep.mubr.msk.f32.mxu0 %vm1091_vm4, %v3771_v29 }
 0x7a0   :  { %4049 = vmatmul.mubr.f32.gmra.mrb[198].mxu0 %v3769_v41 }
 0x7a1   :  { %7065 = vmatprep.mubr.msk.f32.mxu0 %vm1091_vm4, %v3777_v57 }
 0x7a4   :  { %4055 = vmatmul.mubr.f32.gmra.mrb[200].mxu0 %v3775_v54 }
 0x7a5   :  { %7066 = vmatprep.mubr.msk.f32.mxu0 %vm1091_vm4, %v3783_v62 }
 0x7a8   :  { %4061 = vmatmul.mubr.f32.gmra.mrb[202].mxu0 %v3781_v45 }
 0x81f   :  { %v10966_v24 = vpop.f32.mrb[156].mxu0 }
 0x820   :  { %v3926_v30 = vpop.f32.mrb[157].mxu0 }
 0x821   :  { %7067 = vmatprep.mubr.msk.f32.mxu1 %vm1091_vm4, %v3926_v30 }
 0x823   :  { %v10969_v37 = vpop.f32.mrb[158].mxu0 }
 0x824   :  { %v7949_v5 = vpack.c.bf16 %v10969_v37, %v10966_v24  ;;  %v10973_v55 = vpop.f32.mrb[159].mxu0 }
 0x825   :  { %v7947_v59 = vpack.c.bf16 %v10973_v55, %v3926_v30 }
 0x827   :  { %v10976_v43 = vpop.f32.mrb[160].mxu0  ;;  %7948 = vmatprep.subr.bf16.mxu1 %v7947_v59 }
 0x828   :  { %v10978_v8 = vpop.f32.mrb[161].mxu0  ;;  %7950 = vmatpush1.bf16.msra.mxu1 %v7949_v5 }
 0x82b   :  { %v10980_v50 = vpop.f32.mrb[162].mxu0 }
 0x82c   :  { %v7953_v22 = vpack.c.bf16 %v10980_v50, %v10976_v43  ;;  %v10984_v40 = vpop.f32.mrb[163].mxu0 }
 0x82d   :  { %v7951_v11 = vpack.c.bf16 %v10984_v40, %v10978_v8 }
 0x82f   :  { %v10988_v61 = vpop.f32.mrb[164].mxu0  ;;  %7952 = vmatprep.subr.bf16.mxu1 %v7951_v11 }
 0x830   :  { %v10990_v13 = vpop.f32.mrb[165].mxu0  ;;  %7954 = vmatpush1.bf16.msra.mxu1 %v7953_v22 }
 0x833   :  { %v10992_v0 = vpop.f32.mrb[166].mxu0 }
 0x834   :  { %v7957_v3 = vpack.c.bf16 %v10992_v0, %v10988_v61  ;;  %v10996_v58 = vpop.f32.mrb[167].mxu0 }
 0x835   :  { %v7955_v16 = vpack.c.bf16 %v10996_v58, %v10990_v13 }
 0x837   :  { %v11000_v31 = vpop.f32.mrb[168].mxu0  ;;  %7956 = vmatprep.subr.bf16.mxu1 %v7955_v16 }
 0x838   :  { %v11002_v48 = vpop.f32.mrb[169].mxu0  ;;  %7958 = vmatpush1.bf16.msra.mxu1 %v7957_v3 }
 0x83b   :  { %v11004_v56 = vpop.f32.mrb[170].mxu0 }
 0x83c   :  { %v7961_v53 = vpack.c.bf16 %v11004_v56, %v11000_v31  ;;  %v11008_v1 = vpop.f32.mrb[171].mxu0 }
 0x83d   :  { %v7959_v19 = vpack.c.bf16 %v11008_v1, %v11002_v48 }
 0x83f   :  { %v11012_v38 = vpop.f32.mrb[172].mxu0  ;;  %7960 = vmatprep.subr.bf16.mxu1 %v7959_v19 }
 0x840   :  { %v11014_v17 = vpop.f32.mrb[173].mxu0  ;;  %7962 = vmatpush1.bf16.msra.mxu1 %v7961_v53 }
 0x843   :  { %v11016_v21 = vpop.f32.mrb[174].mxu0 }
 0x844   :  { %v7965_v27 = vpack.c.bf16 %v11016_v21, %v11012_v38  ;;  %v11020_v42 = vpop.f32.mrb[175].mxu0 }
 0x845   :  { %v7963_v23 = vpack.c.bf16 %v11020_v42, %v11014_v17 }
 0x847   :  { %v11024_v32 = vpop.f32.mrb[176].mxu0  ;;  %7964 = vmatprep.subr.bf16.mxu1 %v7963_v23 }
 0x848   :  { %v11026_v26 = vpop.f32.mrb[177].mxu0  ;;  %7966 = vmatpush1.bf16.msra.mxu1 %v7965_v27  ;;  %v12448_v27 = vmov 0.0|0.0  }
 0x84b   :  { %v11028_v4 = vpop.f32.mrb[178].mxu0 }
 0x84c   :  { %v7969_v60 = vpack.c.bf16 %v11028_v4, %v11024_v32  ;;  %v11032_v63 = vpop.f32.mrb[179].mxu0 }
 0x84d   :  { %v7967_v47 = vpack.c.bf16 %v11032_v63, %v11026_v26 }
 0x84f   :  { %v11036_v35 = vpop.f32.mrb[180].mxu0  ;;  %7968 = vmatprep.subr.bf16.mxu1 %v7967_v47 }
 0x850   :  { %v11038_v46 = vpop.f32.mrb[181].mxu0  ;;  %7970 = vmatpush1.bf16.msra.mxu1 %v7969_v60 }
 0x853   :  { %v11040_v15 = vpop.f32.mrb[182].mxu0 }
 0x854   :  { %v7973_v36 = vpack.c.bf16 %v11040_v15, %v11036_v35  ;;  %v11044_v2 = vpop.f32.mrb[183].mxu0 }
 0x855   :  { %v7971_v39 = vpack.c.bf16 %v11044_v2, %v11038_v46 }
 0x857   :  { %v11048_v34 = vpop.f32.mrb[184].mxu0  ;;  %7972 = vmatprep.subr.bf16.mxu1 %v7971_v39 }
 0x858   :  { %v11050_v25 = vpop.f32.mrb[185].mxu0  ;;  %7974 = vmatpush1.bf16.msra.mxu1 %v7973_v36 }
 0x85b   :  { %v11052_v33 = vpop.f32.mrb[186].mxu0 }
 0x85c   :  { %v7977_v6 = vpack.c.bf16 %v11052_v33, %v11048_v34  ;;  %v11056_v52 = vpop.f32.mrb[187].mxu0 }
 0x85d   :  { %v7975_v18 = vpack.c.bf16 %v11056_v52, %v11050_v25 }
 0x85f   :  { %v11060_v14 = vpop.f32.mrb[188].mxu0  ;;  %7976 = vmatprep.subr.bf16.mxu1 %v7975_v18 }
 0x860   :  { %v11062_v49 = vpop.f32.mrb[189].mxu0  ;;  %7978 = vmatpush1.bf16.msra.mxu1 %v7977_v6 }
 0x863   :  { %v11064_v51 = vpop.f32.mrb[190].mxu0 }
 0x864   :  { %v7981_v12 = vpack.c.bf16 %v11064_v51, %v11060_v14  ;;  %v4028_v28 = vpop.f32.mrb[191].mxu0 }
 0x865   :  { %v7979_v41 = vpack.c.bf16 %v4028_v28, %v11062_v49 }
 0x867   :  { %v11069_v9 = vpop.f32.mrb[192].mxu0  ;;  %7980 = vmatprep.subr.bf16.mxu1 %v7979_v41 }
 0x868   :  { %v4034_v29 = vpop.f32.mrb[193].mxu0  ;;  %7982 = vmatpush1.bf16.msra.mxu1 %v7981_v12 }
 0x86b   :  { %v4038_v20 = vpop.f32.mrb[194].mxu0 }
 0x86c   :  { %v7985_v54 = vpack.c.bf16 %v4038_v20, %v11069_v9  ;;  %v4040_v57 = vpop.f32.mrb[195].mxu0 }
 0x86d   :  { %v7983_v45 = vpack.c.bf16 %v4040_v57, %v4034_v29 }
 0x86f   :  { %v4044_v10 = vpop.f32.mrb[196].mxu0  ;;  %7984 = vmatprep.subr.bf16.mxu1 %v7983_v45  ;;  %v4677_v45 = vld [vmem:[%s11817_s3] sm:$0xff] }
 0x870   :  { %v4046_v62 = vpop.f32.mrb[197].mxu0  ;;  %7986 = vmatpush1.bf16.msra.mxu1 %v7985_v54 }
 0x873   :  { %v4050_v44 = vpop.f32.mrb[198].mxu0 }
 0x874   :  { %v7989_v30 = vpack.c.bf16 %v4050_v44, %v4044_v10  ;;  %v4052_v5 = vpop.f32.mrb[199].mxu0 }
 0x875   :  { %v7987_v59 = vpack.c.bf16 %v4052_v5, %v4046_v62 }
 0x877   :  { %v4056_v22 = vpop.f32.mrb[200].mxu0  ;;  %7988 = vmatprep.subr.bf16.mxu1 %v7987_v59 }
 0x878   :  { %v4058_v11 = vpop.f32.mrb[201].mxu0  ;;  %7990 = vmatpush1.bf16.msra.mxu1 %v7989_v30 }
 0x87b   :  { %v4062_v3 = vpop.f32.mrb[202].mxu0 }
 0x87c   :  { %v7993_v16 = vpack.c.bf16 %v4062_v3, %v4056_v22  ;;  %v4064_v53 = vpop.f32.mrb[203].mxu0 }
 0x87d   :  { %v7991_v19 = vpack.c.bf16 %v4064_v53, %v4058_v11 }
 0x87f   :  { %7992 = vmatprep.subr.bf16.mxu1 %v7991_v19 }
 0x880   :  { %7994 = vmatpush1.bf16.msra.mxu1 %v7993_v16 }
 0x881   :  { %8043 = vmatprep.subr.bf16.mxu1 %v12448_v27 }
 0x883   :  { %4204 = vmatmul.mubr.f32.vlgmr.msra.gmra.mrb[156].mxu1 %v10966_v24 }
 0x884   :  { %7068 = vmatprep.mubr.msk.f32.mxu1 %vm1091_vm4, %v10973_v55 }
 0x887   :  { %4210 = vmatmul.mubr.f32.gmra.mrb[158].mxu1 %v10969_v37 }
 0x888   :  { %7069 = vmatprep.mubr.msk.f32.mxu1 %vm1091_vm4, %v10978_v8 }
 0x88b   :  { %4216 = vmatmul.mubr.f32.gmra.mrb[160].mxu1 %v10976_v43 }
 0x88c   :  { %7070 = vmatprep.mubr.msk.f32.mxu1 %vm1091_vm4, %v10984_v40 }
 0x88f   :  { %4222 = vmatmul.mubr.f32.gmra.mrb[162].mxu1 %v10980_v50 }
 0x890   :  { %7071 = vmatprep.mubr.msk.f32.mxu1 %vm1091_vm4, %v10990_v13 }
 0x893   :  { %4228 = vmatmul.mubr.f32.gmra.mrb[164].mxu1 %v10988_v61 }
 0x894   :  { %7072 = vmatprep.mubr.msk.f32.mxu1 %vm1091_vm4, %v10996_v58 }
 0x897   :  { %4234 = vmatmul.mubr.f32.gmra.mrb[166].mxu1 %v10992_v0 }
 0x898   :  { %7073 = vmatprep.mubr.msk.f32.mxu1 %vm1091_vm4, %v11002_v48 }
 0x89b   :  { %4240 = vmatmul.mubr.f32.gmra.mrb[168].mxu1 %v11000_v31 }
 0x89c   :  { %7074 = vmatprep.mubr.msk.f32.mxu1 %vm1091_vm4, %v11008_v1 }
 0x89f   :  { %4246 = vmatmul.mubr.f32.gmra.mrb[170].mxu1 %v11004_v56 }
 0x8a0   :  { %7075 = vmatprep.mubr.msk.f32.mxu1 %vm1091_vm4, %v11014_v17 }
 0x8a3   :  { %4252 = vmatmul.mubr.f32.gmra.mrb[172].mxu1 %v11012_v38 }
 0x8a4   :  { %7076 = vmatprep.mubr.msk.f32.mxu1 %vm1091_vm4, %v11020_v42 }
 0x8a7   :  { %4258 = vmatmul.mubr.f32.gmra.mrb[174].mxu1 %v11016_v21 }
 0x8a8   :  { %7077 = vmatprep.mubr.msk.f32.mxu1 %vm1091_vm4, %v11026_v26 }
 0x8ab   :  { %4264 = vmatmul.mubr.f32.gmra.mrb[176].mxu1 %v11024_v32 }
 0x8ac   :  { %7078 = vmatprep.mubr.msk.f32.mxu1 %vm1091_vm4, %v11032_v63 }
 0x8af   :  { %4270 = vmatmul.mubr.f32.gmra.mrb[178].mxu1 %v11028_v4 }
 0x8b0   :  { %7079 = vmatprep.mubr.msk.f32.mxu1 %vm1091_vm4, %v11038_v46 }
 0x8b3   :  { %4276 = vmatmul.mubr.f32.gmra.mrb[180].mxu1 %v11036_v35 }
 0x8b4   :  { %7080 = vmatprep.mubr.msk.f32.mxu1 %vm1091_vm4, %v11044_v2 }
 0x8b7   :  { %4282 = vmatmul.mubr.f32.gmra.mrb[182].mxu1 %v11040_v15 }
 0x8b8   :  { %7081 = vmatprep.mubr.msk.f32.mxu1 %vm1091_vm4, %v11050_v25 }
 0x8bb   :  { %4288 = vmatmul.mubr.f32.gmra.mrb[184].mxu1 %v11048_v34 }
 0x8bc   :  { %7082 = vmatprep.mubr.msk.f32.mxu1 %vm1091_vm4, %v11056_v52 }
 0x8bf   :  { %4294 = vmatmul.mubr.f32.gmra.mrb[186].mxu1 %v11052_v33 }
 0x8c0   :  { %7083 = vmatprep.mubr.msk.f32.mxu1 %vm1091_vm4, %v11062_v49 }
 0x8c3   :  { %4300 = vmatmul.mubr.f32.gmra.mrb[188].mxu1 %v11060_v14 }
 0x8c4   :  { %7084 = vmatprep.mubr.msk.f32.mxu1 %vm1091_vm4, %v4028_v28 }
 0x8c7   :  { %4306 = vmatmul.mubr.f32.gmra.mrb[190].mxu1 %v11064_v51 }
 0x8c8   :  { %7085 = vmatprep.mubr.msk.f32.mxu1 %vm1091_vm4, %v4034_v29 }
 0x8cb   :  { %4312 = vmatmul.mubr.f32.gmra.mrb[192].mxu1 %v11069_v9 }
 0x8cc   :  { %7086 = vmatprep.mubr.msk.f32.mxu1 %vm1091_vm4, %v4040_v57 }
 0x8cf   :  { %4318 = vmatmul.mubr.f32.gmra.mrb[194].mxu1 %v4038_v20 }
 0x8d0   :  { %7087 = vmatprep.mubr.msk.f32.mxu1 %vm1091_vm4, %v4046_v62  ;;  %v4679_v62 = vld [vmem:[%s11817_s3 + $0x10] sm:$0xff] }
 0x8d3   :  { %4324 = vmatmul.mubr.f32.gmra.mrb[196].mxu1 %v4044_v10  ;;  %v4678_v10 = vld [vmem:[%s11817_s3 + $0x8] sm:$0xff] }
 0x8d4   :  { %7088 = vmatprep.mubr.msk.f32.mxu1 %vm1091_vm4, %v4052_v5  ;;  %v8044_v30 = vpack.c.bf16 %v4678_v10, %v4677_v45  ;;  %v4680_v5 = vld [vmem:[%s11817_s3 + $0x18] sm:$0xff] }
 0x8d5   :  { %v8047_v59 = vpack.c.bf16 %v4680_v5, %v4679_v62  ;;  %v4689_v62 = vld [vmem:[%s11817_s3 + $0x60] sm:$0xff] }
 0x8d6   :  { %8045 = vmatpush1.bf16.msra.mxu1 %v8044_v30  ;;  %v4690_v30 = vld [vmem:[%s11817_s3 + $0x68] sm:$0xff] }
 0x8d7   :  { %4330 = vmatmul.mubr.f32.gmra.mrb[198].mxu1 %v4050_v44  ;;  %8046 = vmatprep.subr.bf16.mxu1 %v12448_v27 }
 0x8d8   :  { %7089 = vmatprep.mubr.msk.f32.mxu1 %vm1091_vm4, %v4058_v11  ;;  %v4681_v11 = vld [vmem:[%s11817_s3 + $0x20] sm:$0xff] }
 0x8da   :  { %8048 = vmatpush1.bf16.msra.mxu1 %v8047_v59 }
 0x8db   :  { %4336 = vmatmul.mubr.f32.gmra.mrb[200].mxu1 %v4056_v22  ;;  %8049 = vmatprep.subr.bf16.mxu1 %v12448_v27 }
 0x8dc   :  { %7090 = vmatprep.mubr.msk.f32.mxu1 %vm1091_vm4, %v4064_v53 }
 0x8df   :  { %4342 = vmatmul.mubr.f32.gmra.mrb[202].mxu1 %v4062_v3  ;;  %v4682_v3 = vld [vmem:[%s11817_s3 + $0x28] sm:$0xff] }
 0x956   :  { %v11131_v24 = vpop.f32.mrb[156].mxu1 }
 0x957   :  { %v4207_v37 = vpop.f32.mrb[157].mxu1 }
 0x958   :  { %7091 = vmatprep.mubr.msk.f32.mxu0 %vm1091_vm4, %v4207_v37 }
 0x95a   :  { %v11134_v55 = vpop.f32.mrb[158].mxu1 }
 0x95b   :  { %v7997_v43 = vpack.c.bf16 %v11134_v55, %v11131_v24  ;;  %v11138_v8 = vpop.f32.mrb[159].mxu1 }
 0x95c   :  { %v7995_v50 = vpack.c.bf16 %v11138_v8, %v4207_v37  ;;  %v8050_v37 = vpack.c.bf16 %v4682_v3, %v4681_v11  ;;  %v8062_v3 = vpack.c.bf16 %v4690_v30, %v4689_v62  ;;  %v4697_v30 = vld [vmem:[%s11817_s3 + $0xa0] sm:$0xff] }
 0x95e   :  { %v11141_v40 = vpop.f32.mrb[160].mxu1  ;;  %7996 = vmatprep.subr.bf16.mxu0 %v7995_v50  ;;  %v4683_v50 = vld [vmem:[%s11817_s3 + $0x30] sm:$0xff]  ;;  %8051 = vmatpush1.bf16.msra.mxu1 %v8050_v37  ;;  %v4692_v37 = vld [vmem:[%s11817_s3 + $0x78] sm:$0xff] }
 0x95f   :  { %v11143_v61 = vpop.f32.mrb[161].mxu1  ;;  %7998 = vmatpush1.bf16.msra.mxu0 %v7997_v43  ;;  %8052 = vmatprep.subr.bf16.mxu1 %v12448_v27 }
 0x962   :  { %v11145_v13 = vpop.f32.mrb[162].mxu1 }
 0x963   :  { %v8001_v0 = vpack.c.bf16 %v11145_v13, %v11141_v40  ;;  %v11149_v58 = vpop.f32.mrb[163].mxu1 }
 0x964   :  { %v7999_v31 = vpack.c.bf16 %v11149_v58, %v11143_v61 }
 0x966   :  { %v11153_v48 = vpop.f32.mrb[164].mxu1  ;;  %8000 = vmatprep.subr.bf16.mxu0 %v7999_v31 }
 0x967   :  { %v11155_v56 = vpop.f32.mrb[165].mxu1  ;;  %8002 = vmatpush1.bf16.msra.mxu0 %v8001_v0  ;;  %v4684_v0 = vld [vmem:[%s11817_s3 + $0x38] sm:$0xff] }
 0x96a   :  { %v11157_v1 = vpop.f32.mrb[166].mxu1 }
 0x96b   :  { %v8005_v38 = vpack.c.bf16 %v11157_v1, %v11153_v48  ;;  %v11161_v17 = vpop.f32.mrb[167].mxu1 }
 0x96c   :  { %v8003_v21 = vpack.c.bf16 %v11161_v17, %v11155_v56 }
 0x96e   :  { %v11165_v42 = vpop.f32.mrb[168].mxu1  ;;  %8004 = vmatprep.subr.bf16.mxu0 %v8003_v21 }
 0x96f   :  { %v11167_v23 = vpop.f32.mrb[169].mxu1  ;;  %8006 = vmatpush1.bf16.msra.mxu0 %v8005_v38  ;;  %v8053_v38 = vpack.c.bf16 %v4684_v0, %v4683_v50 }
 0x971   :  { %8054 = vmatpush1.bf16.msra.mxu1 %v8053_v38 }
 0x972   :  { %v11169_v32 = vpop.f32.mrb[170].mxu1  ;;  %8055 = vmatprep.subr.bf16.mxu1 %v12448_v27 }
 0x973   :  { %v8009_v26 = vpack.c.bf16 %v11169_v32, %v11165_v42  ;;  %v11173_v4 = vpop.f32.mrb[171].mxu1 }
 0x974   :  { %v8007_v60 = vpack.c.bf16 %v11173_v4, %v11167_v23 }
 0x976   :  { %v11177_v63 = vpop.f32.mrb[172].mxu1  ;;  %8008 = vmatprep.subr.bf16.mxu0 %v8007_v60  ;;  %v4686_v60 = vld [vmem:[%s11817_s3 + $0x48] sm:$0xff] }
 0x977   :  { %v11179_v47 = vpop.f32.mrb[173].mxu1  ;;  %8010 = vmatpush1.bf16.msra.mxu0 %v8009_v26  ;;  %v4685_v26 = vld [vmem:[%s11817_s3 + $0x40] sm:$0xff] }
 0x97a   :  { %v11181_v35 = vpop.f32.mrb[174].mxu1 }
 0x97b   :  { %v8013_v46 = vpack.c.bf16 %v11181_v35, %v11177_v63  ;;  %v11185_v15 = vpop.f32.mrb[175].mxu1 }
 0x97c   :  { %v8011_v36 = vpack.c.bf16 %v11185_v15, %v11179_v47 }
 0x97e   :  { %v11189_v2 = vpop.f32.mrb[176].mxu1  ;;  %8012 = vmatprep.subr.bf16.mxu0 %v8011_v36 }
 0x97f   :  { %v11191_v39 = vpop.f32.mrb[177].mxu1  ;;  %8014 = vmatpush1.bf16.msra.mxu0 %v8013_v46 }
 0x982   :  { %v11193_v34 = vpop.f32.mrb[178].mxu1 }
 0x983   :  { %v8017_v25 = vpack.c.bf16 %v11193_v34, %v11189_v2  ;;  %v11197_v33 = vpop.f32.mrb[179].mxu1 }
 0x984   :  { %v8015_v6 = vpack.c.bf16 %v11197_v33, %v11191_v39 }
 0x986   :  { %v11201_v52 = vpop.f32.mrb[180].mxu1  ;;  %8016 = vmatprep.subr.bf16.mxu0 %v8015_v6  ;;  %v8056_v6 = vpack.c.bf16 %v4686_v60, %v4685_v26  ;;  %v4693_v26 = vld [vmem:[%s11817_s3 + $0x80] sm:$0xff]  ;;  %v4694_v60 = vld [vmem:[%s11817_s3 + $0x88] sm:$0xff] }
 0x987   :  { %v11203_v18 = vpop.f32.mrb[181].mxu1  ;;  %8018 = vmatpush1.bf16.msra.mxu0 %v8017_v25 }
 0x988   :  { %8057 = vmatpush1.bf16.msra.mxu1 %v8056_v6 }
 0x989   :  { %8058 = vmatprep.subr.bf16.mxu1 %v12448_v27 }
 0x98a   :  { %v11205_v14 = vpop.f32.mrb[182].mxu1 }
 0x98b   :  { %v8021_v49 = vpack.c.bf16 %v11205_v14, %v11201_v52  ;;  %v11209_v51 = vpop.f32.mrb[183].mxu1 }
 0x98c   :  { %v8019_v12 = vpack.c.bf16 %v11209_v51, %v11203_v18 }
 0x98e   :  { %v11213_v28 = vpop.f32.mrb[184].mxu1  ;;  %8020 = vmatprep.subr.bf16.mxu0 %v8019_v12  ;;  %v4687_v12 = vld [vmem:[%s11817_s3 + $0x50] sm:$0xff] }
 0x98f   :  { %v11215_v41 = vpop.f32.mrb[185].mxu1  ;;  %8022 = vmatpush1.bf16.msra.mxu0 %v8021_v49 }
 0x992   :  { %v11217_v9 = vpop.f32.mrb[186].mxu1 }
 0x993   :  { %v8025_v29 = vpack.c.bf16 %v11217_v9, %v11213_v28  ;;  %v11221_v20 = vpop.f32.mrb[187].mxu1 }
 0x994   :  { %v8023_v54 = vpack.c.bf16 %v11221_v20, %v11215_v41 }
 0x996   :  { %v11225_v57 = vpop.f32.mrb[188].mxu1  ;;  %8024 = vmatprep.subr.bf16.mxu0 %v8023_v54 }
 0x997   :  { %v11236_v44 = vpop.f32.mrb[189].mxu1  ;;  %8026 = vmatpush1.bf16.msra.mxu0 %v8025_v29  ;;  %v4688_v29 = vld [vmem:[%s11817_s3 + $0x58] sm:$0xff] }
 0x998   :  { %v8059_v45 = vpack.c.bf16 %v4688_v29, %v4687_v12  ;;  %v8068_v12 = vpack.c.bf16 %v4694_v60, %v4693_v26  ;;  %v4695_v29 = vld [vmem:[%s11817_s3 + $0x90] sm:$0xff]  ;;  %v4630_v60 = vld [vmem:[%s11816_s2 + $0x8] sm:$0xff] }
 0x99a   :  { %v11241_v22 = vpop.f32.mrb[190].mxu1  ;;  %8060 = vmatpush1.bf16.msra.mxu1 %v8059_v45  ;;  %v4696_v45 = vld [vmem:[%s11817_s3 + $0x98] sm:$0xff] }
 0x99b   :  { %v8029_v16 = vpack.c.bf16 %v11241_v22, %v11225_v57  ;;  %v11252_v53 = vpop.f32.mrb[191].mxu1  ;;  %8061 = vmatprep.subr.bf16.mxu1 %v12448_v27  ;;  %v8071_v62 = vpack.c.bf16 %v4696_v45, %v4695_v29 }
 0x99c   :  { %v8027_v19 = vpack.c.bf16 %v11252_v53, %v11236_v44 }
 0x99e   :  { %v11256_v43 = vpop.f32.mrb[192].mxu1  ;;  %8028 = vmatprep.subr.bf16.mxu0 %v8027_v19  ;;  %v4691_v19 = vld [vmem:[%s11817_s3 + $0x70] sm:$0xff]  ;;  %8063 = vmatpush1.bf16.msra.mxu1 %v8062_v3 }
 0x99f   :  { %v11265_v31 = vpop.f32.mrb[193].mxu1  ;;  %8030 = vmatpush1.bf16.msra.mxu0 %v8029_v16  ;;  %v8065_v0 = vpack.c.bf16 %v4692_v37, %v4691_v19  ;;  %8064 = vmatprep.subr.bf16.mxu1 %v12448_v27 }
 0x9a2   :  { %v11267_v21 = vpop.f32.mrb[194].mxu1  ;;  %8066 = vmatpush1.bf16.msra.mxu1 %v8065_v0 }
 0x9a3   :  { %v8033_v46 = vpack.c.bf16 %v11267_v21, %v11256_v43  ;;  %v11278_v36 = vpop.f32.mrb[195].mxu1  ;;  %8067 = vmatprep.subr.bf16.mxu1 %v12448_v27 }
 0x9a4   :  { %v8031_v25 = vpack.c.bf16 %v11278_v36, %v11265_v31 }
 0x9a6   :  { %v11282_v49 = vpop.f32.mrb[196].mxu1  ;;  %8032 = vmatprep.subr.bf16.mxu0 %v8031_v25  ;;  %8069 = vmatpush1.bf16.msra.mxu1 %v8068_v12 }
 0x9a7   :  { %v11291_v54 = vpop.f32.mrb[197].mxu1  ;;  %8034 = vmatpush1.bf16.msra.mxu0 %v8033_v46  ;;  %8070 = vmatprep.subr.bf16.mxu1 %v12448_v27 }
 0x9aa   :  { %v11293_v10 = vpop.f32.mrb[198].mxu1  ;;  %8072 = vmatpush1.bf16.msra.mxu1 %v8071_v62 }
 0x9ab   :  { %v8037_v5 = vpack.c.bf16 %v11293_v10, %v11282_v49  ;;  %v11304_v59 = vpop.f32.mrb[199].mxu1  ;;  %8073 = vmatprep.subr.bf16.mxu1 %v12448_v27 }
 0x9ac   :  { %v8035_v11 = vpack.c.bf16 %v11304_v59, %v11291_v54 }
 0x9ae   :  { %v11308_v16 = vpop.f32.mrb[200].mxu1  ;;  %8036 = vmatprep.subr.bf16.mxu0 %v8035_v11 }
 0x9af   :  { %v11317_v50 = vpop.f32.mrb[201].mxu1  ;;  %8038 = vmatpush1.bf16.msra.mxu0 %v8037_v5  ;;  %v4698_v5 = vld [vmem:[%s11817_s3 + $0xa8] sm:$0xff] }
 0x9b0   :  { %v8074_v11 = vpack.c.bf16 %v4698_v5, %v4697_v30 }
 0x9b2   :  { %v11319_v38 = vpop.f32.mrb[202].mxu1  ;;  %8075 = vmatpush1.bf16.msra.mxu1 %v8074_v11 }
 0x9b3   :  { %v8041_v46 = vpack.c.bf16 %v11319_v38, %v11308_v16  ;;  %v11330_v25 = vpop.f32.mrb[203].mxu1  ;;  %8076 = vmatprep.subr.bf16.mxu1 %v12448_v27 }
 0x9b4   :  { %v8039_v6 = vpack.c.bf16 %v11330_v25, %v11317_v50 }
 0x9b6   :  { %8040 = vmatprep.subr.bf16.mxu0 %v8039_v6 }
 0x9b7   :  { %8042 = vmatpush1.bf16.msra.mxu0 %v8041_v46 }
 0x9b8   :  { %8079 = vmatprep.subr.bf16.mxu0 %v12448_v27 }
 0x9ba   :  { %4485 = vmatmul.mubr.f32.vlgmr.msra.gmra.mrb[204].mxu0 %v11131_v24  ;;  %v4699_v24 = vld [vmem:[%s11817_s3 + $0xb0] sm:$0xff] }
 0x9bb   :  { %7092 = vmatprep.mubr.msk.f32.mxu0 %vm1091_vm4, %v11138_v8 }
 0x9be   :  { %4491 = vmatmul.mubr.f32.gmra.mrb[206].mxu0 %v11134_v55  ;;  %v4700_v55 = vld [vmem:[%s11817_s3 + $0xb8] sm:$0xff] }
 0x9bf   :  { %7093 = vmatprep.mubr.msk.f32.mxu0 %vm1091_vm4, %v11143_v61  ;;  %v8077_v8 = vpack.c.bf16 %v4700_v55, %v4699_v24 }
 0x9c1   :  { %8078 = vmatpush1.bf16.msra.mxu1 %v8077_v8 }
 0x9c2   :  { %4497 = vmatmul.mubr.f32.gmra.mrb[208].mxu0 %v11141_v40 }
 0x9c3   :  { %7094 = vmatprep.mubr.msk.f32.mxu0 %vm1091_vm4, %v11149_v58 }
 0x9c6   :  { %4503 = vmatmul.mubr.f32.gmra.mrb[210].mxu0 %v11145_v13 }
 0x9c7   :  { %7095 = vmatprep.mubr.msk.f32.mxu0 %vm1091_vm4, %v11155_v56 }
 0x9ca   :  { %4509 = vmatmul.mubr.f32.gmra.mrb[212].mxu0 %v11153_v48 }
 0x9cb   :  { %7096 = vmatprep.mubr.msk.f32.mxu0 %vm1091_vm4, %v11161_v17 }
 0x9ce   :  { %4515 = vmatmul.mubr.f32.gmra.mrb[214].mxu0 %v11157_v1 }
 0x9cf   :  { %7097 = vmatprep.mubr.msk.f32.mxu0 %vm1091_vm4, %v11167_v23 }
 0x9d2   :  { %4521 = vmatmul.mubr.f32.gmra.mrb[216].mxu0 %v11165_v42 }
 0x9d3   :  { %7098 = vmatprep.mubr.msk.f32.mxu0 %vm1091_vm4, %v11173_v4 }
 0x9d6   :  { %4527 = vmatmul.mubr.f32.gmra.mrb[218].mxu0 %v11169_v32 }
 0x9d7   :  { %7099 = vmatprep.mubr.msk.f32.mxu0 %vm1091_vm4, %v11179_v47 }
 0x9da   :  { %4533 = vmatmul.mubr.f32.gmra.mrb[220].mxu0 %v11177_v63 }
 0x9db   :  { %7100 = vmatprep.mubr.msk.f32.mxu0 %vm1091_vm4, %v11185_v15 }
 0x9de   :  { %4539 = vmatmul.mubr.f32.gmra.mrb[222].mxu0 %v11181_v35 }
 0x9df   :  { %7101 = vmatprep.mubr.msk.f32.mxu0 %vm1091_vm4, %v11191_v39 }
 0x9e2   :  { %4545 = vmatmul.mubr.f32.gmra.mrb[224].mxu0 %v11189_v2 }
 0x9e3   :  { %7102 = vmatprep.mubr.msk.f32.mxu0 %vm1091_vm4, %v11197_v33 }
 0x9e6   :  { %4551 = vmatmul.mubr.f32.gmra.mrb[226].mxu0 %v11193_v34 }
 0x9e7   :  { %7103 = vmatprep.mubr.msk.f32.mxu0 %vm1091_vm4, %v11203_v18 }
 0x9ea   :  { %4557 = vmatmul.mubr.f32.gmra.mrb[228].mxu0 %v11201_v52 }
 0x9eb   :  { %7104 = vmatprep.mubr.msk.f32.mxu0 %vm1091_vm4, %v11209_v51 }
 0x9ee   :  { %4563 = vmatmul.mubr.f32.gmra.mrb[230].mxu0 %v11205_v14 }
 0x9ef   :  { %7105 = vmatprep.mubr.msk.f32.mxu0 %vm1091_vm4, %v11215_v41 }
 0x9f2   :  { %4569 = vmatmul.mubr.f32.gmra.mrb[232].mxu0 %v11213_v28 }
 0x9f3   :  { %7106 = vmatprep.mubr.msk.f32.mxu0 %vm1091_vm4, %v11221_v20 }
 0x9f6   :  { %4575 = vmatmul.mubr.f32.gmra.mrb[234].mxu0 %v11217_v9 }
 0x9f7   :  { %7107 = vmatprep.mubr.msk.f32.mxu0 %vm1091_vm4, %v11236_v44 }
 0x9fa   :  { %4581 = vmatmul.mubr.f32.gmra.mrb[236].mxu0 %v11225_v57 }
 0x9fb   :  { %7108 = vmatprep.mubr.msk.f32.mxu0 %vm1091_vm4, %v11252_v53 }
 0x9fe   :  { %4587 = vmatmul.mubr.f32.gmra.mrb[238].mxu0 %v11241_v22 }
 0x9ff   :  { %7109 = vmatprep.mubr.msk.f32.mxu0 %vm1091_vm4, %v11265_v31 }
 0xa02   :  { %4593 = vmatmul.mubr.f32.gmra.mrb[240].mxu0 %v11256_v43 }
 0xa03   :  { %7110 = vmatprep.mubr.msk.f32.mxu0 %vm1091_vm4, %v11278_v36 }
 0xa06   :  { %4599 = vmatmul.mubr.f32.gmra.mrb[242].mxu0 %v11267_v21 }
 0xa07   :  { %7111 = vmatprep.mubr.msk.f32.mxu0 %vm1091_vm4, %v11291_v54 }
 0xa0a   :  { %4605 = vmatmul.mubr.f32.gmra.mrb[244].mxu0 %v11282_v49 }
 0xa0b   :  { %7112 = vmatprep.mubr.msk.f32.mxu0 %vm1091_vm4, %v11304_v59 }
 0xa0e   :  { %4611 = vmatmul.mubr.f32.gmra.mrb[246].mxu0 %v11293_v10 }
 0xa0f   :  { %7113 = vmatprep.mubr.msk.f32.mxu0 %vm1091_vm4, %v11317_v50 }
 0xa12   :  { %4617 = vmatmul.mubr.f32.gmra.mrb[248].mxu0 %v11308_v16 }
 0xa13   :  { %7114 = vmatprep.mubr.msk.f32.mxu0 %vm1091_vm4, %v11330_v25 }
 0xa16   :  { %4623 = vmatmul.mubr.f32.gmra.mrb[250].mxu0 %v11319_v38 }
 0xa17   :  { %7139 = vmatprep.mubr.msk.f32.mxu0 %vm1091_vm4, %v4630_v60  ;;  %v4632_v60 = vld [vmem:[%s11816_s2 + $0x18] sm:$0xff] }
 0xa8d   :  { %v4486_v40 = vpop.f32.mrb[204].mxu0 }
 0xa8e   :  { %v4488_v61 = vpop.f32.mrb[205].mxu0 }
 0xa8f   :  { %7115 = vmatprep.mubr.msk.f32.mxu1 %vm1091_vm4, %v4488_v61 }
 0xa90   :  { %4838 = vmatmul.mubr.f32.vlgmr.msra.gmra.mrb[204].mxu1 %v4486_v40 }
 0xa91   :  { %v4492_v13 = vpop.f32.mrb[206].mxu0 }
 0xa92   :  { %v4494_v58 = vpop.f32.mrb[207].mxu0 }
 0xa93   :  { %7116 = vmatprep.mubr.msk.f32.mxu1 %vm1091_vm4, %v4494_v58 }
 0xa94   :  { %4843 = vmatmul.mubr.f32.gmra.mrb[206].mxu1 %v4492_v13 }
 0xa95   :  { %v4498_v48 = vpop.f32.mrb[208].mxu0 }
 0xa96   :  { %v4500_v56 = vpop.f32.mrb[209].mxu0 }
 0xa97   :  { %7117 = vmatprep.mubr.msk.f32.mxu1 %vm1091_vm4, %v4500_v56 }
 0xa98   :  { %4848 = vmatmul.mubr.f32.gmra.mrb[208].mxu1 %v4498_v48 }
 0xa99   :  { %v4504_v1 = vpop.f32.mrb[210].mxu0 }
 0xa9a   :  { %v4506_v17 = vpop.f32.mrb[211].mxu0 }
 0xa9b   :  { %7118 = vmatprep.mubr.msk.f32.mxu1 %vm1091_vm4, %v4506_v17 }
 0xa9c   :  { %4853 = vmatmul.mubr.f32.gmra.mrb[210].mxu1 %v4504_v1 }
 0xa9d   :  { %v4510_v42 = vpop.f32.mrb[212].mxu0 }
 0xa9e   :  { %v4512_v23 = vpop.f32.mrb[213].mxu0 }
 0xa9f   :  { %7119 = vmatprep.mubr.msk.f32.mxu1 %vm1091_vm4, %v4512_v23 }
 0xaa0   :  { %4858 = vmatmul.mubr.f32.gmra.mrb[212].mxu1 %v4510_v42 }
 0xaa1   :  { %v4516_v32 = vpop.f32.mrb[214].mxu0 }
 0xaa2   :  { %v4518_v4 = vpop.f32.mrb[215].mxu0 }
 0xaa3   :  { %7120 = vmatprep.mubr.msk.f32.mxu1 %vm1091_vm4, %v4518_v4 }
 0xaa4   :  { %4863 = vmatmul.mubr.f32.gmra.mrb[214].mxu1 %v4516_v32 }
 0xaa5   :  { %v4522_v63 = vpop.f32.mrb[216].mxu0 }
 0xaa6   :  { %v4524_v47 = vpop.f32.mrb[217].mxu0 }
 0xaa7   :  { %7121 = vmatprep.mubr.msk.f32.mxu1 %vm1091_vm4, %v4524_v47 }
 0xaa8   :  { %4868 = vmatmul.mubr.f32.gmra.mrb[216].mxu1 %v4522_v63 }
 0xaa9   :  { %v4528_v35 = vpop.f32.mrb[218].mxu0 }
 0xaaa   :  { %v4530_v15 = vpop.f32.mrb[219].mxu0 }
 0xaab   :  { %7122 = vmatprep.mubr.msk.f32.mxu1 %vm1091_vm4, %v4530_v15 }
 0xaac   :  { %4873 = vmatmul.mubr.f32.gmra.mrb[218].mxu1 %v4528_v35 }
 0xaad   :  { %v4534_v2 = vpop.f32.mrb[220].mxu0 }
 0xaae   :  { %v4536_v39 = vpop.f32.mrb[221].mxu0 }
 0xaaf   :  { %7123 = vmatprep.mubr.msk.f32.mxu1 %vm1091_vm4, %v4536_v39 }
 0xab0   :  { %4878 = vmatmul.mubr.f32.gmra.mrb[220].mxu1 %v4534_v2 }
 0xab1   :  { %v4540_v34 = vpop.f32.mrb[222].mxu0 }
 0xab2   :  { %v4542_v33 = vpop.f32.mrb[223].mxu0 }
 0xab3   :  { %7124 = vmatprep.mubr.msk.f32.mxu1 %vm1091_vm4, %v4542_v33 }
 0xab4   :  { %4883 = vmatmul.mubr.f32.gmra.mrb[222].mxu1 %v4540_v34 }
 0xab5   :  { %v4546_v52 = vpop.f32.mrb[224].mxu0 }
 0xab6   :  { %v4548_v18 = vpop.f32.mrb[225].mxu0 }
 0xab7   :  { %7125 = vmatprep.mubr.msk.f32.mxu1 %vm1091_vm4, %v4548_v18 }
 0xab8   :  { %4888 = vmatmul.mubr.f32.gmra.mrb[224].mxu1 %v4546_v52 }
 0xab9   :  { %v4552_v14 = vpop.f32.mrb[226].mxu0 }
 0xaba   :  { %v4554_v51 = vpop.f32.mrb[227].mxu0 }
 0xabb   :  { %7126 = vmatprep.mubr.msk.f32.mxu1 %vm1091_vm4, %v4554_v51 }
 0xabc   :  { %4893 = vmatmul.mubr.f32.gmra.mrb[226].mxu1 %v4552_v14 }
 0xabd   :  { %v4558_v28 = vpop.f32.mrb[228].mxu0 }
 0xabe   :  { %v4560_v41 = vpop.f32.mrb[229].mxu0 }
 0xabf   :  { %7127 = vmatprep.mubr.msk.f32.mxu1 %vm1091_vm4, %v4560_v41 }
 0xac0   :  { %4898 = vmatmul.mubr.f32.gmra.mrb[228].mxu1 %v4558_v28 }
 0xac1   :  { %v4564_v9 = vpop.f32.mrb[230].mxu0 }
 0xac2   :  { %v4566_v20 = vpop.f32.mrb[231].mxu0 }
 0xac3   :  { %7128 = vmatprep.mubr.msk.f32.mxu1 %vm1091_vm4, %v4566_v20 }
 0xac4   :  { %4903 = vmatmul.mubr.f32.gmra.mrb[230].mxu1 %v4564_v9 }
 0xac5   :  { %v4570_v57 = vpop.f32.mrb[232].mxu0 }
 0xac6   :  { %v4572_v44 = vpop.f32.mrb[233].mxu0 }
 0xac7   :  { %7129 = vmatprep.mubr.msk.f32.mxu1 %vm1091_vm4, %v4572_v44 }
 0xac8   :  { %4908 = vmatmul.mubr.f32.gmra.mrb[232].mxu1 %v4570_v57 }
 0xac9   :  { %v4576_v22 = vpop.f32.mrb[234].mxu0 }
 0xaca   :  { %v4578_v53 = vpop.f32.mrb[235].mxu0 }
 0xacb   :  { %7130 = vmatprep.mubr.msk.f32.mxu1 %vm1091_vm4, %v4578_v53 }
 0xacc   :  { %4913 = vmatmul.mubr.f32.gmra.mrb[234].mxu1 %v4576_v22 }
 0xacd   :  { %v4582_v43 = vpop.f32.mrb[236].mxu0 }
 0xace   :  { %v4584_v31 = vpop.f32.mrb[237].mxu0 }
 0xacf   :  { %7131 = vmatprep.mubr.msk.f32.mxu1 %vm1091_vm4, %v4584_v31 }
 0xad0   :  { %4918 = vmatmul.mubr.f32.gmra.mrb[236].mxu1 %v4582_v43 }
 0xad1   :  { %v4588_v21 = vpop.f32.mrb[238].mxu0 }
 0xad2   :  { %v4590_v36 = vpop.f32.mrb[239].mxu0 }
 0xad3   :  { %7132 = vmatprep.mubr.msk.f32.mxu1 %vm1091_vm4, %v4590_v36 }
 0xad4   :  { %4923 = vmatmul.mubr.f32.gmra.mrb[238].mxu1 %v4588_v21 }
 0xad5   :  { %v4594_v49 = vpop.f32.mrb[240].mxu0 }
 0xad6   :  { %v4596_v54 = vpop.f32.mrb[241].mxu0 }
 0xad7   :  { %7133 = vmatprep.mubr.msk.f32.mxu1 %vm1091_vm4, %v4596_v54 }
 0xad8   :  { %4928 = vmatmul.mubr.f32.gmra.mrb[240].mxu1 %v4594_v49 }
 0xad9   :  { %v4600_v10 = vpop.f32.mrb[242].mxu0 }
 0xada   :  { %v4602_v59 = vpop.f32.mrb[243].mxu0 }
 0xadb   :  { %7134 = vmatprep.mubr.msk.f32.mxu1 %vm1091_vm4, %v4602_v59 }
 0xadc   :  { %4933 = vmatmul.mubr.f32.gmra.mrb[242].mxu1 %v4600_v10 }
 0xadd   :  { %v4606_v3 = vpop.f32.mrb[244].mxu0 }
 0xade   :  { %v4608_v16 = vpop.f32.mrb[245].mxu0 }
 0xadf   :  { %7135 = vmatprep.mubr.msk.f32.mxu1 %vm1091_vm4, %v4608_v16 }
 0xae0   :  { %4938 = vmatmul.mubr.f32.gmra.mrb[244].mxu1 %v4606_v3 }
 0xae1   :  { %v4612_v19 = vpop.f32.mrb[246].mxu0 }
 0xae2   :  { %v4614_v37 = vpop.f32.mrb[247].mxu0 }
 0xae3   :  { %7136 = vmatprep.mubr.msk.f32.mxu1 %vm1091_vm4, %v4614_v37 }
 0xae4   :  { %4943 = vmatmul.mubr.f32.gmra.mrb[246].mxu1 %v4612_v19 }
 0xae5   :  { %v4618_v50 = vpop.f32.mrb[248].mxu0 }
 0xae6   :  { %v4620_v0 = vpop.f32.mrb[249].mxu0 }
 0xae7   :  { %7137 = vmatprep.mubr.msk.f32.mxu1 %vm1091_vm4, %v4620_v0 }
 0xae8   :  { %4948 = vmatmul.mubr.f32.gmra.mrb[248].mxu1 %v4618_v50 }
 0xae9   :  { %v4624_v38 = vpop.f32.mrb[250].mxu0 }
 0xaea   :  { %v4626_v26 = vpop.f32.mrb[251].mxu0 }
 0xaeb   :  { %7138 = vmatprep.mubr.msk.f32.mxu1 %vm1091_vm4, %v4626_v26  ;;  %v4629_v26 = vld [vmem:[%s11816_s2] sm:$0xff] }
 0xaec   :  { %4953 = vmatmul.mubr.f32.gmra.mrb[250].mxu1 %v4624_v38 }
 0xb63   :  { %v4839_v46 = vpop.f32.mrb[204].mxu1 }
 0xb64   :  { %v4841_v25 = vpop.f32.mrb[205].mxu1 }
 0xb65   :  { %v4634_v25 = vld [vmem:[%s11816_s2 + $0x28] sm:$0xff] }
 0xb67   :  { %v4844_v6 = vpop.f32.mrb[206].mxu1 }
 0xb68   :  { %v8080_v12 = vpack.c.bf16 %v4844_v6, %v4839_v46  ;;  %v4846_v29 = vpop.f32.mrb[207].mxu1  ;;  %v4631_v46 = vld [vmem:[%s11816_s2 + $0x10] sm:$0xff]  ;;  %v4633_v6 = vld [vmem:[%s11816_s2 + $0x20] sm:$0xff] }
 0xb69   :  { %v4635_v29 = vld [vmem:[%s11816_s2 + $0x30] sm:$0xff] }
 0xb6a   :  { %8081 = vmatpush1.bf16.msra.mxu0 %v8080_v12  ;;  %v4636_v12 = vld [vmem:[%s11816_s2 + $0x38] sm:$0xff] }
 0xb6b   :  { %v4849_v45 = vpop.f32.mrb[208].mxu1  ;;  %8082 = vmatprep.subr.bf16.mxu0 %v12448_v27 }
 0xb6c   :  { %v4851_v62 = vpop.f32.mrb[209].mxu1 }
 0xb6d   :  { %v4637_v62 = vld [vmem:[%s11816_s2 + $0x40] sm:$0xff] }
 0xb6f   :  { %v4854_v30 = vpop.f32.mrb[210].mxu1 }
 0xb70   :  { %v8083_v5 = vpack.c.bf16 %v4854_v30, %v4849_v45  ;;  %v4856_v11 = vpop.f32.mrb[211].mxu1  ;;  %v4638_v45 = vld [vmem:[%s11816_s2 + $0x48] sm:$0xff]  ;;  %v4640_v30 = vld [vmem:[%s11816_s2 + $0x58] sm:$0xff] }
 0xb71   :  { %v4642_v11 = vld [vmem:[%s11816_s2 + $0x68] sm:$0xff] }
 0xb72   :  { %8084 = vmatpush1.bf16.msra.mxu0 %v8083_v5  ;;  %v4639_v5 = vld [vmem:[%s11816_s2 + $0x50] sm:$0xff] }
 0xb73   :  { %v4859_v24 = vpop.f32.mrb[212].mxu1  ;;  %8085 = vmatprep.subr.bf16.mxu0 %v12448_v27 }
 0xb74   :  { %v4861_v55 = vpop.f32.mrb[213].mxu1 }
 0xb75   :  { %v4644_v55 = vld [vmem:[%s11816_s2 + $0x78] sm:$0xff] }
 0xb77   :  { %v4864_v8 = vpop.f32.mrb[214].mxu1 }
 0xb78   :  { %v8086_v40 = vpack.c.bf16 %v4864_v8, %v4859_v24  ;;  %v4866_v61 = vpop.f32.mrb[215].mxu1  ;;  %v4641_v24 = vld [vmem:[%s11816_s2 + $0x60] sm:$0xff]  ;;  %v4643_v8 = vld [vmem:[%s11816_s2 + $0x70] sm:$0xff] }
 0xb79   :  { %v4645_v61 = vld [vmem:[%s11816_s2 + $0x80] sm:$0xff] }
 0xb7a   :  { %8087 = vmatpush1.bf16.msra.mxu0 %v8086_v40  ;;  %v4646_v40 = vld [vmem:[%s11816_s2 + $0x88] sm:$0xff] }
 0xb7b   :  { %v4869_v13 = vpop.f32.mrb[216].mxu1  ;;  %8088 = vmatprep.subr.bf16.mxu0 %v12448_v27 }
 0xb7c   :  { %v4871_v58 = vpop.f32.mrb[217].mxu1 }
 0xb7d   :  { %v4647_v58 = vld [vmem:[%s11816_s2 + $0x90] sm:$0xff] }
 0xb7f   :  { %v4874_v48 = vpop.f32.mrb[218].mxu1 }
 0xb80   :  { %v8089_v56 = vpack.c.bf16 %v4874_v48, %v4869_v13  ;;  %v4876_v1 = vpop.f32.mrb[219].mxu1  ;;  %v4648_v13 = vld [vmem:[%s11816_s2 + $0x98] sm:$0xff]  ;;  %v4650_v48 = vld [vmem:[%s11816_s2 + $0xa8] sm:$0xff] }
 0xb81   :  { %v4652_v1 = vld [vmem:[%s11816_s2 + $0xb8] sm:$0xff] }
 0xb82   :  { %8090 = vmatpush1.bf16.msra.mxu0 %v8089_v56  ;;  %v4649_v56 = vld [vmem:[%s11816_s2 + $0xa0] sm:$0xff] }
 0xb83   :  { %v4879_v17 = vpop.f32.mrb[220].mxu1  ;;  %8091 = vmatprep.subr.bf16.mxu0 %v12448_v27 }
 0xb84   :  { %v4881_v42 = vpop.f32.mrb[221].mxu1 }
 0xb85   :  { %v4654_v42 = vld [vmem:[%s11816_s2 + $0xc8] sm:$0xff] }
 0xb87   :  { %v4884_v23 = vpop.f32.mrb[222].mxu1 }
 0xb88   :  { %v8092_v32 = vpack.c.bf16 %v4884_v23, %v4879_v17  ;;  %v4886_v4 = vpop.f32.mrb[223].mxu1  ;;  %v4651_v17 = vld [vmem:[%s11816_s2 + $0xb0] sm:$0xff]  ;;  %v4653_v23 = vld [vmem:[%s11816_s2 + $0xc0] sm:$0xff] }
 0xb89   :  { %v4655_v4 = vld [vmem:[%s11816_s2 + $0xd0] sm:$0xff] }
 0xb8a   :  { %8093 = vmatpush1.bf16.msra.mxu0 %v8092_v32  ;;  %v4656_v32 = vld [vmem:[%s11816_s2 + $0xd8] sm:$0xff] }
 0xb8b   :  { %v4889_v63 = vpop.f32.mrb[224].mxu1  ;;  %8094 = vmatprep.subr.bf16.mxu0 %v12448_v27 }
 0xb8c   :  { %v4891_v47 = vpop.f32.mrb[225].mxu1 }
 0xb8d   :  { %v4657_v47 = vld [vmem:[%s11816_s2 + $0xe0] sm:$0xff] }
 0xb8f   :  { %v4894_v35 = vpop.f32.mrb[226].mxu1 }
 0xb90   :  { %v8095_v15 = vpack.c.bf16 %v4894_v35, %v4889_v63  ;;  %v4896_v2 = vpop.f32.mrb[227].mxu1  ;;  %v4658_v63 = vld [vmem:[%s11816_s2 + $0xe8] sm:$0xff]  ;;  %v4660_v35 = vld [vmem:[%s11816_s2 + $0xf8] sm:$0xff] }
 0xb91   :  { %v4662_v2 = vld [vmem:[%s11816_s2 + $0x108] sm:$0xff] }
 0xb92   :  { %8096 = vmatpush1.bf16.msra.mxu0 %v8095_v15  ;;  %v4659_v15 = vld [vmem:[%s11816_s2 + $0xf0] sm:$0xff] }
 0xb93   :  { %v4899_v39 = vpop.f32.mrb[228].mxu1  ;;  %8097 = vmatprep.subr.bf16.mxu0 %v12448_v27 }
 0xb94   :  { %v4901_v34 = vpop.f32.mrb[229].mxu1 }
 0xb95   :  { %v4664_v34 = vld [vmem:[%s11816_s2 + $0x118] sm:$0xff] }
 0xb97   :  { %v4904_v33 = vpop.f32.mrb[230].mxu1 }
 0xb98   :  { %v8098_v52 = vpack.c.bf16 %v4904_v33, %v4899_v39  ;;  %v4906_v18 = vpop.f32.mrb[231].mxu1  ;;  %v4661_v39 = vld [vmem:[%s11816_s2 + $0x100] sm:$0xff]  ;;  %v4663_v33 = vld [vmem:[%s11816_s2 + $0x110] sm:$0xff] }
 0xb99   :  { %v4665_v18 = vld [vmem:[%s11816_s2 + $0x120] sm:$0xff] }
 0xb9a   :  { %8099 = vmatpush1.bf16.msra.mxu0 %v8098_v52  ;;  %v4666_v52 = vld [vmem:[%s11816_s2 + $0x128] sm:$0xff] }
 0xb9b   :  { %v4909_v14 = vpop.f32.mrb[232].mxu1  ;;  %8100 = vmatprep.subr.bf16.mxu0 %v12448_v27 }
 0xb9c   :  { %v4911_v51 = vpop.f32.mrb[233].mxu1 }
 0xb9d   :  { %v4667_v51 = vld [vmem:[%s11816_s2 + $0x130] sm:$0xff] }
 0xb9f   :  { %v4914_v28 = vpop.f32.mrb[234].mxu1 }
 0xba0   :  { %v8101_v41 = vpack.c.bf16 %v4914_v28, %v4909_v14  ;;  %v4916_v9 = vpop.f32.mrb[235].mxu1  ;;  %v4668_v14 = vld [vmem:[%s11816_s2 + $0x138] sm:$0xff]  ;;  %v4670_v28 = vld [vmem:[%s11816_s2 + $0x148] sm:$0xff] }
 0xba1   :  { %v4672_v9 = vld [vmem:[%s11816_s2 + $0x158] sm:$0xff] }
 0xba2   :  { %8102 = vmatpush1.bf16.msra.mxu0 %v8101_v41  ;;  %v4669_v41 = vld [vmem:[%s11816_s2 + $0x140] sm:$0xff] }
 0xba3   :  { %v4919_v20 = vpop.f32.mrb[236].mxu1  ;;  %8103 = vmatprep.subr.bf16.mxu0 %v12448_v27 }
 0xba4   :  { %v4921_v57 = vpop.f32.mrb[237].mxu1 }
 0xba5   :  { %v4674_v57 = vld [vmem:[%s11816_s2 + $0x168] sm:$0xff] }
 0xba7   :  { %v4924_v44 = vpop.f32.mrb[238].mxu1 }
 0xba8   :  { %v8104_v22 = vpack.c.bf16 %v4924_v44, %v4919_v20  ;;  %v4926_v53 = vpop.f32.mrb[239].mxu1  ;;  %v4671_v20 = vld [vmem:[%s11816_s2 + $0x150] sm:$0xff]  ;;  %v4673_v44 = vld [vmem:[%s11816_s2 + $0x160] sm:$0xff] }
 0xba9   :  { %v4675_v53 = vld [vmem:[%s11816_s2 + $0x170] sm:$0xff] }
 0xbaa   :  { %8105 = vmatpush1.bf16.msra.mxu0 %v8104_v22  ;;  %v4676_v22 = vld [vmem:[%s11816_s2 + $0x178] sm:$0xff]  ;;  %s8226_s2 = spop %8225 }
 0xbab   :  { %v4929_v43 = vpop.f32.mrb[240].mxu1  ;;  %8106 = vmatprep.subr.bf16.mxu0 %v12448_v27 }
 0xbac   :  { %v4931_v31 = vpop.f32.mrb[241].mxu1 }
 0xbaf   :  { %v4934_v21 = vpop.f32.mrb[242].mxu1 }
 0xbb0   :  { %v8107_v36 = vpack.c.bf16 %v4934_v21, %v4929_v43  ;;  %v4936_v49 = vpop.f32.mrb[243].mxu1 }
 0xbb2   :  { %8108 = vmatpush1.bf16.msra.mxu0 %v8107_v36 }
 0xbb3   :  { %v4939_v54 = vpop.f32.mrb[244].mxu1  ;;  %8109 = vmatprep.subr.bf16.mxu0 %v12448_v27 }
 0xbb4   :  { %v4941_v10 = vpop.f32.mrb[245].mxu1 }
 0xbb7   :  { %v4944_v59 = vpop.f32.mrb[246].mxu1 }
 0xbb8   :  { %v8110_v3 = vpack.c.bf16 %v4944_v59, %v4939_v54  ;;  %v4946_v16 = vpop.f32.mrb[247].mxu1 }
 0xbba   :  { %8111 = vmatpush1.bf16.msra.mxu0 %v8110_v3 }
 0xbbb   :  { %v4949_v19 = vpop.f32.mrb[248].mxu1  ;;  %8112 = vmatprep.subr.bf16.mxu0 %v12448_v27 }
 0xbbc   :  { %v4951_v37 = vpop.f32.mrb[249].mxu1 }
 0xbbf   :  { %v4954_v50 = vpop.f32.mrb[250].mxu1 }
 0xbc0   :  { %v8113_v0 = vpack.c.bf16 %v4954_v50, %v4949_v19  ;;  %v4956_v38 = vpop.f32.mrb[251].mxu1 }
 0xbc2   :  { %8114 = vmatpush1.bf16.msra.mxu0 %v8113_v0 }
 0xbc3   :  { %8199 = vmatprep.subr.bf16.mxu0 %v12448_v27 }
 0xbc5   :  { %5095 = vmatmul.mubr.f32.vlgmr.msra.gmra.mrb[252].mxu0 %v4629_v26 }
 0xbc6   :  { %7140 = vmatprep.mubr.msk.f32.mxu0 %vm1091_vm4, %v4632_v60 }
 0xbc9   :  { %5100 = vmatmul.mubr.f32.gmra.mrb[254].mxu0 %v4631_v46 }
 0xbca   :  { %7141 = vmatprep.mubr.msk.f32.mxu0 %vm1091_vm4, %v4634_v25 }
 0xbcd   :  { %5105 = vmatmul.mubr.f32.gmra.mrb[0].mxu0 %v4633_v6 }
 0xbce   :  { %7142 = vmatprep.mubr.msk.f32.mxu0 %vm1091_vm4, %v4636_v12 }
 0xbd1   :  { %5110 = vmatmul.mubr.f32.gmra.mrb[2].mxu0 %v4635_v29 }
 0xbd2   :  { %7143 = vmatprep.mubr.msk.f32.mxu0 %vm1091_vm4, %v4638_v45 }
 0xbd5   :  { %5115 = vmatmul.mubr.f32.gmra.mrb[4].mxu0 %v4637_v62 }
 0xbd6   :  { %7144 = vmatprep.mubr.msk.f32.mxu0 %vm1091_vm4, %v4640_v30 }
 0xbd9   :  { %5120 = vmatmul.mubr.f32.gmra.mrb[6].mxu0 %v4639_v5 }
 0xbda   :  { %7145 = vmatprep.mubr.msk.f32.mxu0 %vm1091_vm4, %v4642_v11 }
 0xbdd   :  { %5125 = vmatmul.mubr.f32.gmra.mrb[8].mxu0 %v4641_v24 }
 0xbde   :  { %7146 = vmatprep.mubr.msk.f32.mxu0 %vm1091_vm4, %v4644_v55 }
 0xbe1   :  { %5130 = vmatmul.mubr.f32.gmra.mrb[10].mxu0 %v4643_v8 }
 0xbe2   :  { %7147 = vmatprep.mubr.msk.f32.mxu0 %vm1091_vm4, %v4646_v40 }
 0xbe5   :  { %5135 = vmatmul.mubr.f32.gmra.mrb[12].mxu0 %v4645_v61 }
 0xbe6   :  { %7148 = vmatprep.mubr.msk.f32.mxu0 %vm1091_vm4, %v4648_v13 }
 0xbe9   :  { %5140 = vmatmul.mubr.f32.gmra.mrb[14].mxu0 %v4647_v58 }
 0xbea   :  { %7149 = vmatprep.mubr.msk.f32.mxu0 %vm1091_vm4, %v4650_v48 }
 0xbed   :  { %5145 = vmatmul.mubr.f32.gmra.mrb[16].mxu0 %v4649_v56 }
 0xbee   :  { %7150 = vmatprep.mubr.msk.f32.mxu0 %vm1091_vm4, %v4652_v1 }
 0xbf1   :  { %5150 = vmatmul.mubr.f32.gmra.mrb[18].mxu0 %v4651_v17 }
 0xbf2   :  { %7151 = vmatprep.mubr.msk.f32.mxu0 %vm1091_vm4, %v4654_v42 }
 0xbf5   :  { %5155 = vmatmul.mubr.f32.gmra.mrb[20].mxu0 %v4653_v23 }
 0xbf6   :  { %7152 = vmatprep.mubr.msk.f32.mxu0 %vm1091_vm4, %v4656_v32 }
 0xbf9   :  { %5160 = vmatmul.mubr.f32.gmra.mrb[22].mxu0 %v4655_v4 }
 0xbfa   :  { %7153 = vmatprep.mubr.msk.f32.mxu0 %vm1091_vm4, %v4658_v63 }
 0xbfd   :  { %5165 = vmatmul.mubr.f32.gmra.mrb[24].mxu0 %v4657_v47 }
 0xbfe   :  { %7154 = vmatprep.mubr.msk.f32.mxu0 %vm1091_vm4, %v4660_v35 }
 0xc01   :  { %5170 = vmatmul.mubr.f32.gmra.mrb[26].mxu0 %v4659_v15 }
 0xc02   :  { %7155 = vmatprep.mubr.msk.f32.mxu0 %vm1091_vm4, %v4662_v2 }
 0xc05   :  { %5175 = vmatmul.mubr.f32.gmra.mrb[28].mxu0 %v4661_v39 }
 0xc06   :  { %7156 = vmatprep.mubr.msk.f32.mxu0 %vm1091_vm4, %v4664_v34 }
 0xc09   :  { %5180 = vmatmul.mubr.f32.gmra.mrb[30].mxu0 %v4663_v33 }
 0xc0a   :  { %7157 = vmatprep.mubr.msk.f32.mxu0 %vm1091_vm4, %v4666_v52 }
 0xc0d   :  { %5185 = vmatmul.mubr.f32.gmra.mrb[32].mxu0 %v4665_v18 }
 0xc0e   :  { %7158 = vmatprep.mubr.msk.f32.mxu0 %vm1091_vm4, %v4668_v14 }
 0xc11   :  { %5190 = vmatmul.mubr.f32.gmra.mrb[34].mxu0 %v4667_v51 }
 0xc12   :  { %7159 = vmatprep.mubr.msk.f32.mxu0 %vm1091_vm4, %v4670_v28 }
 0xc15   :  { %5195 = vmatmul.mubr.f32.gmra.mrb[36].mxu0 %v4669_v41 }
 0xc16   :  { %7160 = vmatprep.mubr.msk.f32.mxu0 %vm1091_vm4, %v4672_v9 }
 0xc19   :  { %5200 = vmatmul.mubr.f32.gmra.mrb[38].mxu0 %v4671_v20 }
 0xc1a   :  { %7161 = vmatprep.mubr.msk.f32.mxu0 %vm1091_vm4, %v4674_v57 }
 0xc1d   :  { %5205 = vmatmul.mubr.f32.gmra.mrb[40].mxu0 %v4673_v44 }
 0xc1e   :  { %7162 = vmatprep.mubr.msk.f32.mxu0 %vm1091_vm4, %v4676_v22  ;;  %vm6539_vm4 = vcmask 261120  }
 0xc21   :  { %5210 = vmatmul.mubr.f32.gmra.mrb[42].mxu0 %v4675_v53 }
 0xc22   :  { %7551 = vmatprep.mubr.msk.f32.mxu0 %vm8310_vm2, %v12297_v7 }
 0xc98   :  { %v5096_v43 = vpop.f32.mrb[252].mxu0 }
 0xc99   :  { %v5098_v31 = vpop.f32.mrb[253].mxu0 }
 0xc9c   :  { %v5101_v21 = vpop.f32.mrb[254].mxu0 }
 0xc9d   :  { %v8115_v36 = vpack.c.bf16 %v5101_v21, %v5096_v43  ;;  %v5103_v49 = vpop.f32.mrb[255].mxu0 }
 0xc9f   :  { %8116 = vmatprep.subr.bf16.mxu1 %v8115_v36 }
 0xca0   :  { %8118 = vmatpush3.bf16.msra.mxu1 %v8115_v36  ;;  %v5106_v54 = vpop.f32.mrb[0].mxu0 }
 0xca1   :  { %v5108_v10 = vpop.f32.mrb[1].mxu0  ;;  %7403 = vmatprep.mubr.msk.f32.mxu1 %vm335_vm3, %v5106_v54 }
 0xca4   :  { %v5111_v59 = vpop.f32.mrb[2].mxu0 }
 0xca5   :  { %v5113_v3 = vpop.f32.mrb[3].mxu0  ;;  %7404 = vmatmul.mubr.msk.f32.vlgmr.msra.gmra.mrb[252].mxu1 %vm335_vm3, %v5111_v59 }
 0xca8   :  { %v5116_v16 = vpop.f32.mrb[4].mxu0 }
 0xca9   :  { %v5118_v19 = vpop.f32.mrb[5].mxu0 }
 0xcac   :  { %v5121_v37 = vpop.f32.mrb[6].mxu0 }
 0xcad   :  { %v8119_v50 = vpack.c.bf16 %v5121_v37, %v5116_v16  ;;  %v5123_v0 = vpop.f32.mrb[7].mxu0 }
 0xcaf   :  { %8120 = vmatprep.subr.bf16.mxu1 %v8119_v50 }
 0xcb0   :  { %v5126_v38 = vpop.f32.mrb[8].mxu0  ;;  %8122 = vmatpush3.bf16.msra.mxu1 %v8119_v50 }
 0xcb1   :  { %v5128_v26 = vpop.f32.mrb[9].mxu0  ;;  %7410 = vmatprep.mubr.msk.f32.mxu1 %vm335_vm3, %v5126_v38  ;;  %v1040_v38 = vstv %s8226_s2 }
 0xcb2   :  { %v12449_v26 = vld [vmem:[#allocation80_spill] sm:$0xff] }
 0xcb4   :  { %v5131_v60 = vpop.f32.mrb[10].mxu0 }
 0xcb5   :  { %v5133_v46 = vpop.f32.mrb[11].mxu0  ;;  %7411 = vmatmul.mubr.msk.f32.vlgmr.msra.gmra.mrb[254].mxu1 %vm335_vm3, %v5131_v60  ;;  %v1041_v60 = vmul.f32 %v1040_v38, %v12449_v26 }
 0xcb6   :  { %v12450_v46 = vld [vmem:[#allocation81_spill] sm:$0xff] }
 0xcb8   :  { %v5136_v25 = vpop.f32.mrb[12].mxu0 }
 0xcb9   :  { %v5138_v6 = vpop.f32.mrb[13].mxu0 }
 0xcbc   :  { %v5141_v12 = vpop.f32.mrb[14].mxu0 }
 0xcbd   :  { %v8123_v29 = vpack.c.bf16 %v5141_v12, %v5136_v25  ;;  %v5143_v45 = vpop.f32.mrb[15].mxu0  ;;  %v1042_v25 = vmul.f32 %v1040_v38, %v12450_v46  ;;  %v6221_v38 = vld [vmem:[%s11814_s0 + $0xa8] sm:$0x1] }
 0xcbf   :  { %8124 = vmatprep.subr.bf16.mxu1 %v8123_v29  ;;  %v8159_v45 = vpack.c.bf16 %v1042_v25, %v1041_v60  ;;  %v6533_v25 = vld [vmem:[%s11814_s0 + $0x130] sm:$0xff] }
 0xcc0   :  { %v5146_v62 = vpop.f32.mrb[16].mxu0  ;;  %8126 = vmatpush3.bf16.msra.mxu1 %v8123_v29 }
 0xcc1   :  { %v5148_v30 = vpop.f32.mrb[17].mxu0  ;;  %7417 = vmatprep.mubr.msk.f32.mxu1 %vm335_vm3, %v5146_v62 }
 0xcc4   :  { %v5151_v5 = vpop.f32.mrb[18].mxu0 }
 0xcc5   :  { %v5153_v11 = vpop.f32.mrb[19].mxu0  ;;  %7418 = vmatmul.mubr.msk.f32.vlgmr.msra.gmra.mrb[0].mxu1 %vm335_vm3, %v5151_v5 }
 0xcc8   :  { %v5156_v24 = vpop.f32.mrb[20].mxu0 }
 0xcc9   :  { %v5158_v55 = vpop.f32.mrb[21].mxu0 }
 0xccc   :  { %v5161_v8 = vpop.f32.mrb[22].mxu0 }
 0xccd   :  { %v8127_v40 = vpack.c.bf16 %v5161_v8, %v5156_v24  ;;  %v5163_v61 = vpop.f32.mrb[23].mxu0  ;;  %v6225_v8 = vld [vmem:[%s11814_s0 + $0xb0] sm:$0xff] }
 0xccf   :  { %8128 = vmatprep.subr.bf16.mxu1 %v8127_v40 }
 0xcd0   :  { %v5166_v13 = vpop.f32.mrb[24].mxu0  ;;  %8130 = vmatpush3.bf16.msra.mxu1 %v8127_v40  ;;  %v6226_v40 = vld [vmem:[%s11814_s0 + $0xb8] sm:$0xff] }
 0xcd1   :  { %v5168_v58 = vpop.f32.mrb[25].mxu0  ;;  %7424 = vmatprep.mubr.msk.f32.mxu1 %vm335_vm3, %v5166_v13  ;;  %v11670_v61 = vpack.c.bf16 %v6226_v40, %v6225_v8  ;;  %v6227_v13 = vld [vmem:[%s11814_s0 + $0xc0] sm:$0xff]  ;;  %v6525_v40 = vld [vmem:[%s11814_s0 + $0x110] sm:$0x1] }
 0xcd2   :  { %v6228_v58 = vld [vmem:[%s11814_s0 + $0xc8] sm:$0xff] }
 0xcd4   :  { %v5171_v48 = vpop.f32.mrb[26].mxu0 }
 0xcd5   :  { %7425 = vmatmul.mubr.msk.f32.vlgmr.msra.gmra.mrb[2].mxu1 %vm335_vm3, %v5171_v48  ;;  %v5173_v56 = vpop.f32.mrb[27].mxu0  ;;  %v11680_v48 = vpack.c.bf16 %v6228_v58, %v6227_v13 }
 0xcd6   :  { %v6229_v56 = vld [vmem:[%s11814_s0 + $0xd0] sm:$0xff] }
 0xcd8   :  { %v5176_v1 = vpop.f32.mrb[28].mxu0 }
 0xcd9   :  { %v5178_v17 = vpop.f32.mrb[29].mxu0 }
 0xcdc   :  { %v5181_v42 = vpop.f32.mrb[30].mxu0 }
 0xcdd   :  { %v8131_v23 = vpack.c.bf16 %v5181_v42, %v5176_v1  ;;  %v5183_v32 = vpop.f32.mrb[31].mxu0  ;;  %v6230_v1 = vld [vmem:[%s11814_s0 + $0xd8] sm:$0xff]  ;;  %v6531_v42 = vld [vmem:[%s11814_s0 + $0x120] sm:$0xff] }
 0xcde   :  { %v11690_v17 = vpack.c.bf16 %v6230_v1, %v6229_v56 }
 0xcdf   :  { %8132 = vmatprep.subr.bf16.mxu1 %v8131_v23 }
 0xce0   :  { %v5186_v4 = vpop.f32.mrb[32].mxu0  ;;  %8134 = vmatpush3.bf16.msra.mxu1 %v8131_v23  ;;  %v6532_v23 = vld [vmem:[%s11814_s0 + $0x128] sm:$0xff] }
 0xce1   :  { %v5188_v63 = vpop.f32.mrb[33].mxu0  ;;  %7431 = vmatprep.mubr.msk.f32.mxu1 %vm335_vm3, %v5186_v4  ;;  %v11700_v32 = vpack.c.bf16 %v6532_v23, %v6531_v42  ;;  %v6527_v42 = vld [vmem:[%s11814_s0 + $0x118] sm:$0x1] }
 0xce3   :  { %8201 = vmatpush3.bf16.msra.mxu0 %v11700_v32 }
 0xce4   :  { %v5191_v47 = vpop.f32.mrb[34].mxu0  ;;  %8202 = vmatprep.subr.bf16.mxu0 %v12448_v27 }
 0xce5   :  { %v5193_v35 = vpop.f32.mrb[35].mxu0  ;;  %7432 = vmatmul.mubr.msk.f32.vlgmr.msra.gmra.mrb[4].mxu1 %vm335_vm3, %v5191_v47 }
 0xce8   :  { %v5196_v15 = vpop.f32.mrb[36].mxu0 }
 0xce9   :  { %v5198_v2 = vpop.f32.mrb[37].mxu0 }
 0xcec   :  { %v5201_v39 = vpop.f32.mrb[38].mxu0 }
 0xced   :  { %v8135_v34 = vpack.c.bf16 %v5201_v39, %v5196_v15  ;;  %v5203_v33 = vpop.f32.mrb[39].mxu0 }
 0xcef   :  { %8136 = vmatprep.subr.bf16.mxu1 %v8135_v34 }
 0xcf0   :  { %v5206_v52 = vpop.f32.mrb[40].mxu0  ;;  %8138 = vmatpush3.bf16.msra.mxu1 %v8135_v34 }
 0xcf1   :  { %v5208_v18 = vpop.f32.mrb[41].mxu0  ;;  %7438 = vmatprep.mubr.msk.f32.mxu1 %vm335_vm3, %v5206_v52 }
 0xcf4   :  { %v5211_v14 = vpop.f32.mrb[42].mxu0 }
 0xcf5   :  { %7439 = vmatmul.mubr.msk.f32.vlgmr.msra.gmra.mrb[6].mxu1 %vm335_vm3, %v5211_v14  ;;  %v5213_v51 = vpop.f32.mrb[43].mxu0 }
 0xd78   :  { %v7405_v28 = vpop.f32.mrb[252].mxu1 }
 0xd79   :  { %v5287_v41 = vpop.f32.mrb[253].mxu1 }
 0xd7a   :  { %v8139_v9 = vpack.c.bf16 %v7405_v28, %v5287_v41  ;;  %v6209_v41 = vld [vmem:[%s11814_s0 + $0x90] sm:$0x1] }
 0xd7c   :  { %8140 = vmatprep.subr.bf16.mxu1 %v8139_v9 }
 0xd7d   :  { %8142 = vmatpush3.bf16.msra.mxu1 %v8139_v9  ;;  %v6212_v9 = vld [vmem:[%s11814_s0 + $0x98] sm:$0x1] }
 0xd88   :  { %v7412_v20 = vpop.f32.mrb[254].mxu1 }
 0xd89   :  { %v5368_v57 = vpop.f32.mrb[255].mxu1 }
 0xd8a   :  { %7445 = vmatprep.mubr.msk.f32.mxu1 %vm335_vm3, %v5368_v57 }
 0xd8b   :  { %7446 = vmatmul.mubr.msk.f32.vlgmr.msra.gmra.mrb[8].mxu1 %vm335_vm3, %v7412_v20 }
 0xd98   :  { %v7419_v44 = vpop.f32.mrb[0].mxu1 }
 0xd99   :  { %v5449_v22 = vpop.f32.mrb[1].mxu1 }
 0xd9a   :  { %v8143_v53 = vpack.c.bf16 %v7419_v44, %v5449_v22 }
 0xd9c   :  { %8144 = vmatprep.subr.bf16.mxu1 %v8143_v53 }
 0xd9d   :  { %8146 = vmatpush3.bf16.msra.mxu1 %v8143_v53  ;;  %v6216_v53 = vld [vmem:[%s11814_s0 + $0xa0] sm:$0x1] }
 0xda8   :  { %v7426_v43 = vpop.f32.mrb[2].mxu1 }
 0xda9   :  { %v5530_v31 = vpop.f32.mrb[3].mxu1 }
 0xdaa   :  { %7452 = vmatprep.mubr.msk.f32.mxu1 %vm335_vm3, %v5530_v31  ;;  %v6231_v31 = vld [vmem:[%s11814_s0 + $0xe0] sm:$0xff] }
 0xdab   :  { %7453 = vmatmul.mubr.msk.f32.vlgmr.msra.gmra.mrb[10].mxu1 %vm335_vm3, %v7426_v43 }
 0xdb8   :  { %v7433_v21 = vpop.f32.mrb[4].mxu1 }
 0xdb9   :  { %v5611_v36 = vpop.f32.mrb[5].mxu1 }
 0xdba   :  { %v8147_v49 = vpack.c.bf16 %v7433_v21, %v5611_v36  ;;  %v6232_v21 = vld [vmem:[%s11814_s0 + $0xe8] sm:$0xff] }
 0xdbc   :  { %8148 = vmatprep.subr.bf16.mxu1 %v8147_v49 }
 0xdbd   :  { %8150 = vmatpush3.bf16.msra.mxu1 %v8147_v49  ;;  %v8173_v49 = vpack.c.bf16 %v6232_v21, %v6231_v31 }
 0xdc8   :  { %v7440_v54 = vpop.f32.mrb[6].mxu1 }
 0xdc9   :  { %v5692_v10 = vpop.f32.mrb[7].mxu1 }
 0xdca   :  { %7459 = vmatprep.mubr.msk.f32.mxu1 %vm335_vm3, %v5692_v10 }
 0xdcb   :  { %7460 = vmatmul.mubr.msk.f32.vlgmr.msra.gmra.mrb[12].mxu1 %vm335_vm3, %v7440_v54 }
 0xe5e   :  { %v7447_v59 = vpop.f32.mrb[8].mxu1 }
 0xe5f   :  { %v5773_v3 = vpop.f32.mrb[9].mxu1 }
 0xe60   :  { %v8151_v16 = vpack.c.bf16 %v7447_v59, %v5773_v3  ;;  %v6233_v3 = vld [vmem:[%s11814_s0 + $0xf0] sm:$0xff] }
 0xe62   :  { %8152 = vmatprep.subr.bf16.mxu1 %v8151_v16 }
 0xe63   :  { %8154 = vmatpush3.bf16.msra.mxu1 %v8151_v16  ;;  %v6234_v16 = vld [vmem:[%s11814_s0 + $0xf8] sm:$0xff] }
 0xe7e   :  { %v7454_v19 = vpop.f32.mrb[10].mxu1 }
 0xe7f   :  { %v5854_v37 = vpop.f32.mrb[11].mxu1 }
 0xe80   :  { %7466 = vmatprep.mubr.msk.f32.mxu1 %vm335_vm3, %v5854_v37 }
 0xe81   :  { %7467 = vmatmul.mubr.msk.f32.vlgmr.msra.gmra.mrb[14].mxu1 %vm335_vm3, %v7454_v19  ;;  %v8176_v19 = vpack.c.bf16 %v6234_v16, %v6233_v3 }
 0xe9e   :  { %v7461_v50 = vpop.f32.mrb[12].mxu1 }
 0xe9f   :  { %v5935_v0 = vpop.f32.mrb[13].mxu1 }
 0xea0   :  { %7473 = vmatprep.mubr.msk.f32.mxu1 %vm335_vm3, %v5935_v0  ;;  %v6236_v0 = vld [vmem:[%s11814_s0 + $0x108] sm:$0xff] }
 0xf54   :  { %v7468_v6 = vpop.f32.mrb[14].mxu1 }
 0xf55   :  { %v6016_v12 = vpop.f32.mrb[15].mxu1 }
 0xf56   :  { %v8155_v29 = vpack.c.bf16 %v7468_v6, %v6016_v12  ;;  %v6534_v6 = vld [vmem:[%s11814_s0 + $0x138] sm:$0xff] }
 0xf57   :  { %v8203_v12 = vpack.c.bf16 %v6534_v6, %v6533_v25 }
 0xf58   :  { %8156 = vmatprep.subr.bf16.mxu1 %v8155_v29 }
 0xf59   :  { %8158 = vmatpush3.bf16.msra.mxu1 %v8155_v29  ;;  %8204 = vmatpush3.bf16.msra.mxu0 %v8203_v12  ;;  %v6535_v29 = vld [vmem:[%s11814_s0 + $0x140] sm:$0xff] }
 0xf5a   :  { %8160 = vmatprep.subr.bf16.mxu1 %v8159_v45  ;;  %8211 = vmatprep.subr.bf16.mxu0 %v12448_v27 }
 0xf5c   :  { %7474 = vmatmul.mubr.msk.f32.vlgmr.msra.gmra.mrb[16].mxu1 %vm335_vm3, %v7461_v50  ;;  %v6235_v50 = vld [vmem:[%s11814_s0 + $0x100] sm:$0xff] }
 0xf5d   :  { %8162 = vmatpush3.bf16.msra.mxu1 %v8159_v45  ;;  %v8179_v26 = vpack.c.bf16 %v6236_v0, %v6235_v50  ;;  %v6536_v45 = vld [vmem:[%s11814_s0 + $0x148] sm:$0xff] }
 0xf5e   :  { %8163 = vmatprep.subr.bf16.mxu1 %v12448_v27 }
0x102f   :  { %v7475_v62 = vpop.f32.mrb[16].mxu1 }
0x1030   :  { %v6097_v30 = vpop.f32.mrb[17].mxu1 }
0x1031   :  { %7480 = vmatprep.mubr.msk.f32.mxu1 %vm335_vm3, %v6097_v30  ;;  %v6537_v30 = vld [vmem:[%s11814_s0 + $0x150] sm:$0xff] }
0x1032   :  { %7481 = vmatmul.mubr.msk.f32.vlgmr.msra.gmra.mrb[18].mxu1 %vm335_vm3, %v7475_v62  ;;  %vm6237_vm3 = vcmask 392192   ;;  %v8206_v62 = vpack.c.bf16 %v6536_v45, %v6535_v29 }
0x1033   :  { %7495 = vmatprep.mubr.msk.f32.mxu1 %vm8310_vm2, %v12297_v7  ;;  %8165 = vmatpush3.bf16.msra.mxu1 %v11670_v61 }
0x1034   :  { %8166 = vmatprep.subr.bf16.mxu1 %v12448_v27 }
0x1037   :  { %8168 = vmatpush3.bf16.msra.mxu1 %v11680_v48 }
0x1038   :  { %8169 = vmatprep.subr.bf16.mxu1 %v12448_v27 }
0x103b   :  { %8171 = vmatpush3.bf16.msra.mxu1 %v11690_v17 }
0x103c   :  { %8172 = vmatprep.subr.bf16.mxu1 %v12448_v27 }
0x1105   :  { %v7482_v5 = vpop.f32.mrb[18].mxu1 }
0x1106   :  { %v6178_v11 = vpop.f32.mrb[19].mxu1  ;;  %v6198_v24 = vsel %vm1026_vm9, %v7482_v5, 0.0  ;;  %v6538_v5 = vld [vmem:[%s11814_s0 + $0x158] sm:$0xff] }
0x1107   :  { %6199 = vadd.xlane.f32.xlu0 %v6198_v24  ;;  %v6187_v55 = vsel %vm1026_vm9, %v6178_v11, 0.0  ;;  %v8209_v11 = vpack.c.bf16 %v6538_v5, %v6537_v30 }
0x1108   :  { %6188 = vadd.xlane.f32.xlu1 %v6187_v55 }
0x1194   :  { %v6200_v4 = vpop.xlane.xlu0 %6199 }
0x1195   :  { %v6201_v63 = vrot.slane %v6200_v4, 4  ;;  %v6189_v47 = vpop.xlane.xlu1 %6188 }
0x1196   :  { %v6190_v35 = vrot.slane %v6189_v47, 4 }
0x1197   :  { %v6202_v15 = vadd.f32 %v6201_v63, %v6200_v4 }
0x1198   :  { %v6191_v2 = vadd.f32 %v6190_v35, %v6189_v47 }
0x1199   :  { %v6203_v39 = vrot.slane %v6202_v15, 2 }
0x119a   :  { %v6192_v34 = vrot.slane %v6191_v2, 2 }
0x119b   :  { %v6204_v33 = vadd.f32 %v6203_v39, %v6202_v15 }
0x119c   :  { %v6193_v52 = vadd.f32 %v6192_v34, %v6191_v2 }
0x119d   :  { %v6205_v18 = vrot.slane %v6204_v33, 1 }
0x119e   :  { %v6194_v14 = vrot.slane %v6193_v52, 1 }
0x119f   :  { %v6206_v51 = vadd.f32 %v6205_v18, %v6204_v33 }
0x11a0   :  { %v6195_v28 = vadd.f32 %v6194_v14, %v6193_v52  ;;  %v6827_v52 = vld [vmem:[%s11814_s0 + $0x160] sm:$0x1] }
0x11a2   :  { %8227 = vpush %v6195_v28 }
0x11a3   :  { %8229 = vpush %v6206_v51 }
0x11d3   :  { %s8228_s3 = spop %8227 }
0x11d4   :  { %s6197_s30 = smul.f32 0.125, %s8228_s3  ;;  %s8230_s7 = spop %8229 }
0x11d5   :  { %s6208_s9 = smul.f32 0.125, %s8230_s7 }
0x11d6   :  { %v6210_v20 = vstv %s6197_s30 }
0x11d7   :  { %v6211_v57 = vmul.f32 %v6210_v20, %v6209_v41  ;;  %v6213_v44 = vstv %s6208_s9  ;;  %v6218_v54 = vmul.f32 %v6212_v9, %v6210_v20 }
0x11d8   :  { %v6214_v22 = vmul.f32 %v6213_v44, %v6212_v9  ;;  %v6219_v10 = vmul.f32 %v6213_v44, %v6209_v41 }
0x11da   :  { %v6215_v43 = vsub.f32 %v6211_v57, %v6214_v22  ;;  %v6220_v37 = vadd.f32 %v6219_v10, %v6218_v54 }
0x11dc   :  { %v6217_v36 = vadd.f32 %v6216_v53, %v6215_v43  ;;  %v6222_v60 = vadd.f32 %v6221_v38, %v6220_v37 }
0x11de   :  { %v6223_v59 = vmax.f32 %v6217_v36, 0.0  ;;  %v6224_v46 = vmax.f32 %v6222_v60, 0.0 }
0x11e0   :  { %7496 = vmatmul.mubr.msk.f32.vlgmr.msra.gmra.mrb[20].mxu1 %vm6237_vm3, %v6223_v59 }
0x11e1   :  { %8174 = vmatpush3.bf16.msra.mxu1 %v8173_v49  ;;  %7510 = vmatprep.mubr.msk.f32.mxu1 %vm8310_vm2, %v12297_v7 }
0x11e2   :  { %8175 = vmatprep.subr.bf16.mxu1 %v12448_v27 }
0x11e5   :  { %8177 = vmatpush3.bf16.msra.mxu1 %v8176_v19 }
0x11e6   :  { %8178 = vmatprep.subr.bf16.mxu1 %v12448_v27 }
0x11e9   :  { %8180 = vmatpush3.bf16.msra.mxu1 %v8179_v26 }
0x11ea   :  { %8181 = vmatprep.subr.bf16.mxu1 %v12448_v27 }
0x11ec   :  { %7511 = vmatmul.mubr.msk.f32.vlgmr.msra.gmra.mrb[22].mxu1 %vm6237_vm3, %v6224_v46 }
0x11ed   :  { %8183 = vmatpush3.bf16.msra.mxu1 %v11670_v61  ;;  %7525 = vmatprep.mubr.msk.f32.mxu1 %vm8310_vm2, %v12297_v7 }
0x11ee   :  { %8184 = vmatprep.subr.bf16.mxu1 %v12448_v27 }
0x11f1   :  { %8186 = vmatpush3.bf16.msra.mxu1 %v11680_v48 }
0x11f2   :  { %8187 = vmatprep.subr.bf16.mxu1 %v12448_v27 }
0x11f5   :  { %8189 = vmatpush3.bf16.msra.mxu1 %v11690_v17 }
0x11f6   :  { %8190 = vmatprep.subr.bf16.mxu1 %v12448_v27 }
0x11f8   :  { %7526 = vmatmul.mubr.msk.f32.vlgmr.msra.gmra.mrb[24].mxu1 %vm6237_vm3, %v6224_v46 }
0x11f9   :  { %8192 = vmatpush3.bf16.msra.mxu1 %v8173_v49  ;;  %7540 = vmatprep.mubr.msk.f32.mxu1 %vm8310_vm2, %v12297_v7 }
0x11fa   :  { %8193 = vmatprep.subr.bf16.mxu1 %v12448_v27 }
0x11fd   :  { %8195 = vmatpush3.bf16.msra.mxu1 %v8176_v19 }
0x11fe   :  { %8196 = vmatprep.subr.bf16.mxu1 %v12448_v27 }
0x1201   :  { %8198 = vmatpush3.bf16.msra.mxu1 %v8179_v26 }
0x1202   :  { %8205 = vmatprep.subr.bf16.mxu1 %v12448_v27 }
0x1204   :  { %7541 = vmatmul.mubr.msk.f32.vlgmr.msra.gmra.mrb[26].mxu1 %vm6237_vm3, %v6223_v59 }
0x1205   :  { %7562 = vmatprep.mubr.msk.f32.mxu1 %vm8310_vm2, %v12297_v7  ;;  %8207 = vmatpush3.bf16.msra.mxu1 %v8206_v62 }
0x1206   :  { %8208 = vmatprep.subr.bf16.mxu1 %v12448_v27 }
0x1209   :  { %8210 = vmatpush3.bf16.msra.mxu1 %v8209_v11 }
0x120a   :  { %8217 = vmatprep.subr.bf16.mxu1 %v12448_v27 }
0x12b3   :  { %v6307_v24 = vpop.f32.mrb[20].mxu1 }
0x12b4   :  { %v7497_v55 = vpop.f32.mrb[21].mxu1 }
0x12bf   :  { %v6380_v8 = vpop.f32.mrb[22].mxu1 }
0x12c0   :  { %v6384_v61 = vsub.f32 %v6307_v24, %v6380_v8  ;;  %v7512_v13 = vpop.f32.mrb[23].mxu1 }
0x12c2   :  { %v6526_v58 = vadd.f32 %v6525_v40, %v6384_v61 }
0x12c4   :  { %v6529_v48 = vmax.f32 %v6526_v58, 0.0 }
0x12c6   :  { %7552 = vmatmul.mubr.msk.f32.vlgmr.msra.gmra.mrb[44].mxu0 %vm6539_vm4, %v6529_v48 }
0x12c7   :  { %8213 = vmatpush3.bf16.msra.mxu0 %v11700_v32  ;;  %7573 = vmatprep.mubr.msk.f32.mxu0 %vm8310_vm2, %v12297_v7 }
0x12c8   :  { %8214 = vmatprep.subr.bf16.mxu0 %v12448_v27 }
0x12cb   :  { %v6451_v56 = vpop.f32.mrb[24].mxu1  ;;  %8216 = vmatpush3.bf16.msra.mxu0 %v8203_v12 }
0x12cc   :  { %v7527_v1 = vpop.f32.mrb[25].mxu1 }
0x12d7   :  { %v6521_v17 = vpop.f32.mrb[26].mxu1 }
0x12d8   :  { %v6522_v23 = vadd.f32 %v6521_v17, %v6451_v56  ;;  %v7542_v4 = vpop.f32.mrb[27].mxu1 }
0x12da   :  { %v6528_v63 = vadd.f32 %v6527_v42, %v6522_v23 }
0x12dc   :  { %v6530_v47 = vmax.f32 %v6528_v63, 0.0 }
0x12de   :  { %7563 = vmatmul.mubr.msk.f32.vlgmr.msra.gmra.mrb[28].mxu1 %vm6539_vm4, %v6530_v47  ;;  %7574 = vmatmul.mubr.msk.f32.vlgmr.msra.gmra.mrb[46].mxu0 %vm6539_vm4, %v6530_v47 }
0x12df   :  { %8219 = vmatpush3.bf16.msra.mxu1 %v8206_v62  ;;  %7584 = vmatprep.mubr.msk.f32.mxu1 %vm8310_vm2, %v12297_v7  ;;  %v6829_v7 = vld [vmem:[%s11814_s0 + $0x168] sm:$0x1]  ;;  %vm6834_vm2 = vcmask 8192  }
0x12e0   :  { %8220 = vmatprep.subr.bf16.mxu1 %v12448_v27 }
0x12e3   :  { %8222 = vmatpush3.bf16.msra.mxu1 %v8209_v11 }
0x12e6   :  { %7585 = vmatmul.mubr.msk.f32.vlgmr.msra.gmra.mrb[30].mxu1 %vm6539_vm4, %v6529_v48 }
0x1399   :  { %v6609_v32 = vpop.f32.mrb[44].mxu0 }
0x139a   :  { %v7553_v35 = vpop.f32.mrb[45].mxu0 }
0x13b1   :  { %v6682_v15 = vpop.f32.mrb[28].mxu1  ;;  %v6753_v2 = vpop.f32.mrb[46].mxu0 }
0x13b2   :  { %v6686_v39 = vsub.f32 %v6609_v32, %v6682_v15  ;;  %v7564_v34 = vpop.f32.mrb[29].mxu1  ;;  %v7575_v33 = vpop.f32.mrb[47].mxu0 }
0x13b4   :  { %v6828_v27 = vadd.f32 %v6827_v52, %v6686_v39 }
0x13b6   :  { %v6831_v41 = vmul.f32 %v6828_v27, %v6828_v27 }
0x13b9   :  { %v6823_v18 = vpop.f32.mrb[30].mxu1 }
0x13ba   :  { %v6824_v14 = vadd.f32 %v6823_v18, %v6753_v2  ;;  %v7586_v51 = vpop.f32.mrb[31].mxu1 }
0x13bc   :  { %v6830_v28 = vadd.f32 %v6829_v7, %v6824_v14 }
0x13be   :  { %v6832_v9 = vmul.f32 %v6830_v28, %v6830_v28 }
0x13c0   :  { %v6833_v20 = vadd.f32 %v6832_v9, %v6831_v41 }
0x13c2   :  { %6835 = vst.msk [vmem:[#allocation2] sm:$0x1] %vm6834_vm2, %v6833_v20 }
0x13c3   :  { %8296 = shalt.err (!%p8293_p4)
}
0x13c4   :  { %s8297_s21 = scalar_lea.hbm %s11818_s4, 16 }
0x13c5   :  { %p8298_p5 = scmp.ne.s32.totalorder %s11818_s4, %s8297_s21  ;;  %p8301_p6 = scmp.lt.u32.totalorder %s8297_s21, %s11818_s4 }
0x13c7   :  { %p8303_p7 = pnand %p8301_p6, %p8298_p5 }
0x13c9   :  { %8306 = shalt.err (!%p8303_p7)
}
0x13ca   :  { %6845 = dma.vmem_to_hbm [thread:$0]  %s6843_s17, 16, %s11818_s4, [#allocation3]  }
0x13cb   :  { %8307 = dma.done.wait [#allocation3], 16  }
0x13cc   :  { %8308 = vsyncadd [#allocation3], 4294967280 }
0x13cd   :  { %6849 = vsyncpa [#allocation3], 1 }

</bundles_post_ra>
